<compile_context>
chip_gen: v7x
topology: tpu7x:2x2x1
jax: 0.10.0
libtpu: 0.0.40
codegen_flags: <defaults>
</compile_context>

<pallas_src>
import functools

import jax
import jax.numpy as jnp
from jax.experimental import pallas as pl
from jax.experimental.pallas import tpu as pltpu


def _round_up(x, m):
    return ((x + m - 1) // m) * m


# ----------------------------------------------------------------------------
# Kernel 1: tiled matmul + bias (+ReLU)   (stride-4 conv1 via im2col)
# ----------------------------------------------------------------------------
def _matmul_bias_kernel(x_ref, w_ref, b_ref, o_ref, acc_ref, *, relu):
    k = pl.program_id(1)

    @pl.when(k == 0)
    def _():
        acc_ref[...] = jnp.zeros_like(acc_ref)

    acc_ref[...] += jnp.dot(x_ref[...], w_ref[...],
                            preferred_element_type=jnp.float32)

    @pl.when(k == pl.num_programs(1) - 1)
    def _():
        r = acc_ref[...] + b_ref[...]
        if relu:
            r = jnp.maximum(r, 0.0)
        o_ref[...] = r


def matmul_bias_tiled(x_bf16, w_pad, b_pad, *, relu):
    """x:[M,K] bf16, w_pad:[Kp,Np] bf16 (zero padded), b_pad:[1,Np] f32 -> [Mp,Np] f32."""
    M, K = x_bf16.shape
    Kp, Np = w_pad.shape
    TM = 128
    Mp = _round_up(M, TM)
    if Kp <= 512:
        TK = Kp
    elif Kp % 512 == 0:
        TK = 512
    elif Kp % 256 == 0:
        TK = 256
    else:
        TK = 128
    xq = jnp.pad(x_bf16, ((0, Mp - M), (0, Kp - K)))

    return pl.pallas_call(
        functools.partial(_matmul_bias_kernel, relu=relu),
        out_shape=jax.ShapeDtypeStruct((Mp, Np), jnp.float32),
        grid=(Mp // TM, Kp // TK),
        in_specs=[
            pl.BlockSpec((TM, TK), lambda i, k: (i, k)),
            pl.BlockSpec((TK, Np), lambda i, k: (k, 0)),
            pl.BlockSpec((1, Np), lambda i, k: (0, 0)),
        ],
        out_specs=pl.BlockSpec((TM, Np), lambda i, k: (i, 0)),
        scratch_shapes=[pltpu.VMEM((TM, Np), jnp.float32)],
        compiler_params=pltpu.CompilerParams(
            dimension_semantics=("parallel", "arbitrary")),
    )(xq, w_pad, b_pad)


def conv1_im2col(x_nhwc, w_pad, b_pad, *, ksize, stride, pad, oc, relu):
    """Stride-4 conv: im2col (strided gather, glue) + tiled Pallas matmul."""
    N, H, W, C = x_nhwc.shape
    xp = jnp.pad(x_nhwc, ((0, 0), (pad, pad), (pad, pad), (0, 0)))
    OH = (H + 2 * pad - ksize) // stride + 1
    OW = (W + 2 * pad - ksize) // stride + 1
    cols = []
    for kh in range(ksize):
        for kw in range(ksize):
            cols.append(xp[:, kh:kh + stride * OH:stride,
                           kw:kw + stride * OW:stride, :])
    pat = jnp.stack(cols, axis=3).reshape(N * OH * OW, ksize * ksize * C)
    out = matmul_bias_tiled(pat.astype(jnp.bfloat16), w_pad, b_pad, relu=relu)
    return out[:N * OH * OW, :oc].reshape(N, OH, OW, oc)


# ----------------------------------------------------------------------------
# Kernel 2: direct stride-1 conv ("shifted-slab" implicit GEMM, no im2col)
# ----------------------------------------------------------------------------
def _conv_s1_kernel(x_ref, w_ref, b_ref, o_ref, *, offsets, l8, relu):
    acc = None
    for j, d in enumerate(offsets):
        xs = x_ref[0, pl.ds(d, l8), :]               # contiguous slab, bf16
        c = jnp.dot(xs, w_ref[j], preferred_element_type=jnp.float32)
        acc = c if acc is None else acc + c
    acc = acc + b_ref[...]
    if relu:
        acc = jnp.maximum(acc, 0.0)
    o_ref[0] = acc


def conv2d_s1(x_nhwc, w_pack, b2, *, kh_kw, pad, relu):
    """Stride-1 conv. Returns raw flattened output [N, L8, OC] plus geometry.

    Output rows are laid out over (OH, Wp); columns >= OW (and rows >= OH*Wp)
    are wrap-around garbage discarded by _unflatten / masked by the caller.
    """
    KH, KW = kh_kw
    N, H, W, C = x_nhwc.shape
    KHW, _, OC = w_pack.shape
    xp = jnp.pad(x_nhwc, ((0, 0), (pad, pad), (pad, pad), (0, 0)))
    Hp, Wp = H + 2 * pad, W + 2 * pad
    OH, OW = Hp - KH + 1, Wp - KW + 1
    L = OH * Wp
    L8 = _round_up(L, 8)
    d_max = (KH - 1) * Wp + (KW - 1)
    Lx = _round_up(d_max + L8, 8)
    xf = xp.reshape(N, Hp * Wp, C)
    if Lx > Hp * Wp:
        xf = jnp.pad(xf, ((0, 0), (0, Lx - Hp * Wp), (0, 0)))
    xf = xf.astype(jnp.bfloat16)
    offsets = tuple(kh * Wp + kw for kh in range(KH) for kw in range(KW))

    raw = pl.pallas_call(
        functools.partial(_conv_s1_kernel, offsets=offsets, l8=L8, relu=relu),
        out_shape=jax.ShapeDtypeStruct((N, L8, OC), jnp.float32),
        grid=(N,),
        in_specs=[
            pl.BlockSpec((1, Lx, C), lambda n: (n, 0, 0)),
            pl.BlockSpec((KHW, C, OC), lambda n: (0, 0, 0)),
            pl.BlockSpec((1, OC), lambda n: (0, 0)),
        ],
        out_specs=pl.BlockSpec((1, L8, OC), lambda n: (n, 0, 0)),
        compiler_params=pltpu.CompilerParams(dimension_semantics=("parallel",)),
    )(xf, w_pack, b2)
    return raw, (OH, OW, Wp, L)


def _unflatten(raw, OH, OW, Wp, L):
    N, _, OC = raw.shape
    return raw[:, :L, :].reshape(N, OH, Wp, OC)[:, :, :OW, :]


# ----------------------------------------------------------------------------
# Kernel 3: max-pool (window-stacked VPU reduce, tiled over rows)
# ----------------------------------------------------------------------------
def _max_over_windows_kernel(x_ref, o_ref):
    o_ref[...] = jnp.max(x_ref[...], axis=0)


def maxpool2d(x_nhwc, ksize, stride):
    # TODO(synk): overlapping stride-2 pooling could be fused into the conv
    # epilogue with strided in-kernel loads; kept as a stacked reduce for
    # portability (pool tensors here are tiny).
    N, H, W, C = x_nhwc.shape
    OH = (H - ksize) // stride + 1
    OW = (W - ksize) // stride + 1
    wins = []
    for kh in range(ksize):
        for kw in range(ksize):
            sl = x_nhwc[:, kh:kh + stride * OH:stride,
                        kw:kw + stride * OW:stride, :]
            wins.append(sl.reshape(N * OH * OW, C))
    st = jnp.stack(wins, axis=0)                     # [P, M, C]
    P, M, _ = st.shape
    TM = min(512, _round_up(M, 8))
    Mp = _round_up(M, TM)
    if Mp > M:
        st = jnp.pad(st, ((0, 0), (0, Mp - M), (0, 0)))

    out = pl.pallas_call(
        _max_over_windows_kernel,
        out_shape=jax.ShapeDtypeStruct((Mp, C), x_nhwc.dtype),
        grid=(Mp // TM,),
        in_specs=[pl.BlockSpec((P, TM, C), lambda i: (0, i, 0))],
        out_specs=pl.BlockSpec((TM, C), lambda i: (i, 0)),
        compiler_params=pltpu.CompilerParams(dimension_semantics=("parallel",)),
    )(st)
    return out[:M].reshape(N, OH, OW, C)


# ----------------------------------------------------------------------------
# Kernel 4: fused global max-pool + Flatten + Linear(256, 10)
# ----------------------------------------------------------------------------
def _gpool_linear_kernel(x_ref, w_ref, b_ref, o_ref, *, L, Wp, OW):
    x = x_ref[...]                                            # [N, L8, C] f32
    pos = jax.lax.broadcasted_iota(jnp.int32, x.shape, 1)
    valid = (pos < L) & ((pos % Wp) < OW)                     # real spatial positions
    g = jnp.max(jnp.where(valid, x, -jnp.inf), axis=1)        # [N, C]
    out = jnp.dot(g.astype(jnp.bfloat16), w_ref[...],
                  preferred_element_type=jnp.float32)
    o_ref[...] = out + b_ref[...]


def gpool_linear(conv_raw, w_pad, b_pad, *, L, Wp, OW, num_out):
    N, L8, C = conv_raw.shape
    Np = w_pad.shape[1]
    out = pl.pallas_call(
        functools.partial(_gpool_linear_kernel, L=L, Wp=Wp, OW=OW),
        out_shape=jax.ShapeDtypeStruct((N, Np), jnp.float32),
        grid=(1,),
        in_specs=[
            pl.BlockSpec((N, L8, C), lambda i: (0, 0, 0)),
            pl.BlockSpec((C, Np), lambda i: (0, 0)),
            pl.BlockSpec((1, Np), lambda i: (0, 0)),
        ],
        out_specs=pl.BlockSpec((N, Np), lambda i: (0, 0)),
    )(conv_raw, w_pad, b_pad)
    return out[:, :num_out]


# ----------------------------------------------------------------------------
# Parameter prep (hoisted out of the traced forward: pack / pad / bf16 once)
# ----------------------------------------------------------------------------
def prepare_params(p):
    prep = {}
    # conv1: im2col weight matrix (KH*KW*IC, OC), K padded to 128-mult, OC -> 128.
    w1 = jnp.transpose(p["w1"], (2, 3, 1, 0)).reshape(11 * 11 * 3, 64)
    kp = _round_up(w1.shape[0], 128)
    n1 = _round_up(w1.shape[1], 128)
    prep["w1"] = jnp.pad(w1, ((0, kp - w1.shape[0]),
                              (0, n1 - w1.shape[1]))).astype(jnp.bfloat16)
    prep["b1"] = jnp.pad(p["b1"], (0, n1 - p["b1"].shape[0])
                         ).reshape(1, n1).astype(jnp.float32)

    def pack_s1(w, b):
        oc, ic, kh, kw = w.shape
        wp = jnp.transpose(w, (2, 3, 1, 0)).reshape(kh * kw, ic, oc)
        return wp.astype(jnp.bfloat16), b.reshape(1, oc).astype(jnp.float32)

    prep["w2"], prep["b2"] = pack_s1(p["w2"], p["b2"])
    prep["w3"], prep["b3"] = pack_s1(p["w3"], p["b3"])
    prep["w4"], prep["b4"] = pack_s1(p["w4"], p["b4"])

    # last: Linear(256, 10) -- pre-transposed, outputs padded to one lane group.
    wl = jnp.transpose(p["wl"], (1, 0))                       # (256, 10)
    nl = _round_up(wl.shape[1], 128)
    prep["wl"] = jnp.pad(wl, ((0, 0), (0, nl - wl.shape[1]))).astype(jnp.bfloat16)
    prep["bl"] = jnp.pad(p["bl"], (0, nl - p["bl"].shape[0])
                         ).reshape(1, nl).astype(jnp.float32)
    return prep


# ----------------------------------------------------------------------------
# Forward: AlexNet features[0..8] -> global max-pool -> Flatten + Linear
# ----------------------------------------------------------------------------
def forward(x_nchw, prep):
    x = jnp.transpose(x_nchw, (0, 2, 3, 1)).astype(jnp.float32)   # NCHW -> NHWC
    # features.0 Conv(3,64,11,s4,p2) + features.1 ReLU
    x = conv1_im2col(x, prep["w1"], prep["b1"],
                     ksize=11, stride=4, pad=2, oc=64, relu=True)
    # features.2 MaxPool(3, s2)
    x = maxpool2d(x, 3, 2)
    # features.3 Conv(64,192,5,p2) + features.4 ReLU
    raw, (oh, ow, wp, l) = conv2d_s1(x, prep["w2"], prep["b2"],
                                     kh_kw=(5, 5), pad=2, relu=True)
    x = _unflatten(raw, oh, ow, wp, l)
    # features.5 MaxPool(3, s2)
    x = maxpool2d(x, 3, 2)
    # features.6 Conv(192,384,3,p1) + features.7 ReLU
    raw, (oh, ow, wp, l) = conv2d_s1(x, prep["w3"], prep["b3"],
                                     kh_kw=(3, 3), pad=1, relu=True)
    x = _unflatten(raw, oh, ow, wp, l)
    # features.8 Conv(384,256,3,p1)  <- hooked (pre-ReLU) activation
    raw4, (oh, ow, wp, l) = conv2d_s1(x, prep["w4"], prep["b4"],
                                      kh_kw=(3, 3), pad=1, relu=False)
    # TODO(synk): the reference also runs AlexNet's remaining layers purely for
    # the hook side-effect; they do not influence the returned value.
    # gpool (MaxPool2d over the full spatial extent) + Flatten + Linear(256,10)
    return gpool_linear(raw4, prep["wl"], prep["bl"],
                        L=l, Wp=wp, OW=ow, num_out=10)


def init_params(key):
    ks = jax.random.split(key, 10)
    s = 0.05
    return {
        "w1": s * jax.random.normal(ks[0], (64, 3, 11, 11), jnp.float32),
        "b1": s * jax.random.normal(ks[1], (64,), jnp.float32),
        "w2": s * jax.random.normal(ks[2], (192, 64, 5, 5), jnp.float32),
        "b2": s * jax.random.normal(ks[3], (192,), jnp.float32),
        "w3": s * jax.random.normal(ks[4], (384, 192, 3, 3), jnp.float32),
        "b3": s * jax.random.normal(ks[5], (384,), jnp.float32),
        "w4": s * jax.random.normal(ks[6], (256, 384, 3, 3), jnp.float32),
        "b4": s * jax.random.normal(ks[7], (256,), jnp.float32),
        "wl": s * jax.random.normal(ks[8], (10, 256), jnp.float32),
        "bl": s * jax.random.normal(ks[9], (10,), jnp.float32),
    }


if __name__ == "__main__":
    key = jax.random.PRNGKey(0)
    kx, kp_key = jax.random.split(key)
    # PyTorch-style NCHW input (small, but large enough for AlexNet's stride-4 stem)
    x = jax.random.normal(kx, (2, 3, 64, 64), jnp.float32)
    params = init_params(kp_key)
    prep = prepare_params(params)          # pack/pad/bf16 weights once (hoisted)

    out = jax.jit(forward)(x, prep)
    out = jax.block_until_ready(out)
    assert out.shape == (2, 10) and out.dtype == jnp.float32
    print("KERNEL_OK")
</pallas_src>

<mosaic_0001>
module attributes {stable_mosaic.version = 11 : i64} {
  func.func @_matmul_bias_kernel(%arg0: i32, %arg1: i32, %arg2: memref<128x384xbf16, #tpu.memory_space<vmem>>, %arg3: memref<384x128xbf16, #tpu.memory_space<vmem>>, %arg4: memref<1x128xf32, #tpu.memory_space<vmem>>, %arg5: memref<128x128xf32, #tpu.memory_space<vmem>>, %arg6: memref<128x128xf32, #tpu.memory_space<vmem>>) attributes {dimension_semantics = [#tpu.dimension_semantics<parallel>, #tpu.dimension_semantics<arbitrary>], iteration_bounds = array<i64: 4, 1>, scalar_prefetch = 0 : i64, scratch_operands = 1 : i64, tpu.core_type = #tpu.core_type<tc>, window_params = [{transform_indices = @transform_0, window_bounds = array<i64: 128, 384>}, {transform_indices = @transform_1, window_bounds = array<i64: 384, 128>}, {pipeline_mode = #tpu.pipeline_mode<synchronous>, transform_indices = @transform_2, window_bounds = array<i64: 1, 128>}, {transform_indices = @transform_3, window_bounds = array<i64: 128, 128>}]} {
    %c0_i32 = arith.constant 0 : i32
    %0 = arith.cmpi eq, %arg1, %c0_i32 : i32
    %1 = arith.extui %0 : i1 to i32
    %c0_i32_0 = arith.constant 0 : i32
    %2 = arith.cmpi ne, %1, %c0_i32_0 : i32
    scf.if %2 {
      %cst_10 = arith.constant 0.000000e+00 : f32
      %12 = vector.broadcast %cst_10 : f32 to vector<128x128xf32>
      %c0_11 = arith.constant 0 : index
      %c0_12 = arith.constant 0 : index
      %13 = vector.load %arg6[%c0_11, %c0_12] : memref<128x128xf32, #tpu.memory_space<vmem>>, vector<128x128xf32>
      tpu.vector_store %arg6[%c0_11, %c0_12], %12 {strides = array<i32>} : memref<128x128xf32, #tpu.memory_space<vmem>>, vector<128x128xf32>,
    } else {
    }
    %c0 = arith.constant 0 : index
    %c0_1 = arith.constant 0 : index
    %3 = vector.load %arg6[%c0, %c0_1] : memref<128x128xf32, #tpu.memory_space<vmem>>, vector<128x128xf32>
    %c0_2 = arith.constant 0 : index
    %c0_3 = arith.constant 0 : index
    %4 = vector.load %arg2[%c0_2, %c0_3] : memref<128x384xbf16, #tpu.memory_space<vmem>>, vector<128x384xbf16>
    %c0_4 = arith.constant 0 : index
    %c0_5 = arith.constant 0 : index
    %5 = vector.load %arg3[%c0_4, %c0_5] : memref<384x128xbf16, #tpu.memory_space<vmem>>, vector<384x128xbf16>
    %cst = arith.constant dense<0.000000e+00> : vector<128x128xf32>
    %6 = tpu.matmul %4, %5, %cst {dimension_numbers = #tpu.dot_dimension_numbers<[1], [0], [0], [1], [0, 0, 1, 1], [], []>} : vector<128x384xbf16>, vector<384x128xbf16>, vector<128x128xf32> -> vector<128x128xf32>
    %7 = arith.addf %3, %6 : vector<128x128xf32>
    %c0_6 = arith.constant 0 : index
    %c0_7 = arith.constant 0 : index
    %8 = vector.load %arg6[%c0_6, %c0_7] : memref<128x128xf32, #tpu.memory_space<vmem>>, vector<128x128xf32>
    tpu.vector_store %arg6[%c0_6, %c0_7], %7 {strides = array<i32>} : memref<128x128xf32, #tpu.memory_space<vmem>>, vector<128x128xf32>,
    %c0_i32_8 = arith.constant 0 : i32
    %9 = arith.cmpi eq, %arg1, %c0_i32_8 : i32
    %10 = arith.extui %9 : i1 to i32
    %c0_i32_9 = arith.constant 0 : i32
    %11 = arith.cmpi ne, %10, %c0_i32_9 : i32
    scf.if %11 {
      %c0_10 = arith.constant 0 : index
      %c0_11 = arith.constant 0 : index
      %12 = vector.load %arg6[%c0_10, %c0_11] : memref<128x128xf32, #tpu.memory_space<vmem>>, vector<128x128xf32>
      %c0_12 = arith.constant 0 : index
      %c0_13 = arith.constant 0 : index
      %13 = vector.load %arg4[%c0_12, %c0_13] : memref<1x128xf32, #tpu.memory_space<vmem>>, vector<1x128xf32>
      %14 = vector.broadcast %13 : vector<1x128xf32> to vector<128x128xf32>
      %15 = arith.addf %12, %14 : vector<128x128xf32>
      %cst_14 = arith.constant 0.000000e+00 : f32
      %16 = vector.broadcast %cst_14 : f32 to vector<128x128xf32>
      %17 = arith.maximumf %15, %16 : vector<128x128xf32>
      %c0_15 = arith.constant 0 : index
      %c0_16 = arith.constant 0 : index
      %18 = vector.load %arg5[%c0_15, %c0_16] : memref<128x128xf32, #tpu.memory_space<vmem>>, vector<128x128xf32>
      tpu.vector_store %arg5[%c0_15, %c0_16], %17 {strides = array<i32>} : memref<128x128xf32, #tpu.memory_space<vmem>>, vector<128x128xf32>,
    } else {
    }
    return
  }
  func.func @transform_0(%arg0: i32, %arg1: i32) -> (i32, i32) {
    %c0_i32 = arith.constant 0 : i32
    return %arg0, %arg1 : i32, i32
  }
  func.func @transform_1(%arg0: i32, %arg1: i32) -> (i32, i32) {
    %c0_i32 = arith.constant 0 : i32
    %c0_i32_0 = arith.constant 0 : i32
    return %arg1, %c0_i32 : i32, i32
  }
  func.func @transform_2(%arg0: i32, %arg1: i32) -> (i32, i32) {
    %c0_i32 = arith.constant 0 : i32
    %c0_i32_0 = arith.constant 0 : i32
    %c0_i32_1 = arith.constant 0 : i32
    return %c0_i32, %c0_i32_0 : i32, i32
  }
  func.func @transform_3(%arg0: i32, %arg1: i32) -> (i32, i32) {
    %c0_i32 = arith.constant 0 : i32
    %c0_i32_0 = arith.constant 0 : i32
    return %arg0, %c0_i32 : i32, i32
  }
}

module attributes {stable_mosaic.version = 11 : i64} {
  func.func @_max_over_windows_kernel(%arg0: i32, %arg1: memref<9x104x64xf32, #tpu.memory_space<vmem>>, %arg2: memref<104x64xf32, #tpu.memory_space<vmem>>) attributes {dimension_semantics = [#tpu.dimension_semantics<parallel>], iteration_bounds = array<i64: 1>, scalar_prefetch = 0 : i64, scratch_operands = 0 : i64, tpu.core_type = #tpu.core_type<tc>, window_params = [{transform_indices = @transform_0, window_bounds = array<i64: 9, 104, 64>}, {transform_indices = @transform_1, window_bounds = array<i64: 104, 64>}]} {
    %c0 = arith.constant 0 : index
    %c0_0 = arith.constant 0 : index
    %c0_1 = arith.constant 0 : index
    %0 = vector.load %arg1[%c0, %c0_0, %c0_1] : memref<9x104x64xf32, #tpu.memory_space<vmem>>, vector<9x104x64xf32>
    %cst = arith.constant dense<0xFF800000> : vector<104x64xf32>
    %1 = vector.multi_reduction <maximumf>, %0, %cst [0] : vector<9x104x64xf32> to vector<104x64xf32>
    %c0_2 = arith.constant 0 : index
    %c0_3 = arith.constant 0 : index
    %2 = vector.load %arg2[%c0_2, %c0_3] : memref<104x64xf32, #tpu.memory_space<vmem>>, vector<104x64xf32>
    tpu.vector_store %arg2[%c0_2, %c0_3], %1 {strides = array<i32>} : memref<104x64xf32, #tpu.memory_space<vmem>>, vector<104x64xf32>,
    return
  }
  func.func @transform_0(%arg0: i32) -> (i32, i32, i32) {
    %c0_i32 = arith.constant 0 : i32
    %c0_i32_0 = arith.constant 0 : i32
    %c0_i32_1 = arith.constant 0 : i32
    return %c0_i32, %arg0, %c0_i32_0 : i32, i32, i32
  }
  func.func @transform_1(%arg0: i32) -> (i32, i32) {
    %c0_i32 = arith.constant 0 : i32
    %c0_i32_0 = arith.constant 0 : i32
    return %arg0, %c0_i32 : i32, i32
  }
}

module attributes {stable_mosaic.version = 11 : i64} {
  func.func @_conv_s1_kernel(%arg0: i32, %arg1: memref<1x128x64xbf16, #tpu.memory_space<vmem>>, %arg2: memref<25x64x192xbf16, #tpu.memory_space<vmem>>, %arg3: memref<1x192xf32, #tpu.memory_space<vmem>>, %arg4: memref<1x80x192xf32, #tpu.memory_space<vmem>>) attributes {dimension_semantics = [#tpu.dimension_semantics<parallel>], iteration_bounds = array<i64: 2>, scalar_prefetch = 0 : i64, scratch_operands = 0 : i64, tpu.core_type = #tpu.core_type<tc>, window_params = [{transform_indices = @transform_0, window_bounds = array<i64: 1, 128, 64>}, {pipeline_mode = #tpu.pipeline_mode<synchronous>, transform_indices = @transform_1, window_bounds = array<i64: 25, 64, 192>}, {pipeline_mode = #tpu.pipeline_mode<synchronous>, transform_indices = @transform_2, window_bounds = array<i64: 1, 192>}, {transform_indices = @transform_3, window_bounds = array<i64: 1, 80, 192>}]} {
    %c0 = arith.constant 0 : index
    %c0_0 = arith.constant 0 : index
    %c0_1 = arith.constant 0 : index
    %0 = vector.load %arg1[%c0, %c0_0, %c0_1] : memref<1x128x64xbf16, #tpu.memory_space<vmem>>, vector<1x80x64xbf16>
    %1 = vector.shape_cast %0 : vector<1x80x64xbf16> to vector<80x64xbf16>
    %c0_2 = arith.constant 0 : index
    %c0_3 = arith.constant 0 : index
    %c0_4 = arith.constant 0 : index
    %2 = vector.load %arg2[%c0_2, %c0_3, %c0_4] : memref<25x64x192xbf16, #tpu.memory_space<vmem>>, vector<1x64x192xbf16>
    %3 = vector.shape_cast %2 : vector<1x64x192xbf16> to vector<64x192xbf16>
    %cst = arith.constant dense<0.000000e+00> : vector<80x192xf32>
    %4 = tpu.matmul %1, %3, %cst {dimension_numbers = #tpu.dot_dimension_numbers<[1], [0], [0], [1], [0, 0, 1, 1], [], []>} : vector<80x64xbf16>, vector<64x192xbf16>, vector<80x192xf32> -> vector<80x192xf32>
    %c0_5 = arith.constant 0 : index
    %c1 = arith.constant 1 : index
    %c0_6 = arith.constant 0 : index
    %5 = vector.load %arg1[%c0_5, %c1, %c0_6] : memref<1x128x64xbf16, #tpu.memory_space<vmem>>, vector<1x80x64xbf16>
    %6 = vector.shape_cast %5 : vector<1x80x64xbf16> to vector<80x64xbf16>
    %c1_7 = arith.constant 1 : index
    %c0_8 = arith.constant 0 : index
    %c0_9 = arith.constant 0 : index
    %7 = vector.load %arg2[%c1_7, %c0_8, %c0_9] : memref<25x64x192xbf16, #tpu.memory_space<vmem>>, vector<1x64x192xbf16>
    %8 = vector.shape_cast %7 : vector<1x64x192xbf16> to vector<64x192xbf16>
    %cst_10 = arith.constant dense<0.000000e+00> : vector<80x192xf32>
    %9 = tpu.matmul %6, %8, %cst_10 {dimension_numbers = #tpu.dot_dimension_numbers<[1], [0], [0], [1], [0, 0, 1, 1], [], []>} : vector<80x64xbf16>, vector<64x192xbf16>, vector<80x192xf32> -> vector<80x192xf32>
    %10 = arith.addf %4, %9 : vector<80x192xf32>
    %c0_11 = arith.constant 0 : index
    %c2 = arith.constant 2 : index
    %c0_12 = arith.constant 0 : index
    %11 = vector.load %arg1[%c0_11, %c2, %c0_12] : memref<1x128x64xbf16, #tpu.memory_space<vmem>>, vector<1x80x64xbf16>
    %12 = vector.shape_cast %11 : vector<1x80x64xbf16> to vector<80x64xbf16>
    %c2_13 = arith.constant 2 : index
    %c0_14 = arith.constant 0 : index
    %c0_15 = arith.constant 0 : index
    %13 = vector.load %arg2[%c2_13, %c0_14, %c0_15] : memref<25x64x192xbf16, #tpu.memory_space<vmem>>, vector<1x64x192xbf16>
    %14 = vector.shape_cast %13 : vector<1x64x192xbf16> to vector<64x192xbf16>
    %cst_16 = arith.constant dense<0.000000e+00> : vector<80x192xf32>
    %15 = tpu.matmul %12, %14, %cst_16 {dimension_numbers = #tpu.dot_dimension_numbers<[1], [0], [0], [1], [0, 0, 1, 1], [], []>} : vector<80x64xbf16>, vector<64x192xbf16>, vector<80x192xf32> -> vector<80x192xf32>
    %16 = arith.addf %10, %15 : vector<80x192xf32>
    %c0_17 = arith.constant 0 : index
    %c3 = arith.constant 3 : index
    %c0_18 = arith.constant 0 : index
    %17 = vector.load %arg1[%c0_17, %c3, %c0_18] : memref<1x128x64xbf16, #tpu.memory_space<vmem>>, vector<1x80x64xbf16>
    %18 = vector.shape_cast %17 : vector<1x80x64xbf16> to vector<80x64xbf16>
    %c3_19 = arith.constant 3 : index
    %c0_20 = arith.constant 0 : index
    %c0_21 = arith.constant 0 : index
    %19 = vector.load %arg2[%c3_19, %c0_20, %c0_21] : memref<25x64x192xbf16, #tpu.memory_space<vmem>>, vector<1x64x192xbf16>
    %20 = vector.shape_cast %19 : vector<1x64x192xbf16> to vector<64x192xbf16>
    %cst_22 = arith.constant dense<0.000000e+00> : vector<80x192xf32>
    %21 = tpu.matmul %18, %20, %cst_22 {dimension_numbers = #tpu.dot_dimension_numbers<[1], [0], [0], [1], [0, 0, 1, 1], [], []>} : vector<80x64xbf16>, vector<64x192xbf16>, vector<80x192xf32> -> vector<80x192xf32>
    %22 = arith.addf %16, %21 : vector<80x192xf32>
    %c0_23 = arith.constant 0 : index
    %c4 = arith.constant 4 : index
    %c0_24 = arith.constant 0 : index
    %23 = vector.load %arg1[%c0_23, %c4, %c0_24] : memref<1x128x64xbf16, #tpu.memory_space<vmem>>, vector<1x80x64xbf16>
    %24 = vector.shape_cast %23 : vector<1x80x64xbf16> to vector<80x64xbf16>
    %c4_25 = arith.constant 4 : index
    %c0_26 = arith.constant 0 : index
    %c0_27 = arith.constant 0 : index
    %25 = vector.load %arg2[%c4_25, %c0_26, %c0_27] : memref<25x64x192xbf16, #tpu.memory_space<vmem>>, vector<1x64x192xbf16>
    %26 = vector.shape_cast %25 : vector<1x64x192xbf16> to vector<64x192xbf16>
    %cst_28 = arith.constant dense<0.000000e+00> : vector<80x192xf32>
    %27 = tpu.matmul %24, %26, %cst_28 {dimension_numbers = #tpu.dot_dimension_numbers<[1], [0], [0], [1], [0, 0, 1, 1], [], []>} : vector<80x64xbf16>, vector<64x192xbf16>, vector<80x192xf32> -> vector<80x192xf32>
    %28 = arith.addf %22, %27 : vector<80x192xf32>
    %c0_29 = arith.constant 0 : index
    %c11 = arith.constant 11 : index
    %c0_30 = arith.constant 0 : index
    %29 = vector.load %arg1[%c0_29, %c11, %c0_30] : memref<1x128x64xbf16, #tpu.memory_space<vmem>>, vector<1x80x64xbf16>
    %30 = vector.shape_cast %29 : vector<1x80x64xbf16> to vector<80x64xbf16>
    %c5 = arith.constant 5 : index
    %c0_31 = arith.constant 0 : index
    %c0_32 = arith.constant 0 : index
    %31 = vector.load %arg2[%c5, %c0_31, %c0_32] : memref<25x64x192xbf16, #tpu.memory_space<vmem>>, vector<1x64x192xbf16>
    %32 = vector.shape_cast %31 : vector<1x64x192xbf16> to vector<64x192xbf16>
    %cst_33 = arith.constant dense<0.000000e+00> : vector<80x192xf32>
    %33 = tpu.matmul %30, %32, %cst_33 {dimension_numbers = #tpu.dot_dimension_numbers<[1], [0], [0], [1], [0, 0, 1, 1], [], []>} : vector<80x64xbf16>, vector<64x192xbf16>, vector<80x192xf32> -> vector<80x192xf32>
    %34 = arith.addf %28, %33 : vector<80x192xf32>
    %c0_34 = arith.constant 0 : index
    %c12 = arith.constant 12 : index
    %c0_35 = arith.constant 0 : index
    %35 = vector.load %arg1[%c0_34, %c12, %c0_35] : memref<1x128x64xbf16, #tpu.memory_space<vmem>>, vector<1x80x64xbf16>
    %36 = vector.shape_cast %35 : vector<1x80x64xbf16> to vector<80x64xbf16>
    %c6 = arith.constant 6 : index
    %c0_36 = arith.constant 0 : index
    %c0_37 = arith.constant 0 : index
    %37 = vector.load %arg2[%c6, %c0_36, %c0_37] : memref<25x64x192xbf16, #tpu.memory_space<vmem>>, vector<1x64x192xbf16>
    %38 = vector.shape_cast %37 : vector<1x64x192xbf16> to vector<64x192xbf16>
    %cst_38 = arith.constant dense<0.000000e+00> : vector<80x192xf32>
    %39 = tpu.matmul %36, %38, %cst_38 {dimension_numbers = #tpu.dot_dimension_numbers<[1], [0], [0], [1], [0, 0, 1, 1], [], []>} : vector<80x64xbf16>, vector<64x192xbf16>, vector<80x192xf32> -> vector<80x192xf32>
    %40 = arith.addf %34, %39 : vector<80x192xf32>
    %c0_39 = arith.constant 0 : index
    %c13 = arith.constant 13 : index
    %c0_40 = arith.constant 0 : index
    %41 = vector.load %arg1[%c0_39, %c13, %c0_40] : memref<1x128x64xbf16, #tpu.memory_space<vmem>>, vector<1x80x64xbf16>
    %42 = vector.shape_cast %41 : vector<1x80x64xbf16> to vector<80x64xbf16>
    %c7 = arith.constant 7 : index
    %c0_41 = arith.constant 0 : index
    %c0_42 = arith.constant 0 : index
    %43 = vector.load %arg2[%c7, %c0_41, %c0_42] : memref<25x64x192xbf16, #tpu.memory_space<vmem>>, vector<1x64x192xbf16>
    %44 = vector.shape_cast %43 : vector<1x64x192xbf16> to vector<64x192xbf16>
    %cst_43 = arith.constant dense<0.000000e+00> : vector<80x192xf32>
    %45 = tpu.matmul %42, %44, %cst_43 {dimension_numbers = #tpu.dot_dimension_numbers<[1], [0], [0], [1], [0, 0, 1, 1], [], []>} : vector<80x64xbf16>, vector<64x192xbf16>, vector<80x192xf32> -> vector<80x192xf32>
    %46 = arith.addf %40, %45 : vector<80x192xf32>
    %c0_44 = arith.constant 0 : index
    %c14 = arith.constant 14 : index
    %c0_45 = arith.constant 0 : index
    %47 = vector.load %arg1[%c0_44, %c14, %c0_45] : memref<1x128x64xbf16, #tpu.memory_space<vmem>>, vector<1x80x64xbf16>
    %48 = vector.shape_cast %47 : vector<1x80x64xbf16> to vector<80x64xbf16>
    %c8 = arith.constant 8 : index
    %c0_46 = arith.constant 0 : index
    %c0_47 = arith.constant 0 : index
    %49 = vector.load %arg2[%c8, %c0_46, %c0_47] : memref<25x64x192xbf16, #tpu.memory_space<vmem>>, vector<1x64x192xbf16>
    %50 = vector.shape_cast %49 : vector<1x64x192xbf16> to vector<64x192xbf16>
    %cst_48 = arith.constant dense<0.000000e+00> : vector<80x192xf32>
    %51 = tpu.matmul %48, %50, %cst_48 {dimension_numbers = #tpu.dot_dimension_numbers<[1], [0], [0], [1], [0, 0, 1, 1], [], []>} : vector<80x64xbf16>, vector<64x192xbf16>, vector<80x192xf32> -> vector<80x192xf32>
    %52 = arith.addf %46, %51 : vector<80x192xf32>
    %c0_49 = arith.constant 0 : index
    %c15 = arith.constant 15 : index
    %c0_50 = arith.constant 0 : index
    %53 = vector.load %arg1[%c0_49, %c15, %c0_50] : memref<1x128x64xbf16, #tpu.memory_space<vmem>>, vector<1x80x64xbf16>
    %54 = vector.shape_cast %53 : vector<1x80x64xbf16> to vector<80x64xbf16>
    %c9 = arith.constant 9 : index
    %c0_51 = arith.constant 0 : index
    %c0_52 = arith.constant 0 : index
    %55 = vector.load %arg2[%c9, %c0_51, %c0_52] : memref<25x64x192xbf16, #tpu.memory_space<vmem>>, vector<1x64x192xbf16>
    %56 = vector.shape_cast %55 : vector<1x64x192xbf16> to vector<64x192xbf16>
    %cst_53 = arith.constant dense<0.000000e+00> : vector<80x192xf32>
    %57 = tpu.matmul %54, %56, %cst_53 {dimension_numbers = #tpu.dot_dimension_numbers<[1], [0], [0], [1], [0, 0, 1, 1], [], []>} : vector<80x64xbf16>, vector<64x192xbf16>, vector<80x192xf32> -> vector<80x192xf32>
    %58 = arith.addf %52, %57 : vector<80x192xf32>
    %c0_54 = arith.constant 0 : index
    %c22 = arith.constant 22 : index
    %c0_55 = arith.constant 0 : index
    %59 = vector.load %arg1[%c0_54, %c22, %c0_55] : memref<1x128x64xbf16, #tpu.memory_space<vmem>>, vector<1x80x64xbf16>
    %60 = vector.shape_cast %59 : vector<1x80x64xbf16> to vector<80x64xbf16>
    %c10 = arith.constant 10 : index
    %c0_56 = arith.constant 0 : index
    %c0_57 = arith.constant 0 : index
    %61 = vector.load %arg2[%c10, %c0_56, %c0_57] : memref<25x64x192xbf16, #tpu.memory_space<vmem>>, vector<1x64x192xbf16>
    %62 = vector.shape_cast %61 : vector<1x64x192xbf16> to vector<64x192xbf16>
    %cst_58 = arith.constant dense<0.000000e+00> : vector<80x192xf32>
    %63 = tpu.matmul %60, %62, %cst_58 {dimension_numbers = #tpu.dot_dimension_numbers<[1], [0], [0], [1], [0, 0, 1, 1], [], []>} : vector<80x64xbf16>, vector<64x192xbf16>, vector<80x192xf32> -> vector<80x192xf32>
    %64 = arith.addf %58, %63 : vector<80x192xf32>
    %c0_59 = arith.constant 0 : index
    %c23 = arith.constant 23 : index
    %c0_60 = arith.constant 0 : index
    %65 = vector.load %arg1[%c0_59, %c23, %c0_60] : memref<1x128x64xbf16, #tpu.memory_space<vmem>>, vector<1x80x64xbf16>
    %66 = vector.shape_cast %65 : vector<1x80x64xbf16> to vector<80x64xbf16>
    %c11_61 = arith.constant 11 : index
    %c0_62 = arith.constant 0 : index
    %c0_63 = arith.constant 0 : index
    %67 = vector.load %arg2[%c11_61, %c0_62, %c0_63] : memref<25x64x192xbf16, #tpu.memory_space<vmem>>, vector<1x64x192xbf16>
    %68 = vector.shape_cast %67 : vector<1x64x192xbf16> to vector<64x192xbf16>
    %cst_64 = arith.constant dense<0.000000e+00> : vector<80x192xf32>
    %69 = tpu.matmul %66, %68, %cst_64 {dimension_numbers = #tpu.dot_dimension_numbers<[1], [0], [0], [1], [0, 0, 1, 1], [], []>} : vector<80x64xbf16>, vector<64x192xbf16>, vector<80x192xf32> -> vector<80x192xf32>
    %70 = arith.addf %64, %69 : vector<80x192xf32>
    %c0_65 = arith.constant 0 : index
    %c24 = arith.constant 24 : index
    %c0_66 = arith.constant 0 : index
    %71 = vector.load %arg1[%c0_65, %c24, %c0_66] : memref<1x128x64xbf16, #tpu.memory_space<vmem>>, vector<1x80x64xbf16>
    %72 = vector.shape_cast %71 : vector<1x80x64xbf16> to vector<80x64xbf16>
    %c12_67 = arith.constant 12 : index
    %c0_68 = arith.constant 0 : index
    %c0_69 = arith.constant 0 : index
    %73 = vector.load %arg2[%c12_67, %c0_68, %c0_69] : memref<25x64x192xbf16, #tpu.memory_space<vmem>>, vector<1x64x192xbf16>
    %74 = vector.shape_cast %73 : vector<1x64x192xbf16> to vector<64x192xbf16>
    %cst_70 = arith.constant dense<0.000000e+00> : vector<80x192xf32>
    %75 = tpu.matmul %72, %74, %cst_70 {dimension_numbers = #tpu.dot_dimension_numbers<[1], [0], [0], [1], [0, 0, 1, 1], [], []>} : vector<80x64xbf16>, vector<64x192xbf16>, vector<80x192xf32> -> vector<80x192xf32>
    %76 = arith.addf %70, %75 : vector<80x192xf32>
    %c0_71 = arith.constant 0 : index
    %c25 = arith.constant 25 : index
    %c0_72 = arith.constant 0 : index
    %77 = vector.load %arg1[%c0_71, %c25, %c0_72] : memref<1x128x64xbf16, #tpu.memory_space<vmem>>, vector<1x80x64xbf16>
    %78 = vector.shape_cast %77 : vector<1x80x64xbf16> to vector<80x64xbf16>
    %c13_73 = arith.constant 13 : index
    %c0_74 = arith.constant 0 : index
    %c0_75 = arith.constant 0 : index
    %79 = vector.load %arg2[%c13_73, %c0_74, %c0_75] : memref<25x64x192xbf16, #tpu.memory_space<vmem>>, vector<1x64x192xbf16>
    %80 = vector.shape_cast %79 : vector<1x64x192xbf16> to vector<64x192xbf16>
    %cst_76 = arith.constant dense<0.000000e+00> : vector<80x192xf32>
    %81 = tpu.matmul %78, %80, %cst_76 {dimension_numbers = #tpu.dot_dimension_numbers<[1], [0], [0], [1], [0, 0, 1, 1], [], []>} : vector<80x64xbf16>, vector<64x192xbf16>, vector<80x192xf32> -> vector<80x192xf32>
    %82 = arith.addf %76, %81 : vector<80x192xf32>
    %c0_77 = arith.constant 0 : index
    %c26 = arith.constant 26 : index
    %c0_78 = arith.constant 0 : index
    %83 = vector.load %arg1[%c0_77, %c26, %c0_78] : memref<1x128x64xbf16, #tpu.memory_space<vmem>>, vector<1x80x64xbf16>
    %84 = vector.shape_cast %83 : vector<1x80x64xbf16> to vector<80x64xbf16>
    %c14_79 = arith.constant 14 : index
    %c0_80 = arith.constant 0 : index
    %c0_81 = arith.constant 0 : index
    %85 = vector.load %arg2[%c14_79, %c0_80, %c0_81] : memref<25x64x192xbf16, #tpu.memory_space<vmem>>, vector<1x64x192xbf16>
    %86 = vector.shape_cast %85 : vector<1x64x192xbf16> to vector<64x192xbf16>
    %cst_82 = arith.constant dense<0.000000e+00> : vector<80x192xf32>
    %87 = tpu.matmul %84, %86, %cst_82 {dimension_numbers = #tpu.dot_dimension_numbers<[1], [0], [0], [1], [0, 0, 1, 1], [], []>} : vector<80x64xbf16>, vector<64x192xbf16>, vector<80x192xf32> -> vector<80x192xf32>
    %88 = arith.addf %82, %87 : vector<80x192xf32>
    %c0_83 = arith.constant 0 : index
    %c33 = arith.constant 33 : index
    %c0_84 = arith.constant 0 : index
    %89 = vector.load %arg1[%c0_83, %c33, %c0_84] : memref<1x128x64xbf16, #tpu.memory_space<vmem>>, vector<1x80x64xbf16>
    %90 = vector.shape_cast %89 : vector<1x80x64xbf16> to vector<80x64xbf16>
    %c15_85 = arith.constant 15 : index
    %c0_86 = arith.constant 0 : index
    %c0_87 = arith.constant 0 : index
    %91 = vector.load %arg2[%c15_85, %c0_86, %c0_87] : memref<25x64x192xbf16, #tpu.memory_space<vmem>>, vector<1x64x192xbf16>
    %92 = vector.shape_cast %91 : vector<1x64x192xbf16> to vector<64x192xbf16>
    %cst_88 = arith.constant dense<0.000000e+00> : vector<80x192xf32>
    %93 = tpu.matmul %90, %92, %cst_88 {dimension_numbers = #tpu.dot_dimension_numbers<[1], [0], [0], [1], [0, 0, 1, 1], [], []>} : vector<80x64xbf16>, vector<64x192xbf16>, vector<80x192xf32> -> vector<80x192xf32>
    %94 = arith.addf %88, %93 : vector<80x192xf32>
    %c0_89 = arith.constant 0 : index
    %c34 = arith.constant 34 : index
    %c0_90 = arith.constant 0 : index
    %95 = vector.load %arg1[%c0_89, %c34, %c0_90] : memref<1x128x64xbf16, #tpu.memory_space<vmem>>, vector<1x80x64xbf16>
    %96 = vector.shape_cast %95 : vector<1x80x64xbf16> to vector<80x64xbf16>
    %c16 = arith.constant 16 : index
    %c0_91 = arith.constant 0 : index
    %c0_92 = arith.constant 0 : index
    %97 = vector.load %arg2[%c16, %c0_91, %c0_92] : memref<25x64x192xbf16, #tpu.memory_space<vmem>>, vector<1x64x192xbf16>
    %98 = vector.shape_cast %97 : vector<1x64x192xbf16> to vector<64x192xbf16>
    %cst_93 = arith.constant dense<0.000000e+00> : vector<80x192xf32>
    %99 = tpu.matmul %96, %98, %cst_93 {dimension_numbers = #tpu.dot_dimension_numbers<[1], [0], [0], [1], [0, 0, 1, 1], [], []>} : vector<80x64xbf16>, vector<64x192xbf16>, vector<80x192xf32> -> vector<80x192xf32>
    %100 = arith.addf %94, %99 : vector<80x192xf32>
    %c0_94 = arith.constant 0 : index
    %c35 = arith.constant 35 : index
    %c0_95 = arith.constant 0 : index
    %101 = vector.load %arg1[%c0_94, %c35, %c0_95] : memref<1x128x64xbf16, #tpu.memory_space<vmem>>, vector<1x80x64xbf16>
    %102 = vector.shape_cast %101 : vector<1x80x64xbf16> to vector<80x64xbf16>
    %c17 = arith.constant 17 : index
    %c0_96 = arith.constant 0 : index
    %c0_97 = arith.constant 0 : index
    %103 = vector.load %arg2[%c17, %c0_96, %c0_97] : memref<25x64x192xbf16, #tpu.memory_space<vmem>>, vector<1x64x192xbf16>
    %104 = vector.shape_cast %103 : vector<1x64x192xbf16> to vector<64x192xbf16>
    %cst_98 = arith.constant dense<0.000000e+00> : vector<80x192xf32>
    %105 = tpu.matmul %102, %104, %cst_98 {dimension_numbers = #tpu.dot_dimension_numbers<[1], [0], [0], [1], [0, 0, 1, 1], [], []>} : vector<80x64xbf16>, vector<64x192xbf16>, vector<80x192xf32> -> vector<80x192xf32>
    %106 = arith.addf %100, %105 : vector<80x192xf32>
    %c0_99 = arith.constant 0 : index
    %c36 = arith.constant 36 : index
    %c0_100 = arith.constant 0 : index
    %107 = vector.load %arg1[%c0_99, %c36, %c0_100] : memref<1x128x64xbf16, #tpu.memory_space<vmem>>, vector<1x80x64xbf16>
    %108 = vector.shape_cast %107 : vector<1x80x64xbf16> to vector<80x64xbf16>
    %c18 = arith.constant 18 : index
    %c0_101 = arith.constant 0 : index
    %c0_102 = arith.constant 0 : index
    %109 = vector.load %arg2[%c18, %c0_101, %c0_102] : memref<25x64x192xbf16, #tpu.memory_space<vmem>>, vector<1x64x192xbf16>
    %110 = vector.shape_cast %109 : vector<1x64x192xbf16> to vector<64x192xbf16>
    %cst_103 = arith.constant dense<0.000000e+00> : vector<80x192xf32>
    %111 = tpu.matmul %108, %110, %cst_103 {dimension_numbers = #tpu.dot_dimension_numbers<[1], [0], [0], [1], [0, 0, 1, 1], [], []>} : vector<80x64xbf16>, vector<64x192xbf16>, vector<80x192xf32> -> vector<80x192xf32>
    %112 = arith.addf %106, %111 : vector<80x192xf32>
    %c0_104 = arith.constant 0 : index
    %c37 = arith.constant 37 : index
    %c0_105 = arith.constant 0 : index
    %113 = vector.load %arg1[%c0_104, %c37, %c0_105] : memref<1x128x64xbf16, #tpu.memory_space<vmem>>, vector<1x80x64xbf16>
    %114 = vector.shape_cast %113 : vector<1x80x64xbf16> to vector<80x64xbf16>
    %c19 = arith.constant 19 : index
    %c0_106 = arith.constant 0 : index
    %c0_107 = arith.constant 0 : index
    %115 = vector.load %arg2[%c19, %c0_106, %c0_107] : memref<25x64x192xbf16, #tpu.memory_space<vmem>>, vector<1x64x192xbf16>
    %116 = vector.shape_cast %115 : vector<1x64x192xbf16> to vector<64x192xbf16>
    %cst_108 = arith.constant dense<0.000000e+00> : vector<80x192xf32>
    %117 = tpu.matmul %114, %116, %cst_108 {dimension_numbers = #tpu.dot_dimension_numbers<[1], [0], [0], [1], [0, 0, 1, 1], [], []>} : vector<80x64xbf16>, vector<64x192xbf16>, vector<80x192xf32> -> vector<80x192xf32>
    %118 = arith.addf %112, %117 : vector<80x192xf32>
    %c0_109 = arith.constant 0 : index
    %c44 = arith.constant 44 : index
    %c0_110 = arith.constant 0 : index
    %119 = vector.load %arg1[%c0_109, %c44, %c0_110] : memref<1x128x64xbf16, #tpu.memory_space<vmem>>, vector<1x80x64xbf16>
    %120 = vector.shape_cast %119 : vector<1x80x64xbf16> to vector<80x64xbf16>
    %c20 = arith.constant 20 : index
    %c0_111 = arith.constant 0 : index
    %c0_112 = arith.constant 0 : index
    %121 = vector.load %arg2[%c20, %c0_111, %c0_112] : memref<25x64x192xbf16, #tpu.memory_space<vmem>>, vector<1x64x192xbf16>
    %122 = vector.shape_cast %121 : vector<1x64x192xbf16> to vector<64x192xbf16>
    %cst_113 = arith.constant dense<0.000000e+00> : vector<80x192xf32>
    %123 = tpu.matmul %120, %122, %cst_113 {dimension_numbers = #tpu.dot_dimension_numbers<[1], [0], [0], [1], [0, 0, 1, 1], [], []>} : vector<80x64xbf16>, vector<64x192xbf16>, vector<80x192xf32> -> vector<80x192xf32>
    %124 = arith.addf %118, %123 : vector<80x192xf32>
    %c0_114 = arith.constant 0 : index
    %c45 = arith.constant 45 : index
    %c0_115 = arith.constant 0 : index
    %125 = vector.load %arg1[%c0_114, %c45, %c0_115] : memref<1x128x64xbf16, #tpu.memory_space<vmem>>, vector<1x80x64xbf16>
    %126 = vector.shape_cast %125 : vector<1x80x64xbf16> to vector<80x64xbf16>
    %c21 = arith.constant 21 : index
    %c0_116 = arith.constant 0 : index
    %c0_117 = arith.constant 0 : index
    %127 = vector.load %arg2[%c21, %c0_116, %c0_117] : memref<25x64x192xbf16, #tpu.memory_space<vmem>>, vector<1x64x192xbf16>
    %128 = vector.shape_cast %127 : vector<1x64x192xbf16> to vector<64x192xbf16>
    %cst_118 = arith.constant dense<0.000000e+00> : vector<80x192xf32>
    %129 = tpu.matmul %126, %128, %cst_118 {dimension_numbers = #tpu.dot_dimension_numbers<[1], [0], [0], [1], [0, 0, 1, 1], [], []>} : vector<80x64xbf16>, vector<64x192xbf16>, vector<80x192xf32> -> vector<80x192xf32>
    %130 = arith.addf %124, %129 : vector<80x192xf32>
    %c0_119 = arith.constant 0 : index
    %c46 = arith.constant 46 : index
    %c0_120 = arith.constant 0 : index
    %131 = vector.load %arg1[%c0_119, %c46, %c0_120] : memref<1x128x64xbf16, #tpu.memory_space<vmem>>, vector<1x80x64xbf16>
    %132 = vector.shape_cast %131 : vector<1x80x64xbf16> to vector<80x64xbf16>
    %c22_121 = arith.constant 22 : index
    %c0_122 = arith.constant 0 : index
    %c0_123 = arith.constant 0 : index
    %133 = vector.load %arg2[%c22_121, %c0_122, %c0_123] : memref<25x64x192xbf16, #tpu.memory_space<vmem>>, vector<1x64x192xbf16>
    %134 = vector.shape_cast %133 : vector<1x64x192xbf16> to vector<64x192xbf16>
    %cst_124 = arith.constant dense<0.000000e+00> : vector<80x192xf32>
    %135 = tpu.matmul %132, %134, %cst_124 {dimension_numbers = #tpu.dot_dimension_numbers<[1], [0], [0], [1], [0, 0, 1, 1], [], []>} : vector<80x64xbf16>, vector<64x192xbf16>, vector<80x192xf32> -> vector<80x192xf32>
    %136 = arith.addf %130, %135 : vector<80x192xf32>
    %c0_125 = arith.constant 0 : index
    %c47 = arith.constant 47 : index
    %c0_126 = arith.constant 0 : index
    %137 = vector.load %arg1[%c0_125, %c47, %c0_126] : memref<1x128x64xbf16, #tpu.memory_space<vmem>>, vector<1x80x64xbf16>
    %138 = vector.shape_cast %137 : vector<1x80x64xbf16> to vector<80x64xbf16>
    %c23_127 = arith.constant 23 : index
    %c0_128 = arith.constant 0 : index
    %c0_129 = arith.constant 0 : index
    %139 = vector.load %arg2[%c23_127, %c0_128, %c0_129] : memref<25x64x192xbf16, #tpu.memory_space<vmem>>, vector<1x64x192xbf16>
    %140 = vector.shape_cast %139 : vector<1x64x192xbf16> to vector<64x192xbf16>
    %cst_130 = arith.constant dense<0.000000e+00> : vector<80x192xf32>
    %141 = tpu.matmul %138, %140, %cst_130 {dimension_numbers = #tpu.dot_dimension_numbers<[1], [0], [0], [1], [0, 0, 1, 1], [], []>} : vector<80x64xbf16>, vector<64x192xbf16>, vector<80x192xf32> -> vector<80x192xf32>
    %142 = arith.addf %136, %141 : vector<80x192xf32>
    %c0_131 = arith.constant 0 : index
    %c48 = arith.constant 48 : index
    %c0_132 = arith.constant 0 : index
    %143 = vector.load %arg1[%c0_131, %c48, %c0_132] : memref<1x128x64xbf16, #tpu.memory_space<vmem>>, vector<1x80x64xbf16>
    %144 = vector.shape_cast %143 : vector<1x80x64xbf16> to vector<80x64xbf16>
    %c24_133 = arith.constant 24 : index
    %c0_134 = arith.constant 0 : index
    %c0_135 = arith.constant 0 : index
    %145 = vector.load %arg2[%c24_133, %c0_134, %c0_135] : memref<25x64x192xbf16, #tpu.memory_space<vmem>>, vector<1x64x192xbf16>
    %146 = vector.shape_cast %145 : vector<1x64x192xbf16> to vector<64x192xbf16>
    %cst_136 = arith.constant dense<0.000000e+00> : vector<80x192xf32>
    %147 = tpu.matmul %144, %146, %cst_136 {dimension_numbers = #tpu.dot_dimension_numbers<[1], [0], [0], [1], [0, 0, 1, 1], [], []>} : vector<80x64xbf16>, vector<64x192xbf16>, vector<80x192xf32> -> vector<80x192xf32>
    %148 = arith.addf %142, %147 : vector<80x192xf32>
    %c0_137 = arith.constant 0 : index
    %c0_138 = arith.constant 0 : index
    %149 = vector.load %arg3[%c0_137, %c0_138] : memref<1x192xf32, #tpu.memory_space<vmem>>, vector<1x192xf32>
    %150 = vector.broadcast %149 : vector<1x192xf32> to vector<80x192xf32>
    %151 = arith.addf %148, %150 : vector<80x192xf32>
    %cst_139 = arith.constant 0.000000e+00 : f32
    %152 = vector.broadcast %cst_139 : f32 to vector<80x192xf32>
    %153 = arith.maximumf %151, %152 : vector<80x192xf32>
    %c0_140 = arith.constant 0 : index
    %c0_141 = arith.constant 0 : index
    %c0_142 = arith.constant 0 : index
    %154 = vector.load %arg4[%c0_140, %c0_141, %c0_142] : memref<1x80x192xf32, #tpu.memory_space<vmem>>, vector<1x80x192xf32>
    %155 = vector.shape_cast %154 : vector<1x80x192xf32> to vector<80x192xf32>
    %156 = vector.shape_cast %153 : vector<80x192xf32> to vector<1x80x192xf32>
    tpu.vector_store %arg4[%c0_140, %c0_141, %c0_142], %156 {strides = array<i32>} : memref<1x80x192xf32, #tpu.memory_space<vmem>>, vector<1x80x192xf32>,
    return
  }
  func.func @transform_0(%arg0: i32) -> (i32, i32, i32) {
    %c0_i32 = arith.constant 0 : i32
    %c0_i32_0 = arith.constant 0 : i32
    %c0_i32_1 = arith.constant 0 : i32
    return %arg0, %c0_i32, %c0_i32_0 : i32, i32, i32
  }
  func.func @transform_1(%arg0: i32) -> (i32, i32, i32) {
    %c0_i32 = arith.constant 0 : i32
    %c0_i32_0 = arith.constant 0 : i32
    %c0_i32_1 = arith.constant 0 : i32
    %c0_i32_2 = arith.constant 0 : i32
    return %c0_i32, %c0_i32_0, %c0_i32_1 : i32, i32, i32
  }
  func.func @transform_2(%arg0: i32) -> (i32, i32) {
    %c0_i32 = arith.constant 0 : i32
    %c0_i32_0 = arith.constant 0 : i32
    %c0_i32_1 = arith.constant 0 : i32
    return %c0_i32, %c0_i32_0 : i32, i32
  }
  func.func @transform_3(%arg0: i32) -> (i32, i32, i32) {
    %c0_i32 = arith.constant 0 : i32
    %c0_i32_0 = arith.constant 0 : i32
    %c0_i32_1 = arith.constant 0 : i32
    return %arg0, %c0_i32, %c0_i32_0 : i32, i32, i32
  }
}

module attributes {stable_mosaic.version = 11 : i64} {
  func.func @_max_over_windows_kernel(%arg0: i32, %arg1: memref<9x24x192xf32, #tpu.memory_space<vmem>>, %arg2: memref<24x192xf32, #tpu.memory_space<vmem>>) attributes {dimension_semantics = [#tpu.dimension_semantics<parallel>], iteration_bounds = array<i64: 1>, scalar_prefetch = 0 : i64, scratch_operands = 0 : i64, tpu.core_type = #tpu.core_type<tc>, window_params = [{transform_indices = @transform_0, window_bounds = array<i64: 9, 24, 192>}, {transform_indices = @transform_1, window_bounds = array<i64: 24, 192>}]} {
    %c0 = arith.constant 0 : index
    %c0_0 = arith.constant 0 : index
    %c0_1 = arith.constant 0 : index
    %0 = vector.load %arg1[%c0, %c0_0, %c0_1] : memref<9x24x192xf32, #tpu.memory_space<vmem>>, vector<9x24x192xf32>
    %cst = arith.constant dense<0xFF800000> : vector<24x192xf32>
    %1 = vector.multi_reduction <maximumf>, %0, %cst [0] : vector<9x24x192xf32> to vector<24x192xf32>
    %c0_2 = arith.constant 0 : index
    %c0_3 = arith.constant 0 : index
    %2 = vector.load %arg2[%c0_2, %c0_3] : memref<24x192xf32, #tpu.memory_space<vmem>>, vector<24x192xf32>
    tpu.vector_store %arg2[%c0_2, %c0_3], %1 {strides = array<i32>} : memref<24x192xf32, #tpu.memory_space<vmem>>, vector<24x192xf32>,
    return
  }
  func.func @transform_0(%arg0: i32) -> (i32, i32, i32) {
    %c0_i32 = arith.constant 0 : i32
    %c0_i32_0 = arith.constant 0 : i32
    %c0_i32_1 = arith.constant 0 : i32
    return %c0_i32, %arg0, %c0_i32_0 : i32, i32, i32
  }
  func.func @transform_1(%arg0: i32) -> (i32, i32) {
    %c0_i32 = arith.constant 0 : i32
    %c0_i32_0 = arith.constant 0 : i32
    return %arg0, %c0_i32 : i32, i32
  }
}

module attributes {stable_mosaic.version = 11 : i64} {
  func.func @_conv_s1_kernel(%arg0: i32, %arg1: memref<1x32x192xbf16, #tpu.memory_space<vmem>>, %arg2: memref<9x192x384xbf16, #tpu.memory_space<vmem>>, %arg3: memref<1x384xf32, #tpu.memory_space<vmem>>, %arg4: memref<1x16x384xf32, #tpu.memory_space<vmem>>) attributes {dimension_semantics = [#tpu.dimension_semantics<parallel>], iteration_bounds = array<i64: 2>, scalar_prefetch = 0 : i64, scratch_operands = 0 : i64, tpu.core_type = #tpu.core_type<tc>, window_params = [{transform_indices = @transform_0, window_bounds = array<i64: 1, 32, 192>}, {pipeline_mode = #tpu.pipeline_mode<synchronous>, transform_indices = @transform_1, window_bounds = array<i64: 9, 192, 384>}, {pipeline_mode = #tpu.pipeline_mode<synchronous>, transform_indices = @transform_2, window_bounds = array<i64: 1, 384>}, {transform_indices = @transform_3, window_bounds = array<i64: 1, 16, 384>}]} {
    %c0 = arith.constant 0 : index
    %c0_0 = arith.constant 0 : index
    %c0_1 = arith.constant 0 : index
    %0 = vector.load %arg1[%c0, %c0_0, %c0_1] : memref<1x32x192xbf16, #tpu.memory_space<vmem>>, vector<1x16x192xbf16>
    %1 = vector.shape_cast %0 : vector<1x16x192xbf16> to vector<16x192xbf16>
    %c0_2 = arith.constant 0 : index
    %c0_3 = arith.constant 0 : index
    %c0_4 = arith.constant 0 : index
    %2 = vector.load %arg2[%c0_2, %c0_3, %c0_4] : memref<9x192x384xbf16, #tpu.memory_space<vmem>>, vector<1x192x384xbf16>
    %3 = vector.shape_cast %2 : vector<1x192x384xbf16> to vector<192x384xbf16>
    %cst = arith.constant dense<0.000000e+00> : vector<16x384xf32>
    %4 = tpu.matmul %1, %3, %cst {dimension_numbers = #tpu.dot_dimension_numbers<[1], [0], [0], [1], [0, 0, 1, 1], [], []>} : vector<16x192xbf16>, vector<192x384xbf16>, vector<16x384xf32> -> vector<16x384xf32>
    %c0_5 = arith.constant 0 : index
    %c1 = arith.constant 1 : index
    %c0_6 = arith.constant 0 : index
    %5 = vector.load %arg1[%c0_5, %c1, %c0_6] : memref<1x32x192xbf16, #tpu.memory_space<vmem>>, vector<1x16x192xbf16>
    %6 = vector.shape_cast %5 : vector<1x16x192xbf16> to vector<16x192xbf16>
    %c1_7 = arith.constant 1 : index
    %c0_8 = arith.constant 0 : index
    %c0_9 = arith.constant 0 : index
    %7 = vector.load %arg2[%c1_7, %c0_8, %c0_9] : memref<9x192x384xbf16, #tpu.memory_space<vmem>>, vector<1x192x384xbf16>
    %8 = vector.shape_cast %7 : vector<1x192x384xbf16> to vector<192x384xbf16>
    %cst_10 = arith.constant dense<0.000000e+00> : vector<16x384xf32>
    %9 = tpu.matmul %6, %8, %cst_10 {dimension_numbers = #tpu.dot_dimension_numbers<[1], [0], [0], [1], [0, 0, 1, 1], [], []>} : vector<16x192xbf16>, vector<192x384xbf16>, vector<16x384xf32> -> vector<16x384xf32>
    %10 = arith.addf %4, %9 : vector<16x384xf32>
    %c0_11 = arith.constant 0 : index
    %c2 = arith.constant 2 : index
    %c0_12 = arith.constant 0 : index
    %11 = vector.load %arg1[%c0_11, %c2, %c0_12] : memref<1x32x192xbf16, #tpu.memory_space<vmem>>, vector<1x16x192xbf16>
    %12 = vector.shape_cast %11 : vector<1x16x192xbf16> to vector<16x192xbf16>
    %c2_13 = arith.constant 2 : index
    %c0_14 = arith.constant 0 : index
    %c0_15 = arith.constant 0 : index
    %13 = vector.load %arg2[%c2_13, %c0_14, %c0_15] : memref<9x192x384xbf16, #tpu.memory_space<vmem>>, vector<1x192x384xbf16>
    %14 = vector.shape_cast %13 : vector<1x192x384xbf16> to vector<192x384xbf16>
    %cst_16 = arith.constant dense<0.000000e+00> : vector<16x384xf32>
    %15 = tpu.matmul %12, %14, %cst_16 {dimension_numbers = #tpu.dot_dimension_numbers<[1], [0], [0], [1], [0, 0, 1, 1], [], []>} : vector<16x192xbf16>, vector<192x384xbf16>, vector<16x384xf32> -> vector<16x384xf32>
    %16 = arith.addf %10, %15 : vector<16x384xf32>
    %c0_17 = arith.constant 0 : index
    %c5 = arith.constant 5 : index
    %c0_18 = arith.constant 0 : index
    %17 = vector.load %arg1[%c0_17, %c5, %c0_18] : memref<1x32x192xbf16, #tpu.memory_space<vmem>>, vector<1x16x192xbf16>
    %18 = vector.shape_cast %17 : vector<1x16x192xbf16> to vector<16x192xbf16>
    %c3 = arith.constant 3 : index
    %c0_19 = arith.constant 0 : index
    %c0_20 = arith.constant 0 : index
    %19 = vector.load %arg2[%c3, %c0_19, %c0_20] : memref<9x192x384xbf16, #tpu.memory_space<vmem>>, vector<1x192x384xbf16>
    %20 = vector.shape_cast %19 : vector<1x192x384xbf16> to vector<192x384xbf16>
    %cst_21 = arith.constant dense<0.000000e+00> : vector<16x384xf32>
    %21 = tpu.matmul %18, %20, %cst_21 {dimension_numbers = #tpu.dot_dimension_numbers<[1], [0], [0], [1], [0, 0, 1, 1], [], []>} : vector<16x192xbf16>, vector<192x384xbf16>, vector<16x384xf32> -> vector<16x384xf32>
    %22 = arith.addf %16, %21 : vector<16x384xf32>
    %c0_22 = arith.constant 0 : index
    %c6 = arith.constant 6 : index
    %c0_23 = arith.constant 0 : index
    %23 = vector.load %arg1[%c0_22, %c6, %c0_23] : memref<1x32x192xbf16, #tpu.memory_space<vmem>>, vector<1x16x192xbf16>
    %24 = vector.shape_cast %23 : vector<1x16x192xbf16> to vector<16x192xbf16>
    %c4 = arith.constant 4 : index
    %c0_24 = arith.constant 0 : index
    %c0_25 = arith.constant 0 : index
    %25 = vector.load %arg2[%c4, %c0_24, %c0_25] : memref<9x192x384xbf16, #tpu.memory_space<vmem>>, vector<1x192x384xbf16>
    %26 = vector.shape_cast %25 : vector<1x192x384xbf16> to vector<192x384xbf16>
    %cst_26 = arith.constant dense<0.000000e+00> : vector<16x384xf32>
    %27 = tpu.matmul %24, %26, %cst_26 {dimension_numbers = #tpu.dot_dimension_numbers<[1], [0], [0], [1], [0, 0, 1, 1], [], []>} : vector<16x192xbf16>, vector<192x384xbf16>, vector<16x384xf32> -> vector<16x384xf32>
    %28 = arith.addf %22, %27 : vector<16x384xf32>
    %c0_27 = arith.constant 0 : index
    %c7 = arith.constant 7 : index
    %c0_28 = arith.constant 0 : index
    %29 = vector.load %arg1[%c0_27, %c7, %c0_28] : memref<1x32x192xbf16, #tpu.memory_space<vmem>>, vector<1x16x192xbf16>
    %30 = vector.shape_cast %29 : vector<1x16x192xbf16> to vector<16x192xbf16>
    %c5_29 = arith.constant 5 : index
    %c0_30 = arith.constant 0 : index
    %c0_31 = arith.constant 0 : index
    %31 = vector.load %arg2[%c5_29, %c0_30, %c0_31] : memref<9x192x384xbf16, #tpu.memory_space<vmem>>, vector<1x192x384xbf16>
    %32 = vector.shape_cast %31 : vector<1x192x384xbf16> to vector<192x384xbf16>
    %cst_32 = arith.constant dense<0.000000e+00> : vector<16x384xf32>
    %33 = tpu.matmul %30, %32, %cst_32 {dimension_numbers = #tpu.dot_dimension_numbers<[1], [0], [0], [1], [0, 0, 1, 1], [], []>} : vector<16x192xbf16>, vector<192x384xbf16>, vector<16x384xf32> -> vector<16x384xf32>
    %34 = arith.addf %28, %33 : vector<16x384xf32>
    %c0_33 = arith.constant 0 : index
    %c10 = arith.constant 10 : index
    %c0_34 = arith.constant 0 : index
    %35 = vector.load %arg1[%c0_33, %c10, %c0_34] : memref<1x32x192xbf16, #tpu.memory_space<vmem>>, vector<1x16x192xbf16>
    %36 = vector.shape_cast %35 : vector<1x16x192xbf16> to vector<16x192xbf16>
    %c6_35 = arith.constant 6 : index
    %c0_36 = arith.constant 0 : index
    %c0_37 = arith.constant 0 : index
    %37 = vector.load %arg2[%c6_35, %c0_36, %c0_37] : memref<9x192x384xbf16, #tpu.memory_space<vmem>>, vector<1x192x384xbf16>
    %38 = vector.shape_cast %37 : vector<1x192x384xbf16> to vector<192x384xbf16>
    %cst_38 = arith.constant dense<0.000000e+00> : vector<16x384xf32>
    %39 = tpu.matmul %36, %38, %cst_38 {dimension_numbers = #tpu.dot_dimension_numbers<[1], [0], [0], [1], [0, 0, 1, 1], [], []>} : vector<16x192xbf16>, vector<192x384xbf16>, vector<16x384xf32> -> vector<16x384xf32>
    %40 = arith.addf %34, %39 : vector<16x384xf32>
    %c0_39 = arith.constant 0 : index
    %c11 = arith.constant 11 : index
    %c0_40 = arith.constant 0 : index
    %41 = vector.load %arg1[%c0_39, %c11, %c0_40] : memref<1x32x192xbf16, #tpu.memory_space<vmem>>, vector<1x16x192xbf16>
    %42 = vector.shape_cast %41 : vector<1x16x192xbf16> to vector<16x192xbf16>
    %c7_41 = arith.constant 7 : index
    %c0_42 = arith.constant 0 : index
    %c0_43 = arith.constant 0 : index
    %43 = vector.load %arg2[%c7_41, %c0_42, %c0_43] : memref<9x192x384xbf16, #tpu.memory_space<vmem>>, vector<1x192x384xbf16>
    %44 = vector.shape_cast %43 : vector<1x192x384xbf16> to vector<192x384xbf16>
    %cst_44 = arith.constant dense<0.000000e+00> : vector<16x384xf32>
    %45 = tpu.matmul %42, %44, %cst_44 {dimension_numbers = #tpu.dot_dimension_numbers<[1], [0], [0], [1], [0, 0, 1, 1], [], []>} : vector<16x192xbf16>, vector<192x384xbf16>, vector<16x384xf32> -> vector<16x384xf32>
    %46 = arith.addf %40, %45 : vector<16x384xf32>
    %c0_45 = arith.constant 0 : index
    %c12 = arith.constant 12 : index
    %c0_46 = arith.constant 0 : index
    %47 = vector.load %arg1[%c0_45, %c12, %c0_46] : memref<1x32x192xbf16, #tpu.memory_space<vmem>>, vector<1x16x192xbf16>
    %48 = vector.shape_cast %47 : vector<1x16x192xbf16> to vector<16x192xbf16>
    %c8 = arith.constant 8 : index
    %c0_47 = arith.constant 0 : index
    %c0_48 = arith.constant 0 : index
    %49 = vector.load %arg2[%c8, %c0_47, %c0_48] : memref<9x192x384xbf16, #tpu.memory_space<vmem>>, vector<1x192x384xbf16>
    %50 = vector.shape_cast %49 : vector<1x192x384xbf16> to vector<192x384xbf16>
    %cst_49 = arith.constant dense<0.000000e+00> : vector<16x384xf32>
    %51 = tpu.matmul %48, %50, %cst_49 {dimension_numbers = #tpu.dot_dimension_numbers<[1], [0], [0], [1], [0, 0, 1, 1], [], []>} : vector<16x192xbf16>, vector<192x384xbf16>, vector<16x384xf32> -> vector<16x384xf32>
    %52 = arith.addf %46, %51 : vector<16x384xf32>
    %c0_50 = arith.constant 0 : index
    %c0_51 = arith.constant 0 : index
    %53 = vector.load %arg3[%c0_50, %c0_51] : memref<1x384xf32, #tpu.memory_space<vmem>>, vector<1x384xf32>
    %54 = vector.broadcast %53 : vector<1x384xf32> to vector<16x384xf32>
    %55 = arith.addf %52, %54 : vector<16x384xf32>
    %cst_52 = arith.constant 0.000000e+00 : f32
    %56 = vector.broadcast %cst_52 : f32 to vector<16x384xf32>
    %57 = arith.maximumf %55, %56 : vector<16x384xf32>
    %c0_53 = arith.constant 0 : index
    %c0_54 = arith.constant 0 : index
    %c0_55 = arith.constant 0 : index
    %58 = vector.load %arg4[%c0_53, %c0_54, %c0_55] : memref<1x16x384xf32, #tpu.memory_space<vmem>>, vector<1x16x384xf32>
    %59 = vector.shape_cast %58 : vector<1x16x384xf32> to vector<16x384xf32>
    %60 = vector.shape_cast %57 : vector<16x384xf32> to vector<1x16x384xf32>
    tpu.vector_store %arg4[%c0_53, %c0_54, %c0_55], %60 {strides = array<i32>} : memref<1x16x384xf32, #tpu.memory_space<vmem>>, vector<1x16x384xf32>,
    return
  }
  func.func @transform_0(%arg0: i32) -> (i32, i32, i32) {
    %c0_i32 = arith.constant 0 : i32
    %c0_i32_0 = arith.constant 0 : i32
    %c0_i32_1 = arith.constant 0 : i32
    return %arg0, %c0_i32, %c0_i32_0 : i32, i32, i32
  }
  func.func @transform_1(%arg0: i32) -> (i32, i32, i32) {
    %c0_i32 = arith.constant 0 : i32
    %c0_i32_0 = arith.constant 0 : i32
    %c0_i32_1 = arith.constant 0 : i32
    %c0_i32_2 = arith.constant 0 : i32
    return %c0_i32, %c0_i32_0, %c0_i32_1 : i32, i32, i32
  }
  func.func @transform_2(%arg0: i32) -> (i32, i32) {
    %c0_i32 = arith.constant 0 : i32
    %c0_i32_0 = arith.constant 0 : i32
    %c0_i32_1 = arith.constant 0 : i32
    return %c0_i32, %c0_i32_0 : i32, i32
  }
  func.func @transform_3(%arg0: i32) -> (i32, i32, i32) {
    %c0_i32 = arith.constant 0 : i32
    %c0_i32_0 = arith.constant 0 : i32
    %c0_i32_1 = arith.constant 0 : i32
    return %arg0, %c0_i32, %c0_i32_0 : i32, i32, i32
  }
}

module attributes {stable_mosaic.version = 11 : i64} {
  func.func @_conv_s1_kernel(%arg0: i32, %arg1: memref<1x32x384xbf16, #tpu.memory_space<vmem>>, %arg2: memref<9x384x256xbf16, #tpu.memory_space<vmem>>, %arg3: memref<1x256xf32, #tpu.memory_space<vmem>>, %arg4: memref<1x16x256xf32, #tpu.memory_space<vmem>>) attributes {dimension_semantics = [#tpu.dimension_semantics<parallel>], iteration_bounds = array<i64: 2>, scalar_prefetch = 0 : i64, scratch_operands = 0 : i64, tpu.core_type = #tpu.core_type<tc>, window_params = [{transform_indices = @transform_0, window_bounds = array<i64: 1, 32, 384>}, {pipeline_mode = #tpu.pipeline_mode<synchronous>, transform_indices = @transform_1, window_bounds = array<i64: 9, 384, 256>}, {pipeline_mode = #tpu.pipeline_mode<synchronous>, transform_indices = @transform_2, window_bounds = array<i64: 1, 256>}, {transform_indices = @transform_3, window_bounds = array<i64: 1, 16, 256>}]} {
    %c0 = arith.constant 0 : index
    %c0_0 = arith.constant 0 : index
    %c0_1 = arith.constant 0 : index
    %0 = vector.load %arg1[%c0, %c0_0, %c0_1] : memref<1x32x384xbf16, #tpu.memory_space<vmem>>, vector<1x16x384xbf16>
    %1 = vector.shape_cast %0 : vector<1x16x384xbf16> to vector<16x384xbf16>
    %c0_2 = arith.constant 0 : index
    %c0_3 = arith.constant 0 : index
    %c0_4 = arith.constant 0 : index
    %2 = vector.load %arg2[%c0_2, %c0_3, %c0_4] : memref<9x384x256xbf16, #tpu.memory_space<vmem>>, vector<1x384x256xbf16>
    %3 = vector.shape_cast %2 : vector<1x384x256xbf16> to vector<384x256xbf16>
    %cst = arith.constant dense<0.000000e+00> : vector<16x256xf32>
    %4 = tpu.matmul %1, %3, %cst {dimension_numbers = #tpu.dot_dimension_numbers<[1], [0], [0], [1], [0, 0, 1, 1], [], []>} : vector<16x384xbf16>, vector<384x256xbf16>, vector<16x256xf32> -> vector<16x256xf32>
    %c0_5 = arith.constant 0 : index
    %c1 = arith.constant 1 : index
    %c0_6 = arith.constant 0 : index
    %5 = vector.load %arg1[%c0_5, %c1, %c0_6] : memref<1x32x384xbf16, #tpu.memory_space<vmem>>, vector<1x16x384xbf16>
    %6 = vector.shape_cast %5 : vector<1x16x384xbf16> to vector<16x384xbf16>
    %c1_7 = arith.constant 1 : index
    %c0_8 = arith.constant 0 : index
    %c0_9 = arith.constant 0 : index
    %7 = vector.load %arg2[%c1_7, %c0_8, %c0_9] : memref<9x384x256xbf16, #tpu.memory_space<vmem>>, vector<1x384x256xbf16>
    %8 = vector.shape_cast %7 : vector<1x384x256xbf16> to vector<384x256xbf16>
    %cst_10 = arith.constant dense<0.000000e+00> : vector<16x256xf32>
    %9 = tpu.matmul %6, %8, %cst_10 {dimension_numbers = #tpu.dot_dimension_numbers<[1], [0], [0], [1], [0, 0, 1, 1], [], []>} : vector<16x384xbf16>, vector<384x256xbf16>, vector<16x256xf32> -> vector<16x256xf32>
    %10 = arith.addf %4, %9 : vector<16x256xf32>
    %c0_11 = arith.constant 0 : index
    %c2 = arith.constant 2 : index
    %c0_12 = arith.constant 0 : index
    %11 = vector.load %arg1[%c0_11, %c2, %c0_12] : memref<1x32x384xbf16, #tpu.memory_space<vmem>>, vector<1x16x384xbf16>
    %12 = vector.shape_cast %11 : vector<1x16x384xbf16> to vector<16x384xbf16>
    %c2_13 = arith.constant 2 : index
    %c0_14 = arith.constant 0 : index
    %c0_15 = arith.constant 0 : index
    %13 = vector.load %arg2[%c2_13, %c0_14, %c0_15] : memref<9x384x256xbf16, #tpu.memory_space<vmem>>, vector<1x384x256xbf16>
    %14 = vector.shape_cast %13 : vector<1x384x256xbf16> to vector<384x256xbf16>
    %cst_16 = arith.constant dense<0.000000e+00> : vector<16x256xf32>
    %15 = tpu.matmul %12, %14, %cst_16 {dimension_numbers = #tpu.dot_dimension_numbers<[1], [0], [0], [1], [0, 0, 1, 1], [], []>} : vector<16x384xbf16>, vector<384x256xbf16>, vector<16x256xf32> -> vector<16x256xf32>
    %16 = arith.addf %10, %15 : vector<16x256xf32>
    %c0_17 = arith.constant 0 : index
    %c5 = arith.constant 5 : index
    %c0_18 = arith.constant 0 : index
    %17 = vector.load %arg1[%c0_17, %c5, %c0_18] : memref<1x32x384xbf16, #tpu.memory_space<vmem>>, vector<1x16x384xbf16>
    %18 = vector.shape_cast %17 : vector<1x16x384xbf16> to vector<16x384xbf16>
    %c3 = arith.constant 3 : index
    %c0_19 = arith.constant 0 : index
    %c0_20 = arith.constant 0 : index
    %19 = vector.load %arg2[%c3, %c0_19, %c0_20] : memref<9x384x256xbf16, #tpu.memory_space<vmem>>, vector<1x384x256xbf16>
    %20 = vector.shape_cast %19 : vector<1x384x256xbf16> to vector<384x256xbf16>
    %cst_21 = arith.constant dense<0.000000e+00> : vector<16x256xf32>
    %21 = tpu.matmul %18, %20, %cst_21 {dimension_numbers = #tpu.dot_dimension_numbers<[1], [0], [0], [1], [0, 0, 1, 1], [], []>} : vector<16x384xbf16>, vector<384x256xbf16>, vector<16x256xf32> -> vector<16x256xf32>
    %22 = arith.addf %16, %21 : vector<16x256xf32>
    %c0_22 = arith.constant 0 : index
    %c6 = arith.constant 6 : index
    %c0_23 = arith.constant 0 : index
    %23 = vector.load %arg1[%c0_22, %c6, %c0_23] : memref<1x32x384xbf16, #tpu.memory_space<vmem>>, vector<1x16x384xbf16>
    %24 = vector.shape_cast %23 : vector<1x16x384xbf16> to vector<16x384xbf16>
    %c4 = arith.constant 4 : index
    %c0_24 = arith.constant 0 : index
    %c0_25 = arith.constant 0 : index
    %25 = vector.load %arg2[%c4, %c0_24, %c0_25] : memref<9x384x256xbf16, #tpu.memory_space<vmem>>, vector<1x384x256xbf16>
    %26 = vector.shape_cast %25 : vector<1x384x256xbf16> to vector<384x256xbf16>
    %cst_26 = arith.constant dense<0.000000e+00> : vector<16x256xf32>
    %27 = tpu.matmul %24, %26, %cst_26 {dimension_numbers = #tpu.dot_dimension_numbers<[1], [0], [0], [1], [0, 0, 1, 1], [], []>} : vector<16x384xbf16>, vector<384x256xbf16>, vector<16x256xf32> -> vector<16x256xf32>
    %28 = arith.addf %22, %27 : vector<16x256xf32>
    %c0_27 = arith.constant 0 : index
    %c7 = arith.constant 7 : index
    %c0_28 = arith.constant 0 : index
    %29 = vector.load %arg1[%c0_27, %c7, %c0_28] : memref<1x32x384xbf16, #tpu.memory_space<vmem>>, vector<1x16x384xbf16>
    %30 = vector.shape_cast %29 : vector<1x16x384xbf16> to vector<16x384xbf16>
    %c5_29 = arith.constant 5 : index
    %c0_30 = arith.constant 0 : index
    %c0_31 = arith.constant 0 : index
    %31 = vector.load %arg2[%c5_29, %c0_30, %c0_31] : memref<9x384x256xbf16, #tpu.memory_space<vmem>>, vector<1x384x256xbf16>
    %32 = vector.shape_cast %31 : vector<1x384x256xbf16> to vector<384x256xbf16>
    %cst_32 = arith.constant dense<0.000000e+00> : vector<16x256xf32>
    %33 = tpu.matmul %30, %32, %cst_32 {dimension_numbers = #tpu.dot_dimension_numbers<[1], [0], [0], [1], [0, 0, 1, 1], [], []>} : vector<16x384xbf16>, vector<384x256xbf16>, vector<16x256xf32> -> vector<16x256xf32>
    %34 = arith.addf %28, %33 : vector<16x256xf32>
    %c0_33 = arith.constant 0 : index
    %c10 = arith.constant 10 : index
    %c0_34 = arith.constant 0 : index
    %35 = vector.load %arg1[%c0_33, %c10, %c0_34] : memref<1x32x384xbf16, #tpu.memory_space<vmem>>, vector<1x16x384xbf16>
    %36 = vector.shape_cast %35 : vector<1x16x384xbf16> to vector<16x384xbf16>
    %c6_35 = arith.constant 6 : index
    %c0_36 = arith.constant 0 : index
    %c0_37 = arith.constant 0 : index
    %37 = vector.load %arg2[%c6_35, %c0_36, %c0_37] : memref<9x384x256xbf16, #tpu.memory_space<vmem>>, vector<1x384x256xbf16>
    %38 = vector.shape_cast %37 : vector<1x384x256xbf16> to vector<384x256xbf16>
    %cst_38 = arith.constant dense<0.000000e+00> : vector<16x256xf32>
    %39 = tpu.matmul %36, %38, %cst_38 {dimension_numbers = #tpu.dot_dimension_numbers<[1], [0], [0], [1], [0, 0, 1, 1], [], []>} : vector<16x384xbf16>, vector<384x256xbf16>, vector<16x256xf32> -> vector<16x256xf32>
    %40 = arith.addf %34, %39 : vector<16x256xf32>
    %c0_39 = arith.constant 0 : index
    %c11 = arith.constant 11 : index
    %c0_40 = arith.constant 0 : index
    %41 = vector.load %arg1[%c0_39, %c11, %c0_40] : memref<1x32x384xbf16, #tpu.memory_space<vmem>>, vector<1x16x384xbf16>
    %42 = vector.shape_cast %41 : vector<1x16x384xbf16> to vector<16x384xbf16>
    %c7_41 = arith.constant 7 : index
    %c0_42 = arith.constant 0 : index
    %c0_43 = arith.constant 0 : index
    %43 = vector.load %arg2[%c7_41, %c0_42, %c0_43] : memref<9x384x256xbf16, #tpu.memory_space<vmem>>, vector<1x384x256xbf16>
    %44 = vector.shape_cast %43 : vector<1x384x256xbf16> to vector<384x256xbf16>
    %cst_44 = arith.constant dense<0.000000e+00> : vector<16x256xf32>
    %45 = tpu.matmul %42, %44, %cst_44 {dimension_numbers = #tpu.dot_dimension_numbers<[1], [0], [0], [1], [0, 0, 1, 1], [], []>} : vector<16x384xbf16>, vector<384x256xbf16>, vector<16x256xf32> -> vector<16x256xf32>
    %46 = arith.addf %40, %45 : vector<16x256xf32>
    %c0_45 = arith.constant 0 : index
    %c12 = arith.constant 12 : index
    %c0_46 = arith.constant 0 : index
    %47 = vector.load %arg1[%c0_45, %c12, %c0_46] : memref<1x32x384xbf16, #tpu.memory_space<vmem>>, vector<1x16x384xbf16>
    %48 = vector.shape_cast %47 : vector<1x16x384xbf16> to vector<16x384xbf16>
    %c8 = arith.constant 8 : index
    %c0_47 = arith.constant 0 : index
    %c0_48 = arith.constant 0 : index
    %49 = vector.load %arg2[%c8, %c0_47, %c0_48] : memref<9x384x256xbf16, #tpu.memory_space<vmem>>, vector<1x384x256xbf16>
    %50 = vector.shape_cast %49 : vector<1x384x256xbf16> to vector<384x256xbf16>
    %cst_49 = arith.constant dense<0.000000e+00> : vector<16x256xf32>
    %51 = tpu.matmul %48, %50, %cst_49 {dimension_numbers = #tpu.dot_dimension_numbers<[1], [0], [0], [1], [0, 0, 1, 1], [], []>} : vector<16x384xbf16>, vector<384x256xbf16>, vector<16x256xf32> -> vector<16x256xf32>
    %52 = arith.addf %46, %51 : vector<16x256xf32>
    %c0_50 = arith.constant 0 : index
    %c0_51 = arith.constant 0 : index
    %53 = vector.load %arg3[%c0_50, %c0_51] : memref<1x256xf32, #tpu.memory_space<vmem>>, vector<1x256xf32>
    %54 = vector.broadcast %53 : vector<1x256xf32> to vector<16x256xf32>
    %55 = arith.addf %52, %54 : vector<16x256xf32>
    %c0_52 = arith.constant 0 : index
    %c0_53 = arith.constant 0 : index
    %c0_54 = arith.constant 0 : index
    %56 = vector.load %arg4[%c0_52, %c0_53, %c0_54] : memref<1x16x256xf32, #tpu.memory_space<vmem>>, vector<1x16x256xf32>
    %57 = vector.shape_cast %56 : vector<1x16x256xf32> to vector<16x256xf32>
    %58 = vector.shape_cast %55 : vector<16x256xf32> to vector<1x16x256xf32>
    tpu.vector_store %arg4[%c0_52, %c0_53, %c0_54], %58 {strides = array<i32>} : memref<1x16x256xf32, #tpu.memory_space<vmem>>, vector<1x16x256xf32>,
    return
  }
  func.func @transform_0(%arg0: i32) -> (i32, i32, i32) {
    %c0_i32 = arith.constant 0 : i32
    %c0_i32_0 = arith.constant 0 : i32
    %c0_i32_1 = arith.constant 0 : i32
    return %arg0, %c0_i32, %c0_i32_0 : i32, i32, i32
  }
  func.func @transform_1(%arg0: i32) -> (i32, i32, i32) {
    %c0_i32 = arith.constant 0 : i32
    %c0_i32_0 = arith.constant 0 : i32
    %c0_i32_1 = arith.constant 0 : i32
    %c0_i32_2 = arith.constant 0 : i32
    return %c0_i32, %c0_i32_0, %c0_i32_1 : i32, i32, i32
  }
  func.func @transform_2(%arg0: i32) -> (i32, i32) {
    %c0_i32 = arith.constant 0 : i32
    %c0_i32_0 = arith.constant 0 : i32
    %c0_i32_1 = arith.constant 0 : i32
    return %c0_i32, %c0_i32_0 : i32, i32
  }
  func.func @transform_3(%arg0: i32) -> (i32, i32, i32) {
    %c0_i32 = arith.constant 0 : i32
    %c0_i32_0 = arith.constant 0 : i32
    %c0_i32_1 = arith.constant 0 : i32
    return %arg0, %c0_i32, %c0_i32_0 : i32, i32, i32
  }
}

module attributes {stable_mosaic.version = 11 : i64} {
  func.func @_gpool_linear_kernel(%arg0: i32, %arg1: memref<2x16x256xf32, #tpu.memory_space<vmem>>, %arg2: memref<256x128xbf16, #tpu.memory_space<vmem>>, %arg3: memref<1x128xf32, #tpu.memory_space<vmem>>, %arg4: memref<2x128xf32, #tpu.memory_space<vmem>>) attributes {dimension_semantics = [#tpu.dimension_semantics<arbitrary>], iteration_bounds = array<i64: 1>, scalar_prefetch = 0 : i64, scratch_operands = 0 : i64, tpu.core_type = #tpu.core_type<tc>, window_params = [{pipeline_mode = #tpu.pipeline_mode<synchronous>, transform_indices = @transform_0, window_bounds = array<i64: 2, 16, 256>}, {pipeline_mode = #tpu.pipeline_mode<synchronous>, transform_indices = @transform_1, window_bounds = array<i64: 256, 128>}, {pipeline_mode = #tpu.pipeline_mode<synchronous>, transform_indices = @transform_2, window_bounds = array<i64: 1, 128>}, {pipeline_mode = #tpu.pipeline_mode<synchronous>, transform_indices = @transform_3, window_bounds = array<i64: 2, 128>}]} {
    %c0 = arith.constant 0 : index
    %c0_0 = arith.constant 0 : index
    %c0_1 = arith.constant 0 : index
    %0 = vector.load %arg1[%c0, %c0_0, %c0_1] : memref<2x16x256xf32, #tpu.memory_space<vmem>>, vector<2x16x256xf32>
    %1 = tpu.iota {dimensions = array<i32: 1>} : vector<2x16x256xi32>
    %c15_i32 = arith.constant 15 : i32
    %2 = vector.broadcast %c15_i32 : i32 to vector<2x16x256xi32>
    %3 = arith.cmpi slt, %1, %2 : vector<2x16x256xi32>
    %c5_i32 = arith.constant 5 : i32
    %c0_i32 = arith.constant 0 : i32
    %4 = arith.cmpi eq, %c5_i32, %c0_i32 : i32
    %c1_i32 = arith.constant 1 : i32
    %5 = arith.select %4, %c1_i32, %c5_i32 : i32
    %6 = vector.broadcast %5 : i32 to vector<2x16x256xi32>
    %7 = arith.remsi %1, %6 : vector<2x16x256xi32>
    %c0_i32_2 = arith.constant 0 : i32
    %8 = vector.broadcast %c0_i32_2 : i32 to vector<2x16x256xi32>
    %9 = arith.cmpi ne, %7, %8 : vector<2x16x256xi32>
    %c0_i32_3 = arith.constant 0 : i32
    %10 = vector.broadcast %c0_i32_3 : i32 to vector<2x16x256xi32>
    %11 = arith.cmpi slt, %7, %10 : vector<2x16x256xi32>
    %c0_i32_4 = arith.constant 0 : i32
    %12 = arith.cmpi slt, %5, %c0_i32_4 : i32
    %13 = vector.broadcast %12 : i1 to vector<2x16x256xi1>
    %14 = vector.broadcast %13 : vector<2x16x256xi1> to vector<2x16x256xi1>
    %15 = arith.xori %11, %14 : vector<2x16x256xi1>
    %16 = arith.andi %15, %9 : vector<2x16x256xi1>
    %17 = vector.broadcast %5 : i32 to vector<2x16x256xi32>
    %18 = arith.addi %7, %17 : vector<2x16x256xi32>
    %19 = arith.select %16, %18, %7 : vector<2x16x256xi1>, vector<2x16x256xi32>
    %c3_i32 = arith.constant 3 : i32
    %20 = vector.broadcast %c3_i32 : i32 to vector<2x16x256xi32>
    %21 = arith.cmpi slt, %19, %20 : vector<2x16x256xi32>
    %22 = arith.andi %3, %21 : vector<2x16x256xi1>
    %cst = arith.constant 0xFF800000 : f32
    %23 = vector.broadcast %cst : f32 to vector<2x16x256xf32>
    %24 = arith.select %22, %0, %23 : vector<2x16x256xi1>, vector<2x16x256xf32>
    %cst_5 = arith.constant dense<0xFF800000> : vector<2x256xf32>
    %25 = vector.multi_reduction <maximumf>, %24, %cst_5 [1] : vector<2x16x256xf32> to vector<2x256xf32>
    %26 = arith.truncf %25 : vector<2x256xf32> to vector<2x256xbf16>
    %c0_6 = arith.constant 0 : index
    %c0_7 = arith.constant 0 : index
    %27 = vector.load %arg2[%c0_6, %c0_7] : memref<256x128xbf16, #tpu.memory_space<vmem>>, vector<256x128xbf16>
    %cst_8 = arith.constant dense<0.000000e+00> : vector<2x128xf32>
    %28 = tpu.matmul %26, %27, %cst_8 {dimension_numbers = #tpu.dot_dimension_numbers<[1], [0], [0], [1], [0, 0, 1, 1], [], []>} : vector<2x256xbf16>, vector<256x128xbf16>, vector<2x128xf32> -> vector<2x128xf32>
    %c0_9 = arith.constant 0 : index
    %c0_10 = arith.constant 0 : index
    %29 = vector.load %arg3[%c0_9, %c0_10] : memref<1x128xf32, #tpu.memory_space<vmem>>, vector<1x128xf32>
    %30 = vector.broadcast %29 : vector<1x128xf32> to vector<2x128xf32>
    %31 = arith.addf %28, %30 : vector<2x128xf32>
    %c0_11 = arith.constant 0 : index
    %c0_12 = arith.constant 0 : index
    %32 = vector.load %arg4[%c0_11, %c0_12] : memref<2x128xf32, #tpu.memory_space<vmem>>, vector<2x128xf32>
    tpu.vector_store %arg4[%c0_11, %c0_12], %31 {strides = array<i32>} : memref<2x128xf32, #tpu.memory_space<vmem>>, vector<2x128xf32>,
    return
  }
  func.func @transform_0(%arg0: i32) -> (i32, i32, i32) {
    %c0_i32 = arith.constant 0 : i32
    %c0_i32_0 = arith.constant 0 : i32
    %c0_i32_1 = arith.constant 0 : i32
    %c0_i32_2 = arith.constant 0 : i32
    return %c0_i32, %c0_i32_0, %c0_i32_1 : i32, i32, i32
  }
  func.func @transform_1(%arg0: i32) -> (i32, i32) {
    %c0_i32 = arith.constant 0 : i32
    %c0_i32_0 = arith.constant 0 : i32
    %c0_i32_1 = arith.constant 0 : i32
    return %c0_i32, %c0_i32_0 : i32, i32
  }
  func.func @transform_2(%arg0: i32) -> (i32, i32) {
    %c0_i32 = arith.constant 0 : i32
    %c0_i32_0 = arith.constant 0 : i32
    %c0_i32_1 = arith.constant 0 : i32
    return %c0_i32, %c0_i32_0 : i32, i32
  }
  func.func @transform_3(%arg0: i32) -> (i32, i32) {
    %c0_i32 = arith.constant 0 : i32
    %c0_i32_0 = arith.constant 0 : i32
    %c0_i32_1 = arith.constant 0 : i32
    return %c0_i32, %c0_i32_0 : i32, i32
  }
}

</mosaic_0001>

<bundles_post_ra>
// kernel: forward.7
= control target key start
LH: loop header
LB: loop body
LE: loop exit
PB: predicated region body
PF: predicated region fallthrough
CT: control target
= control target key end

     0   :  { %s1300_s12 = smov 0   ;;  %s1302_s13 = smov 0   ;;  %s1477_s0 = inlined_call_operand.vmem [shape: bf16[512,384], index: 0, kind: input, shape index: {}]   ;;  %s1478_s1 = inlined_call_operand.vmem [shape: bf16[384,128], index: 1, kind: input, shape index: {}]   ;;  %s1479_s2 = inlined_call_operand.vmem [shape: f32[1,128], index: 2, kind: input, shape index: {}]   ;;  %s1480_s3 = inlined_call_operand.vmem [shape: f32[512,128], index: 3, kind: output, shape index: {}]  }
   0x1   :  { %s1304_s14 = smov 0  }
   0x2 LB: > { %s25_s15 = sadd.s32 1, %s1274_s13  ;;  %p1007_p0 = scmp.ge.s32.totalorder %s1278_s14, 1  ;;  %s1278_s14 = sphi %s1304_s14, %s13_s14   ;;  %s1274_s13 = sphi %s1302_s13, %s1482_s13   ;;  %s1270_s12 = sphi %s1300_s12, %s1481_s12  }
   0x3   : > { %p27_p1 = scmp.ge.s32.totalorder %s25_s15, 4  ;;  %p169_p2 = scmp.lt.s32.totalorder %s1278_s14, 5 }
   0x5   : > { %s1484_s15 = smov (%p27_p1, %s25_s15), 0  ;;  %p170_p3 = pnand %p1007_p0, %p169_p2 }
   0x6   : > { %v1200_v0 = vld [vmem:[%s1478_s1 + $0x40] sm:$0xff] (!%p170_p3)   ;;  %v1203_v3 = vld [vmem:[%s1478_s1 + $0x48] sm:$0xff] (!%p170_p3)   ;;  %v1206_v6 = vld [vmem:[%s1478_s1 + $0x50] sm:$0xff] (!%p170_p3)   ;;  %s1008_s5 = sshll.u32 (!%p170_p3), %s1270_s12, 4 }
   0x7   : > { %173 = sbr.rel (%p170_p3) target bundleno = 319 (0x13f), region = 32  ;;  %v1201_v1 = vld [vmem:[%s1478_s1] sm:$0xff] (!%p170_p3)   ;;  %1063 = vmatprep.subr.bf16.mxu0 (!%p170_p3), %v1200_v0  ;;  %v1204_v4 = vld [vmem:[%s1478_s1 + $0x8] sm:$0xff] (!%p170_p3)   ;;  %v1207_v7 = vld [vmem:[%s1478_s1 + $0x10] sm:$0xff] (!%p170_p3)   ;;  %p205_p4 = scmp.lt.s32.totalorder (!%p170_p3), %s1008_s5, 63 }
   0x8   : > { %v1202_v2 = vld [vmem:[%s1478_s1 + $0x80] sm:$0xff] (!%p170_p3)   ;;  %1064 = vmatpush3.bf16.msra.mxu0 (!%p170_p3), %v1201_v1  ;;  %v1205_v5 = vld [vmem:[%s1478_s1 + $0x88] sm:$0xff] (!%p170_p3)   ;;  %v1208_v8 = vld [vmem:[%s1478_s1 + $0x90] sm:$0xff] (!%p170_p3)  }
   0x9   : > { %1143 = vmatprep.subr.bf16.mxu1 (!%p170_p3), %v1202_v2  ;;  %1065 = vmatprep.subr.bf16.mxu0 (!%p170_p3), %v1203_v3  ;;  %v1209_v9 = vld [vmem:[%s1478_s1 + $0x58] sm:$0xff] (!%p170_p3)   ;;  %v1212_v12 = vld [vmem:[%s1478_s1 + $0x60] sm:$0xff] (!%p170_p3)   ;;  %v1215_v15 = vld [vmem:[%s1478_s1 + $0x68] sm:$0xff] (!%p170_p3)  }
   0xa   : > { %1144 = vmatpush3.bf16.msra.mxu1 (!%p170_p3), %v1202_v2  ;;  %v1210_v10 = vld [vmem:[%s1478_s1 + $0x18] sm:$0xff] (!%p170_p3)   ;;  %v1214_v13 = vld [vmem:[%s1478_s1 + $0xa0] sm:$0xff] (!%p170_p3)   ;;  %v1217_v16 = vld [vmem:[%s1478_s1 + $0xa8] sm:$0xff] (!%p170_p3)  }
   0xb   : > { %1145 = vmatprep.subr.bf16.mxu1 (!%p170_p3), %v1205_v5  ;;  %v1211_v11 = vld [vmem:[%s1478_s1 + $0x98] sm:$0xff] (!%p170_p3)   ;;  %v1213_v14 = vld [vmem:[%s1478_s1 + $0x20] sm:$0xff] (!%p170_p3)   ;;  %v1216_v17 = vld [vmem:[%s1478_s1 + $0x28] sm:$0xff] (!%p170_p3)  }
   0xc   : > { %1066 = vmatpush3.bf16.msra.mxu0 (!%p170_p3), %v1204_v4  ;;  %v1218_v18 = vld [vmem:[%s1478_s1 + $0x70] sm:$0xff] (!%p170_p3)   ;;  %v1221_v21 = vld [vmem:[%s1478_s1 + $0x78] sm:$0xff] (!%p170_p3)   ;;  %v1428_v55 = vld [vmem:[%s1479_s2] ss:$0 sm:$0xff] (!%p170_p3) }
   0xd   : > { %1067 = vmatprep.subr.bf16.mxu0 (!%p170_p3), %v1206_v6  ;;  %v1219_v19 = vld [vmem:[%s1478_s1 + $0x30] sm:$0xff] (!%p170_p3)   ;;  %v1223_v22 = vld [vmem:[%s1478_s1 + $0xb8] sm:$0xff] (!%p170_p3)  }
   0xe   : > { %1146 = vmatpush3.bf16.msra.mxu1 %v1205_v5  ;;  %s1486_s5 = smov (!%p205_p4, %s1008_s5), 63  ;;  %v1220_v20 = vld [vmem:[%s1478_s1 + $0xb0] sm:$0xff]   ;;  %v1222_v25 = vld [vmem:[%s1478_s1 + $0x38] sm:$0xff]  }
   0xf   : > { %1147 = vmatprep.subr.bf16.mxu1 %v1208_v8  ;;  %s1175_s27 = smul.u32 12, %s1486_s5  ;;  %s1011_s24 = sshll.u32 %s1486_s5, 3 }
  0x10   : > { %1068 = vmatpush3.bf16.msra.mxu0 %v1207_v7 }
  0x11   : > { %1069 = vmatprep.subr.bf16.mxu0 %v1209_v9  ;;  %s1390_s16 = scalar_lea.vmem %s1477_s0, %s1175_s27  ;;  %s1435_s27 = scalar_lea.vmem %s1480_s3, %s1011_s24 }
  0x12   : > { %1148 = vmatpush3.bf16.msra.mxu1 %v1208_v8  ;;  %v1226_v23 = vld [vmem:[%s1390_s16 + $0x4] ss:$12 sps:$4 sm:$0xff]   ;;  %v1227_v24 = vld [vmem:[%s1390_s16 + $0x8] ss:$12 sps:$4 sm:$0xff]   ;;  %v1224_v26 = vld [vmem:[%s1390_s16] ss:$12 sps:$4 sm:$0xff]  }
  0x13   : > { %1149 = vmatprep.subr.bf16.mxu1 %v1211_v11  ;;  %648 = vmatprep.mubr.bf16.mxu0 %v1226_v23  ;;  %v1229_v27 = vld [vmem:[%s1390_s16 + $0x1c] ss:$12 sps:$4 sm:$0xff]   ;;  %v1228_v28 = vld [vmem:[%s1390_s16 + $0x20] ss:$12 sps:$4 sm:$0xff]   ;;  %v1235_v29 = vld [vmem:[%s1390_s16 + $0x38] ss:$12 sps:$4 sm:$0xff]  }
  0x14   : > { %1070 = vmatpush3.bf16.msra.mxu0 %v1210_v10  ;;  %1159 = vmatprep.mubr.bf16.mxu1 %v1227_v24  ;;  %v1231_v30 = vld [vmem:[%s1390_s16 + $0x18] ss:$12 sps:$4 sm:$0xff]   ;;  %v1232_v31 = vld [vmem:[%s1390_s16 + $0x34] ss:$12 sps:$4 sm:$0xff]   ;;  %v1236_v32 = vld [vmem:[%s1390_s16 + $0x50] ss:$12 sps:$4 sm:$0xff]  }
  0x15   : > { %1071 = vmatprep.subr.bf16.mxu0 %v1212_v12  ;;  %v1243_v33 = vld [vmem:[%s1390_s16 + $0x68] ss:$12 sps:$4 sm:$0xff]   ;;  %v1234_v34 = vld [vmem:[%s1390_s16 + $0x30] ss:$12 sps:$4 sm:$0xff]   ;;  %v1237_v35 = vld [vmem:[%s1390_s16 + $0x4c] ss:$12 sps:$4 sm:$0xff]  }
  0x16   : > { %1150 = vmatpush3.bf16.msra.mxu1 %v1211_v11  ;;  %v1244_v36 = vld [vmem:[%s1390_s16 + $0x80] ss:$12 sps:$4 sm:$0xff]   ;;  %v1251_v37 = vld [vmem:[%s1390_s16 + $0x98] ss:$12 sps:$4 sm:$0xff]   ;;  %v1239_v38 = vld [vmem:[%s1390_s16 + $0x48] ss:$12 sps:$4 sm:$0xff]  }
  0x17   : > { %1151 = vmatprep.subr.bf16.mxu1 %v1214_v13  ;;  %v1240_v39 = vld [vmem:[%s1390_s16 + $0x64] ss:$12 sps:$4 sm:$0xff]   ;;  %v1242_v41 = vld [vmem:[%s1390_s16 + $0x60] ss:$12 sps:$4 sm:$0xff]   ;;  %v1245_v42 = vld [vmem:[%s1390_s16 + $0x7c] ss:$12 sps:$4 sm:$0xff]  }
  0x18   : > { %1072 = vmatpush3.bf16.msra.mxu0 %v1213_v14  ;;  %v1252_v40 = vld [vmem:[%s1390_s16 + $0xb0] ss:$12 sps:$4 sm:$0xff]   ;;  %v1247_v43 = vld [vmem:[%s1390_s16 + $0x78] ss:$12 sps:$4 sm:$0xff]   ;;  %v1248_v44 = vld [vmem:[%s1390_s16 + $0x94] ss:$12 sps:$4 sm:$0xff]  }
  0x19   : > { %1073 = vmatprep.subr.bf16.mxu0 %v1215_v15  ;;  %v1250_v45 = vld [vmem:[%s1390_s16 + $0x90] ss:$12 sps:$4 sm:$0xff]   ;;  %v1253_v46 = vld [vmem:[%s1390_s16 + $0xac] ss:$12 sps:$4 sm:$0xff]   ;;  %v1255_v47 = vld [vmem:[%s1390_s16 + $0xa8] ss:$12 sps:$4 sm:$0xff]  }
  0x1a   : > { %1152 = vmatpush3.bf16.msra.mxu1 %v1214_v13 }
  0x1b   : > { %1153 = vmatprep.subr.bf16.mxu1 %v1217_v16 }
  0x1c   : > { %1074 = vmatpush3.bf16.msra.mxu0 %v1216_v17 }
  0x1d   : > { %1075 = vmatprep.subr.bf16.mxu0 %v1218_v18 }
  0x1e   : > { %1154 = vmatpush3.bf16.msra.mxu1 %v1217_v16 }
  0x1f   : > { %1155 = vmatprep.subr.bf16.mxu1 %v1220_v20 }
  0x20   : > { %1076 = vmatpush3.bf16.msra.mxu0 %v1219_v19 }
  0x21   : > { %1077 = vmatprep.subr.bf16.mxu0 %v1221_v21 }
  0x22   : > { %1156 = vmatpush3.bf16.msra.mxu1 %v1220_v20 }
  0x23   : > { %1157 = vmatprep.subr.bf16.mxu1 %v1223_v22 }
  0x24   : > { %1078 = vmatpush3.bf16.msra.mxu0 %v1222_v25 }
  0x26   : > { %1158 = vmatpush3.bf16.msra.mxu1 %v1223_v22 }
  0x27   : > { %649 = vmatmul.mubr.bf16.vlgmr.msra.gmra.mrb[0].mxu0 %v1224_v26 }
  0x28   : > { %656 = vmatprep.mubr.bf16.mxu0 %v1229_v27 }
  0x29   : > { %1160 = vmatmul.mubr.bf16.vlgmr.msra.gmra.mrb[0].mxu1 %v1228_v28 }
  0x2a   : > { %1163 = vmatprep.mubr.bf16.mxu1 %v1235_v29 }
  0x2f   : > { %657 = vmatmul.mubr.bf16.gmra.mrb[4].mxu0 %v1231_v30 }
  0x30   : > { %664 = vmatprep.mubr.bf16.mxu0 %v1232_v31 }
  0x31   : > { %1164 = vmatmul.mubr.bf16.gmra.mrb[4].mxu1 %v1236_v32 }
  0x32   : > { %1167 = vmatprep.mubr.bf16.mxu1 %v1243_v33 }
  0x37   : > { %665 = vmatmul.mubr.bf16.gmra.mrb[8].mxu0 %v1234_v34 }
  0x38   : > { %672 = vmatprep.mubr.bf16.mxu0 %v1237_v35 }
  0x39   : > { %1168 = vmatmul.mubr.bf16.gmra.mrb[8].mxu1 %v1244_v36 }
  0x3a   : > { %1171 = vmatprep.mubr.bf16.mxu1 %v1251_v37 }
  0x3f   : > { %673 = vmatmul.mubr.bf16.gmra.mrb[12].mxu0 %v1239_v38 }
  0x40   : > { %680 = vmatprep.mubr.bf16.mxu0 %v1240_v39 }
  0x41   : > { %1172 = vmatmul.mubr.bf16.gmra.mrb[12].mxu1 %v1252_v40 }
  0x47   : > { %681 = vmatmul.mubr.bf16.gmra.mrb[16].mxu0 %v1242_v41 }
  0x48   : > { %688 = vmatprep.mubr.bf16.mxu0 %v1245_v42 }
  0x4f   : > { %689 = vmatmul.mubr.bf16.gmra.mrb[20].mxu0 %v1247_v43 }
  0x50   : > { %696 = vmatprep.mubr.bf16.mxu0 %v1248_v44 }
  0x57   : > { %697 = vmatmul.mubr.bf16.gmra.mrb[24].mxu0 %v1250_v45 }
  0x58   : > { %704 = vmatprep.mubr.bf16.mxu0 %v1253_v46 }
  0x5f   : > { %705 = vmatmul.mubr.bf16.gmra.mrb[28].mxu0 %v1255_v47 }
  0xfa   : > { %v1079_v48 = vpop.f32.mrb[0].mxu0 }
  0xfb   : > { %v1080_v49 = vpop.f32.mrb[1].mxu0 }
  0xfc   : > { %v1081_v50 = vadd.f32 %v1080_v49, %v1079_v48  ;;  %v1082_v51 = vpop.f32.mrb[2].mxu0  ;;  %v1161_v52 = vpop.f32.mrb[0].mxu1 }
  0xfd   : > { %v1083_v53 = vpop.f32.mrb[3].mxu0  ;;  %v747_v54 = vpop.f32.mrb[1].mxu1 }
  0xfe   : > { %v1084_v56 = vadd.f32 %v1083_v53, %v1082_v51  ;;  %v748_v57 = vadd.f32 %v1081_v50, %v747_v54  ;;  %v1162_v58 = vpop.f32.mrb[2].mxu1 }
  0xff   : > { %v750_v59 = vpop.f32.mrb[3].mxu1 }
 0x100   : > { %v868_v60 = vadd.f32 %v1428_v55, %v748_v57  ;;  %v751_v61 = vadd.f32 %v1084_v56, %v750_v59 }
 0x102   : > { %v884_v62 = vmax.f32 %v868_v60, 0.0  ;;  %v869_v63 = vadd.f32 %v1428_v55, %v751_v61  ;;  %v1085_v0 = vpop.f32.mrb[4].mxu0 }
 0x103   : > { %v1086_v1 = vpop.f32.mrb[5].mxu0 }
 0x104   : > { %900 = vst [vmem:[%s1435_s27] sm:$0xff] %v884_v62  ;;  %v885_v2 = vmax.f32 %v869_v63, 0.0  ;;  %v1087_v3 = vadd.f32 %v1086_v1, %v1085_v0  ;;  %v1088_v4 = vpop.f32.mrb[6].mxu0  ;;  %v1165_v5 = vpop.f32.mrb[4].mxu1 }
 0x105   : > { %v1089_v6 = vpop.f32.mrb[7].mxu0  ;;  %v763_v7 = vpop.f32.mrb[5].mxu1 }
 0x106   : > { %901 = vst [vmem:[%s1435_s27 + $0x8] sm:$0xff] %v885_v2  ;;  %v756_v8 = vadd.f32 %v1161_v52, %v1087_v3  ;;  %v1090_v9 = vadd.f32 %v1089_v6, %v1088_v4  ;;  %v1166_v10 = vpop.f32.mrb[6].mxu1 }
 0x107   : > { %v766_v11 = vpop.f32.mrb[7].mxu1 }
 0x108   : > { %v870_v12 = vadd.f32 %v1428_v55, %v756_v8  ;;  %v759_v13 = vadd.f32 %v1162_v58, %v1090_v9 }
 0x10a   : > { %v886_v14 = vmax.f32 %v870_v12, 0.0  ;;  %v871_v15 = vadd.f32 %v1428_v55, %v759_v13  ;;  %v1091_v16 = vpop.f32.mrb[8].mxu0 }
 0x10b   : > { %v1092_v17 = vpop.f32.mrb[9].mxu0 }
 0x10c   : > { %902 = vst [vmem:[%s1435_s27 + $0x10] sm:$0xff] %v886_v14  ;;  %v887_v18 = vmax.f32 %v871_v15, 0.0  ;;  %v1093_v19 = vadd.f32 %v1092_v17, %v1091_v16  ;;  %v1094_v20 = vpop.f32.mrb[10].mxu0  ;;  %v1169_v21 = vpop.f32.mrb[8].mxu1 }
 0x10d   : > { %v1095_v22 = vpop.f32.mrb[11].mxu0  ;;  %v779_v23 = vpop.f32.mrb[9].mxu1 }
 0x10e   : > { %903 = vst [vmem:[%s1435_s27 + $0x18] sm:$0xff] %v887_v18  ;;  %v1096_v24 = vadd.f32 %v1095_v22, %v1094_v20  ;;  %v764_v25 = vadd.f32 %v1093_v19, %v763_v7  ;;  %v1170_v26 = vpop.f32.mrb[10].mxu1 }
 0x10f   : > { %v782_v27 = vpop.f32.mrb[11].mxu1 }
 0x110   : > { %v872_v28 = vadd.f32 %v1428_v55, %v764_v25  ;;  %v767_v29 = vadd.f32 %v1096_v24, %v766_v11 }
 0x112   : > { %v888_v30 = vmax.f32 %v872_v28, 0.0  ;;  %v873_v31 = vadd.f32 %v1428_v55, %v767_v29  ;;  %v1097_v32 = vpop.f32.mrb[12].mxu0 }
 0x113   : > { %v1098_v33 = vpop.f32.mrb[13].mxu0 }
 0x114   : > { %904 = vst [vmem:[%s1435_s27 + $0x20] sm:$0xff] %v888_v30  ;;  %v889_v34 = vmax.f32 %v873_v31, 0.0  ;;  %v1099_v35 = vadd.f32 %v1098_v33, %v1097_v32  ;;  %v1100_v36 = vpop.f32.mrb[14].mxu0  ;;  %v1173_v37 = vpop.f32.mrb[12].mxu1 }
 0x115   : > { %v1101_v38 = vpop.f32.mrb[15].mxu0  ;;  %v795_v39 = vpop.f32.mrb[13].mxu1 }
 0x116   : > { %905 = vst [vmem:[%s1435_s27 + $0x28] sm:$0xff] %v889_v34  ;;  %v772_v40 = vadd.f32 %v1165_v5, %v1099_v35  ;;  %v1102_v41 = vadd.f32 %v1101_v38, %v1100_v36  ;;  %v1174_v42 = vpop.f32.mrb[14].mxu1 }
 0x117   : > { %v798_v43 = vpop.f32.mrb[15].mxu1 }
 0x118   : > { %v874_v44 = vadd.f32 %v1428_v55, %v772_v40  ;;  %v775_v45 = vadd.f32 %v1166_v10, %v1102_v41 }
 0x11a   : > { %v890_v46 = vmax.f32 %v874_v44, 0.0  ;;  %v875_v47 = vadd.f32 %v1428_v55, %v775_v45  ;;  %v1103_v48 = vpop.f32.mrb[16].mxu0 }
 0x11b   : > { %v1104_v49 = vpop.f32.mrb[17].mxu0 }
 0x11c   : > { %906 = vst [vmem:[%s1435_s27 + $0x30] sm:$0xff] %v890_v46  ;;  %v891_v50 = vmax.f32 %v875_v47, 0.0  ;;  %v1105_v51 = vadd.f32 %v1104_v49, %v1103_v48  ;;  %v1106_v52 = vpop.f32.mrb[18].mxu0 }
 0x11d   : > { %v1107_v53 = vpop.f32.mrb[19].mxu0 }
 0x11e   : > { %907 = vst [vmem:[%s1435_s27 + $0x38] sm:$0xff] %v891_v50  ;;  %v1108_v54 = vadd.f32 %v1107_v53, %v1106_v52  ;;  %v780_v56 = vadd.f32 %v1105_v51, %v779_v23 }
 0x120   : > { %v876_v57 = vadd.f32 %v1428_v55, %v780_v56  ;;  %v783_v58 = vadd.f32 %v1108_v54, %v782_v27 }
 0x122   : > { %v892_v59 = vmax.f32 %v876_v57, 0.0  ;;  %v877_v60 = vadd.f32 %v1428_v55, %v783_v58  ;;  %v1109_v61 = vpop.f32.mrb[20].mxu0 }
 0x123   : > { %v1110_v62 = vpop.f32.mrb[21].mxu0 }
 0x124   : > { %908 = vst [vmem:[%s1435_s27 + $0x40] sm:$0xff] %v892_v59  ;;  %v893_v63 = vmax.f32 %v877_v60, 0.0  ;;  %v1111_v0 = vadd.f32 %v1110_v62, %v1109_v61  ;;  %v1112_v1 = vpop.f32.mrb[22].mxu0 }
 0x125   : > { %v1113_v2 = vpop.f32.mrb[23].mxu0 }
 0x126   : > { %909 = vst [vmem:[%s1435_s27 + $0x48] sm:$0xff] %v893_v63  ;;  %v788_v3 = vadd.f32 %v1169_v21, %v1111_v0  ;;  %v1114_v4 = vadd.f32 %v1113_v2, %v1112_v1 }
 0x128   : > { %v878_v5 = vadd.f32 %v1428_v55, %v788_v3  ;;  %v791_v6 = vadd.f32 %v1170_v26, %v1114_v4 }
 0x12a   : > { %v894_v7 = vmax.f32 %v878_v5, 0.0  ;;  %v879_v8 = vadd.f32 %v1428_v55, %v791_v6  ;;  %v1115_v9 = vpop.f32.mrb[24].mxu0 }
 0x12b   : > { %v1116_v10 = vpop.f32.mrb[25].mxu0 }
 0x12c   : > { %910 = vst [vmem:[%s1435_s27 + $0x50] sm:$0xff] %v894_v7  ;;  %v895_v11 = vmax.f32 %v879_v8, 0.0  ;;  %v1117_v12 = vadd.f32 %v1116_v10, %v1115_v9  ;;  %v1118_v13 = vpop.f32.mrb[26].mxu0 }
 0x12d   : > { %v1119_v14 = vpop.f32.mrb[27].mxu0 }
 0x12e   : > { %911 = vst [vmem:[%s1435_s27 + $0x58] sm:$0xff] %v895_v11  ;;  %v1120_v15 = vadd.f32 %v1119_v14, %v1118_v13  ;;  %v796_v16 = vadd.f32 %v1117_v12, %v795_v39 }
 0x130   : > { %v880_v17 = vadd.f32 %v1428_v55, %v796_v16  ;;  %v799_v18 = vadd.f32 %v1120_v15, %v798_v43 }
 0x132   : > { %v896_v19 = vmax.f32 %v880_v17, 0.0  ;;  %v881_v20 = vadd.f32 %v1428_v55, %v799_v18  ;;  %v1121_v21 = vpop.f32.mrb[28].mxu0 }
 0x133   : > { %v1122_v22 = vpop.f32.mrb[29].mxu0 }
 0x134   : > { %912 = vst [vmem:[%s1435_s27 + $0x60] sm:$0xff] %v896_v19  ;;  %v897_v23 = vmax.f32 %v881_v20, 0.0  ;;  %v1123_v24 = vadd.f32 %v1122_v22, %v1121_v21  ;;  %v1124_v25 = vpop.f32.mrb[30].mxu0 }
 0x135   : > { %v1125_v26 = vpop.f32.mrb[31].mxu0 }
 0x136   : > { %913 = vst [vmem:[%s1435_s27 + $0x68] sm:$0xff] %v897_v23  ;;  %v804_v27 = vadd.f32 %v1173_v37, %v1123_v24  ;;  %v1126_v28 = vadd.f32 %v1125_v26, %v1124_v25 }
 0x138   : > { %v882_v29 = vadd.f32 %v1428_v55, %v804_v27  ;;  %v807_v30 = vadd.f32 %v1174_v42, %v1126_v28 }
 0x13a   : > { %v898_v31 = vmax.f32 %v882_v29, 0.0  ;;  %v883_v32 = vadd.f32 %v1428_v55, %v807_v30 }
 0x13c   : > { %914 = vst [vmem:[%s1435_s27 + $0x70] sm:$0xff] %v898_v31  ;;  %v899_v33 = vmax.f32 %v883_v32, 0.0 }
 0x13e   : > { %915 = vst [vmem:[%s1435_s27 + $0x78] sm:$0xff] %v899_v33 }
 0x13f PF: > { %s13_s14 = sadd.s32 1, %s1278_s14   ;;  %s1481_s12 = smov %s1274_s13 }
 0x140   : > { %p10_p5 = scmp.ge.s32.totalorder %s13_s14, 6   ;;  %s1482_s13 = smov %s1484_s15 }
 0x142   :  { %12 = sbr.rel (!%p10_p5) target bundleno = 2 (0x2), region = 73 }

// kernel: forward.8
= control target key start
LH: loop header
LB: loop body
LE: loop exit
PB: predicated region body
PF: predicated region fallthrough
CT: control target
= control target key end

     0   :  { %vm125_vm0 = vcmask 523264   ;;  %s894_s0 = inlined_call_operand.vmem [shape: f32[9,104,64], index: 0, kind: input, shape index: {}]   ;;  %s895_s1 = inlined_call_operand.vmem [shape: f32[104,64], index: 1, kind: output, shape index: {}]  }
   0x1   :  { %v8_v0 = vld [vmem:[%s894_s0] sm:$0xff]  ;;  %v21_v1 = vld [vmem:[%s894_s0 + $0x68] sm:$0xff]  ;;  %v34_v2 = vld [vmem:[%s894_s0 + $0xd0] sm:$0xff] }
   0x2   :  { %v47_v3 = vld [vmem:[%s894_s0 + $0x138] sm:$0xff]  ;;  %v60_v4 = vld [vmem:[%s894_s0 + $0x1a0] sm:$0xff]  ;;  %v126_v5 = vsel %vm125_vm0, %v8_v0, -inf  ;;  %v127_v6 = vsel %vm125_vm0, %v21_v1, -inf  ;;  %v129_v7 = vsel %vm125_vm0, %v34_v2, -inf  ;;  %v73_v8 = vld [vmem:[%s894_s0 + $0x208] sm:$0xff] }
   0x3   :  { %v86_v9 = vld [vmem:[%s894_s0 + $0x270] sm:$0xff]  ;;  %v99_v10 = vld [vmem:[%s894_s0 + $0x2d8] sm:$0xff]  ;;  %v128_v11 = vmax.f32 %v126_v5, %v127_v6  ;;  %v131_v12 = vsel %vm125_vm0, %v47_v3, -inf  ;;  %v9_v13 = vld [vmem:[%s894_s0 + $0x8] sm:$0xff]  ;;  %v133_v22 = vsel %vm125_vm0, %v60_v4, -inf  ;;  %v135_v23 = vsel %vm125_vm0, %v73_v8, -inf }
   0x4   :  { %v22_v14 = vld [vmem:[%s894_s0 + $0x70] sm:$0xff]  ;;  %v35_v15 = vld [vmem:[%s894_s0 + $0xd8] sm:$0xff]  ;;  %v112_v16 = vld [vmem:[%s894_s0 + $0x340] sm:$0xff]  ;;  %v143_v19 = vsel %vm125_vm0, %v9_v13, -inf  ;;  %v137_v29 = vsel %vm125_vm0, %v86_v9, -inf  ;;  %v139_v30 = vsel %vm125_vm0, %v99_v10, -inf }
   0x5   :  { %v130_v17 = vmax.f32 %v128_v11, %v129_v7  ;;  %v48_v18 = vld [vmem:[%s894_s0 + $0x140] sm:$0xff]  ;;  %v144_v20 = vsel %vm125_vm0, %v22_v14, -inf  ;;  %v146_v21 = vsel %vm125_vm0, %v35_v15, -inf  ;;  %v61_v24 = vld [vmem:[%s894_s0 + $0x1a8] sm:$0xff]  ;;  %v74_v25 = vld [vmem:[%s894_s0 + $0x210] sm:$0xff]  ;;  %v141_v42 = vsel %vm125_vm0, %v112_v16, -inf }
   0x6   :  { %v87_v26 = vld [vmem:[%s894_s0 + $0x278] sm:$0xff]  ;;  %v145_v27 = vmax.f32 %v143_v19, %v144_v20  ;;  %v148_v31 = vsel %vm125_vm0, %v48_v18, -inf  ;;  %v10_v32 = vld [vmem:[%s894_s0 + $0x10] sm:$0xff]  ;;  %v36_v34 = vld [vmem:[%s894_s0 + $0xe0] sm:$0xff]  ;;  %v150_v44 = vsel %vm125_vm0, %v61_v24, -inf  ;;  %v152_v48 = vsel %vm125_vm0, %v74_v25, -inf }
   0x7   :  { %v132_v28 = vmax.f32 %v130_v17, %v131_v12  ;;  %v23_v33 = vld [vmem:[%s894_s0 + $0x78] sm:$0xff]  ;;  %v100_v35 = vld [vmem:[%s894_s0 + $0x2e0] sm:$0xff]  ;;  %v49_v37 = vld [vmem:[%s894_s0 + $0x148] sm:$0xff]  ;;  %v160_v38 = vsel %vm125_vm0, %v10_v32, -inf  ;;  %v163_v40 = vsel %vm125_vm0, %v36_v34, -inf  ;;  %v154_v49 = vsel %vm125_vm0, %v87_v26, -inf }
   0x8   :  { %v147_v36 = vmax.f32 %v145_v27, %v146_v21  ;;  %v161_v39 = vsel %vm125_vm0, %v23_v33, -inf  ;;  %v113_v43 = vld [vmem:[%s894_s0 + $0x348] sm:$0xff]  ;;  %v62_v45 = vld [vmem:[%s894_s0 + $0x1b0] sm:$0xff]  ;;  %v165_v50 = vsel %vm125_vm0, %v49_v37, -inf  ;;  %v11_v51 = vld [vmem:[%s894_s0 + $0x18] sm:$0xff]  ;;  %v156_v55 = vsel %vm125_vm0, %v100_v35, -inf }
   0x9   :  { %v134_v41 = vmax.f32 %v132_v28, %v133_v22  ;;  %v162_v46 = vmax.f32 %v160_v38, %v161_v39  ;;  %v24_v52 = vld [vmem:[%s894_s0 + $0x80] sm:$0xff]  ;;  %v37_v53 = vld [vmem:[%s894_s0 + $0xe8] sm:$0xff]  ;;  %v75_v56 = vld [vmem:[%s894_s0 + $0x218] sm:$0xff]  ;;  %v177_v60 = vsel %vm125_vm0, %v11_v51, -inf  ;;  %v167_v62 = vsel %vm125_vm0, %v62_v45, -inf }
   0xa   :  { %v149_v47 = vmax.f32 %v147_v36, %v148_v31  ;;  %v88_v57 = vld [vmem:[%s894_s0 + $0x280] sm:$0xff]  ;;  %v50_v59 = vld [vmem:[%s894_s0 + $0x150] sm:$0xff]  ;;  %v63_v63 = vld [vmem:[%s894_s0 + $0x1b8] sm:$0xff]  ;;  %v178_v0 = vsel %vm125_vm0, %v24_v52, -inf  ;;  %v180_v1 = vsel %vm125_vm0, %v37_v53, -inf  ;;  %v158_v3 = vsel %vm125_vm0, %v113_v43, -inf }
   0xb   :  { %v136_v54 = vmax.f32 %v134_v41, %v135_v23  ;;  %v164_v58 = vmax.f32 %v162_v46, %v163_v40  ;;  %v179_v5 = vmax.f32 %v177_v60, %v178_v0  ;;  %v12_v6 = vld [vmem:[%s894_s0 + $0x20] sm:$0xff]  ;;  %v25_v7 = vld [vmem:[%s894_s0 + $0x88] sm:$0xff]  ;;  %v38_v8 = vld [vmem:[%s894_s0 + $0xf0] sm:$0xff]  ;;  %v169_v10 = vsel %vm125_vm0, %v75_v56, -inf }
   0xc   :  { %v151_v61 = vmax.f32 %v149_v47, %v150_v44  ;;  %v171_v11 = vsel %vm125_vm0, %v88_v57, -inf  ;;  %v182_v12 = vsel %vm125_vm0, %v50_v59, -inf  ;;  %v101_v14 = vld [vmem:[%s894_s0 + $0x2e8] sm:$0xff]  ;;  %v76_v16 = vld [vmem:[%s894_s0 + $0x220] sm:$0xff]  ;;  %v184_v18 = vsel %vm125_vm0, %v63_v63, -inf  ;;  %v51_v19 = vld [vmem:[%s894_s0 + $0x158] sm:$0xff] }
   0xd   :  { %v138_v2 = vmax.f32 %v136_v54, %v137_v29  ;;  %v166_v4 = vmax.f32 %v164_v58, %v165_v50  ;;  %v181_v17 = vmax.f32 %v179_v5, %v180_v1  ;;  %v114_v21 = vld [vmem:[%s894_s0 + $0x350] sm:$0xff]  ;;  %v194_v22 = vsel %vm125_vm0, %v12_v6, -inf  ;;  %v89_v27 = vld [vmem:[%s894_s0 + $0x288] sm:$0xff]  ;;  %v64_v29 = vld [vmem:[%s894_s0 + $0x1c0] sm:$0xff] }
   0xe   :  { %v153_v9 = vmax.f32 %v151_v61, %v152_v48  ;;  %v195_v23 = vsel %vm125_vm0, %v25_v7, -inf  ;;  %v197_v24 = vsel %vm125_vm0, %v38_v8, -inf  ;;  %v13_v31 = vld [vmem:[%s894_s0 + $0x28] sm:$0xff]  ;;  %v173_v33 = vsel %vm125_vm0, %v101_v14, -inf  ;;  %v26_v36 = vld [vmem:[%s894_s0 + $0x90] sm:$0xff]  ;;  %v39_v43 = vld [vmem:[%s894_s0 + $0xf8] sm:$0xff] }
   0xf   :  { %v140_v13 = vmax.f32 %v138_v2, %v139_v30  ;;  %v168_v15 = vmax.f32 %v166_v4, %v167_v62  ;;  %v183_v28 = vmax.f32 %v181_v17, %v182_v12  ;;  %v196_v30 = vmax.f32 %v194_v22, %v195_v23  ;;  %v102_v39 = vld [vmem:[%s894_s0 + $0x2f0] sm:$0xff]  ;;  %v77_v41 = vld [vmem:[%s894_s0 + $0x228] sm:$0xff]  ;;  %v52_v47 = vld [vmem:[%s894_s0 + $0x160] sm:$0xff] }
  0x10   :  { %v155_v20 = vmax.f32 %v153_v9, %v154_v49  ;;  %v186_v34 = vsel %vm125_vm0, %v76_v16, -inf  ;;  %v199_v35 = vsel %vm125_vm0, %v51_v19, -inf  ;;  %v175_v38 = vsel %vm125_vm0, %v114_v21, -inf  ;;  %v115_v50 = vld [vmem:[%s894_s0 + $0x358] sm:$0xff]  ;;  %v90_v52 = vld [vmem:[%s894_s0 + $0x290] sm:$0xff]  ;;  %v65_v54 = vld [vmem:[%s894_s0 + $0x1c8] sm:$0xff] }
  0x11   :  { %v142_v25 = vmax.f32 %v140_v13, %v141_v42  ;;  %v170_v26 = vmax.f32 %v168_v15, %v169_v10  ;;  %v185_v40 = vmax.f32 %v183_v28, %v184_v18  ;;  %v198_v42 = vmax.f32 %v196_v30, %v197_v24  ;;  %v14_v60 = vld [vmem:[%s894_s0 + $0x30] sm:$0xff]  ;;  %v27_v61 = vld [vmem:[%s894_s0 + $0x98] sm:$0xff]  ;;  %v53_v9 = vld [vmem:[%s894_s0 + $0x168] sm:$0xff] }
  0x12   :  { %v157_v32 = vmax.f32 %v155_v20, %v156_v55  ;;  %v188_v45 = vsel %vm125_vm0, %v89_v27, -inf  ;;  %v201_v46 = vsel %vm125_vm0, %v64_v29, -inf  ;;  %v211_v48 = vsel %vm125_vm0, %v13_v31, -inf  ;;  %v103_v0 = vld [vmem:[%s894_s0 + $0x2f8] sm:$0xff]  ;;  %v78_v6 = vld [vmem:[%s894_s0 + $0x230] sm:$0xff]  ;;  %v28_v22 = vld [vmem:[%s894_s0 + $0xa0] sm:$0xff] }
  0x13   :  { %347 = vst.msk [vmem:[%s895_s1] sm:$0xff] %vm125_vm0, %v142_v25  ;;  %v172_v37 = vmax.f32 %v170_v26, %v171_v11  ;;  %v187_v51 = vmax.f32 %v185_v40, %v186_v34  ;;  %v200_v53 = vmax.f32 %v198_v42, %v199_v35  ;;  %v212_v55 = vsel %vm125_vm0, %v26_v36, -inf  ;;  %v116_v11 = vld [vmem:[%s894_s0 + $0x360] sm:$0xff]  ;;  %v91_v13 = vld [vmem:[%s894_s0 + $0x298] sm:$0xff]  ;;  %v66_v18 = vld [vmem:[%s894_s0 + $0x1d0] sm:$0xff] }
  0x14   :  { %v159_v44 = vmax.f32 %v157_v32, %v158_v3  ;;  %v190_v56 = vsel %vm125_vm0, %v102_v39, -inf  ;;  %v203_v57 = vsel %vm125_vm0, %v77_v41, -inf  ;;  %v213_v58 = vmax.f32 %v211_v48, %v212_v55  ;;  %v40_v3 = vld [vmem:[%s894_s0 + $0x100] sm:$0xff]  ;;  %v15_v21 = vld [vmem:[%s894_s0 + $0x38] sm:$0xff]  ;;  %v41_v27 = vld [vmem:[%s894_s0 + $0x108] sm:$0xff] }
  0x15   :  { %v174_v49 = vmax.f32 %v172_v37, %v173_v33  ;;  %v214_v59 = vsel %vm125_vm0, %v39_v43, -inf  ;;  %v189_v63 = vmax.f32 %v187_v51, %v188_v45  ;;  %v202_v1 = vmax.f32 %v200_v53, %v201_v46  ;;  %v104_v29 = vld [vmem:[%s894_s0 + $0x300] sm:$0xff]  ;;  %v79_v32 = vld [vmem:[%s894_s0 + $0x238] sm:$0xff]  ;;  %v54_v34 = vld [vmem:[%s894_s0 + $0x170] sm:$0xff] }
  0x16   :  { %348 = vst.msk [vmem:[%s895_s1 + $0x8] sm:$0xff] %vm125_vm0, %v159_v44  ;;  %v216_v2 = vsel %vm125_vm0, %v52_v47, -inf  ;;  %v192_v4 = vsel %vm125_vm0, %v115_v50, -inf  ;;  %v205_v5 = vsel %vm125_vm0, %v90_v52, -inf  ;;  %v215_v7 = vmax.f32 %v213_v58, %v214_v59  ;;  %v117_v36 = vld [vmem:[%s894_s0 + $0x368] sm:$0xff]  ;;  %v92_v37 = vld [vmem:[%s894_s0 + $0x2a0] sm:$0xff] }
  0x17   :  { %v176_v62 = vmax.f32 %v174_v49, %v175_v38  ;;  %v218_v8 = vsel %vm125_vm0, %v65_v54, -inf  ;;  %v191_v10 = vmax.f32 %v189_v63, %v190_v56  ;;  %v204_v12 = vmax.f32 %v202_v1, %v203_v57  ;;  %v67_v43 = vld [vmem:[%s894_s0 + $0x1d8] sm:$0xff]  ;;  %v16_v46 = vld [vmem:[%s894_s0 + $0x40] sm:$0xff]  ;;  %v29_v47 = vld [vmem:[%s894_s0 + $0xa8] sm:$0xff] }
  0x18   :  { %v228_v14 = vsel %vm125_vm0, %v14_v60, -inf  ;;  %v229_v15 = vsel %vm125_vm0, %v27_v61, -inf  ;;  %v207_v16 = vsel %vm125_vm0, %v103_v0, -inf  ;;  %v217_v17 = vmax.f32 %v215_v7, %v216_v2  ;;  %v105_v50 = vld [vmem:[%s894_s0 + $0x308] sm:$0xff]  ;;  %v80_v56 = vld [vmem:[%s894_s0 + $0x240] sm:$0xff]  ;;  %v42_v58 = vld [vmem:[%s894_s0 + $0x110] sm:$0xff] }
  0x19   :  { %349 = vst.msk [vmem:[%s895_s1 + $0x10] sm:$0xff] %vm125_vm0, %v176_v62  ;;  %v230_v19 = vmax.f32 %v228_v14, %v229_v15  ;;  %v231_v20 = vsel %vm125_vm0, %v40_v3, -inf  ;;  %v193_v23 = vmax.f32 %v191_v10, %v192_v4  ;;  %v206_v24 = vmax.f32 %v204_v12, %v205_v5  ;;  %v55_v59 = vld [vmem:[%s894_s0 + $0x178] sm:$0xff]  ;;  %v118_v60 = vld [vmem:[%s894_s0 + $0x370] sm:$0xff]  ;;  %v93_v3 = vld [vmem:[%s894_s0 + $0x2a8] sm:$0xff] }
  0x1a   :  { %v220_v25 = vsel %vm125_vm0, %v78_v6, -inf  ;;  %v233_v26 = vsel %vm125_vm0, %v53_v9, -inf  ;;  %v209_v28 = vsel %vm125_vm0, %v116_v11, -inf  ;;  %v219_v30 = vmax.f32 %v217_v17, %v218_v8  ;;  %v68_v5 = vld [vmem:[%s894_s0 + $0x1e0] sm:$0xff]  ;;  %v17_v7 = vld [vmem:[%s894_s0 + $0x48] sm:$0xff]  ;;  %v30_v12 = vld [vmem:[%s894_s0 + $0xb0] sm:$0xff] }
  0x1b   :  { %v222_v31 = vsel %vm125_vm0, %v91_v13, -inf  ;;  %v232_v33 = vmax.f32 %v230_v19, %v231_v20  ;;  %350 = vst.msk [vmem:[%s895_s1 + $0x18] sm:$0xff] %vm125_vm0, %v193_v23  ;;  %v208_v35 = vmax.f32 %v206_v24, %v207_v16  ;;  %v235_v38 = vsel %vm125_vm0, %v66_v18, -inf  ;;  %v106_v15 = vld [vmem:[%s894_s0 + $0x310] sm:$0xff]  ;;  %v81_v17 = vld [vmem:[%s894_s0 + $0x248] sm:$0xff]  ;;  %v43_v19 = vld [vmem:[%s894_s0 + $0x118] sm:$0xff] }
  0x1c   :  { %v245_v39 = vsel %vm125_vm0, %v15_v21, -inf  ;;  %v246_v40 = vsel %vm125_vm0, %v28_v22, -inf  ;;  %v221_v41 = vmax.f32 %v219_v30, %v220_v25  ;;  %v248_v45 = vsel %vm125_vm0, %v41_v27, -inf  ;;  %v56_v23 = vld [vmem:[%s894_s0 + $0x180] sm:$0xff]  ;;  %v69_v30 = vld [vmem:[%s894_s0 + $0x1e8] sm:$0xff] }
  0x1d   :  { %v234_v42 = vmax.f32 %v232_v33, %v233_v26  ;;  %v247_v44 = vmax.f32 %v245_v39, %v246_v40  ;;  %v210_v48 = vmax.f32 %v208_v35, %v209_v28  ;;  %v224_v49 = vsel %vm125_vm0, %v104_v29, -inf  ;;  %v119_v26 = vld [vmem:[%s894_s0 + $0x378] sm:$0xff]  ;;  %v94_v28 = vld [vmem:[%s894_s0 + $0x2b0] sm:$0xff] }
  0x1e   :  { %v237_v51 = vsel %vm125_vm0, %v79_v32, -inf  ;;  %v250_v52 = vsel %vm125_vm0, %v54_v34, -inf  ;;  %v223_v53 = vmax.f32 %v221_v41, %v222_v31  ;;  %v226_v54 = vsel %vm125_vm0, %v117_v36, -inf  ;;  %v18_v36 = vld [vmem:[%s894_s0 + $0x50] sm:$0xff]  ;;  %v107_v40 = vld [vmem:[%s894_s0 + $0x318] sm:$0xff] }
  0x1f   :  { %v236_v55 = vmax.f32 %v234_v42, %v235_v38  ;;  %v249_v57 = vmax.f32 %v247_v44, %v248_v45  ;;  %351 = vst.msk [vmem:[%s895_s1 + $0x20] sm:$0xff] %vm125_vm0, %v210_v48  ;;  %v239_v61 = vsel %vm125_vm0, %v92_v37, -inf  ;;  %v252_v62 = vsel %vm125_vm0, %v67_v43, -inf  ;;  %v31_v37 = vld [vmem:[%s894_s0 + $0xb8] sm:$0xff]  ;;  %v44_v43 = vld [vmem:[%s894_s0 + $0x120] sm:$0xff] }
  0x20   :  { %v262_v63 = vsel %vm125_vm0, %v16_v46, -inf  ;;  %v263_v0 = vsel %vm125_vm0, %v29_v47, -inf  ;;  %v225_v1 = vmax.f32 %v223_v53, %v224_v49  ;;  %v241_v8 = vsel %vm125_vm0, %v105_v50, -inf  ;;  %v82_v46 = vld [vmem:[%s894_s0 + $0x250] sm:$0xff]  ;;  %v57_v49 = vld [vmem:[%s894_s0 + $0x188] sm:$0xff]  ;;  %v95_v53 = vld [vmem:[%s894_s0 + $0x2b8] sm:$0xff] }
  0x21   :  { %v238_v2 = vmax.f32 %v236_v55, %v237_v51  ;;  %v251_v4 = vmax.f32 %v249_v57, %v250_v52  ;;  %v264_v6 = vmax.f32 %v262_v63, %v263_v0  ;;  %v254_v9 = vsel %vm125_vm0, %v80_v56, -inf  ;;  %v120_v51 = vld [vmem:[%s894_s0 + $0x380] sm:$0xff] }
  0x22   :  { %v265_v10 = vsel %vm125_vm0, %v42_v58, -inf  ;;  %v267_v11 = vsel %vm125_vm0, %v55_v59, -inf  ;;  %v227_v13 = vmax.f32 %v225_v1, %v226_v54  ;;  %v243_v20 = vsel %vm125_vm0, %v118_v60, -inf  ;;  %v70_v58 = vld [vmem:[%s894_s0 + $0x1f0] sm:$0xff] }
  0x23   :  { %v240_v14 = vmax.f32 %v238_v2, %v239_v61  ;;  %v253_v16 = vmax.f32 %v251_v4, %v252_v62  ;;  %v266_v18 = vmax.f32 %v264_v6, %v265_v10  ;;  %v256_v21 = vsel %vm125_vm0, %v93_v3, -inf  ;;  %v19_v61 = vld [vmem:[%s894_s0 + $0x58] sm:$0xff]  ;;  %v32_v62 = vld [vmem:[%s894_s0 + $0xc0] sm:$0xff]  ;;  %v45_v3 = vld [vmem:[%s894_s0 + $0x128] sm:$0xff] }
  0x24   :  { %v269_v22 = vsel %vm125_vm0, %v68_v5, -inf  ;;  %v279_v24 = vsel %vm125_vm0, %v17_v7, -inf  ;;  %352 = vst.msk [vmem:[%s895_s1 + $0x28] sm:$0xff] %vm125_vm0, %v227_v13  ;;  %v280_v31 = vsel %vm125_vm0, %v30_v12, -inf  ;;  %v258_v32 = vsel %vm125_vm0, %v106_v15, -inf  ;;  %v108_v5 = vld [vmem:[%s894_s0 + $0x320] sm:$0xff] }
  0x25   :  { %v242_v25 = vmax.f32 %v240_v14, %v241_v8  ;;  %v255_v27 = vmax.f32 %v253_v16, %v254_v9  ;;  %v268_v29 = vmax.f32 %v266_v18, %v267_v11  ;;  %v271_v33 = vsel %vm125_vm0, %v81_v17, -inf  ;;  %v83_v8 = vld [vmem:[%s894_s0 + $0x258] sm:$0xff]  ;;  %v58_v10 = vld [vmem:[%s894_s0 + $0x190] sm:$0xff]  ;;  %v121_v12 = vld [vmem:[%s894_s0 + $0x388] sm:$0xff] }
  0x26   :  { %v281_v34 = vmax.f32 %v279_v24, %v280_v31  ;;  %v282_v35 = vsel %vm125_vm0, %v43_v19, -inf  ;;  %v284_v42 = vsel %vm125_vm0, %v56_v23, -inf  ;;  %v260_v44 = vsel %vm125_vm0, %v119_v26, -inf  ;;  %v96_v13 = vld [vmem:[%s894_s0 + $0x2c0] sm:$0xff]  ;;  %v71_v19 = vld [vmem:[%s894_s0 + $0x1f8] sm:$0xff]  ;;  %v33_v23 = vld [vmem:[%s894_s0 + $0xc8] sm:$0xff] }
  0x27   :  { %v244_v38 = vmax.f32 %v242_v25, %v243_v20  ;;  %v257_v39 = vmax.f32 %v255_v27, %v256_v21  ;;  %v270_v41 = vmax.f32 %v268_v29, %v269_v22  ;;  %v273_v45 = vsel %vm125_vm0, %v94_v28, -inf  ;;  %v20_v22 = vld [vmem:[%s894_s0 + $0x60] sm:$0xff]  ;;  %v109_v26 = vld [vmem:[%s894_s0 + $0x328] sm:$0xff] }
  0x28   :  { %v283_v47 = vmax.f32 %v281_v34, %v282_v35  ;;  %v286_v48 = vsel %vm125_vm0, %v69_v30, -inf  ;;  %v296_v54 = vsel %vm125_vm0, %v18_v36, -inf  ;;  %v297_v55 = vsel %vm125_vm0, %v31_v37, -inf  ;;  %v46_v34 = vld [vmem:[%s894_s0 + $0x130] sm:$0xff]  ;;  %v59_v35 = vld [vmem:[%s894_s0 + $0x198] sm:$0xff] }
  0x29   :  { %353 = vst.msk [vmem:[%s895_s1 + $0x30] sm:$0xff] %vm125_vm0, %v244_v38  ;;  %v259_v50 = vmax.f32 %v257_v39, %v258_v32  ;;  %v272_v52 = vmax.f32 %v270_v41, %v271_v33  ;;  %v275_v56 = vsel %vm125_vm0, %v107_v40, -inf  ;;  %v298_v59 = vmax.f32 %v296_v54, %v297_v55  ;;  %v84_v32 = vld [vmem:[%s894_s0 + $0x260] sm:$0xff]  ;;  %v122_v41 = vld [vmem:[%s894_s0 + $0x390] sm:$0xff]  ;;  %v85_v55 = vld [vmem:[%s894_s0 + $0x268] sm:$0xff] }
  0x2a   :  { %v285_v57 = vmax.f32 %v283_v47, %v284_v42  ;;  %v299_v60 = vsel %vm125_vm0, %v44_v43, -inf  ;;  %v288_v1 = vsel %vm125_vm0, %v82_v46, -inf  ;;  %v301_v2 = vsel %vm125_vm0, %v57_v49, -inf  ;;  %v97_v43 = vld [vmem:[%s894_s0 + $0x2c8] sm:$0xff] }
  0x2b   :  { %v261_v63 = vmax.f32 %v259_v50, %v260_v44  ;;  %v274_v0 = vmax.f32 %v272_v52, %v273_v45  ;;  %v277_v4 = vsel %vm125_vm0, %v120_v51, -inf  ;;  %v290_v7 = vsel %vm125_vm0, %v95_v53, -inf  ;;  %v72_v45 = vld [vmem:[%s894_s0 + $0x200] sm:$0xff]  ;;  %v110_v53 = vld [vmem:[%s894_s0 + $0x330] sm:$0xff] }
  0x2c   :  { %v287_v6 = vmax.f32 %v285_v57, %v286_v48  ;;  %v300_v9 = vmax.f32 %v298_v59, %v299_v60  ;;  %v303_v14 = vsel %vm125_vm0, %v70_v58, -inf  ;;  %v313_v15 = vsel %vm125_vm0, %v19_v61, -inf  ;;  %v123_v61 = vld [vmem:[%s894_s0 + $0x398] sm:$0xff] }
  0x2d   :  { %354 = vst.msk [vmem:[%s895_s1 + $0x38] sm:$0xff] %vm125_vm0, %v261_v63  ;;  %v276_v11 = vmax.f32 %v274_v0, %v275_v56  ;;  %v314_v16 = vsel %vm125_vm0, %v32_v62, -inf  ;;  %v316_v21 = vsel %vm125_vm0, %v45_v3, -inf  ;;  %v292_v25 = vsel %vm125_vm0, %v108_v5, -inf  ;;  %v98_v63 = vld [vmem:[%s894_s0 + $0x2d0] sm:$0xff]  ;;  %v111_v5 = vld [vmem:[%s894_s0 + $0x338] sm:$0xff] }
  0x2e   :  { %v289_v17 = vmax.f32 %v287_v6, %v288_v1  ;;  %v302_v18 = vmax.f32 %v300_v9, %v301_v2  ;;  %v315_v20 = vmax.f32 %v313_v15, %v314_v16  ;;  %v305_v27 = vsel %vm125_vm0, %v83_v8, -inf }
  0x2f   :  { %v278_v24 = vmax.f32 %v276_v11, %v277_v4  ;;  %v318_v28 = vsel %vm125_vm0, %v58_v10, -inf  ;;  %v294_v30 = vsel %vm125_vm0, %v121_v12, -inf  ;;  %v307_v36 = vsel %vm125_vm0, %v96_v13, -inf  ;;  %v124_v10 = vld [vmem:[%s894_s0 + $0x3a0] sm:$0xff] }
  0x30   :  { %v291_v29 = vmax.f32 %v289_v17, %v290_v7  ;;  %v304_v31 = vmax.f32 %v302_v18, %v303_v14  ;;  %v317_v33 = vmax.f32 %v315_v20, %v316_v21  ;;  %v320_v37 = vsel %vm125_vm0, %v71_v19, -inf }
  0x31   :  { %355 = vst.msk [vmem:[%s895_s1 + $0x40] sm:$0xff] %vm125_vm0, %v278_v24  ;;  %v330_v38 = vsel %vm125_vm0, %v20_v22, -inf  ;;  %v331_v39 = vsel %vm125_vm0, %v33_v23, -inf  ;;  %v309_v47 = vsel %vm125_vm0, %v109_v26, -inf  ;;  %v322_v48 = vsel %vm125_vm0, %v84_v32, -inf }
  0x32   :  { %v293_v40 = vmax.f32 %v291_v29, %v292_v25  ;;  %v306_v42 = vmax.f32 %v304_v31, %v305_v27  ;;  %v319_v44 = vmax.f32 %v317_v33, %v318_v28  ;;  %v332_v46 = vmax.f32 %v330_v38, %v331_v39 }
  0x33   :  { %v333_v49 = vsel %vm125_vm0, %v46_v34, -inf  ;;  %v335_v50 = vsel %vm125_vm0, %v59_v35, -inf  ;;  %v311_v57 = vsel %vm125_vm0, %v122_v41, -inf  ;;  %v324_v58 = vsel %vm125_vm0, %v97_v43, -inf }
  0x34   :  { %v295_v51 = vmax.f32 %v293_v40, %v294_v30  ;;  %v308_v52 = vmax.f32 %v306_v42, %v307_v36  ;;  %v321_v54 = vmax.f32 %v319_v44, %v320_v37  ;;  %v334_v56 = vmax.f32 %v332_v46, %v333_v49 }
  0x35   :  { %v337_v59 = vsel %vm125_vm0, %v72_v45, -inf  ;;  %v326_v1 = vsel %vm125_vm0, %v110_v53, -inf  ;;  %v339_v2 = vsel %vm125_vm0, %v85_v55, -inf  ;;  %v328_v7 = vsel %vm125_vm0, %v123_v61, -inf }
  0x36   :  { %356 = vst.msk [vmem:[%s895_s1 + $0x48] sm:$0xff] %vm125_vm0, %v295_v51  ;;  %v310_v60 = vmax.f32 %v308_v52, %v309_v47  ;;  %v323_v62 = vmax.f32 %v321_v54, %v322_v48  ;;  %v336_v0 = vmax.f32 %v334_v56, %v335_v50  ;;  %v341_v8 = vsel %vm125_vm0, %v98_v63, -inf }
  0x37   :  { %v343_v12 = vsel %vm125_vm0, %v111_v5, -inf  ;;  %v345_v15 = vsel %vm125_vm0, %v124_v10, -inf }
  0x38   :  { %v312_v3 = vmax.f32 %v310_v60, %v311_v57  ;;  %v325_v4 = vmax.f32 %v323_v62, %v324_v58  ;;  %v338_v6 = vmax.f32 %v336_v0, %v337_v59 }
  0x3a   :  { %357 = vst.msk [vmem:[%s895_s1 + $0x50] sm:$0xff] %vm125_vm0, %v312_v3  ;;  %v327_v9 = vmax.f32 %v325_v4, %v326_v1  ;;  %v340_v11 = vmax.f32 %v338_v6, %v339_v2 }
  0x3c   :  { %v329_v13 = vmax.f32 %v327_v9, %v328_v7  ;;  %v342_v14 = vmax.f32 %v340_v11, %v341_v8 }
  0x3e   :  { %358 = vst.msk [vmem:[%s895_s1 + $0x58] sm:$0xff] %vm125_vm0, %v329_v13  ;;  %v344_v16 = vmax.f32 %v342_v14, %v343_v12 }
  0x40   :  { %v346_v17 = vmax.f32 %v344_v16, %v345_v15 }
  0x42   :  { %359 = vst.msk [vmem:[%s895_s1 + $0x60] sm:$0xff] %vm125_vm0, %v346_v17 }

// kernel: forward.10
= control target key start
LH: loop header
LB: loop body
LE: loop exit
PB: predicated region body
PF: predicated region fallthrough
CT: control target
= control target key end

     0   :  { %vm70_vm0 = vcmask 523264   ;;  %s368_s0 = inlined_call_operand.vmem [shape: f32[9,24,192], index: 0, kind: input, shape index: {}]   ;;  %s369_s1 = inlined_call_operand.vmem [shape: f32[24,192], index: 1, kind: output, shape index: {}]  }
   0x1   :  { %v8_v0 = vld [vmem:[%s368_s0] sm:$0xff]  ;;  %v14_v1 = vld [vmem:[%s368_s0 + $0x30] sm:$0xff]  ;;  %v9_v6 = vld [vmem:[%s368_s0 + $0x8] sm:$0xff] }
   0x2   :  { %v20_v2 = vld [vmem:[%s368_s0 + $0x60] sm:$0xff]  ;;  %v62_v3 = vmax.f32 %v8_v0, %v14_v1  ;;  %v26_v4 = vld [vmem:[%s368_s0 + $0x90] sm:$0xff]  ;;  %v15_v7 = vld [vmem:[%s368_s0 + $0x38] sm:$0xff]  ;;  %v71_v11 = vsel %vm70_vm0, %v9_v6, -inf }
   0x3   :  { %v21_v8 = vld [vmem:[%s368_s0 + $0x68] sm:$0xff]  ;;  %v32_v9 = vld [vmem:[%s368_s0 + $0xc0] sm:$0xff]  ;;  %v27_v10 = vld [vmem:[%s368_s0 + $0x98] sm:$0xff]  ;;  %v72_v12 = vsel %vm70_vm0, %v15_v7, -inf }
   0x4   :  { %v63_v5 = vmax.f32 %v62_v3, %v20_v2  ;;  %v74_v13 = vsel %vm70_vm0, %v21_v8, -inf  ;;  %v33_v15 = vld [vmem:[%s368_s0 + $0xc8] sm:$0xff]  ;;  %v73_v16 = vmax.f32 %v71_v11, %v72_v12  ;;  %v38_v17 = vld [vmem:[%s368_s0 + $0xf0] sm:$0xff]  ;;  %v76_v18 = vsel %vm70_vm0, %v27_v10, -inf  ;;  %v16_v20 = vld [vmem:[%s368_s0 + $0x40] sm:$0xff] }
   0x5   :  { %v10_v19 = vld [vmem:[%s368_s0 + $0x10] sm:$0xff]  ;;  %v39_v22 = vld [vmem:[%s368_s0 + $0xf8] sm:$0xff]  ;;  %v44_v26 = vld [vmem:[%s368_s0 + $0x120] sm:$0xff]  ;;  %v78_v28 = vsel %vm70_vm0, %v33_v15, -inf }
   0x6   :  { %v64_v14 = vmax.f32 %v63_v5, %v26_v4  ;;  %v75_v23 = vmax.f32 %v73_v16, %v74_v13  ;;  %v22_v24 = vld [vmem:[%s368_s0 + $0x70] sm:$0xff]  ;;  %v88_v25 = vmax.f32 %v10_v19, %v16_v20  ;;  %v28_v29 = vld [vmem:[%s368_s0 + $0xa0] sm:$0xff]  ;;  %v45_v31 = vld [vmem:[%s368_s0 + $0x128] sm:$0xff]  ;;  %v80_v36 = vsel %vm70_vm0, %v39_v22, -inf }
   0x7   :  { %v50_v27 = vld [vmem:[%s368_s0 + $0x150] sm:$0xff]  ;;  %v11_v34 = vld [vmem:[%s368_s0 + $0x18] sm:$0xff]  ;;  %v17_v35 = vld [vmem:[%s368_s0 + $0x48] sm:$0xff]  ;;  %v82_v50 = vsel %vm70_vm0, %v45_v31, -inf }
   0x8   :  { %v65_v21 = vmax.f32 %v64_v14, %v32_v9  ;;  %v77_v32 = vmax.f32 %v75_v23, %v76_v18  ;;  %v89_v33 = vmax.f32 %v88_v25, %v22_v24  ;;  %v34_v37 = vld [vmem:[%s368_s0 + $0xd0] sm:$0xff]  ;;  %v23_v38 = vld [vmem:[%s368_s0 + $0x78] sm:$0xff]  ;;  %v29_v39 = vld [vmem:[%s368_s0 + $0xa8] sm:$0xff]  ;;  %v96_v40 = vsel %vm70_vm0, %v11_v34, -inf }
   0x9   :  { %v97_v41 = vsel %vm70_vm0, %v17_v35, -inf  ;;  %v56_v42 = vld [vmem:[%s368_s0 + $0x180] sm:$0xff]  ;;  %v51_v44 = vld [vmem:[%s368_s0 + $0x158] sm:$0xff]  ;;  %v57_v49 = vld [vmem:[%s368_s0 + $0x188] sm:$0xff]  ;;  %v99_v52 = vsel %vm70_vm0, %v23_v38, -inf  ;;  %v101_v53 = vsel %vm70_vm0, %v29_v39, -inf }
   0xa   :  { %v66_v30 = vmax.f32 %v65_v21, %v38_v17  ;;  %v79_v45 = vmax.f32 %v77_v32, %v78_v28  ;;  %v90_v46 = vmax.f32 %v89_v33, %v28_v29  ;;  %v35_v47 = vld [vmem:[%s368_s0 + $0xd8] sm:$0xff]  ;;  %v98_v48 = vmax.f32 %v96_v40, %v97_v41  ;;  %v40_v51 = vld [vmem:[%s368_s0 + $0x100] sm:$0xff]  ;;  %v41_v58 = vld [vmem:[%s368_s0 + $0x108] sm:$0xff] }
   0xb   :  { %v12_v54 = vld [vmem:[%s368_s0 + $0x20] sm:$0xff]  ;;  %v18_v60 = vld [vmem:[%s368_s0 + $0x50] sm:$0xff]  ;;  %v84_v62 = vsel %vm70_vm0, %v51_v44, -inf  ;;  %v103_v1 = vsel %vm70_vm0, %v35_v47, -inf  ;;  %v47_v6 = vld [vmem:[%s368_s0 + $0x138] sm:$0xff]  ;;  %v86_v10 = vsel %vm70_vm0, %v57_v49, -inf }
   0xc   :  { %v67_v43 = vmax.f32 %v66_v30, %v44_v26  ;;  %v81_v56 = vmax.f32 %v79_v45, %v80_v36  ;;  %v91_v57 = vmax.f32 %v90_v46, %v34_v37  ;;  %v100_v59 = vmax.f32 %v98_v48, %v99_v52  ;;  %v24_v61 = vld [vmem:[%s368_s0 + $0x80] sm:$0xff]  ;;  %v46_v63 = vld [vmem:[%s368_s0 + $0x130] sm:$0xff]  ;;  %v13_v9 = vld [vmem:[%s368_s0 + $0x28] sm:$0xff] }
   0xd   :  { %v52_v0 = vld [vmem:[%s368_s0 + $0x160] sm:$0xff]  ;;  %v113_v2 = vmax.f32 %v12_v54, %v18_v60  ;;  %v30_v8 = vld [vmem:[%s368_s0 + $0xb0] sm:$0xff]  ;;  %v105_v11 = vsel %vm70_vm0, %v41_v58, -inf  ;;  %v19_v13 = vld [vmem:[%s368_s0 + $0x58] sm:$0xff]  ;;  %v121_v16 = vsel %vm70_vm0, %v13_v9, -inf  ;;  %v107_v24 = vsel %vm70_vm0, %v47_v6, -inf }
   0xe   :  { %v68_v55 = vmax.f32 %v67_v43, %v50_v27  ;;  %v83_v4 = vmax.f32 %v81_v56, %v82_v50  ;;  %v92_v5 = vmax.f32 %v91_v57, %v40_v51  ;;  %v102_v7 = vmax.f32 %v100_v59, %v101_v53  ;;  %v25_v14 = vld [vmem:[%s368_s0 + $0x88] sm:$0xff]  ;;  %v31_v15 = vld [vmem:[%s368_s0 + $0xb8] sm:$0xff]  ;;  %v36_v21 = vld [vmem:[%s368_s0 + $0xe0] sm:$0xff] }
   0xf   :  { %v114_v12 = vmax.f32 %v113_v2, %v24_v61  ;;  %v53_v19 = vld [vmem:[%s368_s0 + $0x168] sm:$0xff]  ;;  %v122_v22 = vsel %vm70_vm0, %v19_v13, -inf  ;;  %v58_v23 = vld [vmem:[%s368_s0 + $0x190] sm:$0xff]  ;;  %v124_v28 = vsel %vm70_vm0, %v25_v14, -inf  ;;  %v59_v31 = vld [vmem:[%s368_s0 + $0x198] sm:$0xff]  ;;  %v126_v34 = vsel %vm70_vm0, %v31_v15, -inf }
  0x10   :  { %v69_v3 = vmax.f32 %v68_v55, %v56_v42  ;;  %v85_v17 = vmax.f32 %v83_v4, %v84_v62  ;;  %v93_v18 = vmax.f32 %v92_v5, %v46_v63  ;;  %v104_v20 = vmax.f32 %v102_v7, %v103_v1  ;;  %v37_v26 = vld [vmem:[%s368_s0 + $0xe8] sm:$0xff]  ;;  %v42_v33 = vld [vmem:[%s368_s0 + $0x110] sm:$0xff]  ;;  %v43_v37 = vld [vmem:[%s368_s0 + $0x118] sm:$0xff] }
  0x11   :  { %v115_v25 = vmax.f32 %v114_v12, %v30_v8  ;;  %v123_v27 = vmax.f32 %v121_v16, %v122_v22  ;;  %v109_v35 = vsel %vm70_vm0, %v53_v19, -inf  ;;  %v48_v41 = vld [vmem:[%s368_s0 + $0x140] sm:$0xff]  ;;  %v128_v42 = vsel %vm70_vm0, %v37_v26, -inf  ;;  %v49_v45 = vld [vmem:[%s368_s0 + $0x148] sm:$0xff]  ;;  %v54_v48 = vld [vmem:[%s368_s0 + $0x170] sm:$0xff] }
  0x12   :  { %138 = vst [vmem:[%s369_s1] sm:$0xff] %v69_v3  ;;  %v87_v29 = vmax.f32 %v85_v17, %v86_v10  ;;  %v94_v30 = vmax.f32 %v93_v18, %v52_v0  ;;  %v106_v32 = vmax.f32 %v104_v20, %v105_v11  ;;  %v111_v43 = vsel %vm70_vm0, %v59_v31, -inf  ;;  %v55_v51 = vld [vmem:[%s368_s0 + $0x178] sm:$0xff]  ;;  %v60_v54 = vld [vmem:[%s368_s0 + $0x1a0] sm:$0xff]  ;;  %v61_v57 = vld [vmem:[%s368_s0 + $0x1a8] sm:$0xff] }
  0x13   :  { %v116_v36 = vmax.f32 %v115_v25, %v36_v21  ;;  %v125_v38 = vmax.f32 %v123_v27, %v124_v28  ;;  %v130_v49 = vsel %vm70_vm0, %v43_v37, -inf  ;;  %v132_v55 = vsel %vm70_vm0, %v49_v45, -inf }
  0x14   :  { %139 = vst.msk [vmem:[%s369_s1 + $0x8] sm:$0xff] %vm70_vm0, %v87_v29  ;;  %v95_v39 = vmax.f32 %v94_v30, %v58_v23  ;;  %v108_v40 = vmax.f32 %v106_v32, %v107_v24  ;;  %v134_v59 = vsel %vm70_vm0, %v55_v51, -inf  ;;  %v136_v62 = vsel %vm70_vm0, %v61_v57, -inf }
  0x15   :  { %v117_v44 = vmax.f32 %v116_v36, %v42_v33  ;;  %v127_v46 = vmax.f32 %v125_v38, %v126_v34 }
  0x16   :  { %140 = vst [vmem:[%s369_s1 + $0x10] sm:$0xff] %v95_v39  ;;  %v110_v47 = vmax.f32 %v108_v40, %v109_v35 }
  0x17   :  { %v118_v50 = vmax.f32 %v117_v44, %v48_v41  ;;  %v129_v52 = vmax.f32 %v127_v46, %v128_v42 }
  0x18   :  { %v112_v53 = vmax.f32 %v110_v47, %v111_v43 }
  0x19   :  { %v119_v56 = vmax.f32 %v118_v50, %v54_v48  ;;  %v131_v58 = vmax.f32 %v129_v52, %v130_v49 }
  0x1a   :  { %141 = vst.msk [vmem:[%s369_s1 + $0x18] sm:$0xff] %vm70_vm0, %v112_v53 }
  0x1b   :  { %v120_v60 = vmax.f32 %v119_v56, %v60_v54  ;;  %v133_v61 = vmax.f32 %v131_v58, %v132_v55 }
  0x1d   :  { %142 = vst [vmem:[%s369_s1 + $0x20] sm:$0xff] %v120_v60  ;;  %v135_v63 = vmax.f32 %v133_v61, %v134_v59 }
  0x1f   :  { %v137_v0 = vmax.f32 %v135_v63, %v136_v62 }
  0x21   :  { %143 = vst.msk [vmem:[%s369_s1 + $0x28] sm:$0xff] %vm70_vm0, %v137_v0 }

// kernel: forward.9
= control target key start
LH: loop header
LB: loop body
LE: loop exit
PB: predicated region body
PF: predicated region fallthrough
CT: control target
= control target key end

     0   :  { %s6833_s12 = smov 0   ;;  %s8492_s0 = inlined_call_operand.vmem [shape: bf16[2,128,64], index: 0, kind: input, shape index: {}]   ;;  %s8493_s1 = inlined_call_operand.vmem [shape: bf16[25,64,192], index: 1, kind: input, shape index: {}]   ;;  %s8494_s2 = inlined_call_operand.vmem [shape: f32[1,192], index: 2, kind: input, shape index: {}]   ;;  %s8495_s3 = inlined_call_operand.vmem [shape: f32[2,80,192], index: 3, kind: output, shape index: {}]  }
   0x1 LB: > { %s5343_s13 = sadd.s32 4294967295, %s6810_s12   ;;  %p5347_p0 = scmp.ge.s32.totalorder %s6810_s12, 1  ;;  %s6810_s12 = sphi %s6833_s12, %s13_s12  }
   0x2   : > { %p137_p1 = scmp.lt.s32.totalorder %s6810_s12, 3 }
   0x4   : > { %p138_p2 = pnand %p5347_p0, %p137_p1 }
   0x5   : > { %v6431_v0 = vld [vmem:[%s8493_s1 + $0x44] ss:$8 sps:$4 sm:$0xff] (!%p138_p2)   ;;  %p161_p3 = scmp.lt.s32.totalorder (!%p138_p2), %s5343_s13, 1  ;;  %v6812_v2 = vmov (!%p138_p2), 0   ;;  %v6435_v3 = vld [vmem:[%s8493_s1 + $0x40] ss:$8 sps:$4 sm:$0xff] (!%p138_p2)  }
   0x6   : > { %141 = sbr.rel (%p138_p2) target bundleno = 744 (0x2e8), region = 32  ;;  %v6433_v1 = vld [vmem:[%s8493_s1 + $0x304] ss:$8 sps:$4 sm:$0xff] (!%p138_p2)   ;;  %361 = vmatprep.mubr.bf16.mxu1 (!%p138_p2), %v6812_v2  ;;  %2692 = vmatprep.mubr.bf16.mxu0 (!%p138_p2), %v6812_v2  ;;  %v6436_v4 = vld [vmem:[%s8493_s1 + $0x300] ss:$8 sps:$4 sm:$0xff] (!%p138_p2)   ;;  %vm313_vm1 = vcmask (!%p138_p2), 523264  }
   0x7   : > { %329 = vmatprep.subr.bf16.mxu1 (!%p138_p2), %v6431_v0  ;;  %2660 = vmatprep.subr.bf16.mxu0 (!%p138_p2), %v6433_v1  ;;  %v6437_v5 = vld [vmem:[%s8493_s1 + $0x54] ss:$8 sps:$4 sm:$0xff] (!%p138_p2)   ;;  %v6441_v7 = vld [vmem:[%s8493_s1 + $0x50] ss:$8 sps:$4 sm:$0xff] (!%p138_p2)   ;;  %v6443_v9 = vld [vmem:[%s8493_s1 + $0x64] ss:$8 sps:$4 sm:$0xff] (!%p138_p2)  }
   0x8   : > { %330 = vmatpush1.bf16.msra.mxu1 (!%p138_p2), %v6435_v3  ;;  %2661 = vmatpush1.bf16.msra.mxu0 (!%p138_p2), %v6436_v4  ;;  %v6439_v6 = vld [vmem:[%s8493_s1 + $0x314] ss:$8 sps:$4 sm:$0xff] (!%p138_p2)   ;;  %v6442_v8 = vld [vmem:[%s8493_s1 + $0x310] ss:$8 sps:$4 sm:$0xff] (!%p138_p2)   ;;  %v6445_v10 = vld [vmem:[%s8493_s1 + $0x324] ss:$8 sps:$4 sm:$0xff] (!%p138_p2)  }
   0x9   : > { %331 = vmatprep.subr.bf16.mxu1 (!%p138_p2), %v6437_v5  ;;  %2662 = vmatprep.subr.bf16.mxu0 (!%p138_p2), %v6439_v6  ;;  %v6447_v11 = vld [vmem:[%s8493_s1 + $0x60] ss:$8 sps:$4 sm:$0xff] (!%p138_p2)   ;;  %v6449_v13 = vld [vmem:[%s8493_s1 + $0x74] ss:$8 sps:$4 sm:$0xff] (!%p138_p2)   ;;  %v6453_v15 = vld [vmem:[%s8493_s1 + $0x70] ss:$8 sps:$4 sm:$0xff] (!%p138_p2)  }
   0xa   : > { %v6448_v12 = vld [vmem:[%s8493_s1 + $0x320] ss:$8 sps:$4 sm:$0xff] (!%p138_p2)   ;;  %v6451_v14 = vld [vmem:[%s8493_s1 + $0x334] ss:$8 sps:$4 sm:$0xff] (!%p138_p2)   ;;  %v6454_v16 = vld [vmem:[%s8493_s1 + $0x330] ss:$8 sps:$4 sm:$0xff] (!%p138_p2)  }
   0xb   : > { %vm228_vm0 = vsmask.f32 (!%p138_p2), 7424  ;;  %v6459_v21 = vld [vmem:[%s8493_s1 + $0x4] ss:$8 sps:$4 sm:$0xff] (!%p138_p2)   ;;  %v6462_v27 = vld [vmem:[%s8493_s1 + $0x340] ss:$8 sps:$4 sm:$0xff] (!%p138_p2)  }
   0xc   : > { %332 = vmatpush1.bf16.msra.mxu1 (!%p138_p2), %v6441_v7  ;;  %2663 = vmatpush1.bf16.msra.mxu0 (!%p138_p2), %v6442_v8  ;;  %v6464_v31 = vld [vmem:[%s8493_s1 + $0x344] ss:$8 sps:$4 sm:$0xff] (!%p138_p2)   ;;  %v6457_v33 = vld [vmem:[%s8493_s1] ss:$8 sps:$4 sm:$0xff] (!%p138_p2)   ;;  %v6467_v37 = vld [vmem:[%s8493_s1 + $0x354] ss:$8 sps:$4 sm:$0xff] (!%p138_p2)  }
   0xd   : > { %s8497_s13 = smov (!%p161_p3, %s5343_s13), 1  ;;  %333 = vmatprep.subr.bf16.mxu1 %v6443_v9  ;;  %2664 = vmatprep.subr.bf16.mxu0 %v6445_v10  ;;  %v6465_v42 = vld [vmem:[%s8493_s1 + $0x350] ss:$8 sps:$4 sm:$0xff]   ;;  %v6475_v47 = vld [vmem:[%s8493_s1 + $0x364] ss:$8 sps:$4 sm:$0xff]   ;;  %vm558_vm2 = vcmask 1046528  }
   0xe   : > { %s5932_s28 = sshll.u32 %s8497_s13, 6  ;;  %v6476_v50 = vld [vmem:[%s8493_s1 + $0x10] ss:$8 sps:$4 sm:$0xff]   ;;  %v6478_v51 = vld [vmem:[%s8493_s1 + $0x14] ss:$8 sps:$4 sm:$0xff]   ;;  %vm946_vm4 = vcmask 1045504  }
   0xf   : > { %s6885_s16 = scalar_lea.vmem %s8492_s0, %s5932_s28  ;;  %v6473_v52 = vld [vmem:[%s8493_s1 + $0x360] ss:$8 sps:$4 sm:$0xff]   ;;  %v6481_v55 = vld [vmem:[%s8493_s1 + $0x374] ss:$8 sps:$4 sm:$0xff]   ;;  %v6479_v57 = vld [vmem:[%s8493_s1 + $0x370] ss:$8 sps:$4 sm:$0xff]  }
  0x10   : > { %v172_v17 = vld [vmem:[%s6885_s16] sm:$0xf]  ;;  %v6901_v18 = vld [vmem:[%s6885_s16 + $0x4] sm:$0xf]  ;;  %334 = vmatpush1.bf16.msra.mxu1 %v6447_v11  ;;  %2665 = vmatpush1.bf16.msra.mxu0 %v6448_v12  ;;  %v6907_v20 = vld [vmem:[%s6885_s16 + $0x8] sm:$0xff]   ;;  %vm1775_vm6 = vcmask 1044480  }
  0x11   : > { %v6904_v19 = vcombine.low %v172_v17, %v6901_v18  ;;  %335 = vmatprep.subr.bf16.mxu1 %v6449_v13  ;;  %2666 = vmatprep.subr.bf16.mxu0 %v6451_v14  ;;  %v237_v24 = vshll.u32 %v6907_v20, 16  ;;  %v2151_v25 = vld [vmem:[%s6885_s16 + $0xc] sm:$0xf]  ;;  %v2152_v26 = vld [vmem:[%s6885_s16 + $0x10] sm:$0xf]  ;;  %v241_v35 = vshrl.u32 %v6907_v20, 16 }
  0x12   : > { %v5629_v30 = vcombine.low %v2151_v25, %v2152_v26  ;;  %v6927_v34 = vld [vmem:[%s6885_s16 + $0x10] sm:$0xff]   ;;  %v2154_v43 = vld [vmem:[%s6885_s16 + $0x18] sm:$0xf]  ;;  %v2763_v59 = vld [vmem:[%s6885_s16 + $0xc] sm:$0xf]  ;;  %s6421_s26 = smul.u32 160, %s8497_s13 }
  0x13   : > { %v230_v22 = vshrl.u32 %v6904_v19, 16  ;;  %v232_v23 = vshll.u32 %v6904_v19, 16  ;;  %v239_v29 = vrot.slane %v237_v24, 1  ;;  %v751_v32 = vrot.slane %v237_v24, 2  ;;  %v2153_v40 = vld [vmem:[%s6885_s16 + $0x14] sm:$0xf] }
  0x14   : > { %336 = vmatpush1.bf16.msra.mxu1 %v6453_v15  ;;  %2667 = vmatpush1.bf16.msra.mxu0 %v6454_v16  ;;  %v245_v38 = vshll.u32 %v6927_v34, 16  ;;  %v750_v39 = vrot.slane %v241_v35, 1  ;;  %v6942_v44 = vcombine.low %v2152_v26, %v2153_v40  ;;  %v5630_v49 = vcombine.low %v2153_v40, %v2154_v43  ;;  %v6963_v53 = vld [vmem:[%s6885_s16 + $0x18] sm:$0xff]   ;;  %v6976_v60 = vld [vmem:[%s6885_s16 + $0x10] sm:$0xf]  ;;  %v6989_v1 = vld [vmem:[%s6885_s16 + $0x20] sm:$0xff]   ;;  %s8438_s29 = scalar_lea.vmem %s8495_s3, %s6421_s26 }
  0x15   : > { %v234_v28 = vrot.slane %v232_v23, 1  ;;  %462 = vmatprep.subr.bf16.mxu1 %v6459_v21  ;;  %2910 = vmatprep.subr.bf16.mxu0 %v6464_v31  ;;  %v243_v45 = vor.u32 %v241_v35, %v239_v29  ;;  %v249_v54 = vshrl.u32 %v6927_v34, 16  ;;  %v253_v58 = vshll.u32 %v6963_v53, 16  ;;  %v6979_v61 = vld [vmem:[%s6885_s16 + $0x14] sm:$0xff]   ;;  %v6485_v0 = vld [vmem:[%s8493_s1 + $0x20] ss:$8 sps:$4 sm:$0xff]  }
  0x16   : > { %v247_v46 = vrot.slane %v245_v38, 1  ;;  %v6951_v48 = vor.u32 %v751_v32, %v750_v39  ;;  %v5655_v62 = vcombine.low %v2763_v59, %v6976_v60  ;;  %v2819_v63 = vshll.u32 %v6979_v61, 16  ;;  %v6487_v5 = vld [vmem:[%s8493_s1 + $0x24] ss:$8 sps:$4 sm:$0xff]   ;;  %v7001_v10 = vld [vmem:[%s6885_s16 + $0x1c] sm:$0xff]  }
  0x17   : > { %v235_v36 = vor.u32 %v234_v28, %v230_v22  ;;  %5642 = vmatmul.mubr.msk.bf16.vlgmr.msra.gmra.mrb[0].mxu0 %vm313_vm1, %v5629_v30  ;;  %v255_v7 = vrot.slane %v253_v58, 1  ;;  %v257_v11 = vshrl.u32 %v6963_v53, 16  ;;  %v261_v12 = vshll.u32 %v6989_v1, 16  ;;  %v6492_v13 = vld [vmem:[%s8493_s1 + $0x384] ss:$8 sps:$4 sm:$0xff]  }
  0x18   : > { %2911 = vmatpush1.bf16.msra.mxu0 %v6462_v27  ;;  %2702 = vmatprep.mubr.bf16.mxu0 %v6812_v2  ;;  %v248_v56 = vsel %vm228_vm0, %v243_v45, %v247_v46  ;;  %v2812_v3 = vshrl.u32 %v5655_v62, 16  ;;  %v2814_v4 = vshll.u32 %v5655_v62, 16  ;;  %v251_v6 = vor.u32 %v249_v54, %v247_v46  ;;  %v6490_v17 = vld [vmem:[%s8493_s1 + $0x380] ss:$8 sps:$4 sm:$0xff]   ;;  %v6495_v22 = vld [vmem:[%s8493_s1 + $0x34] ss:$8 sps:$4 sm:$0xff]  }
  0x19   : > { %v240_v41 = vsel %vm228_vm0, %v235_v36, %v239_v29  ;;  %2912 = vmatprep.subr.bf16.mxu0 %v6467_v37  ;;  %v2821_v9 = vrot.slane %v2819_v63, 1  ;;  %v2823_v15 = vshrl.u32 %v6979_v61, 16  ;;  %v2827_v16 = vshll.u32 %v7001_v10, 16  ;;  %v6493_v24 = vld [vmem:[%s8493_s1 + $0x30] ss:$8 sps:$4 sm:$0xff]   ;;  %v7028_v28 = vld [vmem:[%s6885_s16 + $0x24] sm:$0xff]  }
  0x1a   : > { %5373 = vmatmul.mubr.msk.bf16.vlgmr.msra.gmra.mrb[0].mxu1 %vm313_vm1, %v240_v41  ;;  %v2816_v8 = vrot.slane %v2814_v4, 1  ;;  %v256_v21 = vsel %vm228_vm0, %v251_v6, %v255_v7  ;;  %v7023_v25 = vld [vmem:[%s6885_s16 + $0x28] ss:$0 sps:$4 sm:$0x11]   ;;  %v6500_v29 = vld [vmem:[%s8493_s1 + $0x394] ss:$8 sps:$4 sm:$0xff]   ;;  %v259_v30 = vor.u32 %v257_v11, %v255_v7 }
  0x1b   : > { %463 = vmatpush1.bf16.msra.mxu1 %v6457_v33  ;;  %371 = vmatprep.mubr.bf16.mxu1 %v6812_v2  ;;  %v2825_v26 = vor.u32 %v2823_v15, %v2821_v9  ;;  %v2829_v27 = vrot.slane %v2827_v16, 1  ;;  %v263_v31 = vrot.slane %v261_v12, 1  ;;  %v6498_v32 = vld [vmem:[%s8493_s1 + $0x390] ss:$8 sps:$4 sm:$0xff]   ;;  %v6503_v33 = vld [vmem:[%s8493_s1 + $0x84] ss:$8 sps:$4 sm:$0xff]  }
  0x1c   : > { %2913 = vmatpush1.bf16.msra.mxu0 %v6465_v42  ;;  %464 = vmatprep.subr.bf16.mxu1 %v6478_v51  ;;  %v2817_v14 = vor.u32 %v2816_v8, %v2812_v3  ;;  %v2831_v36 = vshrl.u32 %v7001_v10, 16  ;;  %v2835_v37 = vshll.u32 %v7028_v28, 16  ;;  %v6507_v39 = vld [vmem:[%s8493_s1 + $0x3a4] ss:$8 sps:$4 sm:$0xff]   ;;  %v265_v41 = vshrl.u32 %v6989_v1, 16 }
  0x1d   : > { %2914 = vmatprep.subr.bf16.mxu0 %v6475_v47  ;;  %v2830_v35 = vsel %vm228_vm0, %v2825_v26, %v2829_v27  ;;  %v264_v40 = vsel %vm228_vm0, %v259_v30, %v263_v31  ;;  %v269_v42 = vshll.u32 %v7023_v25, 16  ;;  %v6505_v43 = vld [vmem:[%s8493_s1 + $0x3a0] ss:$8 sps:$4 sm:$0xff]   ;;  %v7058_v45 = vld [vmem:[%s6885_s16 + $0x2c] sm:$0xff]   ;;  %v6514_v46 = vld [vmem:[%s8493_s1 + $0x3b4] ss:$8 sps:$4 sm:$0xff]  }
  0x1e   : > { %v2822_v23 = vsel %vm228_vm0, %v2817_v14, %v2821_v9  ;;  %v2833_v47 = vor.u32 %v2831_v36, %v2829_v27  ;;  %v2839_v59 = vshrl.u32 %v7028_v28, 16  ;;  %v2843_v62 = vshll.u32 %v7058_v45, 16  ;;  %v7102_v16 = vld [vmem:[%s6885_s16 + $0x34] ss:$0 sps:$4 sm:$0x11]  }
  0x1f   : > { %465 = vmatpush1.bf16.msra.mxu1 %v6476_v50  ;;  %5643 = vmatmul.mubr.msk.bf16.gmra.mrb[4].mxu0 %vm313_vm1, %v5630_v49  ;;  %v2837_v49 = vrot.slane %v2835_v37, 1  ;;  %v267_v50 = vor.u32 %v265_v41, %v263_v31  ;;  %v271_v51 = vrot.slane %v269_v42, 1  ;;  %v564_v3 = vrot.slane %v6963_v53, 1  ;;  %v6511_v27 = vld [vmem:[%s8493_s1 + $0x94] ss:$8 sps:$4 sm:$0xff]  }
  0x20   : > { %2915 = vmatpush1.bf16.msra.mxu0 %v6473_v52  ;;  %2942 = vmatprep.mubr.bf16.mxu0 %v6812_v2  ;;  %v6512_v52 = vld [vmem:[%s8493_s1 + $0x3b0] ss:$8 sps:$4 sm:$0xff]   ;;  %v566_v4 = vrot.slane %v6989_v1, 1  ;;  %v568_v8 = vrot.slane %v7023_v25, 1  ;;  %v754_v9 = vrot.slane %v249_v54, 1  ;;  %v2845_v15 = vrot.slane %v2843_v62, 1 }
  0x21   : > { %2916 = vmatprep.subr.bf16.mxu0 %v6481_v55  ;;  %466 = vmatprep.subr.bf16.mxu1 %v6487_v5  ;;  %v6521_v55 = vld [vmem:[%s8493_s1 + $0x3c4] ss:$8 sps:$4 sm:$0xff]   ;;  %v2838_v63 = vsel %vm228_vm0, %v2833_v47, %v2837_v49  ;;  %v272_v5 = vsel %vm228_vm0, %v267_v50, %v271_v51  ;;  %v2841_v14 = vor.u32 %v2839_v59, %v2837_v49  ;;  %vm741_vm3 = vsmask.f32 6400  ;;  %v6501_v25 = vld [vmem:[%s8493_s1 + $0x80] ss:$8 sps:$4 sm:$0xff]  }
  0x22   : > { %5374 = vmatmul.mubr.msk.bf16.gmra.mrb[4].mxu1 %vm313_vm1, %v248_v56  ;;  %v560_v56 = vrot.slane %v6907_v20, 1  ;;  %v7091_v7 = vsel %vm558_vm2, %v564_v3, %v566_v4  ;;  %v759_v26 = vrot.slane %v253_v58, 2  ;;  %v6509_v31 = vld [vmem:[%s8493_s1 + $0x90] ss:$8 sps:$4 sm:$0xff]   ;;  %v3013_v58 = vld [vmem:[%s6885_s16 + $0xc] sm:$0xe] }
  0x23   : > { %381 = vmatprep.mubr.bf16.mxu1 %v6812_v2  ;;  %467 = vmatpush1.bf16.msra.mxu1 %v6485_v0  ;;  %v5682_v36 = vcombine.low %v3013_v58, %v6976_v60  ;;  %v6516_v37 = vld [vmem:[%s8493_s1 + $0xa0] ss:$8 sps:$4 sm:$0xff]   ;;  %v3027_v42 = vrot.slane %v6979_v61, 1  ;;  %v6527_v49 = vld [vmem:[%s8493_s1 + $0x3d4] ss:$8 sps:$4 sm:$0xff]   ;;  %v948_v50 = vrot.slane %v6907_v20, 2 }
  0x24   : > { %2917 = vmatpush1.bf16.msra.mxu0 %v6479_v57  ;;  %468 = vmatprep.subr.bf16.mxu1 %v6495_v22  ;;  %v562_v57 = vrot.slane %v6927_v34, 1  ;;  %v2846_v22 = vsel %vm228_vm0, %v2841_v14, %v2845_v15  ;;  %v6519_v61 = vld [vmem:[%s8493_s1 + $0x3c0] ss:$8 sps:$4 sm:$0xff]   ;;  %v950_v51 = vrot.slane %v6927_v34, 2  ;;  %v952_v59 = vrot.slane %v6963_v53, 2 }
  0x25   : > { %3092 = vmatprep.subr.bf16.mxu0 %v6492_v13  ;;  %v755_v13 = vrot.slane %v245_v38, 2  ;;  %v758_v38 = vrot.slane %v257_v11, 1  ;;  %v3026_v60 = vrot.slane %v5682_v36, 1  ;;  %v6552_v36 = vld [vmem:[%s8493_s1 + $0xf4] ss:$8 sps:$4 sm:$0xff]  }
  0x26   : > { %v7082_v0 = vsel %vm558_vm2, %v560_v56, %v562_v57  ;;  %v7088_v6 = vsel %vm558_vm2, %v562_v57, %v564_v3  ;;  %v6525_v57 = vld [vmem:[%s8493_s1 + $0x3d0] ss:$8 sps:$4 sm:$0xff]   ;;  %v6540_v3 = vld [vmem:[%s8493_s1 + $0x3f4] ss:$8 sps:$4 sm:$0xff]   ;;  %vm1570_vm5 = vsmask.f32 5376 }
  0x27   : > { %5669 = vmatmul.mubr.msk.bf16.vlgmr.msra.gmra.mrb[0].mxu0 %vm313_vm1, %v2822_v23  ;;  %469 = vmatpush1.bf16.msra.mxu1 %v6493_v24  ;;  %v2847_v23 = vshrl.u32 %v7058_v45, 16  ;;  %v2851_v24 = vshll.u32 %v7102_v16, 16  ;;  %v760_v11 = vor.u32 %v759_v26, %v758_v38  ;;  %v3028_v47 = vsel %vm558_vm2, %v3026_v60, %v3027_v42 }
  0x28   : > { %2952 = vmatprep.mubr.bf16.mxu0 %v6812_v2  ;;  %3093 = vmatpush1.bf16.msra.mxu0 %v6490_v17  ;;  %v7105_v17 = vsel %vm558_vm2, %v566_v4, %v568_v8  ;;  %v3031_v4 = vrot.slane %v7028_v28, 1  ;;  %v6538_v8 = vld [vmem:[%s8493_s1 + $0x3f0] ss:$8 sps:$4 sm:$0xff]   ;;  %v3035_v26 = vrot.slane %v7102_v16, 1  ;;  %v6543_v16 = vld [vmem:[%s8493_s1 + $0xe0] ss:$8 sps:$4 sm:$0xff]  }
  0x29   : > { %3094 = vmatprep.subr.bf16.mxu0 %v6500_v29  ;;  %625 = vmatprep.subr.bf16.mxu1 %v6503_v33  ;;  %v2849_v29 = vor.u32 %v2847_v23, %v2845_v15  ;;  %v2853_v30 = vrot.slane %v2851_v24, 1  ;;  %v762_v33 = vrot.slane %v265_v41, 1  ;;  %v3033_v15 = vrot.slane %v7058_v45, 1 }
  0x2a   : > { %5375 = vmatmul.mubr.msk.bf16.gmra.mrb[8].mxu1 %vm313_vm1, %v256_v21  ;;  %v756_v21 = vor.u32 %v755_v13, %v754_v9  ;;  %v954_v9 = vrot.slane %v6989_v1, 2  ;;  %vm1958_vm7 = vsmask.f32 4352 }
  0x2b   : > { %391 = vmatprep.mubr.bf16.mxu1 %v6812_v2  ;;  %v3034_v23 = vsel %vm558_vm2, %v3031_v4, %v3033_v15 }
  0x2c   : > { %3095 = vmatpush1.bf16.msra.mxu0 %v6498_v32  ;;  %v7110_v54 = vsel %vm741_vm3, %v6951_v48, %v756_v21  ;;  %v7135_v32 = vsel %vm741_vm3, %v756_v21, %v760_v11  ;;  %v7224_v28 = vsel %vm946_vm4, %v952_v59, %v954_v9  ;;  %v3195_v21 = vld [vmem:[%s6885_s16 + $0x10] sm:$0xf] }
  0x2d   : > { %3096 = vmatprep.subr.bf16.mxu0 %v6507_v39  ;;  %v763_v39 = vrot.slane %v261_v12, 2  ;;  %v6522_v12 = vld [vmem:[%s8493_s1 + $0xb0] ss:$8 sps:$4 sm:$0xff]  }
  0x2f   : > { %5670 = vmatmul.mubr.msk.bf16.gmra.mrb[4].mxu0 %vm313_vm1, %v2830_v35  ;;  %v2854_v35 = vsel %vm228_vm0, %v2849_v29, %v2853_v30  ;;  %v7153_v41 = vor.u32 %v763_v39, %v762_v33  ;;  %v6545_v29 = vld [vmem:[%s8493_s1 + $0xe4] ss:$8 sps:$4 sm:$0xff]   ;;  %v3831_v30 = vld [vmem:[%s6885_s16 + $0x10] sm:$0xc] }
  0x30   : > { %2962 = vmatprep.mubr.bf16.mxu0 %v6812_v2  ;;  %3097 = vmatpush1.bf16.msra.mxu0 %v6505_v43 }
  0x31   : > { %3098 = vmatprep.subr.bf16.mxu0 %v6514_v46  ;;  %v7165_v43 = vsel %vm741_vm3, %v760_v11, %v7153_v41  ;;  %v6531_v46 = vld [vmem:[%s8493_s1 + $0xc4] ss:$8 sps:$4 sm:$0xff]  }
  0x32   : > { %5376 = vmatmul.mubr.msk.bf16.gmra.mrb[12].mxu1 %vm313_vm1, %v264_v40  ;;  %v6524_v40 = vld [vmem:[%s8493_s1 + $0xb4] ss:$8 sps:$4 sm:$0xff]  }
  0x33   : > { %401 = vmatprep.mubr.bf16.mxu1 %v6812_v2 }
  0x34   : > { %3099 = vmatpush1.bf16.msra.mxu0 %v6512_v52  ;;  %v3029_v52 = vrot.slane %v7001_v10, 1  ;;  %v7198_v10 = vsel %vm946_vm4, %v950_v51, %v952_v59 }
  0x35   : > { %3342 = vmatprep.subr.bf16.mxu0 %v6521_v55  ;;  %v7187_v55 = vsel %vm946_vm4, %v948_v50, %v950_v51 }
  0x36   : > { %v3030_v62 = vsel %vm558_vm2, %v3027_v42, %v3029_v52  ;;  %v3032_v13 = vsel %vm558_vm2, %v3029_v52, %v3031_v4  ;;  %v6556_v52 = vld [vmem:[%s8493_s1 + $0x414] ss:$8 sps:$4 sm:$0xff]   ;;  %v6563_v4 = vld [vmem:[%s8493_s1 + $0x424] ss:$8 sps:$4 sm:$0xff]  }
  0x37   : > { %5671 = vmatmul.mubr.msk.bf16.gmra.mrb[8].mxu0 %vm313_vm1, %v2838_v63  ;;  %v6532_v63 = vld [vmem:[%s8493_s1 + $0x3e0] ss:$8 sps:$4 sm:$0xff]  }
  0x38   : > { %2972 = vmatprep.mubr.bf16.mxu0 %v6812_v2 }
  0x3a   : > { %5377 = vmatmul.mubr.msk.bf16.gmra.mrb[16].mxu1 %vm313_vm1, %v272_v5  ;;  %v545_v5 = vld [vmem:[%s6885_s16] sm:$0xe] }
  0x3b   : > { %494 = vmatprep.mubr.bf16.mxu1 %v6812_v2  ;;  %v7228_v14 = vcombine.low %v545_v5, %v6901_v18  ;;  %v6529_v18 = vld [vmem:[%s8493_s1 + $0xc0] ss:$8 sps:$4 sm:$0xff]  }
  0x3d   : > { %v559_v38 = vrot.slane %v7228_v14, 1 }
  0x3f   : > { %5672 = vmatmul.mubr.msk.bf16.gmra.mrb[12].mxu0 %vm313_vm1, %v2846_v22  ;;  %v7239_v22 = vld [vmem:[%s6885_s16 + $0x14] sm:$0xf]  ;;  %v561_v45 = vsel %vm558_vm2, %v559_v38, %v560_v56  ;;  %v6535_v56 = vld [vmem:[%s8493_s1 + $0xd0] ss:$8 sps:$4 sm:$0xff]  }
  0x40   : > { %2982 = vmatprep.mubr.bf16.mxu0 %v6812_v2  ;;  %v5704_v24 = vcombine.low %v3195_v21, %v7239_v22  ;;  %v7271_v58 = vcombine.low %v3831_v30, %v7239_v22 }
  0x42   : > { %5386 = vmatmul.mubr.msk.bf16.vlgmr.msra.gmra.mrb[0].mxu1 %vm313_vm1, %v6904_v19  ;;  %v6518_v19 = vld [vmem:[%s8493_s1 + $0xa4] ss:$8 sps:$4 sm:$0xff]   ;;  %v3246_v11 = vshll.u32 %v5704_v24, 16 }
  0x43   : > { %626 = vmatpush1.bf16.msra.mxu1 %v6501_v25  ;;  %504 = vmatprep.mubr.bf16.mxu1 %v6812_v2  ;;  %v6537_v25 = vld [vmem:[%s8493_s1 + $0xd4] ss:$8 sps:$4 sm:$0xff]  }
  0x44   : > { %627 = vmatprep.subr.bf16.mxu1 %v6511_v27  ;;  %v7257_v27 = vld [vmem:[%s6885_s16 + $0x18] sm:$0xff]   ;;  %v3248_v33 = vrot.slane %v3246_v11, 1 }
  0x45   : > { %v3845_v39 = vrot.slane %v7257_v27, 2 }
  0x47   : > { %628 = vmatpush1.bf16.msra.mxu1 %v6509_v31  ;;  %5673 = vmatmul.mubr.msk.bf16.gmra.mrb[16].mxu0 %vm313_vm1, %v2854_v35  ;;  %v3244_v31 = vshrl.u32 %v5704_v24, 16  ;;  %v7275_v35 = vshll.u32 %v7257_v27, 16  ;;  %v6568_v24 = vld [vmem:[%s8493_s1 + $0x430] ss:$8 sps:$4 sm:$0xff]  }
  0x48   : > { %629 = vmatprep.subr.bf16.mxu1 %v6518_v19  ;;  %3124 = vmatprep.mubr.bf16.mxu0 %v6812_v2  ;;  %v3036_v19 = vsel %vm558_vm2, %v3033_v15, %v3035_v26 }
  0x49   : > { %v3249_v42 = vor.u32 %v3248_v33, %v3244_v31  ;;  %v7388_v33 = vld [vmem:[%s6885_s16 + $0x38] ss:$0 sps:$4 sm:$0x11]  }
  0x4a   : > { %5387 = vmatmul.mubr.msk.bf16.gmra.mrb[4].mxu1 %vm313_vm1, %v6907_v20 }
  0x4b   : > { %514 = vmatprep.mubr.bf16.mxu1 %v6812_v2  ;;  %630 = vmatpush1.bf16.msra.mxu1 %v6516_v37  ;;  %v3844_v37 = vrot.slane %v7271_v58, 2 }
  0x4c   : > { %631 = vmatprep.subr.bf16.mxu1 %v6524_v40  ;;  %v7284_v40 = vld [vmem:[%s6885_s16 + $0x20] sm:$0xff]  }
  0x4d   : > { %v7287_v60 = vsel %vm946_vm4, %v3844_v37, %v3845_v39  ;;  %v7308_v51 = vshll.u32 %v7284_v40, 16  ;;  %v6557_v37 = vld [vmem:[%s8493_s1 + $0x100] ss:$8 sps:$4 sm:$0xff]  }
  0x4f   : > { %632 = vmatpush1.bf16.msra.mxu1 %v6522_v12  ;;  %5691 = vmatmul.mubr.msk.bf16.vlgmr.msra.gmra.mrb[0].mxu0 %vm313_vm1, %v3028_v47  ;;  %v3253_v12 = vrot.slane %v7275_v35, 1  ;;  %v6559_v47 = vld [vmem:[%s8493_s1 + $0x104] ss:$8 sps:$4 sm:$0xff]  }
  0x50   : > { %830 = vmatprep.subr.bf16.mxu1 %v6531_v46  ;;  %3134 = vmatprep.mubr.bf16.mxu0 %v6812_v2  ;;  %v6550_v46 = vld [vmem:[%s8493_s1 + $0xf0] ss:$8 sps:$4 sm:$0xff]  }
  0x51   : > { %3343 = vmatpush1.bf16.msra.mxu0 %v6519_v61  ;;  %v3254_v61 = vsel %vm228_vm0, %v3249_v42, %v3253_v12  ;;  %v3283_v42 = vshll.u32 %v7388_v33, 16 }
  0x52   : > { %5388 = vmatmul.mubr.msk.bf16.gmra.mrb[8].mxu1 %vm313_vm1, %v6927_v34  ;;  %3344 = vmatprep.subr.bf16.mxu0 %v6527_v49  ;;  %v6534_v34 = vld [vmem:[%s8493_s1 + $0x3e4] ss:$8 sps:$4 sm:$0xff]   ;;  %v7305_v49 = vshrl.u32 %v7257_v27, 16 }
  0x53   : > { %524 = vmatprep.mubr.bf16.mxu1 %v6812_v2 }
  0x55   : > { %3345 = vmatpush1.bf16.msra.mxu0 %v6525_v57  ;;  %v3847_v57 = vrot.slane %v7284_v40, 2 }
  0x56   : > { %3346 = vmatprep.subr.bf16.mxu0 %v6534_v34  ;;  %v3257_v34 = vor.u32 %v7305_v49, %v3253_v12  ;;  %v6567_v12 = vld [vmem:[%s8493_s1 + $0x114] ss:$8 sps:$4 sm:$0xff]  }
  0x57   : > { %5692 = vmatmul.mubr.msk.bf16.gmra.mrb[4].mxu0 %vm313_vm1, %v3030_v62  ;;  %v7316_v59 = vsel %vm946_vm4, %v3845_v39, %v3847_v57  ;;  %v3261_v62 = vrot.slane %v7308_v51, 1 }
  0x58   : > { %3144 = vmatprep.mubr.bf16.mxu0 %v6812_v2 }
  0x59   : > { %3347 = vmatpush1.bf16.msra.mxu0 %v6532_v63  ;;  %v7324_v63 = vld [vmem:[%s6885_s16 + $0x28] sm:$0xff]   ;;  %v3262_v5 = vsel %vm228_vm0, %v3257_v34, %v3261_v62 }
  0x5a   : > { %5389 = vmatmul.mubr.msk.bf16.gmra.mrb[12].mxu1 %vm313_vm1, %v6963_v53  ;;  %3348 = vmatprep.subr.bf16.mxu0 %v6540_v3  ;;  %v6549_v53 = vld [vmem:[%s8493_s1 + $0x404] ss:$8 sps:$4 sm:$0xff]   ;;  %v6554_v3 = vld [vmem:[%s8493_s1 + $0x410] ss:$8 sps:$4 sm:$0xff]   ;;  %v3849_v15 = vrot.slane %v7324_v63, 2  ;;  %v7370_v11 = vshrl.u32 %v7324_v63, 16 }
  0x5b   : > { %534 = vmatprep.mubr.bf16.mxu1 %v6812_v2 }
  0x5c   : > { %v7349_v21 = vsel %vm946_vm4, %v3847_v57, %v3849_v15 }
  0x5d   : > { %3349 = vmatpush1.bf16.msra.mxu0 %v6538_v8  ;;  %v7338_v8 = vshrl.u32 %v7284_v40, 16 }
  0x5e   : > { %3524 = vmatprep.subr.bf16.mxu0 %v6549_v53  ;;  %v7341_v53 = vshll.u32 %v7324_v63, 16 }
  0x5f   : > { %5693 = vmatmul.mubr.msk.bf16.gmra.mrb[8].mxu0 %vm313_vm1, %v3032_v13  ;;  %v6570_v13 = vld [vmem:[%s8493_s1 + $0x434] ss:$8 sps:$4 sm:$0xff]   ;;  %v3265_v38 = vor.u32 %v7338_v8, %v3261_v62  ;;  %v6572_v62 = vld [vmem:[%s8493_s1 + $0x120] ss:$8 sps:$4 sm:$0xff]  }
  0x60   : > { %3154 = vmatprep.mubr.bf16.mxu0 %v6812_v2 }
  0x62   : > { %5390 = vmatmul.mubr.msk.bf16.gmra.mrb[16].mxu1 %vm313_vm1, %v6989_v1 }
  0x63   : > { %657 = vmatprep.mubr.bf16.mxu1 %v6812_v2 }
  0x67   : > { %5694 = vmatmul.mubr.msk.bf16.gmra.mrb[12].mxu0 %vm313_vm1, %v3034_v23  ;;  %v7357_v23 = vld [vmem:[%s6885_s16 + $0x30] sm:$0xff]  }
  0x68   : > { %3164 = vmatprep.mubr.bf16.mxu0 %v6812_v2 }
  0x6a   : > { %5408 = vmatmul.mubr.msk.bf16.vlgmr.msra.gmra.mrb[0].mxu1 %vm313_vm1, %v561_v45  ;;  %v743_v45 = vshrl.u32 %v7228_v14, 16 }
  0x6b   : > { %831 = vmatpush1.bf16.msra.mxu1 %v6529_v18  ;;  %667 = vmatprep.mubr.bf16.mxu1 %v6812_v2  ;;  %v3269_v18 = vrot.slane %v7341_v53, 1 }
  0x6c   : > { %832 = vmatprep.subr.bf16.mxu1 %v6537_v25  ;;  %v746_v25 = vshll.u32 %v7228_v14, 16  ;;  %v3851_v14 = vrot.slane %v7357_v23, 2 }
  0x6d   : > { %v3270_v26 = vsel %vm228_vm0, %v3265_v38, %v3269_v18  ;;  %v3461_v38 = vrot.slane %v7284_v40, 1 }
  0x6e   : > { %v748_v30 = vrot.slane %v746_v25, 2  ;;  %v7380_v31 = vsel %vm946_vm4, %v3849_v15, %v3851_v14  ;;  %v6584_v15 = vld [vmem:[%s8493_s1 + $0x454] ss:$8 sps:$4 sm:$0xff]  }
  0x6f   : > { %833 = vmatpush1.bf16.msra.mxu1 %v6535_v56  ;;  %5695 = vmatmul.mubr.msk.bf16.gmra.mrb[16].mxu0 %vm313_vm1, %v3036_v19  ;;  %v7373_v56 = vshll.u32 %v7357_v23, 16 }
  0x70   : > { %834 = vmatprep.subr.bf16.mxu1 %v6545_v29  ;;  %3374 = vmatprep.mubr.bf16.mxu0 %v6812_v2  ;;  %v745_v29 = vrot.slane %v743_v45, 1  ;;  %v6582_v45 = vld [vmem:[%s8493_s1 + $0x450] ss:$8 sps:$4 sm:$0xff]  }
  0x71   : > { %v3277_v19 = vrot.slane %v7373_v56, 1 }
  0x72   : > { %5409 = vmatmul.mubr.msk.bf16.gmra.mrb[4].mxu1 %vm313_vm1, %v7082_v0  ;;  %v6547_v0 = vld [vmem:[%s8493_s1 + $0x400] ss:$8 sps:$4 sm:$0xff]  }
  0x73   : > { %677 = vmatprep.mubr.bf16.mxu1 %v6812_v2  ;;  %835 = vmatpush1.bf16.msra.mxu1 %v6543_v16  ;;  %v3273_v16 = vor.u32 %v7370_v11, %v3269_v18 }
  0x74   : > { %836 = vmatprep.subr.bf16.mxu1 %v6552_v36  ;;  %v749_v36 = vor.u32 %v748_v30, %v745_v29  ;;  %v6597_v29 = vld [vmem:[%s8493_s1 + $0x474] ss:$8 sps:$4 sm:$0xff]   ;;  %v3463_v30 = vrot.slane %v7324_v63, 1  ;;  %v6793_v63 = vld [vmem:[%s6885_s16 + $0x4] sm:$0xf] }
  0x75   : > { %v3278_v39 = vsel %vm228_vm0, %v3273_v16, %v3277_v19 }
  0x77   : > { %837 = vmatpush1.bf16.msra.mxu1 %v6550_v46  ;;  %5718 = vmatmul.mubr.msk.bf16.vlgmr.msra.gmra.mrb[0].mxu0 %vm313_vm1, %v3254_v61  ;;  %v753_v46 = vsel %vm741_vm3, %v749_v36, %v6951_v48  ;;  %v6565_v61 = vld [vmem:[%s8493_s1 + $0x110] ss:$8 sps:$4 sm:$0xff]   ;;  %v6574_v48 = vld [vmem:[%s8493_s1 + $0x124] ss:$8 sps:$4 sm:$0xff]   ;;  %v933_v36 = vld [vmem:[%s6885_s16] sm:$0xc] }
  0x78   : > { %1013 = vmatprep.subr.bf16.mxu1 %v6559_v47  ;;  %3384 = vmatprep.mubr.bf16.mxu0 %v6812_v2 }
  0x79   : > { %3525 = vmatpush1.bf16.msra.mxu0 %v6547_v0  ;;  %v3285_v0 = vrot.slane %v3283_v42, 1  ;;  %v5443_v42 = vcombine.low %v933_v36, %v6793_v63  ;;  %v6615_v36 = vld [vmem:[%s8493_s1 + $0x4a0] ss:$8 sps:$4 sm:$0xff]  }
  0x7a   : > { %5410 = vmatmul.mubr.msk.bf16.gmra.mrb[8].mxu1 %vm313_vm1, %v7088_v6  ;;  %3526 = vmatprep.subr.bf16.mxu0 %v6556_v52  ;;  %v6561_v6 = vld [vmem:[%s8493_s1 + $0x420] ss:$8 sps:$4 sm:$0xff]   ;;  %v3445_v52 = vld [vmem:[%s6885_s16 + $0x10] sm:$0xe] }
  0x7b   : > { %687 = vmatprep.mubr.bf16.mxu1 %v6812_v2  ;;  %v7418_v34 = vcombine.low %v3445_v52, %v7239_v22  ;;  %v3467_v52 = vrot.slane %v7388_v33, 1  ;;  %v6600_v33 = vld [vmem:[%s8493_s1 + $0x164] ss:$8 sps:$4 sm:$0xff]  }
  0x7d   : > { %3527 = vmatpush1.bf16.msra.mxu0 %v6554_v3  ;;  %v6580_v3 = vld [vmem:[%s8493_s1 + $0x134] ss:$8 sps:$4 sm:$0xff]   ;;  %v3458_v22 = vrot.slane %v7418_v34, 1  ;;  %v3641_v20 = vshrl.u32 %v7418_v34, 16 }
  0x7e   : > { %3528 = vmatprep.subr.bf16.mxu0 %v6563_v4  ;;  %v3459_v4 = vrot.slane %v7257_v27, 1  ;;  %v7444_v27 = vld [vmem:[%s6885_s16 + $0x28] ss:$0 sps:$4 sm:$0x33]  }
  0x7f   : > { %5719 = vmatmul.mubr.msk.bf16.gmra.mrb[4].mxu0 %vm313_vm1, %v3262_v5  ;;  %v6588_v5 = vld [vmem:[%s8493_s1 + $0x144] ss:$8 sps:$4 sm:$0xff]   ;;  %v767_v18 = vshrl.u32 %v7444_v27, 16 }
  0x80   : > { %3394 = vmatprep.mubr.bf16.mxu0 %v6812_v2  ;;  %v3462_v25 = vsel %vm558_vm2, %v3459_v4, %v3461_v38 }
  0x81   : > { %3529 = vmatpush1.bf16.msra.mxu0 %v6561_v6  ;;  %v6578_v6 = vld [vmem:[%s8493_s1 + $0x130] ss:$8 sps:$4 sm:$0xff]   ;;  %v769_v40 = vrot.slane %v767_v18, 1  ;;  %v3653_v18 = vrot.slane %v7308_v51, 2 }
  0x82   : > { %5411 = vmatmul.mubr.msk.bf16.gmra.mrb[12].mxu1 %vm313_vm1, %v7091_v7  ;;  %v6577_v7 = vld [vmem:[%s8493_s1 + $0x444] ss:$8 sps:$4 sm:$0xff]   ;;  %3530 = vmatprep.subr.bf16.mxu0 %v6570_v13  ;;  %v6575_v13 = vld [vmem:[%s8493_s1 + $0x440] ss:$8 sps:$4 sm:$0xff]  }
  0x83   : > { %697 = vmatprep.mubr.bf16.mxu1 %v6812_v2 }
  0x85   : > { %3531 = vmatpush1.bf16.msra.mxu0 %v6568_v24  ;;  %v770_v24 = vshll.u32 %v7444_v27, 16 }
  0x86   : > { %3728 = vmatprep.subr.bf16.mxu0 %v6577_v7 }
  0x87   : > { %5720 = vmatmul.mubr.msk.bf16.gmra.mrb[8].mxu0 %vm313_vm1, %v3270_v26  ;;  %v772_v7 = vrot.slane %v770_v24, 2  ;;  %v6589_v26 = vld [vmem:[%s8493_s1 + $0x460] ss:$8 sps:$4 sm:$0xff]  }
  0x88   : > { %3404 = vmatprep.mubr.bf16.mxu0 %v6812_v2  ;;  %v6601_v24 = vld [vmem:[%s8493_s1 + $0x480] ss:$8 sps:$4 sm:$0xff]  }
  0x89   : > { %v773_v16 = vor.u32 %v772_v7, %v769_v40  ;;  %v1116_v40 = vld [vmem:[%s6885_s16 + $0x4] sm:$0xe]  ;;  %v7554_v7 = vld [vmem:[%s6885_s16 + $0x8] sm:$0xf] }
  0x8a   : > { %5412 = vmatmul.mubr.msk.bf16.gmra.mrb[16].mxu1 %vm313_vm1, %v7105_v17  ;;  %v7396_v17 = vshrl.u32 %v7357_v23, 16 }
  0x8b   : > { %862 = vmatprep.mubr.bf16.mxu1 %v6812_v2 }
  0x8c   : > { %v3281_v47 = vor.u32 %v7396_v17, %v3277_v19  ;;  %v6595_v19 = vld [vmem:[%s8493_s1 + $0x470] ss:$8 sps:$4 sm:$0xff]  }
  0x8e   : > { %v3286_v57 = vsel %vm228_vm0, %v3281_v47, %v3285_v0  ;;  %v6586_v0 = vld [vmem:[%s8493_s1 + $0x140] ss:$8 sps:$4 sm:$0xff]  }
  0x8f   : > { %5721 = vmatmul.mubr.msk.bf16.gmra.mrb[12].mxu0 %vm313_vm1, %v3278_v39  ;;  %v774_v39 = vsel %vm741_vm3, %v7153_v41, %v773_v16  ;;  %v5465_v16 = vcombine.low %v1116_v40, %v7554_v7 }
  0x90   : > { %3414 = vmatprep.mubr.bf16.mxu0 %v6812_v2 }
  0x91   : > { %v1165_v63 = vshrl.u32 %v5465_v16, 16 }
  0x92   : > { %5430 = vmatmul.mubr.msk.bf16.vlgmr.msra.gmra.mrb[0].mxu1 %vm313_vm1, %v753_v46  ;;  %v947_v46 = vrot.slane %v5443_v42, 2  ;;  %v1168_v42 = vshll.u32 %v5465_v16, 16 }
  0x93   : > { %1014 = vmatpush1.bf16.msra.mxu1 %v6557_v37  ;;  %872 = vmatprep.mubr.bf16.mxu1 %v6812_v2  ;;  %v6603_v37 = vld [vmem:[%s8493_s1 + $0x484] ss:$8 sps:$4 sm:$0xff]  }
  0x94   : > { %1015 = vmatprep.subr.bf16.mxu1 %v6567_v12  ;;  %v3465_v12 = vrot.slane %v7357_v23, 1  ;;  %v949_v41 = vsel %vm946_vm4, %v947_v46, %v948_v50  ;;  %v3644_v50 = vshll.u32 %v7418_v34, 16  ;;  %v3649_v34 = vrot.slane %v7275_v35, 2  ;;  %v6663_v23 = vld [vmem:[%s8493_s1 + $0x1f4] ss:$8 sps:$4 sm:$0xff]  }
  0x96   : > { %v3466_v47 = vsel %vm558_vm2, %v3463_v30, %v3465_v12 }
  0x97   : > { %1016 = vmatpush1.bf16.msra.mxu1 %v6565_v61  ;;  %5722 = vmatmul.mubr.msk.bf16.gmra.mrb[16].mxu0 %vm313_vm1, %v3286_v57  ;;  %v6594_v61 = vld [vmem:[%s8493_s1 + $0x154] ss:$8 sps:$4 sm:$0xff]   ;;  %v3468_v57 = vsel %vm558_vm2, %v3465_v12, %v3467_v52  ;;  %v7597_v52 = vld [vmem:[%s6885_s16 + $0x38] ss:$0 sps:$4 sm:$0x33]  }
  0x98   : > { %1017 = vmatprep.subr.bf16.mxu1 %v6574_v48  ;;  %3556 = vmatprep.mubr.bf16.mxu0 %v6812_v2  ;;  %v6592_v48 = vld [vmem:[%s8493_s1 + $0x150] ss:$8 sps:$4 sm:$0xff]  }
  0x9a   : > { %5431 = vmatmul.mubr.msk.bf16.gmra.mrb[4].mxu1 %vm313_vm1, %v7110_v54  ;;  %v3460_v54 = vsel %vm558_vm2, %v3458_v22, %v3459_v4  ;;  %v3648_v22 = vrot.slane %v7305_v49, 1  ;;  %v6598_v4 = vld [vmem:[%s8493_s1 + $0x160] ss:$8 sps:$4 sm:$0xff]  }
  0x9b   : > { %882 = vmatprep.mubr.bf16.mxu1 %v6812_v2  ;;  %1018 = vmatpush1.bf16.msra.mxu1 %v6572_v62  ;;  %v3643_v62 = vrot.slane %v3641_v20, 1  ;;  %v1167_v20 = vrot.slane %v1165_v63, 1 }
  0x9c   : > { %1019 = vmatprep.subr.bf16.mxu1 %v6580_v3  ;;  %v3646_v3 = vrot.slane %v3644_v50, 2  ;;  %v1170_v50 = vrot.slane %v1168_v42, 2 }
  0x9f   : > { %1020 = vmatpush1.bf16.msra.mxu1 %v6578_v6  ;;  %5740 = vmatmul.mubr.msk.bf16.vlgmr.msra.gmra.mrb[0].mxu0 %vm313_vm1, %v3460_v54  ;;  %v6606_v6 = vld [vmem:[%s8493_s1 + $0x174] ss:$8 sps:$4 sm:$0xff]   ;;  %v3650_v54 = vor.u32 %v3649_v34, %v3648_v22 }
  0xa0   : > { %1272 = vmatprep.subr.bf16.mxu1 %v6588_v5  ;;  %3566 = vmatprep.mubr.bf16.mxu0 %v6812_v2  ;;  %v3647_v5 = vor.u32 %v3646_v3, %v3643_v62  ;;  %v3668_v62 = vshll.u32 %v7597_v52, 16  ;;  %v1171_v3 = vor.u32 %v1170_v50, %v1167_v20  ;;  %v6632_v20 = vld [vmem:[%s8493_s1 + $0x4c0] ss:$8 sps:$4 sm:$0xff]   ;;  %v7681_v50 = vld [vmem:[%s6885_s16 + $0x2c] ss:$0 sps:$4 sm:$0x33]  }
  0xa1   : > { %3729 = vmatpush1.bf16.msra.mxu0 %v6575_v13  ;;  %v6604_v13 = vld [vmem:[%s8493_s1 + $0x170] ss:$8 sps:$4 sm:$0xff]  }
  0xa2   : > { %5432 = vmatmul.mubr.msk.bf16.gmra.mrb[8].mxu1 %vm313_vm1, %v7135_v32  ;;  %3730 = vmatprep.subr.bf16.mxu0 %v6584_v15  ;;  %v6591_v32 = vld [vmem:[%s8493_s1 + $0x464] ss:$8 sps:$4 sm:$0xff]  }
  0xa3   : > { %892 = vmatprep.mubr.bf16.mxu1 %v6812_v2  ;;  %v6614_v15 = vld [vmem:[%s8493_s1 + $0x184] ss:$8 sps:$4 sm:$0xff]  }
  0xa5   : > { %3731 = vmatpush1.bf16.msra.mxu0 %v6582_v45  ;;  %v6609_v45 = vld [vmem:[%s8493_s1 + $0x494] ss:$8 sps:$4 sm:$0xff]  }
  0xa6   : > { %3732 = vmatprep.subr.bf16.mxu0 %v6591_v32 }
  0xa7   : > { %5741 = vmatmul.mubr.msk.bf16.gmra.mrb[4].mxu0 %vm313_vm1, %v3462_v25  ;;  %v6607_v25 = vld [vmem:[%s8493_s1 + $0x490] ss:$8 sps:$4 sm:$0xff]  }
  0xa8   : > { %3576 = vmatprep.mubr.bf16.mxu0 %v6812_v2 }
  0xa9   : > { %3733 = vmatpush1.bf16.msra.mxu0 %v6589_v26  ;;  %v6617_v26 = vld [vmem:[%s8493_s1 + $0x4a4] ss:$8 sps:$4 sm:$0xff]  }
  0xaa   : > { %5433 = vmatmul.mubr.msk.bf16.gmra.mrb[12].mxu1 %vm313_vm1, %v7165_v43  ;;  %3734 = vmatprep.subr.bf16.mxu0 %v6597_v29  ;;  %v3464_v43 = vsel %vm558_vm2, %v3461_v38, %v3463_v30  ;;  %v3651_v38 = vsel %vm741_vm3, %v3647_v5, %v3650_v54  ;;  %v3656_v29 = vrot.slane %v7370_v11, 1  ;;  %v3657_v30 = vrot.slane %v7341_v53, 2 }
  0xab   : > { %902 = vmatprep.mubr.bf16.mxu1 %v6812_v2 }
  0xad   : > { %3735 = vmatpush1.bf16.msra.mxu0 %v6595_v19  ;;  %v7564_v19 = vld [vmem:[%s6885_s16 + $0xc] sm:$0xff]  }
  0xae   : > { %3910 = vmatprep.subr.bf16.mxu0 %v6603_v37  ;;  %v6625_v37 = vld [vmem:[%s8493_s1 + $0x4b4] ss:$8 sps:$4 sm:$0xff]   ;;  %v7579_v12 = vshrl.u32 %v7564_v19, 16  ;;  %v7582_v46 = vshll.u32 %v7564_v19, 16 }
  0xaf   : > { %5742 = vmatmul.mubr.msk.bf16.gmra.mrb[8].mxu0 %vm313_vm1, %v3464_v43  ;;  %v956_v43 = vrot.slane %v7444_v27, 2  ;;  %v6634_v27 = vld [vmem:[%s8493_s1 + $0x4c4] ss:$8 sps:$4 sm:$0xff]  }
  0xb0   : > { %3586 = vmatprep.mubr.bf16.mxu0 %v6812_v2 }
  0xb2   : > { %5434 = vmatmul.mubr.msk.bf16.gmra.mrb[16].mxu1 %vm313_vm1, %v774_v39  ;;  %v3658_v39 = vor.u32 %v3657_v30, %v3656_v29  ;;  %v7647_v30 = vld [vmem:[%s6885_s16 + $0x24] sm:$0xff]  }
  0xb3   : > { %1045 = vmatprep.mubr.bf16.mxu1 %v6812_v2  ;;  %v7662_v63 = vshrl.u32 %v7647_v30, 16 }
  0xb7   : > { %5743 = vmatmul.mubr.msk.bf16.gmra.mrb[12].mxu0 %vm313_vm1, %v3466_v47  ;;  %v957_v47 = vsel %vm946_vm4, %v954_v9, %v956_v43  ;;  %v3665_v9 = vshrl.u32 %v7597_v52, 16  ;;  %v6628_v43 = vld [vmem:[%s8493_s1 + $0x1a0] ss:$8 sps:$4 sm:$0xff]  }
  0xb8   : > { %3596 = vmatprep.mubr.bf16.mxu0 %v6812_v2 }
  0xb9   : > { %v3667_v5 = vrot.slane %v3665_v9, 1  ;;  %v1212_v9 = vshll.u32 %v7681_v50, 16 }
  0xba   : > { %5452 = vmatmul.mubr.msk.bf16.vlgmr.msra.gmra.mrb[0].mxu1 %vm313_vm1, %v949_v41 }
  0xbb   : > { %1273 = vmatpush1.bf16.msra.mxu1 %v6586_v0  ;;  %1055 = vmatprep.mubr.bf16.mxu1 %v6812_v2  ;;  %v3660_v0 = vrot.slane %v7396_v17, 1 }
  0xbc   : > { %1274 = vmatprep.subr.bf16.mxu1 %v6594_v61  ;;  %v3661_v61 = vrot.slane %v7373_v56, 2 }
  0xbe   : > { %v3662_v1 = vor.u32 %v3661_v61, %v3660_v0 }
  0xbf   : > { %1275 = vmatpush1.bf16.msra.mxu1 %v6592_v48  ;;  %5744 = vmatmul.mubr.msk.bf16.gmra.mrb[16].mxu0 %vm313_vm1, %v3468_v57  ;;  %v1175_v48 = vrot.slane %v7579_v12, 1  ;;  %v7602_v57 = vld [vmem:[%s6885_s16 + $0x14] sm:$0xff]  }
  0xc0   : > { %1276 = vmatprep.subr.bf16.mxu1 %v6600_v33  ;;  %3760 = vmatprep.mubr.bf16.mxu0 %v6812_v2  ;;  %v1178_v33 = vrot.slane %v7582_v46, 2  ;;  %v7611_v34 = vshrl.u32 %v7602_v57, 16 }
  0xc2   : > { %5453 = vmatmul.mubr.msk.bf16.gmra.mrb[4].mxu1 %vm313_vm1, %v7187_v55  ;;  %v3652_v55 = vrot.slane %v7338_v8, 1  ;;  %v1179_v22 = vor.u32 %v1178_v33, %v1175_v48  ;;  %v6641_v48 = vld [vmem:[%s8493_s1 + $0x4d4] ss:$8 sps:$4 sm:$0xff]  }
  0xc3   : > { %1065 = vmatprep.mubr.bf16.mxu1 %v6812_v2  ;;  %1277 = vmatpush1.bf16.msra.mxu1 %v6598_v4  ;;  %v7614_v4 = vshll.u32 %v7602_v57, 16 }
  0xc4   : > { %1278 = vmatprep.subr.bf16.mxu1 %v6606_v6  ;;  %v3654_v32 = vor.u32 %v3653_v18, %v3652_v55  ;;  %v3663_v6 = vsel %vm741_vm3, %v3658_v39, %v3662_v1  ;;  %v7624_v18 = vld [vmem:[%s6885_s16 + $0x1c] sm:$0xff]  }
  0xc5   : > { %v1187_v55 = vrot.slane %v7614_v4, 2  ;;  %v7637_v40 = vshrl.u32 %v7624_v18, 16 }
  0xc6   : > { %v3659_v41 = vsel %vm741_vm3, %v3654_v32, %v3658_v39  ;;  %v6637_v39 = vld [vmem:[%s8493_s1 + $0x1b4] ss:$8 sps:$4 sm:$0xff]  }
  0xc7   : > { %1279 = vmatpush1.bf16.msra.mxu1 %v6604_v13  ;;  %5762 = vmatmul.mubr.msk.bf16.vlgmr.msra.gmra.mrb[0].mxu0 %vm313_vm1, %v3651_v38  ;;  %v1180_v13 = vsel %vm741_vm3, %v1171_v3, %v1179_v22  ;;  %v1184_v38 = vrot.slane %v7611_v34, 1 }
  0xc8   : > { %1454 = vmatprep.subr.bf16.mxu1 %v6614_v15  ;;  %3770 = vmatprep.mubr.bf16.mxu0 %v6812_v2  ;;  %v6612_v15 = vld [vmem:[%s8493_s1 + $0x180] ss:$8 sps:$4 sm:$0xff]  }
  0xc9   : > { %3911 = vmatpush1.bf16.msra.mxu0 %v6601_v24  ;;  %v6622_v24 = vld [vmem:[%s8493_s1 + $0x194] ss:$8 sps:$4 sm:$0xff]  }
  0xca   : > { %5454 = vmatmul.mubr.msk.bf16.gmra.mrb[8].mxu1 %vm313_vm1, %v7198_v10  ;;  %3912 = vmatprep.subr.bf16.mxu0 %v6609_v45  ;;  %v3655_v10 = vsel %vm741_vm3, %v3650_v54, %v3654_v32  ;;  %v3670_v54 = vrot.slane %v3668_v62, 2  ;;  %v1188_v32 = vor.u32 %v1187_v55, %v1184_v38  ;;  %v6639_v62 = vld [vmem:[%s8493_s1 + $0x4d0] ss:$8 sps:$4 sm:$0xff]   ;;  %v1375_v38 = vld [vmem:[%s6885_s16 + $0x4] sm:$0xc] }
  0xcb   : > { %1075 = vmatprep.mubr.bf16.mxu1 %v6812_v2  ;;  %v6660_v55 = vld [vmem:[%s8493_s1 + $0x504] ss:$8 sps:$4 sm:$0xff]  }
  0xcc   : > { %v3671_v45 = vor.u32 %v3670_v54, %v3667_v5  ;;  %v1189_v16 = vsel %vm741_vm3, %v1179_v22, %v1188_v32  ;;  %v6646_v5 = vld [vmem:[%s8493_s1 + $0x4e0] ss:$8 sps:$4 sm:$0xff]   ;;  %v6654_v54 = vld [vmem:[%s8493_s1 + $0x4f4] ss:$8 sps:$4 sm:$0xff]  }
  0xcd   : > { %3913 = vmatpush1.bf16.msra.mxu0 %v6607_v25  ;;  %v6620_v25 = vld [vmem:[%s8493_s1 + $0x190] ss:$8 sps:$4 sm:$0xff]  }
  0xce   : > { %3914 = vmatprep.subr.bf16.mxu0 %v6617_v26  ;;  %v7640_v26 = vshll.u32 %v7624_v18, 16  ;;  %v3672_v29 = vsel %vm741_vm3, %v3662_v1, %v3671_v45  ;;  %v1209_v1 = vshrl.u32 %v7681_v50, 16 }
  0xcf   : > { %5763 = vmatmul.mubr.msk.bf16.gmra.mrb[4].mxu0 %vm313_vm1, %v3655_v10  ;;  %v6630_v10 = vld [vmem:[%s8493_s1 + $0x1a4] ss:$8 sps:$4 sm:$0xff]  }
  0xd0   : > { %3780 = vmatprep.mubr.bf16.mxu0 %v6812_v2  ;;  %v1211_v22 = vrot.slane %v1209_v1, 1 }
  0xd1   : > { %3915 = vmatpush1.bf16.msra.mxu0 %v6615_v36  ;;  %v1193_v36 = vrot.slane %v7637_v40, 1 }
  0xd2   : > { %5455 = vmatmul.mubr.msk.bf16.gmra.mrb[12].mxu1 %vm313_vm1, %v7224_v28  ;;  %v6623_v28 = vld [vmem:[%s8493_s1 + $0x4b0] ss:$8 sps:$4 sm:$0xff]   ;;  %3916 = vmatprep.subr.bf16.mxu0 %v6625_v37  ;;  %v1196_v37 = vrot.slane %v7640_v26, 2 }
  0xd3   : > { %1085 = vmatprep.mubr.bf16.mxu1 %v6812_v2 }
  0xd4   : > { %v1197_v42 = vor.u32 %v1196_v37, %v1193_v36  ;;  %v4030_v36 = vshll.u32 %v7271_v58, 16  ;;  %v1391_v37 = vrot.slane %v7602_v57, 2 }
  0xd5   : > { %3917 = vmatpush1.bf16.msra.mxu0 %v6623_v28  ;;  %v7666_v28 = vshll.u32 %v7647_v30, 16 }
  0xd6   : > { %4114 = vmatprep.subr.bf16.mxu0 %v6634_v27  ;;  %v6635_v27 = vld [vmem:[%s8493_s1 + $0x1b0] ss:$8 sps:$4 sm:$0xff]   ;;  %v1198_v0 = vsel %vm741_vm3, %v1188_v32, %v1197_v42  ;;  %v1389_v32 = vrot.slane %v7564_v19, 2 }
  0xd7   : > { %5764 = vmatmul.mubr.msk.bf16.gmra.mrb[8].mxu0 %vm313_vm1, %v3659_v41  ;;  %v1202_v41 = vrot.slane %v7662_v63, 1  ;;  %v1205_v61 = vrot.slane %v7666_v28, 2 }
  0xd8   : > { %3790 = vmatprep.mubr.bf16.mxu0 %v6812_v2 }
  0xd9   : > { %v1206_v33 = vor.u32 %v1205_v61, %v1202_v41  ;;  %v6655_v41 = vld [vmem:[%s8493_s1 + $0x1e0] ss:$8 sps:$4 sm:$0xff]   ;;  %v6669_v61 = vld [vmem:[%s8493_s1 + $0x204] ss:$8 sps:$4 sm:$0xff]  }
  0xda   : > { %5456 = vmatmul.mubr.msk.bf16.gmra.mrb[16].mxu1 %vm313_vm1, %v957_v47  ;;  %v6645_v47 = vld [vmem:[%s8493_s1 + $0x1c4] ss:$8 sps:$4 sm:$0xff]  }
  0xdb   : > { %1304 = vmatprep.mubr.bf16.mxu1 %v6812_v2  ;;  %v1207_v3 = vsel %vm741_vm3, %v1197_v42, %v1206_v33  ;;  %v4034_v42 = vrot.slane %v7305_v49, 2 }
  0xdf   : > { %5765 = vmatmul.mubr.msk.bf16.gmra.mrb[12].mxu0 %vm313_vm1, %v3663_v6  ;;  %v1214_v6 = vrot.slane %v1212_v9, 2  ;;  %v6658_v9 = vld [vmem:[%s8493_s1 + $0x500] ss:$8 sps:$4 sm:$0xff]  }
  0xe0   : > { %3800 = vmatprep.mubr.bf16.mxu0 %v6812_v2 }
  0xe2   : > { %5479 = vmatmul.mubr.msk.bf16.vlgmr.msra.gmra.mrb[0].mxu1 %vm313_vm1, %v1180_v13  ;;  %v1215_v13 = vor.u32 %v1214_v6, %v1211_v22  ;;  %v6672_v22 = vld [vmem:[%s8493_s1 + $0x524] ss:$8 sps:$4 sm:$0xff]  }
  0xe3   : > { %1455 = vmatpush1.bf16.msra.mxu1 %v6612_v15  ;;  %1314 = vmatprep.mubr.bf16.mxu1 %v6812_v2  ;;  %v6652_v15 = vld [vmem:[%s8493_s1 + $0x4f0] ss:$8 sps:$4 sm:$0xff]  }
  0xe4   : > { %1456 = vmatprep.subr.bf16.mxu1 %v6622_v24  ;;  %v7720_v24 = vcombine.low %v1375_v38, %v7554_v7 }
  0xe6   : > { %v1388_v45 = vrot.slane %v7720_v24, 2 }
  0xe7   : > { %1457 = vmatpush1.bf16.msra.mxu1 %v6620_v25  ;;  %5766 = vmatmul.mubr.msk.bf16.gmra.mrb[16].mxu0 %vm313_vm1, %v3672_v29  ;;  %v3853_v29 = vrot.slane %v7597_v52, 2 }
  0xe8   : > { %1458 = vmatprep.subr.bf16.mxu1 %v6630_v10  ;;  %3942 = vmatprep.mubr.bf16.mxu0 %v6812_v2  ;;  %v1390_v25 = vsel %vm946_vm4, %v1388_v45, %v1389_v32  ;;  %v6643_v10 = vld [vmem:[%s8493_s1 + $0x1c0] ss:$8 sps:$4 sm:$0xff]  }
  0xe9   : > { %v3854_v52 = vsel %vm946_vm4, %v3851_v14, %v3853_v29  ;;  %v1393_v14 = vrot.slane %v7624_v18, 2  ;;  %v2199_v29 = vrot.slane %v6942_v44, 3 }
  0xea   : > { %5480 = vmatmul.mubr.msk.bf16.gmra.mrb[4].mxu1 %vm313_vm1, %v1189_v16  ;;  %v4027_v16 = vshrl.u32 %v7271_v58, 16  ;;  %v4032_v58 = vrot.slane %v4030_v36, 3 }
  0xeb   : > { %1324 = vmatprep.mubr.bf16.mxu1 %v6812_v2  ;;  %1459 = vmatpush1.bf16.msra.mxu1 %v6628_v43  ;;  %v6649_v43 = vld [vmem:[%s8493_s1 + $0x1d0] ss:$8 sps:$4 sm:$0xff]   ;;  %v1394_v1 = vsel %vm946_vm4, %v1391_v37, %v1393_v14 }
  0xec   : > { %1460 = vmatprep.subr.bf16.mxu1 %v6637_v39  ;;  %v4029_v39 = vrot.slane %v4027_v16, 2  ;;  %v6795_v16 = vld [vmem:[%s6885_s16 + $0x18] sm:$0xf] }
  0xee   : > { %v4033_v49 = vor.u32 %v4032_v58, %v4029_v39  ;;  %v6673_v39 = vld [vmem:[%s6885_s16 + $0x38] ss:$0 sps:$4 sm:$0x77]  }
  0xef   : > { %1461 = vmatpush1.bf16.msra.mxu1 %v6635_v27  ;;  %5784 = vmatmul.mubr.msk.bf16.vlgmr.msra.gmra.mrb[0].mxu0 %vm313_vm1, %v7287_v60  ;;  %v6648_v60 = vld [vmem:[%s8493_s1 + $0x4e4] ss:$8 sps:$4 sm:$0xff]   ;;  %v4035_v27 = vrot.slane %v7275_v35, 3 }
  0xf0   : > { %1659 = vmatprep.subr.bf16.mxu1 %v6645_v47  ;;  %3952 = vmatprep.mubr.bf16.mxu0 %v6812_v2  ;;  %v1392_v47 = vsel %vm946_vm4, %v1389_v32, %v1391_v37  ;;  %v1572_v32 = vshrl.u32 %v7720_v24, 16 }
  0xf1   : > { %4115 = vmatpush1.bf16.msra.mxu0 %v6632_v20  ;;  %v4036_v35 = vor.u32 %v4035_v27, %v4034_v42  ;;  %v1579_v27 = vrot.slane %v7579_v12, 2 }
  0xf2   : > { %5481 = vmatmul.mubr.msk.bf16.gmra.mrb[8].mxu1 %vm313_vm1, %v1198_v0  ;;  %4116 = vmatprep.subr.bf16.mxu0 %v6641_v48  ;;  %v6661_v0 = vld [vmem:[%s8493_s1 + $0x1f0] ss:$8 sps:$4 sm:$0xff]   ;;  %v4038_v48 = vrot.slane %v7338_v8, 2  ;;  %v1395_v8 = vrot.slane %v7647_v30, 2  ;;  %v1574_v58 = vrot.slane %v1572_v32, 2 }
  0xf3   : > { %1334 = vmatprep.mubr.bf16.mxu1 %v6812_v2  ;;  %v4037_v20 = vsel %vm1570_vm5, %v4033_v49, %v4036_v35  ;;  %v6682_v32 = vld [vmem:[%s8493_s1 + $0x220] ss:$8 sps:$4 sm:$0xff]  }
  0xf4   : > { %v1396_v38 = vsel %vm946_vm4, %v1393_v14, %v1395_v8 }
  0xf5   : > { %4117 = vmatpush1.bf16.msra.mxu0 %v6639_v62  ;;  %v6666_v62 = vld [vmem:[%s8493_s1 + $0x514] ss:$8 sps:$4 sm:$0xff]  }
  0xf6   : > { %4118 = vmatprep.subr.bf16.mxu0 %v6648_v60  ;;  %v6664_v60 = vld [vmem:[%s8493_s1 + $0x510] ss:$8 sps:$4 sm:$0xff]  }
  0xf7   : > { %5785 = vmatmul.mubr.msk.bf16.gmra.mrb[4].mxu0 %vm313_vm1, %v7316_v59  ;;  %v1216_v59 = vsel %vm741_vm3, %v1206_v33, %v1215_v13  ;;  %v4039_v33 = vrot.slane %v7308_v51, 3  ;;  %v6794_v13 = vld [vmem:[%s6885_s16 + $0xc] sm:$0xf] }
  0xf8   : > { %3962 = vmatprep.mubr.bf16.mxu0 %v6812_v2 }
  0xf9   : > { %4119 = vmatpush1.bf16.msra.mxu0 %v6646_v5  ;;  %v4040_v51 = vor.u32 %v4039_v33, %v4038_v48  ;;  %v4042_v5 = vrot.slane %v7370_v11, 2  ;;  %v7811_v11 = vld [vmem:[%s6885_s16 + $0x1c] sm:$0xf]  ;;  %v6667_v33 = vld [vmem:[%s8493_s1 + $0x200] ss:$8 sps:$4 sm:$0xff]  }
  0xfa   : > { %5482 = vmatmul.mubr.msk.bf16.gmra.mrb[12].mxu1 %vm313_vm1, %v1207_v3  ;;  %4120 = vmatprep.subr.bf16.mxu0 %v6654_v54  ;;  %v2150_v3 = vld [vmem:[%s6885_s16 + $0x8] sm:$0x8]  ;;  %v4043_v54 = vrot.slane %v7341_v53, 3  ;;  %v1397_v53 = vrot.slane %v7681_v50, 2  ;;  %v6688_v50 = vld [vmem:[%s8493_s1 + $0x544] ss:$8 sps:$4 sm:$0xff]   ;;  %v7829_v36 = vcombine.low %v6795_v16, %v7811_v11 }
  0xfb   : > { %1344 = vmatprep.mubr.bf16.mxu1 %v6812_v2  ;;  %v4041_v6 = vsel %vm1570_vm5, %v4036_v35, %v4040_v51  ;;  %v7908_v16 = vld [vmem:[%s6885_s16 + $0x28] sm:$0xf] }
  0xfc   : > { %v4044_v45 = vor.u32 %v4043_v54, %v4042_v5  ;;  %v1398_v37 = vsel %vm946_vm4, %v1395_v8, %v1397_v53  ;;  %v2201_v35 = vrot.slane %v7829_v36, 3  ;;  %v6674_v8 = vld [vmem:[%s8493_s1 + $0x210] ss:$8 sps:$4 sm:$0xff]   ;;  %v7876_v5 = vld [vmem:[%s6885_s16 + $0x20] sm:$0xf]  ;;  %v1587_v53 = vrot.slane %v7637_v40, 2 }
  0xfd   : > { %4121 = vmatpush1.bf16.msra.mxu0 %v6652_v15  ;;  %v7800_v15 = vcombine.low %v2150_v3, %v6794_v13  ;;  %v6684_v54 = vld [vmem:[%s8493_s1 + $0x224] ss:$8 sps:$4 sm:$0xff]  }
  0xfe   : > { %4331 = vmatprep.subr.bf16.mxu0 %v6660_v55  ;;  %v6670_v55 = vld [vmem:[%s8493_s1 + $0x520] ss:$8 sps:$4 sm:$0xff]   ;;  %v7849_v14 = vsel %vm1775_vm6, %v2199_v29, %v2201_v35 }
  0xff   : > { %5786 = vmatmul.mubr.msk.bf16.gmra.mrb[8].mxu0 %vm313_vm1, %v7349_v21  ;;  %v6651_v21 = vld [vmem:[%s8493_s1 + $0x1d4] ss:$8 sps:$4 sm:$0xff]  }
 0x100   : > { %3972 = vmatprep.mubr.bf16.mxu0 %v6812_v2 }
 0x102   : > { %5483 = vmatmul.mubr.msk.bf16.gmra.mrb[16].mxu1 %vm313_vm1, %v1216_v59  ;;  %v6679_v59 = vld [vmem:[%s8493_s1 + $0x534] ss:$8 sps:$4 sm:$0xff]  }
 0x103   : > { %1486 = vmatprep.mubr.bf16.mxu1 %v6812_v2 }
 0x107   : > { %5787 = vmatmul.mubr.msk.bf16.gmra.mrb[12].mxu0 %vm313_vm1, %v7380_v31  ;;  %v6657_v31 = vld [vmem:[%s8493_s1 + $0x1e4] ss:$8 sps:$4 sm:$0xff]  }
 0x108   : > { %3982 = vmatprep.mubr.bf16.mxu0 %v6812_v2 }
 0x10a   : > { %5501 = vmatmul.mubr.msk.bf16.vlgmr.msra.gmra.mrb[0].mxu1 %vm313_vm1, %v1390_v25  ;;  %v1575_v25 = vshll.u32 %v7720_v24, 16 }
 0x10b   : > { %1660 = vmatpush1.bf16.msra.mxu1 %v6643_v10  ;;  %1496 = vmatprep.mubr.bf16.mxu1 %v6812_v2  ;;  %v6677_v10 = vld [vmem:[%s8493_s1 + $0x530] ss:$8 sps:$4 sm:$0xff]  }
 0x10c   : > { %1661 = vmatprep.subr.bf16.mxu1 %v6651_v21  ;;  %v2198_v21 = vrot.slane %v7800_v15, 3  ;;  %v1577_v42 = vrot.slane %v1575_v25, 3  ;;  %v6691_v25 = vld [vmem:[%s8493_s1 + $0x234] ss:$8 sps:$4 sm:$0xff]  }
 0x10e   : > { %v7832_v24 = vsel %vm1775_vm6, %v2198_v21, %v2199_v29 }
 0x10f   : > { %1662 = vmatpush1.bf16.msra.mxu1 %v6649_v43  ;;  %5788 = vmatmul.mubr.msk.bf16.gmra.mrb[16].mxu0 %vm313_vm1, %v3854_v52  ;;  %v4045_v43 = vsel %vm1570_vm5, %v4040_v51, %v4044_v45  ;;  %v4047_v52 = vrot.slane %v7373_v56, 3  ;;  %v1578_v56 = vor.u32 %v1577_v42, %v1574_v58  ;;  %v1591_v42 = vrot.slane %v7662_v63, 2 }
 0x110   : > { %1663 = vmatprep.subr.bf16.mxu1 %v6657_v31  ;;  %4146 = vmatprep.mubr.bf16.mxu0 %v6812_v2  ;;  %v4046_v31 = vrot.slane %v7396_v17, 2  ;;  %v4054_v17 = vshll.u32 %v6673_v39, 16 }
 0x112   : > { %5502 = vmatmul.mubr.msk.bf16.gmra.mrb[4].mxu1 %vm313_vm1, %v1392_v47  ;;  %v1580_v47 = vrot.slane %v7582_v46, 3 }
 0x113   : > { %1506 = vmatprep.mubr.bf16.mxu1 %v6812_v2  ;;  %1664 = vmatpush1.bf16.msra.mxu1 %v6655_v41  ;;  %v4048_v41 = vor.u32 %v4047_v52, %v4046_v31 }
 0x114   : > { %1665 = vmatprep.subr.bf16.mxu1 %v6663_v23  ;;  %v4051_v23 = vshrl.u32 %v6673_v39, 16  ;;  %v1581_v49 = vor.u32 %v1580_v47, %v1579_v27  ;;  %v7922_v39 = vld [vmem:[%s6885_s16 + $0x2c] ss:$0 sps:$4 sm:$0x77]   ;;  %v1592_v27 = vrot.slane %v7666_v28, 3 }
 0x115   : > { %v6686_v47 = vld [vmem:[%s8493_s1 + $0x540] ss:$8 sps:$4 sm:$0xff]  }
 0x116   : > { %v1582_v48 = vsel %vm1570_vm5, %v1578_v56, %v1581_v49  ;;  %v2389_v56 = vshrl.u32 %v6942_v44, 16 }
 0x117   : > { %1666 = vmatpush1.bf16.msra.mxu1 %v6661_v0  ;;  %5806 = vmatmul.mubr.msk.bf16.vlgmr.msra.gmra.mrb[0].mxu0 %vm313_vm1, %v4037_v20  ;;  %v4049_v0 = vsel %vm1570_vm5, %v4044_v45, %v4048_v41  ;;  %v4056_v20 = vrot.slane %v4054_v17, 3  ;;  %v1588_v45 = vrot.slane %v7640_v26, 3  ;;  %v2384_v17 = vshll.u32 %v7800_v15, 16 }
 0x118   : > { %1842 = vmatprep.subr.bf16.mxu1 %v6669_v61  ;;  %4156 = vmatprep.mubr.bf16.mxu0 %v6812_v2  ;;  %v4053_v61 = vrot.slane %v4051_v23, 2  ;;  %v2381_v23 = vshrl.u32 %v7800_v15, 16  ;;  %v7945_v15 = vld [vmem:[%s6885_s16 + $0x2c] sm:$0xf] }
 0x119   : > { %4332 = vmatpush1.bf16.msra.mxu0 %v6658_v9  ;;  %v1584_v9 = vrot.slane %v7614_v4, 3  ;;  %v1589_v29 = vor.u32 %v1588_v45, %v1587_v53  ;;  %v6702_v53 = vld [vmem:[%s8493_s1 + $0x560] ss:$8 sps:$4 sm:$0xff]   ;;  %v6711_v45 = vld [vmem:[%s8493_s1 + $0x574] ss:$8 sps:$4 sm:$0xff]  }
 0x11a   : > { %5503 = vmatmul.mubr.msk.bf16.gmra.mrb[8].mxu1 %vm313_vm1, %v1394_v1  ;;  %4333 = vmatprep.subr.bf16.mxu0 %v6666_v62  ;;  %v1583_v1 = vrot.slane %v7611_v34, 2  ;;  %v6676_v62 = vld [vmem:[%s8493_s1 + $0x214] ss:$8 sps:$4 sm:$0xff]   ;;  %v4057_v51 = vor.u32 %v4056_v20, %v4053_v61  ;;  %v1596_v61 = vshrl.u32 %v7922_v39, 16  ;;  %v1599_v20 = vshll.u32 %v7922_v39, 16 }
 0x11b   : > { %1516 = vmatprep.mubr.bf16.mxu1 %v6812_v2 }
 0x11c   : > { %v1585_v3 = vor.u32 %v1584_v9, %v1583_v1  ;;  %v4058_v13 = vsel %vm1570_vm5, %v4048_v41, %v4057_v51  ;;  %v6696_v41 = vld [vmem:[%s8493_s1 + $0x554] ss:$8 sps:$4 sm:$0xff]   ;;  %v6704_v1 = vld [vmem:[%s8493_s1 + $0x564] ss:$8 sps:$4 sm:$0xff]   ;;  %v2383_v9 = vrot.slane %v2381_v23, 3  ;;  %v2391_v51 = vrot.slane %v2389_v56, 3 }
 0x11d   : > { %4334 = vmatpush1.bf16.msra.mxu0 %v6664_v60  ;;  %v4217_v60 = vld [vmem:[%s6885_s16 + $0x14] sm:$0xc] }
 0x11e   : > { %4335 = vmatprep.subr.bf16.mxu0 %v6672_v22  ;;  %v7870_v22 = vld [vmem:[%s6885_s16 + $0x18] sm:$0xf]  ;;  %v1590_v58 = vsel %vm1570_vm5, %v1585_v3, %v1589_v29 }
 0x11f   : > { %5807 = vmatmul.mubr.msk.bf16.gmra.mrb[4].mxu0 %vm313_vm1, %v4041_v6  ;;  %v7873_v6 = vld [vmem:[%s6885_s16 + $0x1c] sm:$0xf] }
 0x120   : > { %4166 = vmatprep.mubr.bf16.mxu0 %v6812_v2 }
 0x121   : > { %4336 = vmatpush1.bf16.msra.mxu0 %v6670_v55  ;;  %v7887_v55 = vcombine.low %v7873_v6, %v7876_v5 }
 0x122   : > { %5504 = vmatmul.mubr.msk.bf16.gmra.mrb[12].mxu1 %vm313_vm1, %v1396_v38  ;;  %4337 = vmatprep.subr.bf16.mxu0 %v6679_v59  ;;  %v7883_v38 = vcombine.low %v4217_v60, %v7870_v22  ;;  %v1586_v59 = vsel %vm1570_vm5, %v1581_v49, %v1585_v3  ;;  %v2392_v49 = vshll.u32 %v6942_v44, 16  ;;  %v6694_v44 = vld [vmem:[%s8493_s1 + $0x550] ss:$8 sps:$4 sm:$0xff]  }
 0x123   : > { %1526 = vmatprep.mubr.bf16.mxu1 %v6812_v2  ;;  %v4266_v21 = vrot.slane %v7887_v55, 2 }
 0x124   : > { %v2394_v3 = vrot.slane %v2392_v49, 4  ;;  %v1777_v49 = vrot.slane %v7564_v19, 3  ;;  %v6708_v19 = vld [vmem:[%s8493_s1 + $0x254] ss:$8 sps:$4 sm:$0xff]  }
 0x125   : > { %4338 = vmatpush1.bf16.msra.mxu0 %v6677_v10  ;;  %v4265_v10 = vrot.slane %v7883_v38, 2 }
 0x126   : > { %4555 = vmatprep.subr.bf16.mxu0 %v6688_v50  ;;  %v7905_v50 = vld [vmem:[%s6885_s16 + $0x24] sm:$0xf] }
 0x127   : > { %5808 = vmatmul.mubr.msk.bf16.gmra.mrb[8].mxu0 %vm313_vm1, %v4045_v43  ;;  %v6700_v43 = vld [vmem:[%s8493_s1 + $0x244] ss:$8 sps:$4 sm:$0xff]   ;;  %v4267_v31 = vsel %vm946_vm4, %v4265_v10, %v4266_v21  ;;  %v7919_v52 = vcombine.low %v7905_v50, %v7908_v16  ;;  %v7974_v10 = vld [vmem:[%s6885_s16 + $0x34] sm:$0xf] }
 0x128   : > { %4176 = vmatprep.mubr.bf16.mxu0 %v6812_v2 }
 0x12a   : > { %5505 = vmatmul.mubr.msk.bf16.gmra.mrb[16].mxu1 %vm313_vm1, %v1398_v37  ;;  %v6689_v37 = vld [vmem:[%s8493_s1 + $0x230] ss:$8 sps:$4 sm:$0xff]  }
 0x12b   : > { %1691 = vmatprep.mubr.bf16.mxu1 %v6812_v2 }
 0x12f   : > { %5809 = vmatmul.mubr.msk.bf16.gmra.mrb[12].mxu0 %vm313_vm1, %v4049_v0  ;;  %v4268_v0 = vrot.slane %v7919_v52, 2 }
 0x130   : > { %4186 = vmatprep.mubr.bf16.mxu0 %v6812_v2 }
 0x132   : > { %5523 = vmatmul.mubr.msk.bf16.vlgmr.msra.gmra.mrb[0].mxu1 %vm313_vm1, %v1582_v48  ;;  %v1593_v48 = vor.u32 %v1592_v27, %v1591_v42 }
 0x133   : > { %1843 = vmatpush1.bf16.msra.mxu1 %v6667_v33  ;;  %1701 = vmatprep.mubr.bf16.mxu1 %v6812_v2  ;;  %v7948_v33 = vld [vmem:[%s6885_s16 + $0x30] sm:$0xf] }
 0x134   : > { %1844 = vmatprep.subr.bf16.mxu1 %v6676_v62  ;;  %v2386_v62 = vrot.slane %v2384_v17, 4  ;;  %v7959_v60 = vcombine.low %v7945_v15, %v7948_v33 }
 0x137   : > { %1845 = vmatpush1.bf16.msra.mxu1 %v6674_v8  ;;  %5810 = vmatmul.mubr.msk.bf16.gmra.mrb[16].mxu0 %vm313_vm1, %v4058_v13  ;;  %v4269_v8 = vsel %vm946_vm4, %v4266_v21, %v4268_v0  ;;  %v1598_v13 = vrot.slane %v1596_v61, 2  ;;  %v7977_v21 = vld [vmem:[%s6885_s16 + $0x38] sm:$0xf]  ;;  %v6705_v61 = vld [vmem:[%s6885_s16 + $0x3c] ss:$0 sps:$4 sm:$0x33]  }
 0x138   : > { %1846 = vmatprep.subr.bf16.mxu1 %v6684_v54  ;;  %4363 = vmatprep.mubr.bf16.mxu0 %v6812_v2  ;;  %v1594_v54 = vsel %vm1570_vm5, %v1589_v29, %v1593_v48  ;;  %v6709_v29 = vld [vmem:[%s8493_s1 + $0x570] ss:$8 sps:$4 sm:$0xff]  }
 0x13a   : > { %5524 = vmatmul.mubr.msk.bf16.gmra.mrb[4].mxu1 %vm313_vm1, %v1586_v59  ;;  %v1601_v59 = vrot.slane %v1599_v20, 3 }
 0x13b   : > { %1711 = vmatprep.mubr.bf16.mxu1 %v6812_v2  ;;  %1847 = vmatpush1.bf16.msra.mxu1 %v6682_v32  ;;  %v4270_v32 = vrot.slane %v7959_v60, 2 }
 0x13c   : > { %1848 = vmatprep.subr.bf16.mxu1 %v6691_v25  ;;  %v1602_v25 = vor.u32 %v1601_v59, %v1598_v13  ;;  %v4456_v13 = vshrl.u32 %v7887_v55, 16  ;;  %v4459_v59 = vshll.u32 %v7887_v55, 16 }
 0x13d   : > { %v4271_v27 = vsel %vm946_vm4, %v4268_v0, %v4270_v32  ;;  %v2398_v0 = vshrl.u32 %v7829_v36, 16 }
 0x13f   : > { %1849 = vmatpush1.bf16.msra.mxu1 %v6689_v37  ;;  %5833 = vmatmul.mubr.msk.bf16.vlgmr.msra.gmra.mrb[0].mxu0 %vm313_vm1, %v4267_v31  ;;  %v2387_v37 = vor.u32 %v2386_v62, %v2383_v9  ;;  %v1762_v31 = vld [vmem:[%s6885_s16 + $0x4] sm:$0x8]  ;;  %v2400_v20 = vrot.slane %v2398_v0, 3  ;;  %v6698_v9 = vld [vmem:[%s8493_s1 + $0x240] ss:$8 sps:$4 sm:$0xff]  }
 0x140   : > { %2047 = vmatprep.subr.bf16.mxu1 %v6700_v43  ;;  %4373 = vmatprep.mubr.bf16.mxu0 %v6812_v2  ;;  %v2395_v43 = vor.u32 %v2394_v3, %v2391_v51  ;;  %v7996_v23 = vcombine.low %v1762_v31, %v7554_v7  ;;  %v2401_v7 = vshll.u32 %v7829_v36, 16  ;;  %v4274_v51 = vrot.slane %v6705_v61, 2  ;;  %v6712_v31 = vld [vmem:[%s8493_s1 + $0x260] ss:$8 sps:$4 sm:$0xff]   ;;  %v6718_v0 = vld [vmem:[%s8493_s1 + $0x270] ss:$8 sps:$4 sm:$0xff]  }
 0x141   : > { %4556 = vmatpush1.bf16.msra.mxu0 %v6686_v47  ;;  %v7992_v47 = vcombine.low %v7974_v10, %v7977_v21  ;;  %v4448_v3 = vshrl.u32 %v7883_v38, 16 }
 0x142   : > { %5525 = vmatmul.mubr.msk.bf16.gmra.mrb[8].mxu1 %vm313_vm1, %v1590_v58  ;;  %4557 = vmatprep.subr.bf16.mxu0 %v6696_v41  ;;  %v6717_v58 = vld [vmem:[%s8493_s1 + $0x584] ss:$8 sps:$4 sm:$0xff]   ;;  %v7987_v42 = vsel %vm1958_vm7, %v2387_v37, %v2395_v43  ;;  %v1603_v41 = vsel %vm1570_vm5, %v1593_v48, %v1602_v25  ;;  %v1776_v56 = vrot.slane %v7996_v23, 3  ;;  %v2403_v48 = vrot.slane %v2401_v7, 4 }
 0x143   : > { %1721 = vmatprep.mubr.bf16.mxu1 %v6812_v2  ;;  %v4272_v17 = vrot.slane %v7992_v47, 2  ;;  %v4450_v25 = vrot.slane %v4448_v3, 2  ;;  %v4458_v37 = vrot.slane %v4456_v13, 2  ;;  %v6726_v7 = vld [vmem:[%s8493_s1 + $0x284] ss:$8 sps:$4 sm:$0xff]   ;;  %v1783_v3 = vrot.slane %v7647_v30, 3 }
 0x144   : > { %v8013_v62 = vor.u32 %v2403_v48, %v2400_v20 }
 0x145   : > { %4558 = vmatpush1.bf16.msra.mxu0 %v6694_v44  ;;  %v4273_v44 = vsel %vm946_vm4, %v4270_v32, %v4272_v17  ;;  %v6714_v32 = vld [vmem:[%s8493_s1 + $0x264] ss:$8 sps:$4 sm:$0xff]  }
 0x146   : > { %4559 = vmatprep.subr.bf16.mxu0 %v6704_v1  ;;  %v1778_v1 = vsel %vm1775_vm6, %v1776_v56, %v1777_v49  ;;  %v4468_v56 = vshll.u32 %v7919_v52, 16 }
 0x147   : > { %5834 = vmatmul.mubr.msk.bf16.gmra.mrb[4].mxu0 %vm313_vm1, %v4269_v8  ;;  %v8021_v8 = vsel %vm1958_vm7, %v2395_v43, %v8013_v62  ;;  %v4461_v43 = vrot.slane %v4459_v59, 3 }
 0x148   : > { %4383 = vmatprep.mubr.bf16.mxu0 %v6812_v2  ;;  %v4470_v48 = vrot.slane %v4468_v56, 3 }
 0x149   : > { %4560 = vmatpush1.bf16.msra.mxu0 %v6702_v53  ;;  %v1779_v53 = vrot.slane %v7602_v57, 3 }
 0x14a   : > { %5526 = vmatmul.mubr.msk.bf16.gmra.mrb[12].mxu1 %vm313_vm1, %v1594_v54  ;;  %4561 = vmatprep.subr.bf16.mxu0 %v6711_v45  ;;  %v4451_v54 = vshll.u32 %v7883_v38, 16  ;;  %v6706_v45 = vld [vmem:[%s8493_s1 + $0x250] ss:$8 sps:$4 sm:$0xff]   ;;  %v4275_v38 = vsel %vm946_vm4, %v4272_v17, %v4274_v51  ;;  %v4465_v17 = vshrl.u32 %v7919_v52, 16  ;;  %v4477_v51 = vshll.u32 %v7959_v60, 16 }
 0x14b   : > { %1731 = vmatprep.mubr.bf16.mxu1 %v6812_v2  ;;  %v1780_v57 = vsel %vm1775_vm6, %v1777_v49, %v1779_v53  ;;  %v1781_v49 = vrot.slane %v7624_v18, 3 }
 0x14c   : > { %v4467_v20 = vrot.slane %v4465_v17, 2 }
 0x14d   : > { %4562 = vmatpush1.bf16.msra.mxu0 %v6709_v29  ;;  %v4453_v29 = vrot.slane %v4451_v54, 3  ;;  %v1782_v18 = vsel %vm1775_vm6, %v1779_v53, %v1781_v49  ;;  %v6721_v54 = vld [vmem:[%s8493_s1 + $0x590] ss:$8 sps:$4 sm:$0xff]   ;;  %v6729_v53 = vld [vmem:[%s8493_s1 + $0x5a4] ss:$8 sps:$4 sm:$0xff]   ;;  %v1784_v30 = vsel %vm1775_vm6, %v1781_v49, %v1783_v3 }
 0x14e   : > { %4737 = vmatprep.subr.bf16.mxu0 %v6717_v58  ;;  %v6720_v58 = vld [vmem:[%s8493_s1 + $0x274] ss:$8 sps:$4 sm:$0xff]  }
 0x14f   : > { %5835 = vmatmul.mubr.msk.bf16.gmra.mrb[8].mxu0 %vm313_vm1, %v4271_v27  ;;  %v4454_v27 = vor.u32 %v4453_v29, %v4450_v25  ;;  %v6727_v25 = vld [vmem:[%s8493_s1 + $0x5a0] ss:$8 sps:$4 sm:$0xff]   ;;  %v6736_v29 = vld [vmem:[%s8493_s1 + $0x5b4] ss:$8 sps:$4 sm:$0xff]  }
 0x150   : > { %4393 = vmatprep.mubr.bf16.mxu0 %v6812_v2 }
 0x152   : > { %5527 = vmatmul.mubr.msk.bf16.gmra.mrb[16].mxu1 %vm313_vm1, %v1603_v41  ;;  %v4462_v41 = vor.u32 %v4461_v43, %v4458_v37  ;;  %v1785_v37 = vrot.slane %v7922_v39, 3  ;;  %v6743_v39 = vld [vmem:[%s8493_s1 + $0x5c4] ss:$8 sps:$4 sm:$0xff]  }
 0x153   : > { %1874 = vmatprep.mubr.bf16.mxu1 %v6812_v2 }
 0x154   : > { %v4463_v61 = vsel %vm1570_vm5, %v4454_v27, %v4462_v41  ;;  %v1963_v27 = vshll.u32 %v7996_v23, 16  ;;  %v1786_v49 = vsel %vm1775_vm6, %v1783_v3, %v1785_v37 }
 0x157   : > { %5836 = vmatmul.mubr.msk.bf16.gmra.mrb[12].mxu0 %vm313_vm1, %v4273_v44  ;;  %v6715_v44 = vld [vmem:[%s8493_s1 + $0x580] ss:$8 sps:$4 sm:$0xff]  }
 0x158   : > { %4403 = vmatprep.mubr.bf16.mxu0 %v6812_v2 }
 0x15a   : > { %5545 = vmatmul.mubr.msk.bf16.vlgmr.msra.gmra.mrb[0].mxu1 %vm313_vm1, %v1778_v1  ;;  %v6723_v1 = vld [vmem:[%s8493_s1 + $0x594] ss:$8 sps:$4 sm:$0xff]  }
 0x15b   : > { %2048 = vmatpush1.bf16.msra.mxu1 %v6698_v9  ;;  %1884 = vmatprep.mubr.bf16.mxu1 %v6812_v2  ;;  %v4471_v9 = vor.u32 %v4470_v48, %v4467_v20  ;;  %v1965_v48 = vrot.slane %v1963_v27, 4 }
 0x15c   : > { %2049 = vmatprep.subr.bf16.mxu1 %v6708_v19  ;;  %v4474_v19 = vshrl.u32 %v7959_v60, 16 }
 0x15f   : > { %2050 = vmatpush1.bf16.msra.mxu1 %v6706_v45  ;;  %5837 = vmatmul.mubr.msk.bf16.gmra.mrb[16].mxu0 %vm313_vm1, %v4275_v38  ;;  %v4472_v45 = vsel %vm1570_vm5, %v4462_v41, %v4471_v9  ;;  %v4479_v38 = vrot.slane %v4477_v51, 3  ;;  %v6734_v41 = vld [vmem:[%s8493_s1 + $0x5b0] ss:$8 sps:$4 sm:$0xff]  }
 0x160   : > { %2051 = vmatprep.subr.bf16.mxu1 %v6714_v32  ;;  %4587 = vmatprep.mubr.bf16.mxu0 %v6812_v2  ;;  %v4476_v32 = vrot.slane %v4474_v19, 2 }
 0x162   : > { %5546 = vmatmul.mubr.msk.bf16.gmra.mrb[4].mxu1 %vm313_vm1, %v1780_v57  ;;  %v4480_v43 = vor.u32 %v4479_v38, %v4476_v32  ;;  %v4483_v57 = vshrl.u32 %v7992_v47, 16  ;;  %v6724_v38 = vld [vmem:[%s8493_s1 + $0x280] ss:$8 sps:$4 sm:$0xff]  }
 0x163   : > { %1894 = vmatprep.mubr.bf16.mxu1 %v6812_v2  ;;  %2052 = vmatpush1.bf16.msra.mxu1 %v6712_v31  ;;  %v4486_v31 = vshll.u32 %v7992_v47, 16 }
 0x164   : > { %2053 = vmatprep.subr.bf16.mxu1 %v6720_v58  ;;  %v1960_v58 = vshrl.u32 %v7996_v23, 16 }
 0x165   : > { %v4488_v23 = vrot.slane %v4486_v31, 3 }
 0x166   : > { %v1962_v20 = vrot.slane %v1960_v58, 3  ;;  %v6740_v58 = vld [vmem:[%s8493_s1 + $0x2a4] ss:$8 sps:$4 sm:$0xff]  }
 0x167   : > { %2054 = vmatpush1.bf16.msra.mxu1 %v6718_v0  ;;  %5855 = vmatmul.mubr.msk.bf16.vlgmr.msra.gmra.mrb[0].mxu0 %vm313_vm1, %v4463_v61  ;;  %v4481_v0 = vsel %vm1570_vm5, %v4471_v9, %v4480_v43  ;;  %v8121_v61 = vld [vmem:[%s6885_s16 + $0x3c] ss:$0 sps:$4 sm:$0x77]  }
 0x168   : > { %2264 = vmatprep.subr.bf16.mxu1 %v6726_v7  ;;  %4597 = vmatprep.mubr.bf16.mxu0 %v6812_v2  ;;  %v4485_v7 = vrot.slane %v4483_v57, 2  ;;  %v4492_v9 = vshrl.u32 %v8121_v61, 16  ;;  %v4495_v3 = vshll.u32 %v8121_v61, 16 }
 0x169   : > { %4738 = vmatpush1.bf16.msra.mxu0 %v6715_v44  ;;  %v1968_v44 = vrot.slane %v7582_v46, 4 }
 0x16a   : > { %5547 = vmatmul.mubr.msk.bf16.gmra.mrb[8].mxu1 %vm313_vm1, %v1782_v18  ;;  %4739 = vmatprep.subr.bf16.mxu0 %v6723_v1  ;;  %v1967_v18 = vrot.slane %v7579_v12, 3  ;;  %v4489_v1 = vor.u32 %v4488_v23, %v4485_v7  ;;  %v4494_v46 = vrot.slane %v4492_v9, 2  ;;  %v6738_v7 = vld [vmem:[%s8493_s1 + $0x2a0] ss:$8 sps:$4 sm:$0xff]   ;;  %v6746_v23 = vld [vmem:[%s8493_s1 + $0x2b4] ss:$8 sps:$4 sm:$0xff]  }
 0x16b   : > { %1904 = vmatprep.mubr.bf16.mxu1 %v6812_v2  ;;  %v1979_v9 = vrot.slane %v7662_v63, 3  ;;  %v4674_v63 = vrot.slane %v7919_v52, 3  ;;  %v6796_v52 = vld [vmem:[%s8493_s1 + $0x304] ss:$8 sps:$4 sm:$0xff]  }
 0x16c   : > { %v4490_v12 = vsel %vm1570_vm5, %v4480_v43, %v4489_v1 }
 0x16d   : > { %4740 = vmatpush1.bf16.msra.mxu0 %v6721_v54  ;;  %v1966_v54 = vor.u32 %v1965_v48, %v1962_v20  ;;  %v6744_v48 = vld [vmem:[%s8493_s1 + $0x2b0] ss:$8 sps:$4 sm:$0xff]  }
 0x16e   : > { %4741 = vmatprep.subr.bf16.mxu0 %v6729_v53  ;;  %v1969_v53 = vor.u32 %v1968_v44, %v1967_v18  ;;  %v6753_v18 = vld [vmem:[%s8493_s1 + $0x2c4] ss:$8 sps:$4 sm:$0xff]  }
 0x16f   : > { %5856 = vmatmul.mubr.msk.bf16.gmra.mrb[4].mxu0 %vm313_vm1, %v4472_v45  ;;  %v4497_v45 = vrot.slane %v4495_v3, 3  ;;  %v1980_v3 = vrot.slane %v7666_v28, 4 }
 0x170   : > { %4607 = vmatprep.mubr.bf16.mxu0 %v6812_v2  ;;  %v1970_v32 = vsel %vm1958_vm7, %v1966_v54, %v1969_v53  ;;  %v6741_v54 = vld [vmem:[%s8493_s1 + $0x5c0] ss:$8 sps:$4 sm:$0xff]  }
 0x171   : > { %4742 = vmatpush1.bf16.msra.mxu0 %v6727_v25  ;;  %v1972_v25 = vrot.slane %v7614_v4, 4  ;;  %v4498_v37 = vor.u32 %v4497_v45, %v4494_v46  ;;  %v4658_v4 = vld [vmem:[%s6885_s16 + $0x14] sm:$0x8]  ;;  %v1981_v28 = vor.u32 %v1980_v3, %v1979_v9 }
 0x172   : > { %5548 = vmatmul.mubr.msk.bf16.gmra.mrb[12].mxu1 %vm313_vm1, %v1784_v30  ;;  %4743 = vmatprep.subr.bf16.mxu0 %v6736_v29  ;;  %v1971_v30 = vrot.slane %v7611_v34, 3  ;;  %v6733_v29 = vld [vmem:[%s8493_s1 + $0x294] ss:$8 sps:$4 sm:$0xff]   ;;  %v6731_v34 = vld [vmem:[%s8493_s1 + $0x290] ss:$8 sps:$4 sm:$0xff]  }
 0x173   : > { %1914 = vmatprep.mubr.bf16.mxu1 %v6812_v2  ;;  %v4499_v27 = vsel %vm1570_vm5, %v4489_v1, %v4498_v37 }
 0x174   : > { %v1973_v43 = vor.u32 %v1972_v25, %v1971_v30 }
 0x175   : > { %4744 = vmatpush1.bf16.msra.mxu0 %v6734_v41  ;;  %v8154_v41 = vcombine.low %v4658_v4, %v7870_v22  ;;  %v4676_v4 = vrot.slane %v7959_v60, 3 }
 0x176   : > { %4941 = vmatprep.subr.bf16.mxu0 %v6743_v39  ;;  %v1974_v39 = vsel %vm1958_vm7, %v1969_v53, %v1973_v43  ;;  %v6747_v53 = vld [vmem:[%s6885_s16 + $0x2c] ss:$0 sps:$4 sm:$0xff]  }
 0x177   : > { %5857 = vmatmul.mubr.msk.bf16.gmra.mrb[8].mxu0 %vm313_vm1, %v4481_v0  ;;  %v1976_v0 = vrot.slane %v7640_v26, 4  ;;  %v4672_v26 = vrot.slane %v7887_v55, 3  ;;  %v1984_v46 = vshrl.u32 %v6747_v53, 16  ;;  %v1987_v45 = vshll.u32 %v6747_v53, 16 }
 0x178   : > { %4617 = vmatprep.mubr.bf16.mxu0 %v6812_v2  ;;  %v4862_v53 = vrot.slane %v4459_v59, 4 }
 0x179   : > { %v4675_v30 = vsel %vm1775_vm6, %v4672_v26, %v4674_v63  ;;  %v1989_v37 = vrot.slane %v1987_v45, 4  ;;  %v8277_v45 = vld [vmem:[%s6885_s16 + $0x28] sm:$0xf] }
 0x17a   : > { %5549 = vmatmul.mubr.msk.bf16.gmra.mrb[16].mxu1 %vm313_vm1, %v1786_v49  ;;  %v1975_v49 = vrot.slane %v7637_v40, 3  ;;  %v4671_v40 = vrot.slane %v8154_v41, 3 }
 0x17b   : > { %2079 = vmatprep.mubr.bf16.mxu1 %v6812_v2 }
 0x17c   : > { %v1977_v20 = vor.u32 %v1976_v0, %v1975_v49  ;;  %v4673_v44 = vsel %vm1775_vm6, %v4671_v40, %v4672_v26  ;;  %v4677_v49 = vsel %vm1775_vm6, %v4674_v63, %v4676_v4  ;;  %v6751_v40 = vld [vmem:[%s8493_s1 + $0x2c0] ss:$8 sps:$4 sm:$0xff]   ;;  %v6759_v26 = vld [vmem:[%s8493_s1 + $0x2d4] ss:$8 sps:$4 sm:$0xff]  }
 0x17d   : > { %v6764_v63 = vld [vmem:[%s8493_s1 + $0x2e0] ss:$8 sps:$4 sm:$0xff]  }
 0x17e   : > { %v1978_v1 = vsel %vm1958_vm7, %v1973_v43, %v1977_v20  ;;  %v1982_v25 = vsel %vm1958_vm7, %v1977_v20, %v1981_v28  ;;  %v6754_v43 = vld [vmem:[%s8493_s1 + $0x5e0] ss:$8 sps:$4 sm:$0xff]   ;;  %v4680_v20 = vrot.slane %v8121_v61, 3  ;;  %v8247_v61 = vld [vmem:[%s6885_s16 + $0x24] sm:$0xf] }
 0x17f   : > { %5858 = vmatmul.mubr.msk.bf16.gmra.mrb[12].mxu0 %vm313_vm1, %v4490_v12  ;;  %v6750_v12 = vld [vmem:[%s8493_s1 + $0x5d4] ss:$8 sps:$4 sm:$0xff]  }
 0x180   : > { %4627 = vmatprep.mubr.bf16.mxu0 %v6812_v2 }
 0x182   : > { %5567 = vmatmul.mubr.msk.bf16.vlgmr.msra.gmra.mrb[0].mxu1 %vm313_vm1, %v1970_v32  ;;  %v6748_v32 = vld [vmem:[%s8493_s1 + $0x5d0] ss:$8 sps:$4 sm:$0xff]  }
 0x183   : > { %2265 = vmatpush1.bf16.msra.mxu1 %v6724_v38  ;;  %2089 = vmatprep.mubr.bf16.mxu1 %v6812_v2  ;;  %v6756_v38 = vld [vmem:[%s8493_s1 + $0x5e4] ss:$8 sps:$4 sm:$0xff]  }
 0x184   : > { %2266 = vmatprep.subr.bf16.mxu1 %v6733_v29  ;;  %v1986_v29 = vrot.slane %v1984_v46, 3  ;;  %v6771_v46 = vld [vmem:[%s8493_s1 + $0x2f0] ss:$8 sps:$4 sm:$0xff]  }
 0x187   : > { %2267 = vmatpush1.bf16.msra.mxu1 %v6731_v34  ;;  %5859 = vmatmul.mubr.msk.bf16.gmra.mrb[16].mxu0 %vm313_vm1, %v4499_v27  ;;  %v6762_v34 = vld [vmem:[%s8493_s1 + $0x5f4] ss:$8 sps:$4 sm:$0xff]   ;;  %v6760_v27 = vld [vmem:[%s8493_s1 + $0x5f0] ss:$8 sps:$4 sm:$0xff]  }
 0x188   : > { %2268 = vmatprep.subr.bf16.mxu1 %v6740_v58  ;;  %4769 = vmatprep.mubr.bf16.mxu0 %v6812_v2  ;;  %v1990_v58 = vor.u32 %v1989_v37, %v1986_v29  ;;  %v6768_v37 = vld [vmem:[%s8493_s1 + $0x600] ss:$8 sps:$4 sm:$0xff]  }
 0x18a   : > { %5568 = vmatmul.mubr.msk.bf16.gmra.mrb[4].mxu1 %vm313_vm1, %v1974_v39  ;;  %v6770_v39 = vld [vmem:[%s8493_s1 + $0x604] ss:$8 sps:$4 sm:$0xff]   ;;  %v1991_v0 = vsel %vm1958_vm7, %v1981_v28, %v1990_v58  ;;  %v6773_v28 = vld [vmem:[%s8493_s1 + $0x2f4] ss:$8 sps:$4 sm:$0xff]   ;;  %v4870_v58 = vrot.slane %v4477_v51, 4 }
 0x18b   : > { %2099 = vmatprep.mubr.bf16.mxu1 %v6812_v2  ;;  %2269 = vmatpush1.bf16.msra.mxu1 %v6738_v7  ;;  %v4678_v7 = vrot.slane %v7992_v47, 3  ;;  %v8332_v51 = vld [vmem:[%s6885_s16 + $0x3c] sm:$0xf] }
 0x18c   : > { %2270 = vmatprep.subr.bf16.mxu1 %v6746_v23 }
 0x18d   : > { %v4679_v23 = vsel %vm1775_vm6, %v4676_v4, %v4678_v7  ;;  %v4681_v9 = vsel %vm1775_vm6, %v4678_v7, %v4680_v20  ;;  %v4869_v4 = vrot.slane %v4474_v19, 3  ;;  %v6782_v7 = vld [vmem:[%s8493_s1 + $0x630] ss:$8 sps:$4 sm:$0xff]   ;;  %v5890_v20 = vcombine.low %v8332_v51, %v8332_v51 }
 0x18f   : > { %2271 = vmatpush1.bf16.msra.mxu1 %v6744_v48  ;;  %5877 = vmatmul.mubr.msk.bf16.vlgmr.msra.gmra.mrb[0].mxu0 %vm313_vm1, %v4673_v44  ;;  %v4854_v48 = vshrl.u32 %v8154_v41, 16  ;;  %v6757_v44 = vld [vmem:[%s8493_s1 + $0x2d0] ss:$8 sps:$4 sm:$0xff]   ;;  %v4871_v60 = vor.u32 %v4870_v58, %v4869_v4  ;;  %v5914_v4 = vcombine.low %v7908_v16, %v7945_v15  ;;  %v5916_v16 = vcombine.low %v7977_v21, %v8332_v51 }
 0x190   : > { %2488 = vmatprep.subr.bf16.mxu1 %v6753_v18  ;;  %4779 = vmatprep.mubr.bf16.mxu0 %v6812_v2  ;;  %v4857_v18 = vshll.u32 %v8154_v41, 16  ;;  %v5632_v15 = vcombine.low %v8247_v61, %v8277_v45 }
 0x191   : > { %4942 = vmatpush1.bf16.msra.mxu0 %v6741_v54  ;;  %v4856_v3 = vrot.slane %v4854_v48, 3  ;;  %v4861_v54 = vrot.slane %v4456_v13, 3 }
 0x192   : > { %5569 = vmatmul.mubr.msk.bf16.gmra.mrb[8].mxu1 %vm313_vm1, %v1978_v1  ;;  %4943 = vmatprep.subr.bf16.mxu0 %v6750_v12  ;;  %v8244_v1 = vld [vmem:[%s6885_s16 + $0x20] sm:$0xf]  ;;  %v4859_v41 = vrot.slane %v4857_v18, 4 }
 0x193   : > { %2109 = vmatprep.mubr.bf16.mxu1 %v6812_v2  ;;  %v8259_v12 = vcombine.low %v8244_v1, %v8247_v61  ;;  %v4863_v13 = vor.u32 %v4862_v53, %v4861_v54  ;;  %v6798_v53 = vld [vmem:[%s8493_s1 + $0x314] ss:$8 sps:$4 sm:$0xff]  }
 0x194   : > { %v4860_v55 = vor.u32 %v4859_v41, %v4856_v3  ;;  %v6797_v3 = vld [vmem:[%s8493_s1 + $0x300] ss:$8 sps:$4 sm:$0xff]  }
 0x195   : > { %4944 = vmatpush1.bf16.msra.mxu0 %v6748_v32  ;;  %v2203_v59 = vrot.slane %v8259_v12, 3  ;;  %v8280_v32 = vld [vmem:[%s6885_s16 + $0x2c] sm:$0xf]  ;;  %v2407_v41 = vshrl.u32 %v8259_v12, 16  ;;  %v2410_v54 = vshll.u32 %v8259_v12, 16 }
 0x196   : > { %4945 = vmatprep.subr.bf16.mxu0 %v6756_v38  ;;  %v4865_v38 = vrot.slane %v4465_v17, 3  ;;  %v8292_v29 = vcombine.low %v8277_v45, %v8280_v32  ;;  %v6777_v17 = vld [vmem:[%s8493_s1 + $0x614] ss:$8 sps:$4 sm:$0xff]  }
 0x197   : > { %5878 = vmatmul.mubr.msk.bf16.gmra.mrb[4].mxu0 %vm313_vm1, %v4675_v30  ;;  %v4866_v30 = vrot.slane %v4468_v56, 4  ;;  %v6775_v56 = vld [vmem:[%s8493_s1 + $0x610] ss:$8 sps:$4 sm:$0xff]  }
 0x198   : > { %4789 = vmatprep.mubr.bf16.mxu0 %v6812_v2 }
 0x199   : > { %4946 = vmatpush1.bf16.msra.mxu0 %v6754_v43  ;;  %v4867_v36 = vor.u32 %v4866_v30, %v4865_v38  ;;  %v6780_v43 = vld [vmem:[%s8493_s1 + $0x624] ss:$8 sps:$4 sm:$0xff]   ;;  %v6802_v38 = vld [vmem:[%s8493_s1 + $0x334] ss:$8 sps:$4 sm:$0xff]   ;;  %v5912_v30 = vcombine.low %v7870_v22, %v7873_v6 }
 0x19a   : > { %5570 = vmatmul.mubr.msk.bf16.gmra.mrb[12].mxu1 %vm313_vm1, %v1982_v25  ;;  %4947 = vmatprep.subr.bf16.mxu0 %v6762_v34  ;;  %v2204_v25 = vsel %vm1775_vm6, %v2201_v35, %v2203_v59  ;;  %v2205_v35 = vrot.slane %v8292_v29, 3 }
 0x19b   : > { %2119 = vmatprep.mubr.bf16.mxu1 %v6812_v2  ;;  %v4868_v34 = vsel %vm1958_vm7, %v4863_v13, %v4867_v36 }
 0x19d   : > { %4948 = vmatpush1.bf16.msra.mxu0 %v6760_v27  ;;  %v2206_v27 = vsel %vm1775_vm6, %v2203_v59, %v2205_v35  ;;  %v6801_v59 = vld [vmem:[%s8493_s1 + $0x320] ss:$8 sps:$4 sm:$0xff]  }
 0x19e   : > { %5113 = vmatprep.subr.bf16.mxu0 %v6770_v39  ;;  %v6774_v39 = vld [vmem:[%s6885_s16 + $0x30] ss:$0 sps:$4 sm:$0x77]  }
 0x19f   : > { %5879 = vmatmul.mubr.msk.bf16.gmra.mrb[8].mxu0 %vm313_vm1, %v4677_v49  ;;  %v6778_v49 = vld [vmem:[%s8493_s1 + $0x620] ss:$8 sps:$4 sm:$0xff]   ;;  %v2207_v19 = vrot.slane %v6774_v39, 3 }
 0x1a0   : > { %4799 = vmatprep.mubr.bf16.mxu0 %v6812_v2 }
 0x1a1   : > { %v2208_v48 = vsel %vm1775_vm6, %v2205_v35, %v2207_v19 }
 0x1a2   : > { %5571 = vmatmul.mubr.msk.bf16.gmra.mrb[16].mxu1 %vm313_vm1, %v1991_v0  ;;  %v6784_v0 = vld [vmem:[%s8493_s1 + $0x634] ss:$8 sps:$4 sm:$0xff]  }
 0x1a3   : > { %2296 = vmatprep.mubr.bf16.mxu1 %v6812_v2 }
 0x1a7   : > { %5880 = vmatmul.mubr.msk.bf16.gmra.mrb[12].mxu0 %vm313_vm1, %v4679_v23  ;;  %v4872_v23 = vsel %vm1958_vm7, %v4867_v36, %v4871_v60 }
 0x1a8   : > { %4809 = vmatprep.mubr.bf16.mxu0 %v6812_v2 }
 0x1aa   : > { %5594 = vmatmul.mubr.msk.bf16.vlgmr.msra.gmra.mrb[0].mxu1 %vm313_vm1, %v7832_v24  ;;  %v6766_v24 = vld [vmem:[%s8493_s1 + $0x2e4] ss:$8 sps:$4 sm:$0xff]  }
 0x1ab   : > { %2489 = vmatpush1.bf16.msra.mxu1 %v6751_v40  ;;  %2306 = vmatprep.mubr.bf16.mxu1 %v6812_v2  ;;  %v4873_v40 = vrot.slane %v4483_v57, 3 }
 0x1ac   : > { %2490 = vmatprep.subr.bf16.mxu1 %v6759_v26  ;;  %v4874_v26 = vrot.slane %v4486_v31, 4 }
 0x1ae   : > { %v4875_v18 = vor.u32 %v4874_v26, %v4873_v40 }
 0x1af   : > { %2491 = vmatpush1.bf16.msra.mxu1 %v6757_v44  ;;  %5881 = vmatmul.mubr.msk.bf16.gmra.mrb[16].mxu0 %vm313_vm1, %v4681_v9  ;;  %v4878_v44 = vshrl.u32 %v5890_v20, 16 }
 0x1b0   : > { %2492 = vmatprep.subr.bf16.mxu1 %v6766_v24  ;;  %4973 = vmatprep.mubr.bf16.mxu0 %v6812_v2  ;;  %v4881_v24 = vshll.u32 %v5890_v20, 16  ;;  %v4876_v47 = vsel %vm1958_vm7, %v4871_v60, %v4875_v18 }
 0x1b1   : > { %v4880_v57 = vrot.slane %v4878_v44, 3 }
 0x1b2   : > { %5595 = vmatmul.mubr.msk.bf16.gmra.mrb[4].mxu1 %vm313_vm1, %v7849_v14  ;;  %v4864_v14 = vsel %vm1958_vm7, %v4860_v55, %v4863_v13  ;;  %v4883_v31 = vrot.slane %v4881_v24, 4  ;;  %v2412_v55 = vrot.slane %v2410_v54, 4  ;;  %v6800_v13 = vld [vmem:[%s8493_s1 + $0x324] ss:$8 sps:$4 sm:$0xff]  }
 0x1b3   : > { %2316 = vmatprep.mubr.bf16.mxu1 %v6812_v2  ;;  %2493 = vmatpush1.bf16.msra.mxu1 %v6764_v63  ;;  %v6799_v63 = vld [vmem:[%s8493_s1 + $0x310] ss:$8 sps:$4 sm:$0xff]  }
 0x1b4   : > { %2494 = vmatprep.subr.bf16.mxu1 %v6773_v28  ;;  %v4884_v9 = vor.u32 %v4883_v31, %v4880_v57  ;;  %v2409_v28 = vrot.slane %v2407_v41, 3 }
 0x1b6   : > { %v2413_v12 = vor.u32 %v2412_v55, %v2409_v28 }
 0x1b7   : > { %2495 = vmatpush1.bf16.msra.mxu1 %v6771_v46  ;;  %5899 = vmatmul.mubr.msk.bf16.vlgmr.msra.gmra.mrb[0].mxu0 %vm313_vm1, %v4864_v14  ;;  %v2416_v46 = vshrl.u32 %v8292_v29, 16  ;;  %v2419_v14 = vshll.u32 %v8292_v29, 16 }
 0x1b8   : > { %5933 = vmatprep.subr.bf16.mxu1 %v6796_v52  ;;  %4983 = vmatprep.mubr.bf16.mxu0 %v6812_v2  ;;  %v6803_v52 = vld [vmem:[%s8493_s1 + $0x330] ss:$8 sps:$4 sm:$0xff]  }
 0x1b9   : > { %5114 = vmatpush1.bf16.msra.mxu0 %v6768_v37  ;;  %v2418_v37 = vrot.slane %v2416_v46, 3 }
 0x1ba   : > { %5596 = vmatmul.mubr.msk.bf16.gmra.mrb[8].mxu1 %vm313_vm1, %v2204_v25  ;;  %5115 = vmatprep.subr.bf16.mxu0 %v6777_v17  ;;  %v2414_v25 = vsel %vm1958_vm7, %v8013_v62, %v2413_v12  ;;  %v2421_v17 = vrot.slane %v2419_v14, 4  ;;  %v5913_v62 = vcombine.low %v7876_v5, %v7905_v50  ;;  %v5915_v5 = vcombine.low %v7948_v33, %v7974_v10 }
 0x1bb   : > { %2326 = vmatprep.mubr.bf16.mxu1 %v6812_v2  ;;  %v5631_v50 = vcombine.low %v7811_v11, %v8244_v1 }
 0x1bc   : > { %v2422_v22 = vor.u32 %v2421_v17, %v2418_v37 }
 0x1bd   : > { %5116 = vmatpush1.bf16.msra.mxu0 %v6775_v56 }
 0x1be   : > { %5117 = vmatprep.subr.bf16.mxu0 %v6780_v43  ;;  %v2423_v35 = vsel %vm1958_vm7, %v2413_v12, %v2422_v22 }
 0x1bf   : > { %5900 = vmatmul.mubr.msk.bf16.gmra.mrb[4].mxu0 %vm313_vm1, %v4868_v34 }
 0x1c0   : > { %4993 = vmatprep.mubr.bf16.mxu0 %v6812_v2 }
 0x1c1   : > { %5118 = vmatpush1.bf16.msra.mxu0 %v6778_v49 }
 0x1c2   : > { %5597 = vmatmul.mubr.msk.bf16.gmra.mrb[12].mxu1 %vm313_vm1, %v2206_v27  ;;  %5119 = vmatprep.subr.bf16.mxu0 %v6784_v0  ;;  %v5218_v27 = vlaneseq }
 0x1c3   : > { %2336 = vmatprep.mubr.bf16.mxu1 %v6812_v2 }
 0x1c4   : > { %v5219_v21 = vshrl.u32 %v5218_v27, 7 }
 0x1c5   : > { %5120 = vmatpush1.bf16.msra.mxu0 %v6782_v7 }
 0x1c6   : > { %v5220_v45 = vsub.s32 0, %v5219_v21  ;;  %v5224_v19 = vsub.s32 1, %v5219_v21 }
 0x1c7   : > { %5901 = vmatmul.mubr.msk.bf16.gmra.mrb[8].mxu0 %vm313_vm1, %v4872_v23 }
 0x1c8   : > { %5003 = vmatprep.mubr.bf16.mxu0 %v6812_v2 }
 0x1ca   : > { %5598 = vmatmul.mubr.msk.bf16.gmra.mrb[16].mxu1 %vm313_vm1, %v2208_v48 }
 0x1cb   : > { %2520 = vmatprep.mubr.bf16.mxu1 %v6812_v2 }
 0x1cf   : > { %5902 = vmatmul.mubr.msk.bf16.gmra.mrb[12].mxu0 %vm313_vm1, %v4876_v47 }
 0x1d0   : > { %5013 = vmatprep.mubr.bf16.mxu0 %v6812_v2 }
 0x1d2   : > { %5616 = vmatmul.mubr.msk.bf16.vlgmr.msra.gmra.mrb[0].mxu1 %vm313_vm1, %v7987_v42  ;;  %v4885_v42 = vsel %vm1958_vm7, %v4875_v18, %v4884_v9 }
 0x1d3   : > { %5937 = vmatpush1.bf16.msra.mxu1 %v6797_v3  ;;  %2530 = vmatprep.mubr.bf16.mxu1 %v6812_v2 }
 0x1d4   : > { %5934 = vmatprep.subr.bf16.mxu1 %v6798_v53 }
 0x1d7   : > { %5938 = vmatpush1.bf16.msra.mxu1 %v6799_v63  ;;  %5903 = vmatmul.mubr.msk.bf16.gmra.mrb[16].mxu0 %vm313_vm1, %v4885_v42 }
 0x1d8   : > { %5935 = vmatprep.subr.bf16.mxu1 %v6800_v13  ;;  %5145 = vmatprep.mubr.bf16.mxu0 %v6812_v2 }
 0x1da   : > { %5617 = vmatmul.mubr.msk.bf16.gmra.mrb[4].mxu1 %vm313_vm1, %v8021_v8  ;;  %v2367_v8 = vld [vmem:[%s6885_s16 + $0x30] sm:$0xf] }
 0x1db   : > { %2540 = vmatprep.mubr.bf16.mxu1 %v6812_v2  ;;  %5939 = vmatpush1.bf16.msra.mxu1 %v6801_v59  ;;  %v5607_v29 = vcombine.low %v2367_v8, %v2367_v8  ;;  %v5633_v11 = vcombine.low %v8280_v32, %v2367_v8 }
 0x1dc   : > { %5936 = vmatprep.subr.bf16.mxu1 %v6802_v38 }
 0x1dd   : > { %v2425_v6 = vshrl.u32 %v5607_v29, 16  ;;  %v2428_v36 = vshll.u32 %v5607_v29, 16 }
 0x1df   : > { %5940 = vmatpush1.bf16.msra.mxu1 %v6803_v52  ;;  %5925 = vmatmul.mubr.msk.bf16.vlgmr.msra.gmra.mrb[0].mxu0 %vm313_vm1, %v5912_v30  ;;  %v2427_v56 = vrot.slane %v2425_v6, 3  ;;  %v2430_v43 = vrot.slane %v2428_v36, 4 }
 0x1e0   : > { %5155 = vmatprep.mubr.bf16.mxu0 %v6812_v2 }
 0x1e1   : > { %v2431_v34 = vor.u32 %v2430_v43, %v2427_v56 }
 0x1e2   : > { %5618 = vmatmul.mubr.msk.bf16.gmra.mrb[8].mxu1 %vm313_vm1, %v2414_v25 }
 0x1e3   : > { %2550 = vmatprep.mubr.bf16.mxu1 %v6812_v2  ;;  %v2432_v58 = vsel %vm1958_vm7, %v2422_v22, %v2431_v34 }
 0x1e7   : > { %5926 = vmatmul.mubr.msk.bf16.gmra.mrb[4].mxu0 %vm313_vm1, %v5913_v62 }
 0x1e8   : > { %5165 = vmatprep.mubr.bf16.mxu0 %v6812_v2 }
 0x1ea   : > { %5619 = vmatmul.mubr.msk.bf16.gmra.mrb[12].mxu1 %vm313_vm1, %v2423_v35 }
 0x1eb   : > { %2560 = vmatprep.mubr.bf16.mxu1 %v6812_v2 }
 0x1ef   : > { %5927 = vmatmul.mubr.msk.bf16.gmra.mrb[8].mxu0 %vm313_vm1, %v5914_v4 }
 0x1f0   : > { %5175 = vmatprep.mubr.bf16.mxu0 %v6812_v2 }
 0x1f2   : > { %5620 = vmatmul.mubr.msk.bf16.gmra.mrb[16].mxu1 %vm313_vm1, %v2432_v58 }
 0x1f3   : > { %2712 = vmatprep.mubr.bf16.mxu1 %v6812_v2 }
 0x1f7   : > { %5928 = vmatmul.mubr.msk.bf16.gmra.mrb[12].mxu0 %vm313_vm1, %v5915_v5 }
 0x1f8   : > { %5185 = vmatprep.mubr.bf16.mxu0 %v6812_v2 }
 0x1fa   : > { %5644 = vmatmul.mubr.msk.bf16.vlgmr.msra.gmra.mrb[8].mxu1 %vm313_vm1, %v5631_v50 }
 0x1fb   : > { %2722 = vmatprep.mubr.bf16.mxu1 %v6812_v2 }
 0x1ff   : > { %5929 = vmatmul.mubr.msk.bf16.gmra.mrb[16].mxu0 %vm313_vm1, %v5916_v16 }
 0x202   : > { %5645 = vmatmul.mubr.msk.bf16.gmra.mrb[12].mxu1 %vm313_vm1, %v5632_v15 }
 0x203   : > { %2732 = vmatprep.mubr.bf16.mxu1 %v6812_v2  ;;  %v5216_v2 = vld [vmem:[%s8494_s2] sm:$0x3] }
 0x204   : > { %v8429_v32 = vrot.slane %v5216_v2, %v5220_v45  ;;  %v8432_v7 = vrot.slane %v5216_v2, %v5224_v19 }
 0x20a   : > { %5646 = vmatmul.mubr.msk.bf16.gmra.mrb[16].mxu1 %vm313_vm1, %v5633_v11 }
 0x2a5   : > { %v2522_v33 = vpop.f32.mrb[0].mxu1 }
 0x2a6   : > { %v2524_v10 = vpop.f32.mrb[1].mxu1 }
 0x2a7   : > { %v2526_v1 = vpop.f32.mrb[2].mxu1 }
 0x2a8   : > { %v2528_v39 = vpop.f32.mrb[3].mxu1 }
 0x2ad   : > { %v2532_v49 = vpop.f32.mrb[4].mxu1 }
 0x2ae   : > { %v2534_v0 = vpop.f32.mrb[5].mxu1 }
 0x2af   : > { %v2536_v61 = vpop.f32.mrb[6].mxu1 }
 0x2b0   : > { %v2538_v60 = vpop.f32.mrb[7].mxu1 }
 0x2b2   : > { %v5147_v51 = vpop.f32.mrb[0].mxu0 }
 0x2b3   : > { %v5941_v23 = vadd.f32 %v5147_v51, %v2522_v33  ;;  %v5149_v40 = vpop.f32.mrb[1].mxu0 }
 0x2b4   : > { %v5942_v26 = vadd.f32 %v5149_v40, %v2524_v10  ;;  %v5151_v20 = vpop.f32.mrb[2].mxu0 }
 0x2b5   : > { %v5228_v48 = vadd.f32 %v5941_v23, %v8429_v32  ;;  %v5943_v18 = vadd.f32 %v5151_v20, %v2526_v1  ;;  %v5153_v44 = vpop.f32.mrb[3].mxu0 }
 0x2b6   : > { %v5229_v24 = vadd.f32 %v5942_v26, %v8432_v7  ;;  %v5944_v47 = vadd.f32 %v5153_v44, %v2528_v39 }
 0x2b7   : > { %v5248_v57 = vmax.f32 %v5228_v48, 0.0  ;;  %v5230_v31 = vadd.f32 %v5943_v18, %v8429_v32 }
 0x2b8   : > { %v5249_v9 = vmax.f32 %v5229_v24, 0.0  ;;  %v5231_v3 = vadd.f32 %v5944_v47, %v8432_v7 }
 0x2b9   : > { %5268 = vst [vmem:[%s8438_s29] sm:$0xff] %v5248_v57  ;;  %v5250_v41 = vmax.f32 %v5230_v31, 0.0 }
 0x2ba   : > { %5269 = vst.msk [vmem:[%s8438_s29 + $0x8] sm:$0xff] %vm313_vm1, %v5249_v9  ;;  %v5251_v54 = vmax.f32 %v5231_v3, 0.0  ;;  %v5157_v53 = vpop.f32.mrb[4].mxu0 }
 0x2bb   : > { %5270 = vst [vmem:[%s8438_s29 + $0x10] sm:$0xff] %v5250_v41  ;;  %v5945_v42 = vadd.f32 %v5157_v53, %v2532_v49  ;;  %v5159_v63 = vpop.f32.mrb[5].mxu0 }
 0x2bc   : > { %5271 = vst.msk [vmem:[%s8438_s29 + $0x18] sm:$0xff] %vm313_vm1, %v5251_v54  ;;  %v5946_v28 = vadd.f32 %v5159_v63, %v2534_v0  ;;  %v5161_v55 = vpop.f32.mrb[6].mxu0 }
 0x2bd   : > { %v5232_v13 = vadd.f32 %v5945_v42, %v8429_v32  ;;  %v5947_v12 = vadd.f32 %v5161_v55, %v2536_v61  ;;  %v5163_v59 = vpop.f32.mrb[7].mxu0 }
 0x2be   : > { %v5233_v46 = vadd.f32 %v5946_v28, %v8432_v7  ;;  %v5948_v14 = vadd.f32 %v5163_v59, %v2538_v60 }
 0x2bf   : > { %v5252_v38 = vmax.f32 %v5232_v13, 0.0  ;;  %v5234_v8 = vadd.f32 %v5947_v12, %v8429_v32 }
 0x2c0   : > { %v5253_v30 = vmax.f32 %v5233_v46, 0.0  ;;  %v5235_v25 = vadd.f32 %v5948_v14, %v8432_v7 }
 0x2c1   : > { %5272 = vst [vmem:[%s8438_s29 + $0x20] sm:$0xff] %v5252_v38  ;;  %v5254_v37 = vmax.f32 %v5234_v8, 0.0 }
 0x2c2   : > { %5273 = vst.msk [vmem:[%s8438_s29 + $0x28] sm:$0xff] %vm313_vm1, %v5253_v30  ;;  %v5255_v17 = vmax.f32 %v5235_v25, 0.0  ;;  %v5167_v52 = vpop.f32.mrb[8].mxu0 }
 0x2c3   : > { %5274 = vst [vmem:[%s8438_s29 + $0x30] sm:$0xff] %v5254_v37  ;;  %v5169_v29 = vpop.f32.mrb[9].mxu0 }
 0x2c4   : > { %5275 = vst.msk [vmem:[%s8438_s29 + $0x38] sm:$0xff] %vm313_vm1, %v5255_v17  ;;  %v5171_v22 = vpop.f32.mrb[10].mxu0 }
 0x2c5   : > { %v5173_v6 = vpop.f32.mrb[11].mxu0 }
 0x2ca   : > { %v5177_v36 = vpop.f32.mrb[12].mxu0 }
 0x2cb   : > { %v5179_v35 = vpop.f32.mrb[13].mxu0 }
 0x2cc   : > { %v5181_v34 = vpop.f32.mrb[14].mxu0 }
 0x2cd   : > { %v2714_v62 = vpop.f32.mrb[8].mxu1  ;;  %v5183_v5 = vpop.f32.mrb[15].mxu0 }
 0x2ce   : > { %v5949_v56 = vadd.f32 %v5167_v52, %v2714_v62  ;;  %v2716_v43 = vpop.f32.mrb[9].mxu1 }
 0x2cf   : > { %v5950_v4 = vadd.f32 %v5169_v29, %v2716_v43  ;;  %v2718_v58 = vpop.f32.mrb[10].mxu1 }
 0x2d0   : > { %v5236_v50 = vadd.f32 %v5949_v56, %v8429_v32  ;;  %v5951_v16 = vadd.f32 %v5171_v22, %v2718_v58  ;;  %v2720_v15 = vpop.f32.mrb[11].mxu1 }
 0x2d1   : > { %v5237_v11 = vadd.f32 %v5950_v4, %v8432_v7  ;;  %v5952_v33 = vadd.f32 %v5173_v6, %v2720_v15 }
 0x2d2   : > { %v5256_v10 = vmax.f32 %v5236_v50, 0.0  ;;  %v5238_v1 = vadd.f32 %v5951_v16, %v8429_v32  ;;  %v5187_v49 = vpop.f32.mrb[16].mxu0 }
 0x2d3   : > { %v5257_v27 = vmax.f32 %v5237_v11, 0.0  ;;  %v5239_v39 = vadd.f32 %v5952_v33, %v8432_v7  ;;  %v5189_v45 = vpop.f32.mrb[17].mxu0 }
 0x2d4   : > { %5276 = vst [vmem:[%s8438_s29 + $0x40] sm:$0xff] %v5256_v10  ;;  %v5258_v21 = vmax.f32 %v5238_v1, 0.0  ;;  %v5191_v19 = vpop.f32.mrb[18].mxu0 }
 0x2d5   : > { %5277 = vst.msk [vmem:[%s8438_s29 + $0x48] sm:$0xff] %vm313_vm1, %v5257_v27  ;;  %v5259_v0 = vmax.f32 %v5239_v39, 0.0  ;;  %v2724_v61 = vpop.f32.mrb[12].mxu1  ;;  %v5193_v40 = vpop.f32.mrb[19].mxu0 }
 0x2d6   : > { %5278 = vst [vmem:[%s8438_s29 + $0x50] sm:$0xff] %v5258_v21  ;;  %v5953_v60 = vadd.f32 %v5177_v36, %v2724_v61  ;;  %v2726_v2 = vpop.f32.mrb[13].mxu1 }
 0x2d7   : > { %5279 = vst.msk [vmem:[%s8438_s29 + $0x58] sm:$0xff] %vm313_vm1, %v5259_v0  ;;  %v5954_v51 = vadd.f32 %v5179_v35, %v2726_v2  ;;  %v2728_v23 = vpop.f32.mrb[14].mxu1 }
 0x2d8   : > { %v5240_v26 = vadd.f32 %v5953_v60, %v8429_v32  ;;  %v5955_v20 = vadd.f32 %v5181_v34, %v2728_v23  ;;  %v2730_v48 = vpop.f32.mrb[15].mxu1 }
 0x2d9   : > { %v5241_v18 = vadd.f32 %v5954_v51, %v8432_v7  ;;  %v5956_v44 = vadd.f32 %v5183_v5, %v2730_v48 }
 0x2da   : > { %v5260_v24 = vmax.f32 %v5240_v26, 0.0  ;;  %v5242_v47 = vadd.f32 %v5955_v20, %v8429_v32 }
 0x2db   : > { %v5261_v57 = vmax.f32 %v5241_v18, 0.0  ;;  %v5243_v31 = vadd.f32 %v5956_v44, %v8432_v7 }
 0x2dc   : > { %5280 = vst [vmem:[%s8438_s29 + $0x60] sm:$0xff] %v5260_v24  ;;  %v5262_v9 = vmax.f32 %v5242_v47, 0.0 }
 0x2dd   : > { %5281 = vst.msk [vmem:[%s8438_s29 + $0x68] sm:$0xff] %vm313_vm1, %v5261_v57  ;;  %v5263_v3 = vmax.f32 %v5243_v31, 0.0  ;;  %v2734_v41 = vpop.f32.mrb[16].mxu1 }
 0x2de   : > { %5282 = vst [vmem:[%s8438_s29 + $0x70] sm:$0xff] %v5262_v9  ;;  %v5957_v54 = vadd.f32 %v5187_v49, %v2734_v41  ;;  %v2736_v53 = vpop.f32.mrb[17].mxu1 }
 0x2df   : > { %5283 = vst.msk [vmem:[%s8438_s29 + $0x78] sm:$0xff] %vm313_vm1, %v5263_v3  ;;  %v5958_v42 = vadd.f32 %v5189_v45, %v2736_v53  ;;  %v2738_v63 = vpop.f32.mrb[18].mxu1 }
 0x2e0   : > { %v5244_v28 = vadd.f32 %v5957_v54, %v8429_v32  ;;  %v5959_v55 = vadd.f32 %v5191_v19, %v2738_v63  ;;  %v2740_v13 = vpop.f32.mrb[19].mxu1 }
 0x2e1   : > { %v5245_v12 = vadd.f32 %v5958_v42, %v8432_v7  ;;  %v5960_v59 = vadd.f32 %v5193_v40, %v2740_v13 }
 0x2e2   : > { %v5264_v46 = vmax.f32 %v5244_v28, 0.0  ;;  %v5246_v14 = vadd.f32 %v5959_v55, %v8429_v32 }
 0x2e3   : > { %v5265_v38 = vmax.f32 %v5245_v12, 0.0  ;;  %v5247_v8 = vadd.f32 %v5960_v59, %v8432_v7 }
 0x2e4   : > { %5284 = vst [vmem:[%s8438_s29 + $0x80] sm:$0xff] %v5264_v46  ;;  %v5266_v30 = vmax.f32 %v5246_v14, 0.0 }
 0x2e5   : > { %5285 = vst.msk [vmem:[%s8438_s29 + $0x88] sm:$0xff] %vm313_vm1, %v5265_v38  ;;  %v5267_v25 = vmax.f32 %v5247_v8, 0.0 }
 0x2e6   : > { %5286 = vst [vmem:[%s8438_s29 + $0x90] sm:$0xff] %v5266_v30 }
 0x2e7   : > { %5287 = vst.msk [vmem:[%s8438_s29 + $0x98] sm:$0xff] %vm313_vm1, %v5267_v25 }
 0x2e8 PF: > { %s13_s12 = sadd.s32 1, %s6810_s12  }
 0x2e9   : > { %p10_p4 = scmp.ge.s32.totalorder %s13_s12, 4  }
 0x2eb   :  { %12 = sbr.rel (!%p10_p4) target bundleno = 1 (0x1), region = 86 }

// kernel: forward.13
= control target key start
LH: loop header
LB: loop body
LE: loop exit
PB: predicated region body
PF: predicated region fallthrough
CT: control target
= control target key end

     0   :  { %v24_v5 = vlaneseq  ;;  %s522_s0 = inlined_call_operand.vmem [shape: f32[2,16,256], index: 0, kind: input, shape index: {}]   ;;  %s523_s1 = inlined_call_operand.vmem [shape: bf16[256,128], index: 1, kind: input, shape index: {}]   ;;  %s524_s2 = inlined_call_operand.vmem [shape: f32[1,128], index: 2, kind: input, shape index: {}]   ;;  %s525_s3 = inlined_call_operand.hbm [shape: f32[2,128], index: 3, kind: output, shape index: {}]  }
   0x1   :  { %v354_v0 = vld [vmem:[%s523_s1 + $0x40] sm:$0xff]   ;;  %v356_v2 = vld [vmem:[%s523_s1 + $0x48] sm:$0xff]   ;;  %v358_v4 = vld [vmem:[%s523_s1 + $0x50] sm:$0xff]  }
   0x2   :  { %v355_v1 = vld [vmem:[%s523_s1] sm:$0xff]   ;;  %327 = vmatprep.subr.bf16.mxu0 %v354_v0  ;;  %v357_v3 = vld [vmem:[%s523_s1 + $0x8] sm:$0xff]   ;;  %v359_v6 = vld [vmem:[%s523_s1 + $0x10] sm:$0xff]   ;;  %v25_v8 = vshrl.u32 %v24_v5, 7 }
   0x3   :  { %328 = vmatpush3.bf16.msra.mxu0 %v355_v1  ;;  %v360_v7 = vld [vmem:[%s523_s1 + $0x58] sm:$0xff]   ;;  %v362_v10 = vld [vmem:[%s523_s1 + $0x60] sm:$0xff]   ;;  %v364_v13 = vld [vmem:[%s523_s1 + $0x68] sm:$0xff]  }
   0x4   :  { %329 = vmatprep.subr.bf16.mxu0 %v356_v2  ;;  %v361_v9 = vld [vmem:[%s523_s1 + $0x18] sm:$0xff]   ;;  %v26_v11 = vadd.s32 8, %v25_v8  ;;  %v363_v12 = vld [vmem:[%s523_s1 + $0x20] sm:$0xff]   ;;  %v448_v14 = vmul.u32.u64.low 3435973837, %v25_v8  ;;  %v449_v15 = vmul.u32.u64.high 3435973837, %v25_v8, %v448_v14 }
   0x6   :  { %v451_v16 = vmul.u32.u64.low 3435973837, %v26_v11  ;;  %v452_v17 = vmul.u32.u64.high 3435973837, %v26_v11, %v451_v16 }
   0x7   :  { %330 = vmatpush3.bf16.msra.mxu0 %v357_v3 }
   0x8   :  { %331 = vmatprep.subr.bf16.mxu0 %v358_v4 }
   0xb   :  { %332 = vmatpush3.bf16.msra.mxu0 %v359_v6 }
   0xc   :  { %333 = vmatprep.subr.bf16.mxu0 %v360_v7 }
   0xf   :  { %334 = vmatpush3.bf16.msra.mxu0 %v361_v9 }
  0x10   :  { %335 = vmatprep.subr.bf16.mxu0 %v362_v10 }
  0x11   :  { %8 = vsyncpa [#allocation3], 0  ;;  %v365_v18 = vld [vmem:[%s523_s1 + $0x28] sm:$0xff]   ;;  %v366_v19 = vld [vmem:[%s523_s1 + $0x70] sm:$0xff]   ;;  %v35_v20 = vshrl.u32 %v449_v15, 2  ;;  %v46_v21 = vshrl.u32 %v452_v17, 2 }
  0x12   :  { %v367_v23 = vld [vmem:[%s523_s1 + $0x30] sm:$0xff]   ;;  %v368_v25 = vld [vmem:[%s523_s1 + $0x78] sm:$0xff]   ;;  %v17_v29 = vld [vmem:[%s522_s0 + $0x8] sm:$0xff]  ;;  %vm28_vm5 = vcmp.lt.s32.totalorder %v26_v11, 15  ;;  %vm152_vm10 = vcmask 1041409   ;;  %s394_s6 = smov [#allocation2]  }
  0x13   :  { %336 = vmatpush3.bf16.msra.mxu0 %v363_v12  ;;  %v36_v22 = vmul.u32 5, %v35_v20  ;;  %v47_v24 = vmul.u32 5, %v46_v21  ;;  %v369_v28 = vld [vmem:[%s523_s1 + $0x38] sm:$0xff]   ;;  %v21_v31 = vld [vmem:[%s522_s0 + $0x28] sm:$0xff]  ;;  %v16_v33 = vld [vmem:[%s522_s0] sm:$0xff]  ;;  %s302_s7 = sshll.u32 %s394_s6, 4  ;;  %s303_s7 = int_to_ptr.vmem [resolvable:$true] %s302_s7 }
  0x14   :  { %337 = vmatprep.subr.bf16.mxu0 %v364_v13  ;;  %v19_v34 = vld [vmem:[%s522_s0 + $0x18] sm:$0xff]  ;;  %v20_v36 = vld [vmem:[%s522_s0 + $0x20] sm:$0xff]  ;;  %v18_v40 = vld [vmem:[%s522_s0 + $0x10] sm:$0xff]  ;;  %s370_s8 = scalar_lea.vmem %s303_s7, 32  ;;  %p375_p1 = scmp.lt.s32.totalorder %s303_s7, %s303_s7 }
  0x15   :  { %v37_v26 = vsub.s32 %v25_v8, %v36_v22  ;;  %v48_v27 = vsub.s32 %v26_v11, %v47_v24  ;;  %v23_v37 = vld [vmem:[%s522_s0 + $0x38] sm:$0xff]  ;;  %v22_v41 = vld [vmem:[%s522_s0 + $0x30] sm:$0xff]  ;;  %p371_p0 = scmp.ne.s32.totalorder %s303_s7, %s370_s8  ;;  %p376_p2 = scmp.lt.s32.totalorder %s370_s8, %s370_s8 }
  0x17   :  { %338 = vmatpush3.bf16.msra.mxu0 %v365_v18  ;;  %vm51_vm0 = vcmp.ne.s32.totalorder %v37_v26, 0  ;;  %vm53_vm1 = vcmp.lt.s32.totalorder %v37_v26, 0  ;;  %v57_v30 = vadd.s32 5, %v37_v26  ;;  %vm52_vm2 = vcmp.ne.s32.totalorder %v48_v27, 0  ;;  %p377_p3 = por %p376_p2, %p375_p1 }
  0x18   :  { %339 = vmatprep.subr.bf16.mxu0 %v366_v19  ;;  %vm54_vm3 = vcmp.lt.s32.totalorder %v48_v27, 0  ;;  %vm55_vm4 = vmand %vm53_vm1, %vm51_vm0  ;;  %v58_v32 = vadd.s32 5, %v48_v27 }
  0x19   :  { %vm56_vm6 = vmand %vm54_vm3, %vm52_vm2  ;;  %v59_v35 = vsel %vm55_vm4, %v57_v30, %v37_v26  ;;  %p378_p4 = pnand %p377_p3, %p371_p0 }
  0x1a   :  { %v60_v38 = vsel %vm56_vm6, %v58_v32, %v48_v27  ;;  %vm489_vm7 = vcmp.lt.s32.totalorder %v59_v35, 3 }
  0x1b   :  { %340 = vmatpush3.bf16.msra.mxu0 %v367_v23  ;;  %vm62_vm8 = vcmp.lt.s32.totalorder %v60_v38, 3  ;;  %v66_v42 = vsel %vm489_vm7, %v17_v29, -inf  ;;  %v70_v43 = vsel %vm489_vm7, %v21_v31, -inf  ;;  %v65_v44 = vsel %vm489_vm7, %v16_v33, -inf }
  0x1c   :  { %341 = vmatprep.subr.bf16.mxu0 %v368_v25  ;;  %vm64_vm9 = vmand %vm28_vm5, %vm62_vm8  ;;  %v69_v45 = vsel %vm489_vm7, %v20_v36, -inf }
  0x1d   :  { %v68_v46 = vsel %vm64_vm9, %v19_v34, -inf  ;;  %v72_v47 = vsel %vm64_vm9, %v23_v37, -inf  ;;  %v67_v48 = vsel %vm64_vm9, %v18_v40, -inf  ;;  %v71_v49 = vsel %vm64_vm9, %v22_v41, -inf }
  0x1e   :  { %v80_v50 = vmax.f32 %v66_v42, %v68_v46  ;;  %v94_v51 = vmax.f32 %v70_v43, %v72_v47  ;;  %v73_v52 = vmax.f32 %v65_v44, %v67_v48  ;;  %v87_v53 = vmax.f32 %v69_v45, %v71_v49 }
  0x1f   :  { %342 = vmatpush3.bf16.msra.mxu0 %v369_v28  ;;  %v310_v28 = vld [vmem:[%s524_s2] ss:$0 sm:$0xff] }
  0x20   :  { %v81_v54 = vrot.slane %v80_v50, 4  ;;  %v95_v55 = vrot.slane %v94_v51, 4  ;;  %v74_v56 = vrot.slane %v73_v52, 4  ;;  %v88_v57 = vrot.slane %v87_v53, 4 }
  0x22   :  { %v82_v58 = vmax.f32 %v80_v50, %v81_v54  ;;  %v96_v59 = vmax.f32 %v94_v51, %v95_v55  ;;  %v75_v60 = vmax.f32 %v73_v52, %v74_v56  ;;  %v89_v61 = vmax.f32 %v87_v53, %v88_v57 }
  0x24   :  { %v83_v62 = vrot.slane %v82_v58, 2  ;;  %v97_v63 = vrot.slane %v96_v59, 2  ;;  %v76_v0 = vrot.slane %v75_v60, 2  ;;  %v90_v1 = vrot.slane %v89_v61, 2 }
  0x26   :  { %v84_v2 = vmax.f32 %v82_v58, %v83_v62  ;;  %v98_v3 = vmax.f32 %v96_v59, %v97_v63  ;;  %v77_v4 = vmax.f32 %v75_v60, %v76_v0  ;;  %v91_v5 = vmax.f32 %v89_v61, %v90_v1 }
  0x28   :  { %v85_v6 = vrot.slane %v84_v2, 1  ;;  %v99_v7 = vrot.slane %v98_v3, 1  ;;  %v78_v8 = vrot.slane %v77_v4, 1  ;;  %v92_v9 = vrot.slane %v91_v5, 1 }
  0x2a   :  { %v86_v10 = vmax.f32 %v84_v2, %v85_v6  ;;  %v100_v11 = vmax.f32 %v98_v3, %v99_v7  ;;  %v79_v12 = vmax.f32 %v77_v4, %v78_v8  ;;  %v93_v13 = vmax.f32 %v91_v5, %v92_v9 }
  0x2c   :  { %v102_v14 = vpack.c.bf16 %v86_v10, %v86_v10  ;;  %v104_v15 = vpack.c.bf16 %v100_v11, %v100_v11  ;;  %v101_v16 = vpack.c.bf16 %v79_v12, %v79_v12  ;;  %v103_v17 = vpack.c.bf16 %v93_v13, %v93_v13 }
  0x2e   :  { %v149_v18 = vunpack.c.l.b16 %v102_v14  ;;  %v151_v19 = vunpack.c.l.b16 %v104_v15  ;;  %v148_v20 = vunpack.c.l.b16 %v101_v16  ;;  %v150_v21 = vunpack.c.l.b16 %v103_v17 }
  0x30   :  { %v154_v22 = vsel %vm152_vm10, %v151_v19, %v149_v18  ;;  %v153_v23 = vsel %vm152_vm10, %v150_v21, %v148_v20 }
  0x31   :  { %v156_v24 = vpack.c.b16 %v154_v22, %v154_v22  ;;  %v155_v25 = vpack.c.b16 %v153_v23, %v153_v23 }
  0x33   :  { %287 = vmatprep.mubr.bf16.mxu0 %v156_v24 }
  0x34   :  { %288 = vmatmul.mubr.bf16.vlgmr.msra.gmra.mrb[0].mxu0 %v155_v25 }
 0x107   :  { %v343_v26 = vpop.f32.mrb[0].mxu0 }
 0x108   :  { %v344_v27 = vpop.f32.mrb[1].mxu0 }
 0x109   :  { %v345_v29 = vadd.f32 %v344_v27, %v343_v26  ;;  %v346_v30 = vpop.f32.mrb[2].mxu0 }
 0x10a   :  { %v347_v31 = vpop.f32.mrb[3].mxu0 }
 0x10b   :  { %v290_v32 = vadd.f32 %v345_v29, %v310_v28 }
 0x10d   :  { %295 = vst [vmem:[#allocation2] sm:$0x3] %v290_v32 }
 0x10e   :  { %381 = shalt.err (!%p378_p4)
}
 0x10f   :  { %s382_s11 = scalar_lea.hbm %s525_s3, 32 }
 0x110   :  { %p383_p5 = scmp.ne.s32.totalorder %s525_s3, %s382_s11  ;;  %p386_p6 = scmp.lt.u32.totalorder %s382_s11, %s525_s3 }
 0x112   :  { %p388_p7 = pnand %p386_p6, %p383_p5 }
 0x114   :  { %391 = shalt.err (!%p388_p7)
}
 0x115   :  { %305 = dma.vmem_to_hbm [thread:$0]  %s303_s7, 32, %s525_s3, [#allocation3]  }
 0x116   :  { %392 = dma.done.wait [#allocation3], 32  }
 0x117   :  { %393 = vsyncadd [#allocation3], 4294967264 }
 0x118   :  { %309 = vsyncpa [#allocation3], 1 }

// kernel: forward.11
= control target key start
LH: loop header
LB: loop body
LE: loop exit
PB: predicated region body
PF: predicated region fallthrough
CT: control target
= control target key end

     0   :  { %s4781_s12 = smov 0   ;;  %s6076_s0 = inlined_call_operand.vmem [shape: bf16[2,32,192], index: 0, kind: input, shape index: {}]   ;;  %s6077_s1 = inlined_call_operand.vmem [shape: bf16[9,192,384], index: 1, kind: input, shape index: {}]   ;;  %s6078_s2 = inlined_call_operand.vmem [shape: f32[1,384], index: 2, kind: input, shape index: {}]   ;;  %s6079_s3 = inlined_call_operand.vmem [shape: f32[2,16,384], index: 3, kind: output, shape index: {}]  }
   0x1 LB: > { %s3495_s13 = sadd.s32 4294967295, %s4758_s12   ;;  %p3499_p0 = scmp.ge.s32.totalorder %s4758_s12, 1  ;;  %s4758_s12 = sphi %s4781_s12, %s13_s12  }
   0x2   : > { %p137_p1 = scmp.lt.s32.totalorder %s4758_s12, 3 }
   0x4   : > { %p138_p2 = pnand %p3499_p0, %p137_p1 }
   0x5   : > { %v4296_v0 = vld [vmem:[%s6077_s1 + $0x124] ss:$12 sps:$4 sm:$0xff] (!%p138_p2)   ;;  %v4760_v1 = vmov (!%p138_p2), 0   ;;  %v4298_v2 = vld [vmem:[%s6077_s1 + $0x128] ss:$12 sps:$4 sm:$0xff] (!%p138_p2)   ;;  %p161_p3 = scmp.lt.s32.totalorder (!%p138_p2), %s3495_s13, 1 }
   0x6   : > { %141 = sbr.rel (%p138_p2) target bundleno = 659 (0x293), region = 32  ;;  %550 = vmatprep.subr.bf16.mxu1 (!%p138_p2), %v4760_v1  ;;  %507 = vmatprep.subr.bf16.mxu0 (!%p138_p2), %v4296_v0  ;;  %v4299_v3 = vld [vmem:[%s6077_s1 + $0x120] ss:$12 sps:$4 sm:$0xff] (!%p138_p2)   ;;  %v4300_v4 = vld [vmem:[%s6077_s1 + $0x13c] ss:$12 sps:$4 sm:$0xff] (!%p138_p2)   ;;  %vm503_vm1 = vcmask (!%p138_p2), 523264  }
   0x7   : > { %551 = vmatpush1.bf16.msra.mxu1 (!%p138_p2), %v4298_v2  ;;  %508 = vmatpush1.bf16.msra.mxu0 (!%p138_p2), %v4299_v3  ;;  %v4302_v5 = vld [vmem:[%s6077_s1 + $0x140] ss:$12 sps:$4 sm:$0xff] (!%p138_p2)   ;;  %v4303_v6 = vld [vmem:[%s6077_s1 + $0x138] ss:$12 sps:$4 sm:$0xff] (!%p138_p2)   ;;  %v4307_v9 = vld [vmem:[%s6077_s1 + $0x150] ss:$12 sps:$4 sm:$0xff] (!%p138_p2)  }
   0x8   : > { %552 = vmatprep.subr.bf16.mxu1 (!%p138_p2), %v4760_v1  ;;  %509 = vmatprep.subr.bf16.mxu0 (!%p138_p2), %v4300_v4  ;;  %v4304_v7 = vld [vmem:[%s6077_s1 + $0x154] ss:$12 sps:$4 sm:$0xff] (!%p138_p2)   ;;  %v4306_v8 = vld [vmem:[%s6077_s1 + $0x158] ss:$12 sps:$4 sm:$0xff] (!%p138_p2)   ;;  %v4310_v11 = vld [vmem:[%s6077_s1 + $0x170] ss:$12 sps:$4 sm:$0xff] (!%p138_p2)  }
   0x9   : > { %v4308_v10 = vld [vmem:[%s6077_s1 + $0x16c] ss:$12 sps:$4 sm:$0xff] (!%p138_p2)   ;;  %v4311_v12 = vld [vmem:[%s6077_s1 + $0x168] ss:$12 sps:$4 sm:$0xff] (!%p138_p2)   ;;  %v4312_v13 = vld [vmem:[%s6077_s1 + $0x184] ss:$12 sps:$4 sm:$0xff] (!%p138_p2)  }
   0xa   : > { %v4314_v14 = vld [vmem:[%s6077_s1 + $0x188] ss:$12 sps:$4 sm:$0xff] (!%p138_p2)   ;;  %v4315_v15 = vld [vmem:[%s6077_s1 + $0x180] ss:$12 sps:$4 sm:$0xff] (!%p138_p2)   ;;  %v4319_v18 = vld [vmem:[%s6077_s1 + $0x198] ss:$12 sps:$4 sm:$0xff] (!%p138_p2)  }
   0xb   : > { %553 = vmatpush1.bf16.msra.mxu1 (!%p138_p2), %v4302_v5  ;;  %510 = vmatpush1.bf16.msra.mxu0 (!%p138_p2), %v4303_v6  ;;  %v4316_v16 = vld [vmem:[%s6077_s1 + $0x19c] ss:$12 sps:$4 sm:$0xff] (!%p138_p2)   ;;  %v4318_v17 = vld [vmem:[%s6077_s1 + $0x1a0] ss:$12 sps:$4 sm:$0xff] (!%p138_p2)   ;;  %v4322_v20 = vld [vmem:[%s6077_s1 + $0x1b8] ss:$12 sps:$4 sm:$0xff] (!%p138_p2)  }
   0xc   : > { %554 = vmatprep.subr.bf16.mxu1 (!%p138_p2), %v4760_v1  ;;  %511 = vmatprep.subr.bf16.mxu0 (!%p138_p2), %v4304_v7  ;;  %v4320_v19 = vld [vmem:[%s6077_s1 + $0x1b4] ss:$12 sps:$4 sm:$0xff] (!%p138_p2)   ;;  %v4323_v21 = vld [vmem:[%s6077_s1 + $0x1b0] ss:$12 sps:$4 sm:$0xff] (!%p138_p2)   ;;  %v4324_v22 = vld [vmem:[%s6077_s1 + $0x1cc] ss:$12 sps:$4 sm:$0xff] (!%p138_p2)  }
   0xd   : > { %s6081_s13 = smov (!%p161_p3, %s3495_s13), 1  ;;  %v4326_v23 = vld [vmem:[%s6077_s1 + $0x1d0] ss:$12 sps:$4 sm:$0xff]   ;;  %v4327_v24 = vld [vmem:[%s6077_s1 + $0x1c8] ss:$12 sps:$4 sm:$0xff]   ;;  %vm925_vm2 = vcmask 1046528  }
   0xe   : > { %s4253_s27 = sshll.u32 %s6081_s13, 5  ;;  %v4328_v28 = vld [vmem:[%s6077_s1 + $0x1e4] ss:$12 sps:$4 sm:$0xff]   ;;  %v4330_v31 = vld [vmem:[%s6077_s1 + $0x1e8] ss:$12 sps:$4 sm:$0xff]   ;;  %vm1655_vm4 = vcmask 1044480  }
   0xf   : > { %555 = vmatpush1.bf16.msra.mxu1 %v4306_v8  ;;  %512 = vmatpush1.bf16.msra.mxu0 %v4307_v9  ;;  %s4872_s9 = scalar_lea.vmem %s6076_s0, %s4253_s27  ;;  %v4331_v36 = vld [vmem:[%s6077_s1 + $0x1e0] ss:$12 sps:$4 sm:$0xff]   ;;  %v4332_v37 = vld [vmem:[%s6077_s1 + $0x1fc] ss:$12 sps:$4 sm:$0xff]   ;;  %vm285_vm0 = vsmask.f32 7424 }
  0x10   : > { %556 = vmatprep.subr.bf16.mxu1 %v4760_v1  ;;  %513 = vmatprep.subr.bf16.mxu0 %v4308_v10  ;;  %v172_v25 = vld [vmem:[%s4872_s9] sm:$0xff]  ;;  %v4883_v26 = vld [vmem:[%s4872_s9 + $0x8] sm:$0xff]  ;;  %v222_v27 = vld [vmem:[%s4872_s9 + $0x10] sm:$0x11]  ;;  %vm1279_vm3 = vsmask.f32 5376 }
  0x11   : > { %v4890_v29 = vcombine.high %v172_v25, %v4883_v26  ;;  %v4892_v30 = vcombine.high %v222_v27, %v222_v27  ;;  %v4901_v35 = vcombine.low %v172_v25, %v4883_v26  ;;  %v4334_v40 = vld [vmem:[%s6077_s1 + $0x200] ss:$12 sps:$4 sm:$0xff]   ;;  %v4913_v42 = vcombine.low %v222_v27, %v222_v27  ;;  %v4335_v44 = vld [vmem:[%s6077_s1 + $0x1f8] ss:$12 sps:$4 sm:$0xff]   ;;  %v4339_v51 = vld [vmem:[%s6077_s1 + $0x210] ss:$12 sps:$4 sm:$0xff]  }
  0x12   : > { %v4336_v45 = vld [vmem:[%s6077_s1 + $0x214] ss:$12 sps:$4 sm:$0xff]   ;;  %v4338_v47 = vld [vmem:[%s6077_s1 + $0x218] ss:$12 sps:$4 sm:$0xff]   ;;  %v4342_v53 = vld [vmem:[%s6077_s1 + $0x230] ss:$12 sps:$4 sm:$0xff]  }
  0x13   : > { %557 = vmatpush1.bf16.msra.mxu1 %v4310_v11  ;;  %514 = vmatpush1.bf16.msra.mxu0 %v4311_v12  ;;  %v299_v32 = vshrl.u32 %v4890_v29, 16  ;;  %v301_v33 = vshll.u32 %v4890_v29, 16  ;;  %v306_v34 = vshll.u32 %v4892_v30, 16  ;;  %v289_v43 = vshll.u32 %v4901_v35, 16  ;;  %v4340_v52 = vld [vmem:[%s6077_s1 + $0x22c] ss:$12 sps:$4 sm:$0xff]  }
  0x14   : > { %558 = vmatprep.subr.bf16.mxu1 %v4760_v1  ;;  %515 = vmatprep.subr.bf16.mxu0 %v4312_v13  ;;  %v287_v48 = vshrl.u32 %v4901_v35, 16  ;;  %v294_v50 = vshll.u32 %v4913_v42, 16  ;;  %v4343_v56 = vld [vmem:[%s6077_s1 + $0x228] ss:$12 sps:$4 sm:$0xff]   ;;  %v4350_v57 = vld [vmem:[%s6077_s1 + $0x4] ss:$12 sps:$4 sm:$0xff]  }
  0x15   : > { %v303_v38 = vrot.slane %v301_v33, 1  ;;  %v308_v39 = vrot.slane %v306_v34, 1  ;;  %v291_v49 = vrot.slane %v289_v43, 1  ;;  %v4351_v59 = vld [vmem:[%s6077_s1 + $0x8] ss:$12 sps:$4 sm:$0xff]   ;;  %vm3112_vm7 = vcmask 1045504  }
  0x16   : > { %v296_v55 = vrot.slane %v294_v50, 1  ;;  %v4348_v60 = vld [vmem:[%s6077_s1] ss:$12 sps:$4 sm:$0xff]   ;;  %v4354_v61 = vld [vmem:[%s6077_s1 + $0x1c] ss:$12 sps:$4 sm:$0xff]   ;;  %s4286_s17 = smul.u32 48, %s6081_s13 }
  0x17   : > { %559 = vmatpush1.bf16.msra.mxu1 %v4314_v14  ;;  %516 = vmatpush1.bf16.msra.mxu0 %v4315_v15  ;;  %v304_v41 = vor.u32 %v303_v38, %v299_v32  ;;  %v292_v54 = vor.u32 %v291_v49, %v287_v48  ;;  %v4355_v62 = vld [vmem:[%s6077_s1 + $0x20] ss:$12 sps:$4 sm:$0xff]   ;;  %v4352_v63 = vld [vmem:[%s6077_s1 + $0x18] ss:$12 sps:$4 sm:$0xff]   ;;  %v4356_v3 = vld [vmem:[%s6077_s1 + $0x30] ss:$12 sps:$4 sm:$0xff]  }
  0x18   : > { %560 = vmatprep.subr.bf16.mxu1 %v4760_v1  ;;  %517 = vmatprep.subr.bf16.mxu0 %v4316_v16  ;;  %v4358_v0 = vld [vmem:[%s6077_s1 + $0x34] ss:$12 sps:$4 sm:$0xff]   ;;  %v4359_v2 = vld [vmem:[%s6077_s1 + $0x38] ss:$12 sps:$4 sm:$0xff]   ;;  %v4363_v5 = vld [vmem:[%s6077_s1 + $0x50] ss:$12 sps:$4 sm:$0xff]   ;;  %s170_s20 = scalar_lea.vmem %s6079_s3, %s4286_s17 }
  0x19   : > { %v309_v46 = vsel %vm285_vm0, %v304_v41, %v308_v39  ;;  %v297_v58 = vsel %vm285_vm0, %v292_v54, %v296_v55  ;;  %v4362_v4 = vld [vmem:[%s6077_s1 + $0x4c] ss:$12 sps:$4 sm:$0xff]   ;;  %v4360_v6 = vld [vmem:[%s6077_s1 + $0x48] ss:$12 sps:$4 sm:$0xff]   ;;  %v4366_v7 = vld [vmem:[%s6077_s1 + $0x64] ss:$12 sps:$4 sm:$0xff]  }
  0x1a   : > { %3592 = vmatprep.mubr.msk.bf16.mxu1 %vm503_vm1, %v309_v46  ;;  %3591 = vmatprep.mubr.msk.bf16.mxu0 %vm503_vm1, %v309_v46  ;;  %v4367_v8 = vld [vmem:[%s6077_s1 + $0x68] ss:$12 sps:$4 sm:$0xff]   ;;  %v4364_v9 = vld [vmem:[%s6077_s1 + $0x60] ss:$12 sps:$4 sm:$0xff]   ;;  %v4368_v12 = vld [vmem:[%s6077_s1 + $0x78] ss:$12 sps:$4 sm:$0xff]  }
  0x1b   : > { %561 = vmatpush1.bf16.msra.mxu1 %v4318_v17  ;;  %518 = vmatpush1.bf16.msra.mxu0 %v4319_v18  ;;  %v4370_v10 = vld [vmem:[%s6077_s1 + $0x7c] ss:$12 sps:$4 sm:$0xff]   ;;  %v4371_v11 = vld [vmem:[%s6077_s1 + $0x80] ss:$12 sps:$4 sm:$0xff]   ;;  %v4375_v14 = vld [vmem:[%s6077_s1 + $0x98] ss:$12 sps:$4 sm:$0xff]  }
  0x1c   : > { %562 = vmatprep.subr.bf16.mxu1 %v4760_v1  ;;  %519 = vmatprep.subr.bf16.mxu0 %v4320_v19  ;;  %v4374_v13 = vld [vmem:[%s6077_s1 + $0x94] ss:$12 sps:$4 sm:$0xff]   ;;  %v4372_v15 = vld [vmem:[%s6077_s1 + $0x90] ss:$12 sps:$4 sm:$0xff]   ;;  %v4378_v16 = vld [vmem:[%s6077_s1 + $0xac] ss:$12 sps:$4 sm:$0xff]  }
  0x1d   : > { %v4379_v17 = vld [vmem:[%s6077_s1 + $0xb0] ss:$12 sps:$4 sm:$0xff]   ;;  %v4376_v18 = vld [vmem:[%s6077_s1 + $0xa8] ss:$12 sps:$4 sm:$0xff]   ;;  %v4391_v27 = vld [vmem:[%s6077_s1 + $0xf8] ss:$12 sps:$4 sm:$0xff]  }
  0x1e   : > { %v4382_v19 = vld [vmem:[%s6077_s1 + $0xc4] ss:$12 sps:$4 sm:$0xff]   ;;  %v4390_v25 = vld [vmem:[%s6077_s1 + $0xf4] ss:$12 sps:$4 sm:$0xff]   ;;  %v930_v38 = vrot.slane %v4892_v30, 1 }
  0x1f   : > { %563 = vmatpush1.bf16.msra.mxu1 %v4322_v20  ;;  %520 = vmatpush1.bf16.msra.mxu0 %v4323_v21  ;;  %v4383_v20 = vld [vmem:[%s6077_s1 + $0xc8] ss:$12 sps:$4 sm:$0xff]   ;;  %v4380_v21 = vld [vmem:[%s6077_s1 + $0xc0] ss:$12 sps:$4 sm:$0xff]   ;;  %v4395_v33 = vld [vmem:[%s6077_s1 + $0x110] ss:$12 sps:$4 sm:$0xff]  }
  0x20   : > { %564 = vmatprep.subr.bf16.mxu1 %v4760_v1  ;;  %521 = vmatprep.subr.bf16.mxu0 %v4324_v22  ;;  %v4386_v22 = vld [vmem:[%s6077_s1 + $0xdc] ss:$12 sps:$4 sm:$0xff]   ;;  %v4403_v43 = vld [vmem:[%s6077_s1 + $0x260] ss:$12 sps:$4 sm:$0xff]   ;;  %v4414_v50 = vld [vmem:[%s6077_s1 + $0x2a4] ss:$12 sps:$4 sm:$0xff]  }
  0x21   : > { %v4392_v34 = vld [vmem:[%s6077_s1 + $0x108] ss:$12 sps:$4 sm:$0xff]   ;;  %v4404_v46 = vld [vmem:[%s6077_s1 + $0x270] ss:$12 sps:$4 sm:$0xff]   ;;  %v4419_v54 = vld [vmem:[%s6077_s1 + $0x2c0] ss:$12 sps:$4 sm:$0xff]  }
  0x22   : > { %v4399_v39 = vld [vmem:[%s6077_s1 + $0x248] ss:$12 sps:$4 sm:$0xff]   ;;  %v4411_v48 = vld [vmem:[%s6077_s1 + $0x290] ss:$12 sps:$4 sm:$0xff]   ;;  %v4416_v55 = vld [vmem:[%s6077_s1 + $0x2b8] ss:$12 sps:$4 sm:$0xff]  }
  0x23   : > { %565 = vmatpush1.bf16.msra.mxu1 %v4326_v23  ;;  %522 = vmatpush1.bf16.msra.mxu0 %v4327_v24  ;;  %v4387_v23 = vld [vmem:[%s6077_s1 + $0xe0] ss:$12 sps:$4 sm:$0xff]   ;;  %v4384_v24 = vld [vmem:[%s6077_s1 + $0xd8] ss:$12 sps:$4 sm:$0xff]   ;;  %v4402_v41 = vld [vmem:[%s6077_s1 + $0x25c] ss:$12 sps:$4 sm:$0xff]  }
  0x24   : > { %566 = vmatprep.subr.bf16.mxu1 %v4760_v1  ;;  %523 = vmatprep.subr.bf16.mxu0 %v4328_v28  ;;  %v5057_v28 = vld [vmem:[%s4872_s9] sm:$0xee]  ;;  %v4408_v49 = vld [vmem:[%s6077_s1 + $0x288] ss:$12 sps:$4 sm:$0xff]   ;;  %vm2003_vm5 = vsmask.f32 4352 }
  0x25   : > { %v3680_v32 = vcombine.high %v5057_v28, %v4883_v26  ;;  %vm2736_vm6 = vsmask.f32 6400 }
  0x27   : > { %567 = vmatpush1.bf16.msra.mxu1 %v4330_v31  ;;  %524 = vmatpush1.bf16.msra.mxu0 %v4331_v36  ;;  %v4394_v31 = vld [vmem:[%s6077_s1 + $0x10c] ss:$12 sps:$4 sm:$0xff]   ;;  %v4398_v36 = vld [vmem:[%s6077_s1 + $0x244] ss:$12 sps:$4 sm:$0xff]  }
  0x28   : > { %568 = vmatprep.subr.bf16.mxu1 %v4760_v1  ;;  %525 = vmatprep.subr.bf16.mxu0 %v4332_v37  ;;  %v929_v37 = vrot.slane %v3680_v32, 1  ;;  %v4452_v32 = vld [vmem:[%s6077_s1 + $0x37c] ss:$12 sps:$4 sm:$0xff]  }
  0x2a   : > { %v931_v30 = vsel %vm925_vm2, %v929_v37, %v930_v38  ;;  %v4456_v37 = vld [vmem:[%s6077_s1 + $0x394] ss:$12 sps:$4 sm:$0xff]   ;;  %v4457_v38 = vld [vmem:[%s6077_s1 + $0x398] ss:$12 sps:$4 sm:$0xff]  }
  0x2b   : > { %569 = vmatpush1.bf16.msra.mxu1 %v4334_v40  ;;  %526 = vmatpush1.bf16.msra.mxu0 %v4335_v44  ;;  %v4396_v40 = vld [vmem:[%s6077_s1 + $0x240] ss:$12 sps:$4 sm:$0xff]   ;;  %v4400_v44 = vld [vmem:[%s6077_s1 + $0x258] ss:$12 sps:$4 sm:$0xff]  }
  0x2c   : > { %570 = vmatprep.subr.bf16.mxu1 %v4760_v1  ;;  %527 = vmatprep.subr.bf16.mxu0 %v4336_v45  ;;  %v4406_v45 = vld [vmem:[%s6077_s1 + $0x274] ss:$12 sps:$4 sm:$0xff]  }
  0x2f   : > { %571 = vmatpush1.bf16.msra.mxu1 %v4338_v47  ;;  %528 = vmatpush1.bf16.msra.mxu0 %v4339_v51  ;;  %v4410_v47 = vld [vmem:[%s6077_s1 + $0x28c] ss:$12 sps:$4 sm:$0xff]   ;;  %v4415_v51 = vld [vmem:[%s6077_s1 + $0x2a8] ss:$12 sps:$4 sm:$0xff]  }
  0x30   : > { %572 = vmatprep.subr.bf16.mxu1 %v4760_v1  ;;  %529 = vmatprep.subr.bf16.mxu0 %v4340_v52  ;;  %v4412_v52 = vld [vmem:[%s6077_s1 + $0x2a0] ss:$12 sps:$4 sm:$0xff]  }
  0x33   : > { %573 = vmatpush1.bf16.msra.mxu1 %v4342_v53  ;;  %530 = vmatpush1.bf16.msra.mxu0 %v4343_v56  ;;  %v4418_v53 = vld [vmem:[%s6077_s1 + $0x2bc] ss:$12 sps:$4 sm:$0xff]   ;;  %v4422_v56 = vld [vmem:[%s6077_s1 + $0x2d4] ss:$12 sps:$4 sm:$0xff]  }
  0x34   : > { %829 = vmatprep.subr.bf16.mxu1 %v4760_v1  ;;  %786 = vmatprep.subr.bf16.mxu0 %v4350_v57  ;;  %v4423_v57 = vld [vmem:[%s6077_s1 + $0x2d8] ss:$12 sps:$4 sm:$0xff]  }
  0x36   : > { %583 = vmatmul.mubr.bf16.vlgmr.msra.gmra.mrb[0].mxu1 %v297_v58  ;;  %540 = vmatmul.mubr.bf16.vlgmr.msra.gmra.mrb[0].mxu0 %v297_v58  ;;  %v4420_v58 = vld [vmem:[%s6077_s1 + $0x2d0] ss:$12 sps:$4 sm:$0xff]  }
  0x37   : > { %830 = vmatpush1.bf16.msra.mxu1 %v4351_v59  ;;  %787 = vmatpush1.bf16.msra.mxu0 %v4348_v60  ;;  %v4426_v59 = vld [vmem:[%s6077_s1 + $0x2ec] ss:$12 sps:$4 sm:$0xff]   ;;  %v4427_v60 = vld [vmem:[%s6077_s1 + $0x2f0] ss:$12 sps:$4 sm:$0xff]  }
  0x38   : > { %831 = vmatprep.subr.bf16.mxu1 %v4760_v1  ;;  %788 = vmatprep.subr.bf16.mxu0 %v4354_v61  ;;  %v4424_v61 = vld [vmem:[%s6077_s1 + $0x2e8] ss:$12 sps:$4 sm:$0xff]  }
  0x39   : > { %3630 = vmatprep.mubr.msk.bf16.mxu1 %vm503_vm1, %v4890_v29  ;;  %3629 = vmatprep.mubr.msk.bf16.mxu0 %vm503_vm1, %v4890_v29  ;;  %v4388_v29 = vld [vmem:[%s6077_s1 + $0xf0] ss:$12 sps:$4 sm:$0xff]  }
  0x3b   : > { %832 = vmatpush1.bf16.msra.mxu1 %v4355_v62  ;;  %789 = vmatpush1.bf16.msra.mxu0 %v4352_v63  ;;  %v4430_v62 = vld [vmem:[%s6077_s1 + $0x304] ss:$12 sps:$4 sm:$0xff]   ;;  %v4431_v63 = vld [vmem:[%s6077_s1 + $0x308] ss:$12 sps:$4 sm:$0xff]  }
  0x3c   : > { %833 = vmatprep.subr.bf16.mxu1 %v4760_v1  ;;  %790 = vmatprep.subr.bf16.mxu0 %v4358_v0  ;;  %v5168_v0 = vld [vmem:[%s4872_s9] sm:$0xcc] }
  0x3f   : > { %834 = vmatpush1.bf16.msra.mxu1 %v4359_v2  ;;  %791 = vmatpush1.bf16.msra.mxu0 %v4356_v3  ;;  %v5171_v2 = vld [vmem:[%s4872_s9 + $0x10] sm:$0x77]  ;;  %v4428_v3 = vld [vmem:[%s6077_s1 + $0x300] ss:$12 sps:$4 sm:$0xff]  }
  0x40   : > { %835 = vmatprep.subr.bf16.mxu1 %v4760_v1  ;;  %792 = vmatprep.subr.bf16.mxu0 %v4362_v4  ;;  %v4434_v4 = vld [vmem:[%s6077_s1 + $0x31c] ss:$12 sps:$4 sm:$0xff]  }
  0x43   : > { %836 = vmatpush1.bf16.msra.mxu1 %v4363_v5  ;;  %793 = vmatpush1.bf16.msra.mxu0 %v4360_v6  ;;  %v3768_v5 = vcombine.high %v5168_v0, %v4883_v26  ;;  %v5184_v6 = vcombine.high %v5171_v2, %v5171_v2 }
  0x44   : > { %837 = vmatprep.subr.bf16.mxu1 %v4760_v1  ;;  %794 = vmatprep.subr.bf16.mxu0 %v4366_v7  ;;  %v4435_v7 = vld [vmem:[%s6077_s1 + $0x320] ss:$12 sps:$4 sm:$0xff]  }
  0x47   : > { %838 = vmatpush1.bf16.msra.mxu1 %v4367_v8  ;;  %795 = vmatpush1.bf16.msra.mxu0 %v4364_v9  ;;  %v4432_v8 = vld [vmem:[%s6077_s1 + $0x318] ss:$12 sps:$4 sm:$0xff]   ;;  %v4438_v9 = vld [vmem:[%s6077_s1 + $0x334] ss:$12 sps:$4 sm:$0xff]  }
  0x48   : > { %839 = vmatprep.subr.bf16.mxu1 %v4760_v1  ;;  %796 = vmatprep.subr.bf16.mxu0 %v4370_v10  ;;  %v1298_v10 = vshrl.u32 %v3768_v5, 16 }
  0x4b   : > { %840 = vmatpush1.bf16.msra.mxu1 %v4371_v11  ;;  %797 = vmatpush1.bf16.msra.mxu0 %v4368_v12  ;;  %v1301_v11 = vshll.u32 %v3768_v5, 16  ;;  %v1306_v12 = vshrl.u32 %v5184_v6, 16  ;;  %v4489_v5 = vld [vmem:[%s6077_s1 + $0x458] ss:$12 sps:$4 sm:$0xff]  }
  0x4c   : > { %841 = vmatprep.subr.bf16.mxu1 %v4760_v1  ;;  %798 = vmatprep.subr.bf16.mxu0 %v4374_v13  ;;  %v1309_v13 = vshll.u32 %v5184_v6, 16 }
  0x4f   : > { %842 = vmatpush1.bf16.msra.mxu1 %v4375_v14  ;;  %799 = vmatpush1.bf16.msra.mxu0 %v4372_v15  ;;  %v4439_v14 = vld [vmem:[%s6077_s1 + $0x338] ss:$12 sps:$4 sm:$0xff]   ;;  %v3679_v15 = vcombine.low %v5057_v28, %v4883_v26  ;;  %v4443_v26 = vld [vmem:[%s6077_s1 + $0x350] ss:$12 sps:$4 sm:$0xff]  }
  0x50   : > { %843 = vmatprep.subr.bf16.mxu1 %v4760_v1  ;;  %800 = vmatprep.subr.bf16.mxu0 %v4378_v16  ;;  %v4436_v16 = vld [vmem:[%s6077_s1 + $0x330] ss:$12 sps:$4 sm:$0xff]  }
  0x53   : > { %844 = vmatpush1.bf16.msra.mxu1 %v4379_v17  ;;  %801 = vmatpush1.bf16.msra.mxu0 %v4376_v18  ;;  %v4442_v17 = vld [vmem:[%s6077_s1 + $0x34c] ss:$12 sps:$4 sm:$0xff]   ;;  %v1300_v18 = vrot.slane %v1298_v10, 2 }
  0x54   : > { %845 = vmatprep.subr.bf16.mxu1 %v4760_v1  ;;  %802 = vmatprep.subr.bf16.mxu0 %v4382_v19  ;;  %v1303_v19 = vrot.slane %v1301_v11, 3  ;;  %v5340_v11 = vld [vmem:[%s4872_s9] sm:$0x88] }
  0x57   : > { %846 = vmatpush1.bf16.msra.mxu1 %v4383_v20  ;;  %803 = vmatpush1.bf16.msra.mxu0 %v4380_v21  ;;  %v1308_v20 = vrot.slane %v1306_v12, 2  ;;  %v1311_v21 = vrot.slane %v1309_v13, 3  ;;  %v4486_v12 = vld [vmem:[%s6077_s1 + $0x450] ss:$12 sps:$4 sm:$0xff]   ;;  %v4492_v13 = vld [vmem:[%s6077_s1 + $0x46c] ss:$12 sps:$4 sm:$0xff]  }
  0x58   : > { %847 = vmatprep.subr.bf16.mxu1 %v4760_v1  ;;  %804 = vmatprep.subr.bf16.mxu0 %v4386_v22  ;;  %v926_v22 = vrot.slane %v3679_v15, 1  ;;  %v4493_v15 = vld [vmem:[%s6077_s1 + $0x470] ss:$12 sps:$4 sm:$0xff]  }
  0x59   : > { %v1312_v28 = vor.u32 %v1311_v21, %v1308_v20  ;;  %v1660_v21 = vrot.slane %v5184_v6, 3  ;;  %v4504_v6 = vld [vmem:[%s6077_s1 + $0x49c] ss:$12 sps:$4 sm:$0xff]  }
  0x5b   : > { %848 = vmatpush1.bf16.msra.mxu1 %v4387_v23  ;;  %805 = vmatpush1.bf16.msra.mxu0 %v4384_v24  ;;  %v927_v23 = vrot.slane %v4913_v42, 1  ;;  %v4440_v24 = vld [vmem:[%s6077_s1 + $0x348] ss:$12 sps:$4 sm:$0xff]  }
  0x5c   : > { %849 = vmatprep.subr.bf16.mxu1 %v4760_v1  ;;  %806 = vmatprep.subr.bf16.mxu0 %v4390_v25  ;;  %v4448_v25 = vld [vmem:[%s6077_s1 + $0x364] ss:$12 sps:$4 sm:$0xff]   ;;  %v4449_v42 = vld [vmem:[%s6077_s1 + $0x368] ss:$12 sps:$4 sm:$0xff]  }
  0x5f   : > { %850 = vmatpush1.bf16.msra.mxu1 %v4391_v27  ;;  %807 = vmatpush1.bf16.msra.mxu0 %v4388_v29  ;;  %v1304_v27 = vor.u32 %v1303_v19, %v1300_v18  ;;  %v928_v29 = vsel %vm925_vm2, %v926_v22, %v927_v23  ;;  %v4490_v18 = vld [vmem:[%s6077_s1 + $0x468] ss:$12 sps:$4 sm:$0xff]   ;;  %v4500_v19 = vld [vmem:[%s6077_s1 + $0x484] ss:$12 sps:$4 sm:$0xff]   ;;  %v4498_v23 = vld [vmem:[%s6077_s1 + $0x480] ss:$12 sps:$4 sm:$0xff]  }
  0x60   : > { %851 = vmatprep.subr.bf16.mxu1 %v4760_v1  ;;  %808 = vmatprep.subr.bf16.mxu0 %v4394_v31  ;;  %v4446_v31 = vld [vmem:[%s6077_s1 + $0x360] ss:$12 sps:$4 sm:$0xff]   ;;  %v4501_v22 = vld [vmem:[%s6077_s1 + $0x488] ss:$12 sps:$4 sm:$0xff]  }
  0x63   : > { %852 = vmatpush1.bf16.msra.mxu1 %v4395_v33  ;;  %809 = vmatpush1.bf16.msra.mxu0 %v4392_v34  ;;  %v1313_v33 = vsel %vm1279_vm3, %v1304_v27, %v1312_v28  ;;  %v4453_v34 = vld [vmem:[%s6077_s1 + $0x380] ss:$12 sps:$4 sm:$0xff]   ;;  %v4502_v27 = vld [vmem:[%s6077_s1 + $0x498] ss:$12 sps:$4 sm:$0xff]  }
  0x64   : > { %1171 = vmatprep.subr.bf16.mxu1 %v4760_v1  ;;  %1128 = vmatprep.subr.bf16.mxu0 %v4398_v36  ;;  %v4450_v36 = vld [vmem:[%s6077_s1 + $0x378] ss:$12 sps:$4 sm:$0xff]   ;;  %v4508_v28 = vld [vmem:[%s6077_s1 + $0x4b4] ss:$12 sps:$4 sm:$0xff]  }
  0x66   : > { %862 = vmatmul.mubr.bf16.vlgmr.msra.gmra.mrb[4].mxu1 %v4901_v35  ;;  %819 = vmatmul.mubr.bf16.vlgmr.msra.gmra.mrb[0].mxu0 %v4901_v35  ;;  %v4407_v35 = vld [vmem:[%s6077_s1 + $0x278] ss:$12 sps:$4 sm:$0xff]  }
  0x67   : > { %1172 = vmatpush1.bf16.msra.mxu1 %v4399_v39  ;;  %1129 = vmatpush1.bf16.msra.mxu0 %v4396_v40  ;;  %v4454_v39 = vld [vmem:[%s6077_s1 + $0x390] ss:$12 sps:$4 sm:$0xff]   ;;  %v4460_v40 = vld [vmem:[%s6077_s1 + $0x3ac] ss:$12 sps:$4 sm:$0xff]  }
  0x68   : > { %1173 = vmatprep.subr.bf16.mxu1 %v4760_v1  ;;  %1130 = vmatprep.subr.bf16.mxu0 %v4402_v41  ;;  %v4461_v41 = vld [vmem:[%s6077_s1 + $0x3b0] ss:$12 sps:$4 sm:$0xff]  }
  0x69   : > { %3718 = vmatprep.mubr.msk.bf16.mxu1 %vm503_vm1, %v931_v30  ;;  %3717 = vmatprep.mubr.msk.bf16.mxu0 %vm503_vm1, %v931_v30  ;;  %v4458_v30 = vld [vmem:[%s6077_s1 + $0x3a8] ss:$12 sps:$4 sm:$0xff]  }
  0x6b   : > { %1174 = vmatpush1.bf16.msra.mxu1 %v4403_v43  ;;  %1131 = vmatpush1.bf16.msra.mxu0 %v4400_v44  ;;  %v4464_v43 = vld [vmem:[%s6077_s1 + $0x3c4] ss:$12 sps:$4 sm:$0xff]   ;;  %v4465_v44 = vld [vmem:[%s6077_s1 + $0x3c8] ss:$12 sps:$4 sm:$0xff]  }
  0x6c   : > { %1175 = vmatprep.subr.bf16.mxu1 %v4760_v1  ;;  %1132 = vmatprep.subr.bf16.mxu0 %v4406_v45  ;;  %v4462_v45 = vld [vmem:[%s6077_s1 + $0x3c0] ss:$12 sps:$4 sm:$0xff]  }
  0x6f   : > { %1176 = vmatpush1.bf16.msra.mxu1 %v4407_v35  ;;  %1133 = vmatpush1.bf16.msra.mxu0 %v4404_v46  ;;  %v4468_v35 = vld [vmem:[%s6077_s1 + $0x3dc] ss:$12 sps:$4 sm:$0xff]   ;;  %v4469_v46 = vld [vmem:[%s6077_s1 + $0x3e0] ss:$12 sps:$4 sm:$0xff]  }
  0x70   : > { %1177 = vmatprep.subr.bf16.mxu1 %v4760_v1  ;;  %1134 = vmatprep.subr.bf16.mxu0 %v4410_v47  ;;  %v4466_v47 = vld [vmem:[%s6077_s1 + $0x3d8] ss:$12 sps:$4 sm:$0xff]  }
  0x73   : > { %1178 = vmatpush1.bf16.msra.mxu1 %v4411_v48  ;;  %1135 = vmatpush1.bf16.msra.mxu0 %v4408_v49  ;;  %v4472_v48 = vld [vmem:[%s6077_s1 + $0x3f4] ss:$12 sps:$4 sm:$0xff]   ;;  %v4473_v49 = vld [vmem:[%s6077_s1 + $0x3f8] ss:$12 sps:$4 sm:$0xff]  }
  0x74   : > { %1179 = vmatprep.subr.bf16.mxu1 %v4760_v1  ;;  %1136 = vmatprep.subr.bf16.mxu0 %v4414_v50  ;;  %v4470_v50 = vld [vmem:[%s6077_s1 + $0x3f0] ss:$12 sps:$4 sm:$0xff]  }
  0x77   : > { %1180 = vmatpush1.bf16.msra.mxu1 %v4415_v51  ;;  %1137 = vmatpush1.bf16.msra.mxu0 %v4412_v52  ;;  %v4476_v51 = vld [vmem:[%s6077_s1 + $0x40c] ss:$12 sps:$4 sm:$0xff]   ;;  %v4477_v52 = vld [vmem:[%s6077_s1 + $0x410] ss:$12 sps:$4 sm:$0xff]  }
  0x78   : > { %1181 = vmatprep.subr.bf16.mxu1 %v4760_v1  ;;  %1138 = vmatprep.subr.bf16.mxu0 %v4418_v53  ;;  %v4474_v53 = vld [vmem:[%s6077_s1 + $0x408] ss:$12 sps:$4 sm:$0xff]  }
  0x7b   : > { %1182 = vmatpush1.bf16.msra.mxu1 %v4419_v54  ;;  %1139 = vmatpush1.bf16.msra.mxu0 %v4416_v55  ;;  %v4480_v54 = vld [vmem:[%s6077_s1 + $0x424] ss:$12 sps:$4 sm:$0xff]   ;;  %v5306_v55 = vld [vmem:[%s4872_s9 + $0x8] sm:$0xff] }
  0x7c   : > { %1183 = vmatprep.subr.bf16.mxu1 %v4760_v1  ;;  %1140 = vmatprep.subr.bf16.mxu0 %v4422_v56  ;;  %v3767_v56 = vcombine.low %v5168_v0, %v5306_v55 }
  0x7f   : > { %1184 = vmatpush1.bf16.msra.mxu1 %v4423_v57  ;;  %1141 = vmatpush1.bf16.msra.mxu0 %v4420_v58  ;;  %v4481_v57 = vld [vmem:[%s6077_s1 + $0x428] ss:$12 sps:$4 sm:$0xff]   ;;  %v5315_v58 = vcombine.low %v5171_v2, %v5171_v2 }
  0x80   : > { %1185 = vmatprep.subr.bf16.mxu1 %v4760_v1  ;;  %1142 = vmatprep.subr.bf16.mxu0 %v4426_v59  ;;  %v4478_v59 = vld [vmem:[%s6077_s1 + $0x420] ss:$12 sps:$4 sm:$0xff]  }
  0x81   : > { %v1289_v0 = vshrl.u32 %v5315_v58, 16  ;;  %v1292_v2 = vshll.u32 %v5315_v58, 16 }
  0x83   : > { %1186 = vmatpush1.bf16.msra.mxu1 %v4427_v60  ;;  %1143 = vmatpush1.bf16.msra.mxu0 %v4424_v61  ;;  %v4484_v60 = vld [vmem:[%s6077_s1 + $0x43c] ss:$12 sps:$4 sm:$0xff]   ;;  %v1281_v61 = vshrl.u32 %v3767_v56, 16  ;;  %v1294_v10 = vrot.slane %v1292_v2, 3 }
  0x84   : > { %1187 = vmatprep.subr.bf16.mxu1 %v4760_v1  ;;  %1144 = vmatprep.subr.bf16.mxu0 %v4430_v62  ;;  %v1284_v62 = vshll.u32 %v3767_v56, 16  ;;  %v4545_v2 = vld [vmem:[%s6077_s1 + $0x590] ss:$12 sps:$4 sm:$0xff]  }
  0x87   : > { %1188 = vmatpush1.bf16.msra.mxu1 %v4431_v63  ;;  %1145 = vmatpush1.bf16.msra.mxu0 %v4428_v3  ;;  %v4485_v63 = vld [vmem:[%s6077_s1 + $0x440] ss:$12 sps:$4 sm:$0xff]   ;;  %v4482_v3 = vld [vmem:[%s6077_s1 + $0x438] ss:$12 sps:$4 sm:$0xff]  }
  0x88   : > { %1189 = vmatprep.subr.bf16.mxu1 %v4760_v1  ;;  %1146 = vmatprep.subr.bf16.mxu0 %v4434_v4  ;;  %v4488_v4 = vld [vmem:[%s6077_s1 + $0x454] ss:$12 sps:$4 sm:$0xff]  }
  0x8b   : > { %1190 = vmatpush1.bf16.msra.mxu1 %v4435_v7  ;;  %1147 = vmatpush1.bf16.msra.mxu0 %v4432_v8  ;;  %v1283_v7 = vrot.slane %v1281_v61, 2  ;;  %v1286_v8 = vrot.slane %v1284_v62, 3  ;;  %v5481_v62 = vcombine.low %v5340_v11, %v5306_v55 }
  0x8c   : > { %1191 = vmatprep.subr.bf16.mxu1 %v4760_v1  ;;  %1148 = vmatprep.subr.bf16.mxu0 %v4438_v9  ;;  %v1291_v9 = vrot.slane %v1289_v0, 2  ;;  %v4544_v0 = vld [vmem:[%s6077_s1 + $0x58c] ss:$12 sps:$4 sm:$0xff]  }
  0x8f   : > { %1192 = vmatpush1.bf16.msra.mxu1 %v4439_v14  ;;  %1149 = vmatpush1.bf16.msra.mxu0 %v4436_v16  ;;  %v5351_v14 = vcombine.high %v5340_v11, %v5306_v55  ;;  %v1287_v16 = vor.u32 %v1286_v8, %v1283_v7  ;;  %v1656_v7 = vrot.slane %v5481_v62, 3  ;;  %v1657_v8 = vrot.slane %v5315_v58, 3  ;;  %v4551_v11 = vld [vmem:[%s6077_s1 + $0x5a8] ss:$12 sps:$4 sm:$0xff]  }
  0x90   : > { %1193 = vmatprep.subr.bf16.mxu1 %v4760_v1  ;;  %1150 = vmatprep.subr.bf16.mxu0 %v4442_v17  ;;  %v1295_v17 = vor.u32 %v1294_v10, %v1291_v9  ;;  %v4542_v9 = vld [vmem:[%s6077_s1 + $0x588] ss:$12 sps:$4 sm:$0xff]   ;;  %v4550_v10 = vld [vmem:[%s6077_s1 + $0x5a4] ss:$12 sps:$4 sm:$0xff]  }
  0x91   : > { %v1659_v20 = vrot.slane %v5351_v14, 3  ;;  %v2022_v56 = vshrl.u32 %v5351_v14, 16  ;;  %v1658_v58 = vsel %vm1655_vm4, %v1656_v7, %v1657_v8  ;;  %v4600_v7 = vld [vmem:[%s6077_s1 + $0x6c4] ss:$12 sps:$4 sm:$0xff]  }
  0x93   : > { %1194 = vmatpush1.bf16.msra.mxu1 %v4443_v26  ;;  %1151 = vmatpush1.bf16.msra.mxu0 %v4440_v24  ;;  %v1296_v26 = vsel %vm1279_vm3, %v1287_v16, %v1295_v17  ;;  %v1661_v24 = vsel %vm1655_vm4, %v1659_v20, %v1660_v21  ;;  %v4555_v16 = vld [vmem:[%s6077_s1 + $0x5c0] ss:$12 sps:$4 sm:$0xff]   ;;  %v4559_v20 = vld [vmem:[%s6077_s1 + $0x5d8] ss:$12 sps:$4 sm:$0xff]   ;;  %v4556_v21 = vld [vmem:[%s6077_s1 + $0x5d0] ss:$12 sps:$4 sm:$0xff]  }
  0x94   : > { %1553 = vmatprep.subr.bf16.mxu1 %v4760_v1  ;;  %1510 = vmatprep.subr.bf16.mxu0 %v4448_v25  ;;  %v4505_v25 = vld [vmem:[%s6077_s1 + $0x4a0] ss:$12 sps:$4 sm:$0xff]  }
  0x96   : > { %1204 = vmatmul.mubr.bf16.vlgmr.msra.gmra.mrb[8].mxu1 %v928_v29  ;;  %1161 = vmatmul.mubr.bf16.vlgmr.msra.gmra.mrb[0].mxu0 %v928_v29  ;;  %v4509_v29 = vld [vmem:[%s6077_s1 + $0x4b8] ss:$12 sps:$4 sm:$0xff]  }
  0x97   : > { %1554 = vmatpush1.bf16.msra.mxu1 %v4449_v42  ;;  %1511 = vmatpush1.bf16.msra.mxu0 %v4446_v31  ;;  %v4506_v42 = vld [vmem:[%s6077_s1 + $0x4b0] ss:$12 sps:$4 sm:$0xff]   ;;  %v4512_v31 = vld [vmem:[%s6077_s1 + $0x4cc] ss:$12 sps:$4 sm:$0xff]  }
  0x98   : > { %1555 = vmatprep.subr.bf16.mxu1 %v4760_v1  ;;  %1512 = vmatprep.subr.bf16.mxu0 %v4452_v32  ;;  %v4513_v32 = vld [vmem:[%s6077_s1 + $0x4d0] ss:$12 sps:$4 sm:$0xff]  }
  0x99   : > { %3808 = vmatprep.mubr.msk.bf16.mxu1 %vm503_vm1, %v1313_v33  ;;  %3807 = vmatprep.mubr.msk.bf16.mxu0 %vm503_vm1, %v1313_v33  ;;  %v4510_v33 = vld [vmem:[%s6077_s1 + $0x4c8] ss:$12 sps:$4 sm:$0xff]  }
  0x9b   : > { %1556 = vmatpush1.bf16.msra.mxu1 %v4453_v34  ;;  %1513 = vmatpush1.bf16.msra.mxu0 %v4450_v36  ;;  %v4516_v34 = vld [vmem:[%s6077_s1 + $0x4e4] ss:$12 sps:$4 sm:$0xff]   ;;  %v4514_v36 = vld [vmem:[%s6077_s1 + $0x4e0] ss:$12 sps:$4 sm:$0xff]  }
  0x9c   : > { %1557 = vmatprep.subr.bf16.mxu1 %v4760_v1  ;;  %1514 = vmatprep.subr.bf16.mxu0 %v4456_v37  ;;  %v4517_v37 = vld [vmem:[%s6077_s1 + $0x4e8] ss:$12 sps:$4 sm:$0xff]  }
  0x9f   : > { %1558 = vmatpush1.bf16.msra.mxu1 %v4457_v38  ;;  %1515 = vmatpush1.bf16.msra.mxu0 %v4454_v39  ;;  %v4520_v38 = vld [vmem:[%s6077_s1 + $0x4fc] ss:$12 sps:$4 sm:$0xff]   ;;  %v4521_v39 = vld [vmem:[%s6077_s1 + $0x500] ss:$12 sps:$4 sm:$0xff]  }
  0xa0   : > { %1559 = vmatprep.subr.bf16.mxu1 %v4760_v1  ;;  %1516 = vmatprep.subr.bf16.mxu0 %v4460_v40  ;;  %v4518_v40 = vld [vmem:[%s6077_s1 + $0x4f8] ss:$12 sps:$4 sm:$0xff]  }
  0xa3   : > { %1560 = vmatpush1.bf16.msra.mxu1 %v4461_v41  ;;  %1517 = vmatpush1.bf16.msra.mxu0 %v4458_v30  ;;  %v4524_v41 = vld [vmem:[%s6077_s1 + $0x514] ss:$12 sps:$4 sm:$0xff]   ;;  %v4525_v30 = vld [vmem:[%s6077_s1 + $0x518] ss:$12 sps:$4 sm:$0xff]  }
  0xa4   : > { %1561 = vmatprep.subr.bf16.mxu1 %v4760_v1  ;;  %1518 = vmatprep.subr.bf16.mxu0 %v4464_v43  ;;  %v4522_v43 = vld [vmem:[%s6077_s1 + $0x510] ss:$12 sps:$4 sm:$0xff]  }
  0xa7   : > { %1562 = vmatpush1.bf16.msra.mxu1 %v4465_v44  ;;  %1519 = vmatpush1.bf16.msra.mxu0 %v4462_v45  ;;  %v4528_v44 = vld [vmem:[%s6077_s1 + $0x52c] ss:$12 sps:$4 sm:$0xff]   ;;  %v4529_v45 = vld [vmem:[%s6077_s1 + $0x530] ss:$12 sps:$4 sm:$0xff]  }
  0xa8   : > { %1563 = vmatprep.subr.bf16.mxu1 %v4760_v1  ;;  %1520 = vmatprep.subr.bf16.mxu0 %v4468_v35  ;;  %v4526_v35 = vld [vmem:[%s6077_s1 + $0x528] ss:$12 sps:$4 sm:$0xff]  }
  0xab   : > { %1564 = vmatpush1.bf16.msra.mxu1 %v4469_v46  ;;  %1521 = vmatpush1.bf16.msra.mxu0 %v4466_v47  ;;  %v4532_v46 = vld [vmem:[%s6077_s1 + $0x544] ss:$12 sps:$4 sm:$0xff]   ;;  %v4533_v47 = vld [vmem:[%s6077_s1 + $0x548] ss:$12 sps:$4 sm:$0xff]  }
  0xac   : > { %1565 = vmatprep.subr.bf16.mxu1 %v4760_v1  ;;  %1522 = vmatprep.subr.bf16.mxu0 %v4472_v48  ;;  %v5453_v48 = vld [vmem:[%s4872_s9 + $0x10] sm:$0xff] }
  0xaf   : > { %1566 = vmatpush1.bf16.msra.mxu1 %v4473_v49  ;;  %1523 = vmatpush1.bf16.msra.mxu0 %v4470_v50  ;;  %v4530_v49 = vld [vmem:[%s6077_s1 + $0x540] ss:$12 sps:$4 sm:$0xff]   ;;  %v4536_v50 = vld [vmem:[%s6077_s1 + $0x55c] ss:$12 sps:$4 sm:$0xff]  }
  0xb0   : > { %1567 = vmatprep.subr.bf16.mxu1 %v4760_v1  ;;  %1524 = vmatprep.subr.bf16.mxu0 %v4476_v51  ;;  %v4537_v51 = vld [vmem:[%s6077_s1 + $0x560] ss:$12 sps:$4 sm:$0xff]  }
  0xb3   : > { %1568 = vmatpush1.bf16.msra.mxu1 %v4477_v52  ;;  %1525 = vmatpush1.bf16.msra.mxu0 %v4474_v53  ;;  %v4534_v52 = vld [vmem:[%s6077_s1 + $0x558] ss:$12 sps:$4 sm:$0xff]   ;;  %v3946_v53 = vcombine.high %v5453_v48, %v5453_v48 }
  0xb4   : > { %1569 = vmatprep.subr.bf16.mxu1 %v4760_v1  ;;  %1526 = vmatprep.subr.bf16.mxu0 %v4480_v54  ;;  %v4540_v54 = vld [vmem:[%s6077_s1 + $0x574] ss:$12 sps:$4 sm:$0xff]  }
  0xb5   : > { %v2033_v61 = vshll.u32 %v3946_v53, 16 }
  0xb7   : > { %1570 = vmatpush1.bf16.msra.mxu1 %v4481_v57  ;;  %1527 = vmatpush1.bf16.msra.mxu0 %v4478_v59  ;;  %v2025_v57 = vshll.u32 %v5351_v14, 16  ;;  %v4541_v59 = vld [vmem:[%s6077_s1 + $0x578] ss:$12 sps:$4 sm:$0xff]   ;;  %v4548_v14 = vld [vmem:[%s6077_s1 + $0x5a0] ss:$12 sps:$4 sm:$0xff]  }
  0xb8   : > { %1571 = vmatprep.subr.bf16.mxu1 %v4760_v1  ;;  %1528 = vmatprep.subr.bf16.mxu0 %v4484_v60  ;;  %v2030_v60 = vshrl.u32 %v3946_v53, 16  ;;  %v4591_v53 = vld [vmem:[%s6077_s1 + $0x698] ss:$12 sps:$4 sm:$0xff]  }
  0xba   : > { %v2032_v55 = vrot.slane %v2030_v60, 3  ;;  %v5618_v60 = vld [vmem:[%s4872_s9 + $0x8] sm:$0xee] }
  0xbb   : > { %1572 = vmatpush1.bf16.msra.mxu1 %v4485_v63  ;;  %1529 = vmatpush1.bf16.msra.mxu0 %v4482_v3  ;;  %v4538_v63 = vld [vmem:[%s6077_s1 + $0x570] ss:$12 sps:$4 sm:$0xff]   ;;  %v2024_v3 = vrot.slane %v2022_v56, 3 }
  0xbc   : > { %1573 = vmatprep.subr.bf16.mxu1 %v4760_v1  ;;  %1530 = vmatprep.subr.bf16.mxu0 %v4488_v4  ;;  %v2027_v4 = vrot.slane %v2025_v57, 4 }
  0xbf   : > { %1574 = vmatpush1.bf16.msra.mxu1 %v4489_v5  ;;  %1531 = vmatpush1.bf16.msra.mxu0 %v4486_v12  ;;  %v2035_v5 = vrot.slane %v2033_v61, 4  ;;  %v2028_v12 = vor.u32 %v2027_v4, %v2024_v3  ;;  %v5621_v61 = vld [vmem:[%s4872_s9 + $0x18] sm:$0x11] }
  0xc0   : > { %1575 = vmatprep.subr.bf16.mxu1 %v4760_v1  ;;  %1532 = vmatprep.subr.bf16.mxu0 %v4492_v13  ;;  %v4595_v3 = vld [vmem:[%s6077_s1 + $0x6b0] ss:$12 sps:$4 sm:$0xff]  }
  0xc1   : > { %v2036_v13 = vor.u32 %v2035_v5, %v2032_v55  ;;  %v4592_v5 = vld [vmem:[%s6077_s1 + $0x6a8] ss:$12 sps:$4 sm:$0xff]  }
  0xc3   : > { %1576 = vmatpush1.bf16.msra.mxu1 %v4493_v15  ;;  %1533 = vmatpush1.bf16.msra.mxu0 %v4490_v18  ;;  %v4554_v15 = vld [vmem:[%s6077_s1 + $0x5bc] ss:$12 sps:$4 sm:$0xff]   ;;  %v2037_v17 = vsel %vm2003_vm5, %v2028_v12, %v2036_v13  ;;  %v4552_v18 = vld [vmem:[%s6077_s1 + $0x5b8] ss:$12 sps:$4 sm:$0xff]   ;;  %v4598_v12 = vld [vmem:[%s6077_s1 + $0x6c0] ss:$12 sps:$4 sm:$0xff]  }
  0xc4   : > { %1901 = vmatprep.subr.bf16.mxu1 %v4760_v1  ;;  %1858 = vmatprep.subr.bf16.mxu0 %v4500_v19  ;;  %v4558_v19 = vld [vmem:[%s6077_s1 + $0x5d4] ss:$12 sps:$4 sm:$0xff]   ;;  %v4604_v13 = vld [vmem:[%s6077_s1 + $0x6dc] ss:$12 sps:$4 sm:$0xff]  }
  0xc6   : > { %1586 = vmatmul.mubr.bf16.vlgmr.msra.gmra.mrb[12].mxu1 %v1296_v26  ;;  %1543 = vmatmul.mubr.bf16.vlgmr.msra.gmra.mrb[0].mxu0 %v1296_v26  ;;  %v4562_v26 = vld [vmem:[%s6077_s1 + $0x5ec] ss:$12 sps:$4 sm:$0xff]  }
  0xc7   : > { %1902 = vmatpush1.bf16.msra.mxu1 %v4501_v22  ;;  %1859 = vmatpush1.bf16.msra.mxu0 %v4498_v23  ;;  %v4563_v22 = vld [vmem:[%s6077_s1 + $0x5f0] ss:$12 sps:$4 sm:$0xff]   ;;  %v4560_v23 = vld [vmem:[%s6077_s1 + $0x5e8] ss:$12 sps:$4 sm:$0xff]  }
  0xc8   : > { %1903 = vmatprep.subr.bf16.mxu1 %v4760_v1  ;;  %1860 = vmatprep.subr.bf16.mxu0 %v4504_v6  ;;  %v4566_v6 = vld [vmem:[%s6077_s1 + $0x604] ss:$12 sps:$4 sm:$0xff]  }
  0xc9   : > { %3896 = vmatprep.mubr.msk.bf16.mxu1 %vm503_vm1, %v1661_v24  ;;  %3895 = vmatprep.mubr.msk.bf16.mxu0 %vm503_vm1, %v1661_v24  ;;  %v4567_v24 = vld [vmem:[%s6077_s1 + $0x608] ss:$12 sps:$4 sm:$0xff]  }
  0xcb   : > { %1904 = vmatpush1.bf16.msra.mxu1 %v4505_v25  ;;  %1861 = vmatpush1.bf16.msra.mxu0 %v4502_v27  ;;  %v4564_v25 = vld [vmem:[%s6077_s1 + $0x600] ss:$12 sps:$4 sm:$0xff]   ;;  %v4570_v27 = vld [vmem:[%s6077_s1 + $0x61c] ss:$12 sps:$4 sm:$0xff]  }
  0xcc   : > { %1905 = vmatprep.subr.bf16.mxu1 %v4760_v1  ;;  %1862 = vmatprep.subr.bf16.mxu0 %v4508_v28  ;;  %v4571_v28 = vld [vmem:[%s6077_s1 + $0x620] ss:$12 sps:$4 sm:$0xff]  }
  0xcf   : > { %1906 = vmatpush1.bf16.msra.mxu1 %v4509_v29  ;;  %1863 = vmatpush1.bf16.msra.mxu0 %v4506_v42  ;;  %v4568_v29 = vld [vmem:[%s6077_s1 + $0x618] ss:$12 sps:$4 sm:$0xff]  }
  0xd0   : > { %1907 = vmatprep.subr.bf16.mxu1 %v4760_v1  ;;  %1864 = vmatprep.subr.bf16.mxu0 %v4512_v31  ;;  %v4574_v31 = vld [vmem:[%s6077_s1 + $0x634] ss:$12 sps:$4 sm:$0xff]  }
  0xd3   : > { %1908 = vmatpush1.bf16.msra.mxu1 %v4513_v32  ;;  %1865 = vmatpush1.bf16.msra.mxu0 %v4510_v33 }
  0xd4   : > { %1909 = vmatprep.subr.bf16.mxu1 %v4760_v1  ;;  %1866 = vmatprep.subr.bf16.mxu0 %v4516_v34  ;;  %v4575_v34 = vld [vmem:[%s6077_s1 + $0x638] ss:$12 sps:$4 sm:$0xff]  }
  0xd7   : > { %1910 = vmatpush1.bf16.msra.mxu1 %v4517_v37  ;;  %1867 = vmatpush1.bf16.msra.mxu0 %v4514_v36  ;;  %v4572_v37 = vld [vmem:[%s6077_s1 + $0x630] ss:$12 sps:$4 sm:$0xff]  }
  0xd8   : > { %1911 = vmatprep.subr.bf16.mxu1 %v4760_v1  ;;  %1868 = vmatprep.subr.bf16.mxu0 %v4520_v38  ;;  %v4578_v38 = vld [vmem:[%s6077_s1 + $0x64c] ss:$12 sps:$4 sm:$0xff]  }
  0xdb   : > { %1912 = vmatpush1.bf16.msra.mxu1 %v4521_v39  ;;  %1869 = vmatpush1.bf16.msra.mxu0 %v4518_v40  ;;  %v4579_v39 = vld [vmem:[%s6077_s1 + $0x650] ss:$12 sps:$4 sm:$0xff]   ;;  %v4576_v40 = vld [vmem:[%s6077_s1 + $0x648] ss:$12 sps:$4 sm:$0xff]  }
  0xdc   : > { %1913 = vmatprep.subr.bf16.mxu1 %v4760_v1  ;;  %1870 = vmatprep.subr.bf16.mxu0 %v4524_v41  ;;  %v4582_v41 = vld [vmem:[%s6077_s1 + $0x664] ss:$12 sps:$4 sm:$0xff]  }
  0xdf   : > { %1914 = vmatpush1.bf16.msra.mxu1 %v4525_v30  ;;  %1871 = vmatpush1.bf16.msra.mxu0 %v4522_v43  ;;  %v4583_v30 = vld [vmem:[%s6077_s1 + $0x668] ss:$12 sps:$4 sm:$0xff]   ;;  %v3945_v43 = vcombine.low %v5453_v48, %v5453_v48 }
  0xe0   : > { %1915 = vmatprep.subr.bf16.mxu1 %v4760_v1  ;;  %1872 = vmatprep.subr.bf16.mxu0 %v4528_v44  ;;  %v4580_v44 = vld [vmem:[%s6077_s1 + $0x660] ss:$12 sps:$4 sm:$0xff]  }
  0xe3   : > { %1916 = vmatpush1.bf16.msra.mxu1 %v4529_v45  ;;  %1873 = vmatpush1.bf16.msra.mxu0 %v4526_v35  ;;  %v4586_v45 = vld [vmem:[%s6077_s1 + $0x67c] ss:$12 sps:$4 sm:$0xff]   ;;  %v2005_v35 = vshrl.u32 %v5481_v62, 16 }
  0xe4   : > { %1917 = vmatprep.subr.bf16.mxu1 %v4760_v1  ;;  %1874 = vmatprep.subr.bf16.mxu0 %v4532_v46  ;;  %v2008_v46 = vshll.u32 %v5481_v62, 16  ;;  %v4588_v62 = vld [vmem:[%s6077_s1 + $0x690] ss:$12 sps:$4 sm:$0xff]  }
  0xe6   : > { %v2010_v56 = vrot.slane %v2008_v46, 4  ;;  %v4634_v46 = vld [vmem:[%s6077_s1 + $0x798] ss:$12 sps:$4 sm:$0xff]  }
  0xe7   : > { %1918 = vmatpush1.bf16.msra.mxu1 %v4533_v47  ;;  %1875 = vmatpush1.bf16.msra.mxu0 %v4530_v49  ;;  %v4587_v47 = vld [vmem:[%s6077_s1 + $0x680] ss:$12 sps:$4 sm:$0xff]   ;;  %v2013_v49 = vshrl.u32 %v3945_v43, 16 }
  0xe8   : > { %1919 = vmatprep.subr.bf16.mxu1 %v4760_v1  ;;  %1876 = vmatprep.subr.bf16.mxu0 %v4536_v50  ;;  %v2016_v50 = vshll.u32 %v3945_v43, 16  ;;  %v4630_v43 = vld [vmem:[%s6077_s1 + $0x780] ss:$12 sps:$4 sm:$0xff]  }
  0xe9   : > { %v2015_v57 = vrot.slane %v2013_v49, 3 }
  0xeb   : > { %1920 = vmatpush1.bf16.msra.mxu1 %v4537_v51  ;;  %1877 = vmatpush1.bf16.msra.mxu0 %v4534_v52  ;;  %v4584_v51 = vld [vmem:[%s6077_s1 + $0x678] ss:$12 sps:$4 sm:$0xff]   ;;  %v4590_v52 = vld [vmem:[%s6077_s1 + $0x694] ss:$12 sps:$4 sm:$0xff]  }
  0xec   : > { %1921 = vmatprep.subr.bf16.mxu1 %v4760_v1  ;;  %1878 = vmatprep.subr.bf16.mxu0 %v4540_v54  ;;  %v2007_v54 = vrot.slane %v2005_v35, 3  ;;  %v4637_v35 = vld [vmem:[%s6077_s1 + $0x7a0] ss:$12 sps:$4 sm:$0xff]  }
  0xee   : > { %v2011_v4 = vor.u32 %v2010_v56, %v2007_v54  ;;  %v5773_v54 = vcombine.low %v5618_v60, %v5453_v48  ;;  %v4035_v56 = vcombine.low %v5621_v61, %v5621_v61 }
  0xef   : > { %1922 = vmatpush1.bf16.msra.mxu1 %v4541_v59  ;;  %1879 = vmatpush1.bf16.msra.mxu0 %v4538_v63  ;;  %v2018_v59 = vrot.slane %v2016_v50, 4  ;;  %v4594_v63 = vld [vmem:[%s6077_s1 + $0x6ac] ss:$12 sps:$4 sm:$0xff]  }
  0xf0   : > { %1923 = vmatprep.subr.bf16.mxu1 %v4760_v1  ;;  %1880 = vmatprep.subr.bf16.mxu0 %v4544_v0  ;;  %v5632_v0 = vcombine.high %v5618_v60, %v5453_v48 }
  0xf1   : > { %v2019_v55 = vor.u32 %v2018_v59, %v2015_v57  ;;  %v4638_v57 = vld [vmem:[%s6077_s1 + $0x7b0] ss:$12 sps:$4 sm:$0xff]   ;;  %v4644_v59 = vld [vmem:[%s6077_s1 + $0x7cc] ss:$12 sps:$4 sm:$0xff]  }
  0xf2   : > { %v2392_v8 = vrot.slane %v5632_v0, 1  ;;  %v2755_v49 = vshrl.u32 %v5632_v0, 16  ;;  %v2758_v50 = vshll.u32 %v5632_v0, 16 }
  0xf3   : > { %1924 = vmatpush1.bf16.msra.mxu1 %v4545_v2  ;;  %1881 = vmatpush1.bf16.msra.mxu0 %v4542_v9  ;;  %v4036_v2 = vcombine.high %v5621_v61, %v5621_v61  ;;  %v4645_v61 = vld [vmem:[%s6077_s1 + $0x7d0] ss:$12 sps:$4 sm:$0xff]  }
  0xf4   : > { %2277 = vmatprep.subr.bf16.mxu1 %v4760_v1  ;;  %2234 = vmatprep.subr.bf16.mxu0 %v4550_v10  ;;  %v2020_v10 = vsel %vm2003_vm5, %v2011_v4, %v2019_v55  ;;  %v4642_v4 = vld [vmem:[%s6077_s1 + $0x7c8] ss:$12 sps:$4 sm:$0xff]   ;;  %v4652_v55 = vld [vmem:[%s6077_s1 + $0x7e4] ss:$12 sps:$4 sm:$0xff]  }
  0xf5   : > { %v2393_v9 = vrot.slane %v4036_v2, 1  ;;  %v2389_v2 = vrot.slane %v5773_v54, 1 }
  0xf6   : > { %1934 = vmatmul.mubr.bf16.vlgmr.msra.gmra.mrb[16].mxu1 %v1658_v58  ;;  %1891 = vmatmul.mubr.bf16.vlgmr.msra.gmra.mrb[0].mxu0 %v1658_v58 }
  0xf7   : > { %2278 = vmatpush1.bf16.msra.mxu1 %v4551_v11  ;;  %2235 = vmatpush1.bf16.msra.mxu0 %v4548_v14  ;;  %v4601_v11 = vld [vmem:[%s6077_s1 + $0x6c8] ss:$12 sps:$4 sm:$0xff]   ;;  %v2394_v58 = vsel %vm925_vm2, %v2392_v8, %v2393_v9  ;;  %v4605_v14 = vld [vmem:[%s6077_s1 + $0x6e0] ss:$12 sps:$4 sm:$0xff]  }
  0xf8   : > { %2279 = vmatprep.subr.bf16.mxu1 %v4760_v1  ;;  %2236 = vmatprep.subr.bf16.mxu0 %v4554_v15  ;;  %v4602_v15 = vld [vmem:[%s6077_s1 + $0x6d8] ss:$12 sps:$4 sm:$0xff]   ;;  %v4653_v9 = vld [vmem:[%s6077_s1 + $0x7e8] ss:$12 sps:$4 sm:$0xff]  }
  0xf9   : > { %3984 = vmatprep.mubr.msk.bf16.mxu1 %vm503_vm1, %v2037_v17  ;;  %3983 = vmatprep.mubr.msk.bf16.mxu0 %vm503_vm1, %v2037_v17  ;;  %v4609_v17 = vld [vmem:[%s6077_s1 + $0x6f8] ss:$12 sps:$4 sm:$0xff]  }
  0xfb   : > { %2280 = vmatpush1.bf16.msra.mxu1 %v4555_v16  ;;  %2237 = vmatpush1.bf16.msra.mxu0 %v4552_v18  ;;  %v4608_v16 = vld [vmem:[%s6077_s1 + $0x6f4] ss:$12 sps:$4 sm:$0xff]   ;;  %v4606_v18 = vld [vmem:[%s6077_s1 + $0x6f0] ss:$12 sps:$4 sm:$0xff]  }
  0xfc   : > { %2281 = vmatprep.subr.bf16.mxu1 %v4760_v1  ;;  %2238 = vmatprep.subr.bf16.mxu0 %v4558_v19  ;;  %v4612_v19 = vld [vmem:[%s6077_s1 + $0x70c] ss:$12 sps:$4 sm:$0xff]  }
  0xff   : > { %2282 = vmatpush1.bf16.msra.mxu1 %v4559_v20  ;;  %2239 = vmatpush1.bf16.msra.mxu0 %v4556_v21  ;;  %v4613_v20 = vld [vmem:[%s6077_s1 + $0x710] ss:$12 sps:$4 sm:$0xff]   ;;  %v4610_v21 = vld [vmem:[%s6077_s1 + $0x708] ss:$12 sps:$4 sm:$0xff]  }
 0x100   : > { %2283 = vmatprep.subr.bf16.mxu1 %v4760_v1  ;;  %2240 = vmatprep.subr.bf16.mxu0 %v4562_v26  ;;  %v4616_v26 = vld [vmem:[%s6077_s1 + $0x724] ss:$12 sps:$4 sm:$0xff]  }
 0x103   : > { %2284 = vmatpush1.bf16.msra.mxu1 %v4563_v22  ;;  %2241 = vmatpush1.bf16.msra.mxu0 %v4560_v23  ;;  %v4617_v22 = vld [vmem:[%s6077_s1 + $0x728] ss:$12 sps:$4 sm:$0xff]   ;;  %v4614_v23 = vld [vmem:[%s6077_s1 + $0x720] ss:$12 sps:$4 sm:$0xff]  }
 0x104   : > { %2285 = vmatprep.subr.bf16.mxu1 %v4760_v1  ;;  %2242 = vmatprep.subr.bf16.mxu0 %v4566_v6  ;;  %v4620_v6 = vld [vmem:[%s6077_s1 + $0x73c] ss:$12 sps:$4 sm:$0xff]  }
 0x107   : > { %2286 = vmatpush1.bf16.msra.mxu1 %v4567_v24  ;;  %2243 = vmatpush1.bf16.msra.mxu0 %v4564_v25  ;;  %v4621_v24 = vld [vmem:[%s6077_s1 + $0x740] ss:$12 sps:$4 sm:$0xff]   ;;  %v4618_v25 = vld [vmem:[%s6077_s1 + $0x738] ss:$12 sps:$4 sm:$0xff]  }
 0x108   : > { %2287 = vmatprep.subr.bf16.mxu1 %v4760_v1  ;;  %2244 = vmatprep.subr.bf16.mxu0 %v4570_v27 }
 0x109   : > { %v5563_v42 = vpop.f32.mrb[0].mxu1 }
 0x10a   : > { %v586_v32 = vpop.f32.mrb[1].mxu1 }
 0x10b   : > { %v5568_v33 = vpop.f32.mrb[2].mxu1  ;;  %2288 = vmatpush1.bf16.msra.mxu1 %v4571_v28  ;;  %2245 = vmatpush1.bf16.msra.mxu0 %v4568_v29  ;;  %v4624_v28 = vld [vmem:[%s6077_s1 + $0x754] ss:$12 sps:$4 sm:$0xff]  }
 0x10c   : > { %v589_v36 = vpop.f32.mrb[3].mxu1  ;;  %2289 = vmatprep.subr.bf16.mxu1 %v4760_v1  ;;  %2246 = vmatprep.subr.bf16.mxu0 %v4574_v31 }
 0x10f   : > { %2290 = vmatpush1.bf16.msra.mxu1 %v4575_v34  ;;  %2247 = vmatpush1.bf16.msra.mxu0 %v4572_v37  ;;  %v4625_v34 = vld [vmem:[%s6077_s1 + $0x758] ss:$12 sps:$4 sm:$0xff]  }
 0x110   : > { %2291 = vmatprep.subr.bf16.mxu1 %v4760_v1  ;;  %2248 = vmatprep.subr.bf16.mxu0 %v4578_v38  ;;  %v4628_v38 = vld [vmem:[%s6077_s1 + $0x76c] ss:$12 sps:$4 sm:$0xff]  }
 0x113   : > { %2292 = vmatpush1.bf16.msra.mxu1 %v4579_v39  ;;  %2249 = vmatpush1.bf16.msra.mxu0 %v4576_v40  ;;  %v4626_v39 = vld [vmem:[%s6077_s1 + $0x768] ss:$12 sps:$4 sm:$0xff]   ;;  %v4632_v40 = vld [vmem:[%s6077_s1 + $0x784] ss:$12 sps:$4 sm:$0xff]  }
 0x114   : > { %2293 = vmatprep.subr.bf16.mxu1 %v4760_v1  ;;  %2250 = vmatprep.subr.bf16.mxu0 %v4582_v41  ;;  %v4633_v41 = vld [vmem:[%s6077_s1 + $0x788] ss:$12 sps:$4 sm:$0xff]  }
 0x117   : > { %2294 = vmatpush1.bf16.msra.mxu1 %v4583_v30  ;;  %2251 = vmatpush1.bf16.msra.mxu0 %v4580_v44  ;;  %v5741_v30 = vld [vmem:[%s4872_s9 + $0x18] sm:$0x33] }
 0x118   : > { %2295 = vmatprep.subr.bf16.mxu1 %v4760_v1  ;;  %2252 = vmatprep.subr.bf16.mxu0 %v4586_v45  ;;  %v4636_v44 = vld [vmem:[%s6077_s1 + $0x79c] ss:$12 sps:$4 sm:$0xff]   ;;  %v5752_v45 = vcombine.high %v5741_v30, %v5741_v30 }
 0x11b   : > { %2296 = vmatpush1.bf16.msra.mxu1 %v4587_v47  ;;  %2253 = vmatpush1.bf16.msra.mxu0 %v4584_v51  ;;  %v4640_v47 = vld [vmem:[%s6077_s1 + $0x7b4] ss:$12 sps:$4 sm:$0xff]   ;;  %v2763_v51 = vshrl.u32 %v5752_v45, 16 }
 0x11c   : > { %2297 = vmatprep.subr.bf16.mxu1 %v4760_v1  ;;  %2254 = vmatprep.subr.bf16.mxu0 %v4590_v52  ;;  %v2766_v52 = vshll.u32 %v5752_v45, 16 }
 0x11d   : > { %v2765_v0 = vrot.slane %v2763_v51, 1  ;;  %v4693_v51 = vld [vmem:[%s6077_s1 + $0x8d8] ss:$12 sps:$4 sm:$0xff]  }
 0x11e   : > { %v2768_v60 = vrot.slane %v2766_v52, 2 }
 0x11f   : > { %2298 = vmatpush1.bf16.msra.mxu1 %v4591_v53  ;;  %2255 = vmatpush1.bf16.msra.mxu0 %v4588_v62  ;;  %v4641_v53 = vld [vmem:[%s6077_s1 + $0x7b8] ss:$12 sps:$4 sm:$0xff]   ;;  %v2757_v62 = vrot.slane %v2755_v49, 1 }
 0x120   : > { %2299 = vmatprep.subr.bf16.mxu1 %v4760_v1  ;;  %2256 = vmatprep.subr.bf16.mxu0 %v4594_v63  ;;  %v2760_v63 = vrot.slane %v2758_v50, 2  ;;  %v4686_v49 = vld [vmem:[%s6077_s1 + $0x8b8] ss:$12 sps:$4 sm:$0xff]   ;;  %v4692_v50 = vld [vmem:[%s6077_s1 + $0x8d4] ss:$12 sps:$4 sm:$0xff]  }
 0x123   : > { %2300 = vmatpush1.bf16.msra.mxu1 %v4595_v3  ;;  %2257 = vmatpush1.bf16.msra.mxu0 %v4592_v5  ;;  %v2390_v3 = vrot.slane %v4035_v56, 1  ;;  %v2761_v5 = vor.u32 %v2760_v63, %v2757_v62  ;;  %v4696_v62 = vld [vmem:[%s6077_s1 + $0x8ec] ss:$12 sps:$4 sm:$0xff]  }
 0x124   : > { %2634 = vmatprep.subr.bf16.mxu1 %v4760_v1  ;;  %2591 = vmatprep.subr.bf16.mxu0 %v4600_v7  ;;  %v2769_v7 = vor.u32 %v2768_v60, %v2765_v0  ;;  %v4697_v0 = vld [vmem:[%s6077_s1 + $0x8f0] ss:$12 sps:$4 sm:$0xff]  }
 0x125   : > { %v2391_v8 = vsel %vm925_vm2, %v2389_v2, %v2390_v3  ;;  %v4694_v2 = vld [vmem:[%s6077_s1 + $0x8e8] ss:$12 sps:$4 sm:$0xff]   ;;  %v4702_v3 = vld [vmem:[%s6077_s1 + $0x904] ss:$12 sps:$4 sm:$0xff]  }
 0x126   : > { %2310 = vmatmul.mubr.bf16.vlgmr.msra.gmra.mrb[20].mxu1 %v2020_v10  ;;  %2267 = vmatmul.mubr.bf16.vlgmr.msra.gmra.mrb[0].mxu0 %v2020_v10  ;;  %v4650_v10 = vld [vmem:[%s6077_s1 + $0x7e0] ss:$12 sps:$4 sm:$0xff]  }
 0x127   : > { %2635 = vmatpush1.bf16.msra.mxu1 %v4601_v11  ;;  %2592 = vmatpush1.bf16.msra.mxu0 %v4598_v12  ;;  %v4656_v11 = vld [vmem:[%s6077_s1 + $0x7fc] ss:$12 sps:$4 sm:$0xff]   ;;  %v2770_v12 = vsel %vm2736_vm6, %v2761_v5, %v2769_v7  ;;  %v4700_v7 = vld [vmem:[%s6077_s1 + $0x900] ss:$12 sps:$4 sm:$0xff]  }
 0x128   : > { %2636 = vmatprep.subr.bf16.mxu1 %v4760_v1  ;;  %2593 = vmatprep.subr.bf16.mxu0 %v4604_v13  ;;  %v4657_v13 = vld [vmem:[%s6077_s1 + $0x800] ss:$12 sps:$4 sm:$0xff]   ;;  %v4703_v5 = vld [vmem:[%s6077_s1 + $0x908] ss:$12 sps:$4 sm:$0xff]  }
 0x129   : > { %4074 = vmatprep.mubr.msk.bf16.mxu1 %vm503_vm1, %v2394_v58  ;;  %4073 = vmatprep.mubr.msk.bf16.mxu0 %vm503_vm1, %v2394_v58  ;;  %v4654_v58 = vld [vmem:[%s6077_s1 + $0x7f8] ss:$12 sps:$4 sm:$0xff]  }
 0x12b   : > { %2637 = vmatpush1.bf16.msra.mxu1 %v4605_v14  ;;  %2594 = vmatpush1.bf16.msra.mxu0 %v4602_v15  ;;  %v4660_v14 = vld [vmem:[%s6077_s1 + $0x814] ss:$12 sps:$4 sm:$0xff]   ;;  %v4661_v15 = vld [vmem:[%s6077_s1 + $0x818] ss:$12 sps:$4 sm:$0xff]  }
 0x12c   : > { %2638 = vmatprep.subr.bf16.mxu1 %v4760_v1  ;;  %2595 = vmatprep.subr.bf16.mxu0 %v4608_v16  ;;  %v4658_v16 = vld [vmem:[%s6077_s1 + $0x810] ss:$12 sps:$4 sm:$0xff]  }
 0x12f   : > { %2639 = vmatpush1.bf16.msra.mxu1 %v4609_v17  ;;  %2596 = vmatpush1.bf16.msra.mxu0 %v4606_v18  ;;  %v4664_v17 = vld [vmem:[%s6077_s1 + $0x82c] ss:$12 sps:$4 sm:$0xff]   ;;  %v4665_v18 = vld [vmem:[%s6077_s1 + $0x830] ss:$12 sps:$4 sm:$0xff]  }
 0x130   : > { %2640 = vmatprep.subr.bf16.mxu1 %v4760_v1  ;;  %2597 = vmatprep.subr.bf16.mxu0 %v4612_v19  ;;  %v4662_v19 = vld [vmem:[%s6077_s1 + $0x828] ss:$12 sps:$4 sm:$0xff]  }
 0x133   : > { %2641 = vmatpush1.bf16.msra.mxu1 %v4613_v20  ;;  %2598 = vmatpush1.bf16.msra.mxu0 %v4610_v21  ;;  %v4668_v20 = vld [vmem:[%s6077_s1 + $0x844] ss:$12 sps:$4 sm:$0xff]   ;;  %v4669_v21 = vld [vmem:[%s6077_s1 + $0x848] ss:$12 sps:$4 sm:$0xff]  }
 0x134   : > { %2642 = vmatprep.subr.bf16.mxu1 %v4760_v1  ;;  %2599 = vmatprep.subr.bf16.mxu0 %v4616_v26  ;;  %v4666_v26 = vld [vmem:[%s6077_s1 + $0x840] ss:$12 sps:$4 sm:$0xff]  }
 0x137   : > { %2643 = vmatpush1.bf16.msra.mxu1 %v4617_v22  ;;  %2600 = vmatpush1.bf16.msra.mxu0 %v4614_v23  ;;  %v4672_v22 = vld [vmem:[%s6077_s1 + $0x85c] ss:$12 sps:$4 sm:$0xff]   ;;  %v4673_v23 = vld [vmem:[%s6077_s1 + $0x860] ss:$12 sps:$4 sm:$0xff]  }
 0x138   : > { %2644 = vmatprep.subr.bf16.mxu1 %v4760_v1  ;;  %2601 = vmatprep.subr.bf16.mxu0 %v4620_v6  ;;  %v4670_v6 = vld [vmem:[%s6077_s1 + $0x858] ss:$12 sps:$4 sm:$0xff]  }
 0x139   : > { %v863_v27 = vpop.f32.mrb[4].mxu1 }
 0x13a   : > { %v5712_v29 = vadd.f32 %v863_v27, %v5563_v42  ;;  %v865_v31 = vpop.f32.mrb[5].mxu1  ;;  %v4622_v42 = vld [vmem:[%s6077_s1 + $0x750] ss:$12 sps:$4 sm:$0xff]  }
 0x13b   : > { %v866_v32 = vpop.f32.mrb[6].mxu1  ;;  %2645 = vmatpush1.bf16.msra.mxu1 %v4621_v24  ;;  %2602 = vmatpush1.bf16.msra.mxu0 %v4618_v25  ;;  %v4676_v25 = vld [vmem:[%s6077_s1 + $0x874] ss:$12 sps:$4 sm:$0xff]  }
 0x13c   : > { %v5718_v36 = vadd.f32 %v866_v32, %v5568_v33  ;;  %v868_v37 = vpop.f32.mrb[7].mxu1  ;;  %2646 = vmatprep.subr.bf16.mxu1 %v4760_v1  ;;  %2603 = vmatprep.subr.bf16.mxu0 %v4624_v28  ;;  %v4629_v33 = vld [vmem:[%s6077_s1 + $0x770] ss:$12 sps:$4 sm:$0xff]   ;;  %v4677_v32 = vld [vmem:[%s6077_s1 + $0x878] ss:$12 sps:$4 sm:$0xff]  }
 0x13f   : > { %2647 = vmatpush1.bf16.msra.mxu1 %v4625_v34  ;;  %2604 = vmatpush1.bf16.msra.mxu0 %v4622_v42  ;;  %v4674_v42 = vld [vmem:[%s6077_s1 + $0x870] ss:$12 sps:$4 sm:$0xff]  }
 0x140   : > { %2648 = vmatprep.subr.bf16.mxu1 %v4760_v1  ;;  %2605 = vmatprep.subr.bf16.mxu0 %v4628_v38  ;;  %v4681_v38 = vld [vmem:[%s6077_s1 + $0x890] ss:$12 sps:$4 sm:$0xff]  }
 0x143   : > { %2649 = vmatpush1.bf16.msra.mxu1 %v4629_v33  ;;  %2606 = vmatpush1.bf16.msra.mxu0 %v4626_v39  ;;  %v4684_v33 = vld [vmem:[%s6077_s1 + $0x8a4] ss:$12 sps:$4 sm:$0xff]   ;;  %v4685_v39 = vld [vmem:[%s6077_s1 + $0x8a8] ss:$12 sps:$4 sm:$0xff]  }
 0x144   : > { %2650 = vmatprep.subr.bf16.mxu1 %v4760_v1  ;;  %2607 = vmatprep.subr.bf16.mxu0 %v4632_v40  ;;  %v5890_v40 = vcombine.low %v5741_v30, %v5741_v30  ;;  %v2738_v30 = vshrl.u32 %v5773_v54, 16 }
 0x146   : > { %v2740_v52 = vrot.slane %v2738_v30, 1 }
 0x147   : > { %2651 = vmatpush1.bf16.msra.mxu1 %v4633_v41  ;;  %2608 = vmatpush1.bf16.msra.mxu0 %v4630_v43  ;;  %v4682_v41 = vld [vmem:[%s6077_s1 + $0x8a0] ss:$12 sps:$4 sm:$0xff]   ;;  %v4688_v43 = vld [vmem:[%s6077_s1 + $0x8bc] ss:$12 sps:$4 sm:$0xff]  }
 0x148   : > { %2652 = vmatprep.subr.bf16.mxu1 %v4760_v1  ;;  %2609 = vmatprep.subr.bf16.mxu0 %v4636_v44  ;;  %v4689_v44 = vld [vmem:[%s6077_s1 + $0x8c0] ss:$12 sps:$4 sm:$0xff]  }
 0x14b   : > { %2653 = vmatpush1.bf16.msra.mxu1 %v4637_v35  ;;  %2610 = vmatpush1.bf16.msra.mxu0 %v4634_v46  ;;  %v2741_v35 = vshll.u32 %v5773_v54, 16  ;;  %v2746_v46 = vshrl.u32 %v5890_v40, 16 }
 0x14c   : > { %2654 = vmatprep.subr.bf16.mxu1 %v4760_v1  ;;  %2611 = vmatprep.subr.bf16.mxu0 %v4640_v47  ;;  %v2749_v47 = vshll.u32 %v5890_v40, 16 }
 0x14d   : > { %v2748_v54 = vrot.slane %v2746_v46, 1  ;;  %v4746_v46 = vld [vmem:[%s6077_s1 + $0xa0c] ss:$12 sps:$4 sm:$0xff]  }
 0x14e   : > { %v2751_v56 = vrot.slane %v2749_v47, 2  ;;  %v4747_v47 = vld [vmem:[%s6077_s1 + $0xa10] ss:$12 sps:$4 sm:$0xff]  }
 0x14f   : > { %2655 = vmatpush1.bf16.msra.mxu1 %v4641_v53  ;;  %2612 = vmatpush1.bf16.msra.mxu0 %v4638_v57  ;;  %v2743_v53 = vrot.slane %v2741_v35, 2  ;;  %v5917_v57 = vld [vmem:[%s4872_s9 + $0x8] sm:$0xcc]  ;;  %v4740_v35 = vld [vmem:[%s6077_s1 + $0x9f0] ss:$12 sps:$4 sm:$0xff]  }
 0x150   : > { %2656 = vmatprep.subr.bf16.mxu1 %v4760_v1  ;;  %2613 = vmatprep.subr.bf16.mxu0 %v4644_v59  ;;  %v4690_v59 = vld [vmem:[%s6077_s1 + $0x8d0] ss:$12 sps:$4 sm:$0xff]   ;;  %v4212_v63 = vcombine.high %v5917_v57, %v5453_v48 }
 0x151   : > { %v2744_v60 = vor.u32 %v2743_v53, %v2740_v52 }
 0x152   : > { %v3116_v48 = vrot.slane %v4212_v63, 2 }
 0x153   : > { %2657 = vmatpush1.bf16.msra.mxu1 %v4645_v61  ;;  %2614 = vmatpush1.bf16.msra.mxu0 %v4642_v4  ;;  %v2752_v61 = vor.u32 %v2751_v56, %v2748_v54  ;;  %v3117_v4 = vrot.slane %v5752_v45, 2  ;;  %v4706_v45 = vld [vmem:[%s6077_s1 + $0x91c] ss:$12 sps:$4 sm:$0xff]  }
 0x154   : > { %3010 = vmatprep.subr.bf16.mxu1 %v4760_v1  ;;  %2967 = vmatprep.subr.bf16.mxu0 %v4652_v55 }
 0x155   : > { %v2753_v55 = vsel %vm2736_vm6, %v2744_v60, %v2752_v61 }
 0x156   : > { %2667 = vmatmul.mubr.bf16.vlgmr.msra.gmra.mrb[24].mxu1 %v2391_v8  ;;  %2624 = vmatmul.mubr.bf16.vlgmr.msra.gmra.mrb[0].mxu0 %v2391_v8  ;;  %v3118_v8 = vsel %vm3112_vm7, %v3116_v48, %v3117_v4 }
 0x157   : > { %3011 = vmatpush1.bf16.msra.mxu1 %v4653_v9  ;;  %2968 = vmatpush1.bf16.msra.mxu0 %v4650_v10  ;;  %v4707_v9 = vld [vmem:[%s6077_s1 + $0x920] ss:$12 sps:$4 sm:$0xff]   ;;  %v4704_v10 = vld [vmem:[%s6077_s1 + $0x918] ss:$12 sps:$4 sm:$0xff]  }
 0x158   : > { %3012 = vmatprep.subr.bf16.mxu1 %v4760_v1  ;;  %2969 = vmatprep.subr.bf16.mxu0 %v4656_v11  ;;  %v4710_v11 = vld [vmem:[%s6077_s1 + $0x934] ss:$12 sps:$4 sm:$0xff]  }
 0x159   : > { %4162 = vmatprep.mubr.msk.bf16.mxu1 %vm503_vm1, %v2770_v12  ;;  %4161 = vmatprep.mubr.msk.bf16.mxu0 %vm503_vm1, %v2770_v12  ;;  %v4711_v12 = vld [vmem:[%s6077_s1 + $0x938] ss:$12 sps:$4 sm:$0xff]  }
 0x15b   : > { %3013 = vmatpush1.bf16.msra.mxu1 %v4657_v13  ;;  %2970 = vmatpush1.bf16.msra.mxu0 %v4654_v58  ;;  %v4708_v13 = vld [vmem:[%s6077_s1 + $0x930] ss:$12 sps:$4 sm:$0xff]   ;;  %v4714_v58 = vld [vmem:[%s6077_s1 + $0x94c] ss:$12 sps:$4 sm:$0xff]  }
 0x15c   : > { %3014 = vmatprep.subr.bf16.mxu1 %v4760_v1  ;;  %2971 = vmatprep.subr.bf16.mxu0 %v4660_v14  ;;  %v4715_v14 = vld [vmem:[%s6077_s1 + $0x950] ss:$12 sps:$4 sm:$0xff]  }
 0x15f   : > { %3015 = vmatpush1.bf16.msra.mxu1 %v4661_v15  ;;  %2972 = vmatpush1.bf16.msra.mxu0 %v4658_v16  ;;  %v4712_v15 = vld [vmem:[%s6077_s1 + $0x948] ss:$12 sps:$4 sm:$0xff]   ;;  %v4718_v16 = vld [vmem:[%s6077_s1 + $0x964] ss:$12 sps:$4 sm:$0xff]  }
 0x160   : > { %3016 = vmatprep.subr.bf16.mxu1 %v4760_v1  ;;  %2973 = vmatprep.subr.bf16.mxu0 %v4664_v17  ;;  %v4719_v17 = vld [vmem:[%s6077_s1 + $0x968] ss:$12 sps:$4 sm:$0xff]  }
 0x163   : > { %3017 = vmatpush1.bf16.msra.mxu1 %v4665_v18  ;;  %2974 = vmatpush1.bf16.msra.mxu0 %v4662_v19  ;;  %v4716_v18 = vld [vmem:[%s6077_s1 + $0x960] ss:$12 sps:$4 sm:$0xff]   ;;  %v4722_v19 = vld [vmem:[%s6077_s1 + $0x97c] ss:$12 sps:$4 sm:$0xff]  }
 0x164   : > { %3018 = vmatprep.subr.bf16.mxu1 %v4760_v1  ;;  %2975 = vmatprep.subr.bf16.mxu0 %v4668_v20  ;;  %v4723_v20 = vld [vmem:[%s6077_s1 + $0x980] ss:$12 sps:$4 sm:$0xff]  }
 0x167   : > { %3019 = vmatpush1.bf16.msra.mxu1 %v4669_v21  ;;  %2976 = vmatpush1.bf16.msra.mxu0 %v4666_v26  ;;  %v4720_v21 = vld [vmem:[%s6077_s1 + $0x978] ss:$12 sps:$4 sm:$0xff]  }
 0x168   : > { %3020 = vmatprep.subr.bf16.mxu1 %v4760_v1  ;;  %2977 = vmatprep.subr.bf16.mxu0 %v4672_v22  ;;  %v4726_v22 = vld [vmem:[%s6077_s1 + $0x994] ss:$12 sps:$4 sm:$0xff]  }
 0x169   : > { %v1205_v24 = vpop.f32.mrb[8].mxu1 }
 0x16a   : > { %v5860_v27 = vadd.f32 %v1205_v24, %v5712_v29  ;;  %v1207_v28 = vpop.f32.mrb[9].mxu1  ;;  %v4680_v29 = vld [vmem:[%s6077_s1 + $0x88c] ss:$12 sps:$4 sm:$0xff]  }
 0x16b   : > { %v1208_v31 = vpop.f32.mrb[10].mxu1  ;;  %3021 = vmatpush1.bf16.msra.mxu1 %v4673_v23  ;;  %2978 = vmatpush1.bf16.msra.mxu0 %v4670_v6 }
 0x16c   : > { %v5866_v34 = vadd.f32 %v1208_v31, %v5718_v36  ;;  %v1210_v37 = vpop.f32.mrb[11].mxu1  ;;  %3022 = vmatprep.subr.bf16.mxu1 %v4760_v1  ;;  %2979 = vmatprep.subr.bf16.mxu0 %v4676_v25  ;;  %v4678_v36 = vld [vmem:[%s6077_s1 + $0x888] ss:$12 sps:$4 sm:$0xff]   ;;  %v4727_v25 = vld [vmem:[%s6077_s1 + $0x998] ss:$12 sps:$4 sm:$0xff]  }
 0x16d   : > { %v4731_v37 = vld [vmem:[%s6077_s1 + $0x9b0] ss:$12 sps:$4 sm:$0xff]  }
 0x16f   : > { %3023 = vmatpush1.bf16.msra.mxu1 %v4677_v32  ;;  %2980 = vmatpush1.bf16.msra.mxu0 %v4674_v42  ;;  %v4724_v32 = vld [vmem:[%s6077_s1 + $0x990] ss:$12 sps:$4 sm:$0xff]  }
 0x170   : > { %3024 = vmatprep.subr.bf16.mxu1 %v4760_v1  ;;  %2981 = vmatprep.subr.bf16.mxu0 %v4680_v29  ;;  %v4734_v42 = vld [vmem:[%s6077_s1 + $0x9c4] ss:$12 sps:$4 sm:$0xff]   ;;  %v4735_v29 = vld [vmem:[%s6077_s1 + $0x9c8] ss:$12 sps:$4 sm:$0xff]  }
 0x173   : > { %3025 = vmatpush1.bf16.msra.mxu1 %v4681_v38  ;;  %2982 = vmatpush1.bf16.msra.mxu0 %v4678_v36  ;;  %v4732_v38 = vld [vmem:[%s6077_s1 + $0x9c0] ss:$12 sps:$4 sm:$0xff]   ;;  %v4738_v36 = vld [vmem:[%s6077_s1 + $0x9dc] ss:$12 sps:$4 sm:$0xff]  }
 0x174   : > { %3026 = vmatprep.subr.bf16.mxu1 %v4760_v1  ;;  %2983 = vmatprep.subr.bf16.mxu0 %v4684_v33  ;;  %v4739_v33 = vld [vmem:[%s6077_s1 + $0x9e0] ss:$12 sps:$4 sm:$0xff]  }
 0x177   : > { %3027 = vmatpush1.bf16.msra.mxu1 %v4685_v39  ;;  %2984 = vmatpush1.bf16.msra.mxu0 %v4682_v41  ;;  %v4736_v39 = vld [vmem:[%s6077_s1 + $0x9d8] ss:$12 sps:$4 sm:$0xff]   ;;  %v4742_v41 = vld [vmem:[%s6077_s1 + $0x9f4] ss:$12 sps:$4 sm:$0xff]  }
 0x178   : > { %3028 = vmatprep.subr.bf16.mxu1 %v4760_v1  ;;  %2985 = vmatprep.subr.bf16.mxu0 %v4688_v43  ;;  %v4743_v43 = vld [vmem:[%s6077_s1 + $0x9f8] ss:$12 sps:$4 sm:$0xff]  }
 0x17b   : > { %3029 = vmatpush1.bf16.msra.mxu1 %v4689_v44  ;;  %2986 = vmatpush1.bf16.msra.mxu0 %v4686_v49  ;;  %v4751_v44 = vld [vmem:[%s4872_s9 + $0x10] sm:$0xff] }
 0x17c   : > { %3030 = vmatprep.subr.bf16.mxu1 %v4760_v1  ;;  %2987 = vmatprep.subr.bf16.mxu0 %v4692_v50  ;;  %v4211_v30 = vcombine.low %v5917_v57, %v4751_v44  ;;  %v3114_v50 = vrot.slane %v5890_v40, 2 }
 0x17e   : > { %v3113_v49 = vrot.slane %v4211_v30, 2 }
 0x17f   : > { %3031 = vmatpush1.bf16.msra.mxu1 %v4693_v51  ;;  %2988 = vmatpush1.bf16.msra.mxu0 %v4690_v59  ;;  %v4744_v51 = vld [vmem:[%s6077_s1 + $0xa08] ss:$12 sps:$4 sm:$0xff]  }
 0x180   : > { %3032 = vmatprep.subr.bf16.mxu1 %v4760_v1  ;;  %2989 = vmatprep.subr.bf16.mxu0 %v4696_v62  ;;  %v3115_v52 = vsel %vm3112_vm7, %v3113_v49, %v3114_v50 }
 0x183   : > { %3033 = vmatpush1.bf16.msra.mxu1 %v4697_v0  ;;  %2990 = vmatpush1.bf16.msra.mxu0 %v4694_v2 }
 0x184   : > { %3358 = vmatprep.subr.bf16.mxu1 %v4760_v1  ;;  %3315 = vmatprep.subr.bf16.mxu0 %v4702_v3 }
 0x186   : > { %3043 = vmatmul.mubr.bf16.vlgmr.msra.gmra.mrb[28].mxu1 %v2753_v55  ;;  %3000 = vmatmul.mubr.bf16.vlgmr.msra.gmra.mrb[0].mxu0 %v2753_v55 }
 0x187   : > { %3359 = vmatpush1.bf16.msra.mxu1 %v4703_v5  ;;  %3316 = vmatpush1.bf16.msra.mxu0 %v4700_v7 }
 0x188   : > { %3360 = vmatprep.subr.bf16.mxu1 %v4760_v1  ;;  %3317 = vmatprep.subr.bf16.mxu0 %v4706_v45 }
 0x189   : > { %4250 = vmatprep.mubr.msk.bf16.mxu1 %vm503_vm1, %v3118_v8  ;;  %4249 = vmatprep.mubr.msk.bf16.mxu0 %vm503_vm1, %v3118_v8 }
 0x18b   : > { %3361 = vmatpush1.bf16.msra.mxu1 %v4707_v9  ;;  %3318 = vmatpush1.bf16.msra.mxu0 %v4704_v10 }
 0x18c   : > { %3362 = vmatprep.subr.bf16.mxu1 %v4760_v1  ;;  %3319 = vmatprep.subr.bf16.mxu0 %v4710_v11 }
 0x18f   : > { %3363 = vmatpush1.bf16.msra.mxu1 %v4711_v12  ;;  %3320 = vmatpush1.bf16.msra.mxu0 %v4708_v13  ;;  %v3407_v12 = vlaneseq }
 0x190   : > { %3364 = vmatprep.subr.bf16.mxu1 %v4760_v1  ;;  %3321 = vmatprep.subr.bf16.mxu0 %v4714_v58 }
 0x191   : > { %v3408_v13 = vshrl.u32 %v3407_v12, 7 }
 0x193   : > { %3365 = vmatpush1.bf16.msra.mxu1 %v4715_v14  ;;  %3322 = vmatpush1.bf16.msra.mxu0 %v4712_v15  ;;  %v3409_v58 = vsub.s32 0, %v3408_v13  ;;  %v3405_v14 = vld [vmem:[%s6078_s2] sm:$0x7]  ;;  %v3417_v15 = vsub.s32 2, %v3408_v13 }
 0x194   : > { %3366 = vmatprep.subr.bf16.mxu1 %v4760_v1  ;;  %3323 = vmatprep.subr.bf16.mxu0 %v4718_v16  ;;  %v3413_v16 = vsub.s32 1, %v3408_v13 }
 0x197   : > { %3367 = vmatpush1.bf16.msra.mxu1 %v4719_v17  ;;  %3324 = vmatpush1.bf16.msra.mxu0 %v4716_v18  ;;  %v3410_v17 = vrot.slane %v3405_v14, %v3409_v58  ;;  %v3418_v18 = vrot.slane %v3405_v14, %v3417_v15 }
 0x198   : > { %3368 = vmatprep.subr.bf16.mxu1 %v4760_v1  ;;  %3325 = vmatprep.subr.bf16.mxu0 %v4722_v19  ;;  %v3414_v19 = vrot.slane %v3405_v14, %v3413_v16 }
 0x199   : > { %v1587_v26 = vpop.f32.mrb[12].mxu1 }
 0x19a   : > { %v1596_v23 = vadd.f32 %v1587_v26, %v5860_v27  ;;  %v1589_v6 = vpop.f32.mrb[13].mxu1  ;;  %v4730_v27 = vld [vmem:[%s6077_s1 + $0x9ac] ss:$12 sps:$4 sm:$0xff]  }
 0x19b   : > { %v1590_v24 = vpop.f32.mrb[14].mxu1  ;;  %3369 = vmatpush1.bf16.msra.mxu1 %v4723_v20  ;;  %3326 = vmatpush1.bf16.msra.mxu0 %v4720_v21 }
 0x19c   : > { %v1599_v28 = vadd.f32 %v1590_v24, %v5866_v34  ;;  %v1592_v31 = vpop.f32.mrb[15].mxu1  ;;  %3370 = vmatprep.subr.bf16.mxu1 %v4760_v1  ;;  %3327 = vmatprep.subr.bf16.mxu0 %v4726_v22  ;;  %v4728_v34 = vld [vmem:[%s6077_s1 + $0x9a8] ss:$12 sps:$4 sm:$0xff]  }
 0x19f   : > { %3371 = vmatpush1.bf16.msra.mxu1 %v4727_v25  ;;  %3328 = vmatpush1.bf16.msra.mxu0 %v4724_v32 }
 0x1a0   : > { %3372 = vmatprep.subr.bf16.mxu1 %v4760_v1  ;;  %3329 = vmatprep.subr.bf16.mxu0 %v4730_v27 }
 0x1a3   : > { %3373 = vmatpush1.bf16.msra.mxu1 %v4731_v37  ;;  %3330 = vmatpush1.bf16.msra.mxu0 %v4728_v34 }
 0x1a4   : > { %3374 = vmatprep.subr.bf16.mxu1 %v4760_v1  ;;  %3331 = vmatprep.subr.bf16.mxu0 %v4734_v42 }
 0x1a7   : > { %3375 = vmatpush1.bf16.msra.mxu1 %v4735_v29  ;;  %3332 = vmatpush1.bf16.msra.mxu0 %v4732_v38 }
 0x1a8   : > { %3376 = vmatprep.subr.bf16.mxu1 %v4760_v1  ;;  %3333 = vmatprep.subr.bf16.mxu0 %v4738_v36 }
 0x1ab   : > { %3377 = vmatpush1.bf16.msra.mxu1 %v4739_v33  ;;  %3334 = vmatpush1.bf16.msra.mxu0 %v4736_v39 }
 0x1ac   : > { %3378 = vmatprep.subr.bf16.mxu1 %v4760_v1  ;;  %3335 = vmatprep.subr.bf16.mxu0 %v4742_v41 }
 0x1af   : > { %3379 = vmatpush1.bf16.msra.mxu1 %v4743_v43  ;;  %3336 = vmatpush1.bf16.msra.mxu0 %v4740_v35 }
 0x1b0   : > { %3380 = vmatprep.subr.bf16.mxu1 %v4760_v1  ;;  %3337 = vmatprep.subr.bf16.mxu0 %v4746_v46 }
 0x1b3   : > { %3381 = vmatpush1.bf16.msra.mxu1 %v4747_v47  ;;  %3338 = vmatpush1.bf16.msra.mxu0 %v4744_v51 }
 0x1b6   : > { %3391 = vmatmul.mubr.bf16.vlgmr.msra.gmra.mrb[32].mxu1 %v3115_v52  ;;  %3348 = vmatmul.mubr.bf16.vlgmr.msra.gmra.mrb[0].mxu0 %v3115_v52 }
 0x1c9   : > { %v1935_v53 = vpop.f32.mrb[16].mxu1 }
 0x1ca   : > { %v1944_v54 = vadd.f32 %v1935_v53, %v1596_v23  ;;  %v1937_v56 = vpop.f32.mrb[17].mxu1 }
 0x1cb   : > { %v1938_v57 = vpop.f32.mrb[18].mxu1 }
 0x1cc   : > { %v1947_v59 = vadd.f32 %v1938_v57, %v1599_v28  ;;  %v1940_v40 = vpop.f32.mrb[19].mxu1 }
 0x1f9   : > { %v2311_v62 = vpop.f32.mrb[20].mxu1 }
 0x1fa   : > { %v2320_v63 = vadd.f32 %v2311_v62, %v1944_v54  ;;  %v2313_v1 = vpop.f32.mrb[21].mxu1 }
 0x1fb   : > { %v2314_v0 = vpop.f32.mrb[22].mxu1 }
 0x1fc   : > { %v2323_v60 = vadd.f32 %v2314_v0, %v1947_v59  ;;  %v2316_v61 = vpop.f32.mrb[23].mxu1 }
 0x229   : > { %v2668_v2 = vpop.f32.mrb[24].mxu1 }
 0x22a   : > { %v2677_v3 = vadd.f32 %v2668_v2, %v2320_v63  ;;  %v2670_v48 = vpop.f32.mrb[25].mxu1 }
 0x22b   : > { %v2671_v4 = vpop.f32.mrb[26].mxu1 }
 0x22c   : > { %v2680_v55 = vadd.f32 %v2671_v4, %v2323_v60  ;;  %v2673_v5 = vpop.f32.mrb[27].mxu1 }
 0x259   : > { %v3044_v7 = vpop.f32.mrb[28].mxu1 }
 0x25a   : > { %v3053_v45 = vadd.f32 %v3044_v7, %v2677_v3  ;;  %v3046_v8 = vpop.f32.mrb[29].mxu1 }
 0x25b   : > { %v3047_v9 = vpop.f32.mrb[30].mxu1 }
 0x25c   : > { %v3056_v10 = vadd.f32 %v3047_v9, %v2680_v55  ;;  %v3049_v11 = vpop.f32.mrb[31].mxu1 }
 0x289   : > { %v3392_v20 = vpop.f32.mrb[32].mxu1  ;;  %v3349_v26 = vpop.f32.mrb[0].mxu0 }
 0x28a   : > { %v3401_v21 = vadd.f32 %v3392_v20, %v3053_v45  ;;  %v3394_v22 = vpop.f32.mrb[33].mxu1  ;;  %v3422_v23 = vadd.f32 %v3410_v17, %v3349_v26  ;;  %v3351_v6 = vpop.f32.mrb[1].mxu0 }
 0x28b   : > { %v3395_v24 = vpop.f32.mrb[34].mxu1  ;;  %v3423_v28 = vadd.f32 %v3414_v19, %v3351_v6  ;;  %v3353_v32 = vpop.f32.mrb[2].mxu0 }
 0x28c   : > { %v3424_v25 = vadd.f32 %v3418_v18, %v3401_v21  ;;  %v3404_v31 = vadd.f32 %v3395_v24, %v3056_v10  ;;  %v3397_v27 = vpop.f32.mrb[35].mxu1  ;;  %v3428_v37 = vmax.f32 %v3422_v23, 0.0  ;;  %v3425_v34 = vadd.f32 %v3410_v17, %v3353_v32  ;;  %v3355_v42 = vpop.f32.mrb[3].mxu0 }
 0x28d   : > { %v3429_v38 = vmax.f32 %v3423_v28, 0.0  ;;  %v3426_v33 = vadd.f32 %v3414_v19, %v3355_v42 }
 0x28e   : > { %v3430_v29 = vmax.f32 %v3424_v25, 0.0  ;;  %v3427_v36 = vadd.f32 %v3418_v18, %v3404_v31  ;;  %3434 = vst [vmem:[%s170_s20] sm:$0xff] %v3428_v37  ;;  %v3431_v39 = vmax.f32 %v3425_v34, 0.0 }
 0x28f   : > { %3435 = vst [vmem:[%s170_s20 + $0x8] sm:$0xff] %v3429_v38  ;;  %v3432_v43 = vmax.f32 %v3426_v33, 0.0 }
 0x290   : > { %3436 = vst [vmem:[%s170_s20 + $0x10] sm:$0xff] %v3430_v29  ;;  %v3433_v41 = vmax.f32 %v3427_v36, 0.0  ;;  %3437 = vst [vmem:[%s170_s20 + $0x18] sm:$0xff] %v3431_v39 }
 0x291   : > { %3438 = vst [vmem:[%s170_s20 + $0x20] sm:$0xff] %v3432_v43 }
 0x292   : > { %3439 = vst [vmem:[%s170_s20 + $0x28] sm:$0xff] %v3433_v41 }
 0x293 PF: > { %s13_s12 = sadd.s32 1, %s4758_s12  }
 0x294   : > { %p10_p4 = scmp.ge.s32.totalorder %s13_s12, 4  }
 0x296   :  { %12 = sbr.rel (!%p10_p4) target bundleno = 1 (0x1), region = 70 }

// kernel: forward.12
= control target key start
LH: loop header
LB: loop body
LE: loop exit
PB: predicated region body
PF: predicated region fallthrough
CT: control target
= control target key end

     0   :  { %s5685_s12 = smov 0   ;;  %s7284_s0 = inlined_call_operand.vmem [shape: bf16[2,32,384], index: 0, kind: input, shape index: {}]   ;;  %s7285_s1 = inlined_call_operand.vmem [shape: bf16[9,384,256], index: 1, kind: input, shape index: {}]   ;;  %s7286_s2 = inlined_call_operand.vmem [shape: f32[1,256], index: 2, kind: input, shape index: {}]   ;;  %s7287_s3 = inlined_call_operand.vmem [shape: f32[2,16,256], index: 3, kind: output, shape index: {}]  }
   0x1 LB: > { %s4032_s13 = sadd.s32 4294967295, %s5662_s12   ;;  %p4036_p0 = scmp.ge.s32.totalorder %s5662_s12, 1  ;;  %s5662_s12 = sphi %s5685_s12, %s13_s12  }
   0x2   : > { %p137_p1 = scmp.lt.s32.totalorder %s5662_s12, 3 }
   0x4   : > { %p138_p2 = pnand %p4036_p0, %p137_p1 }
   0x5   : > { %v4970_v0 = vld [vmem:[%s7285_s1 + $0x184] ss:$8 sps:$4 sm:$0xff] (!%p138_p2)   ;;  %v5664_v2 = vmov (!%p138_p2), 0   ;;  %v4974_v3 = vld [vmem:[%s7285_s1 + $0x180] ss:$8 sps:$4 sm:$0xff] (!%p138_p2)   ;;  %p161_p3 = scmp.lt.s32.totalorder (!%p138_p2), %s4032_s13, 1 }
   0x6   : > { %141 = sbr.rel (%p138_p2) target bundleno = 675 (0x2a3), region = 32  ;;  %v4972_v1 = vld [vmem:[%s7285_s1 + $0x104] ss:$8 sps:$4 sm:$0xff] (!%p138_p2)   ;;  %980 = vmatprep.mubr.bf16.mxu0 (!%p138_p2), %v5664_v2  ;;  %576 = vmatprep.subr.bf16.mxu1 (!%p138_p2), %v4970_v0  ;;  %v4975_v4 = vld [vmem:[%s7285_s1 + $0x100] ss:$8 sps:$4 sm:$0xff] (!%p138_p2)   ;;  %vm1050_vm1 = vcmask (!%p138_p2), 1046528  }
   0x7   : > { %948 = vmatprep.subr.bf16.mxu0 (!%p138_p2), %v4972_v1  ;;  %v4976_v5 = vld [vmem:[%s7285_s1 + $0x194] ss:$8 sps:$4 sm:$0xff] (!%p138_p2)   ;;  %577 = vmatpush1.bf16.msra.mxu1 (!%p138_p2), %v4974_v3  ;;  %v4980_v7 = vld [vmem:[%s7285_s1 + $0x190] ss:$8 sps:$4 sm:$0xff] (!%p138_p2)   ;;  %v4982_v9 = vld [vmem:[%s7285_s1 + $0x1a4] ss:$8 sps:$4 sm:$0xff] (!%p138_p2)  }
   0x8   : > { %949 = vmatpush1.bf16.msra.mxu0 (!%p138_p2), %v4975_v4  ;;  %v4978_v6 = vld [vmem:[%s7285_s1 + $0x114] ss:$8 sps:$4 sm:$0xff] (!%p138_p2)   ;;  %578 = vmatprep.subr.bf16.mxu1 (!%p138_p2), %v4976_v5  ;;  %v4981_v8 = vld [vmem:[%s7285_s1 + $0x110] ss:$8 sps:$4 sm:$0xff] (!%p138_p2)   ;;  %v4984_v10 = vld [vmem:[%s7285_s1 + $0x124] ss:$8 sps:$4 sm:$0xff] (!%p138_p2)  }
   0x9   : > { %950 = vmatprep.subr.bf16.mxu0 (!%p138_p2), %v4978_v6  ;;  %v4986_v11 = vld [vmem:[%s7285_s1 + $0x1a0] ss:$8 sps:$4 sm:$0xff] (!%p138_p2)   ;;  %v4988_v13 = vld [vmem:[%s7285_s1 + $0x1b4] ss:$8 sps:$4 sm:$0xff] (!%p138_p2)   ;;  %v4992_v15 = vld [vmem:[%s7285_s1 + $0x1b0] ss:$8 sps:$4 sm:$0xff] (!%p138_p2)  }
   0xa   : > { %v4987_v12 = vld [vmem:[%s7285_s1 + $0x120] ss:$8 sps:$4 sm:$0xff] (!%p138_p2)   ;;  %v4990_v14 = vld [vmem:[%s7285_s1 + $0x134] ss:$8 sps:$4 sm:$0xff] (!%p138_p2)   ;;  %v4993_v16 = vld [vmem:[%s7285_s1 + $0x130] ss:$8 sps:$4 sm:$0xff] (!%p138_p2)  }
   0xb   : > { %579 = vmatpush1.bf16.msra.mxu1 (!%p138_p2), %v4980_v7  ;;  %v4994_v17 = vld [vmem:[%s7285_s1 + $0x1c4] ss:$8 sps:$4 sm:$0xff] (!%p138_p2)   ;;  %v4998_v19 = vld [vmem:[%s7285_s1 + $0x1c0] ss:$8 sps:$4 sm:$0xff] (!%p138_p2)   ;;  %v5000_v21 = vld [vmem:[%s7285_s1 + $0x1d4] ss:$8 sps:$4 sm:$0xff] (!%p138_p2)  }
   0xc   : > { %951 = vmatpush1.bf16.msra.mxu0 (!%p138_p2), %v4981_v8  ;;  %580 = vmatprep.subr.bf16.mxu1 (!%p138_p2), %v4982_v9  ;;  %v4996_v18 = vld [vmem:[%s7285_s1 + $0x144] ss:$8 sps:$4 sm:$0xff] (!%p138_p2)   ;;  %v4999_v20 = vld [vmem:[%s7285_s1 + $0x140] ss:$8 sps:$4 sm:$0xff] (!%p138_p2)   ;;  %v5002_v22 = vld [vmem:[%s7285_s1 + $0x154] ss:$8 sps:$4 sm:$0xff] (!%p138_p2)  }
   0xd   : > { %952 = vmatprep.subr.bf16.mxu0 %v4984_v10  ;;  %s7289_s13 = smov (!%p161_p3, %s4032_s13), 1  ;;  %v5004_v23 = vld [vmem:[%s7285_s1 + $0x1d0] ss:$8 sps:$4 sm:$0xff]   ;;  %v5006_v25 = vld [vmem:[%s7285_s1 + $0x1e4] ss:$8 sps:$4 sm:$0xff]   ;;  %vm1906_vm3 = vcmask 1044480  }
   0xe   : > { %v5005_v24 = vld [vmem:[%s7285_s1 + $0x150] ss:$8 sps:$4 sm:$0xff]   ;;  %v5008_v26 = vld [vmem:[%s7285_s1 + $0x164] ss:$8 sps:$4 sm:$0xff]   ;;  %s4960_s16 = smul.u32 48, %s7289_s13  ;;  %vm3614_vm6 = vcmask 1045504  }
   0xf   : > { %581 = vmatpush1.bf16.msra.mxu1 %v4986_v11  ;;  %v5010_v27 = vld [vmem:[%s7285_s1 + $0x1e0] ss:$8 sps:$4 sm:$0xff]   ;;  %v5012_v29 = vld [vmem:[%s7285_s1 + $0x1f4] ss:$8 sps:$4 sm:$0xff]   ;;  %v5016_v31 = vld [vmem:[%s7285_s1 + $0x1f0] ss:$8 sps:$4 sm:$0xff]  }
  0x10   : > { %953 = vmatpush1.bf16.msra.mxu0 %v4987_v12  ;;  %582 = vmatprep.subr.bf16.mxu1 %v4988_v13  ;;  %v5011_v28 = vld [vmem:[%s7285_s1 + $0x160] ss:$8 sps:$4 sm:$0xff]   ;;  %v5014_v30 = vld [vmem:[%s7285_s1 + $0x174] ss:$8 sps:$4 sm:$0xff]   ;;  %s5794_s27 = scalar_lea.vmem %s7284_s0, %s4960_s16  ;;  %v5017_v32 = vld [vmem:[%s7285_s1 + $0x170] ss:$8 sps:$4 sm:$0xff]  }
  0x11   : > { %954 = vmatprep.subr.bf16.mxu0 %v4990_v14  ;;  %v5018_v33 = vld [vmem:[%s7285_s1 + $0x204] ss:$8 sps:$4 sm:$0xff]   ;;  %v173_v34 = vld [vmem:[%s5794_s27 + $0x8] sm:$0xf]  ;;  %v5807_v35 = vld [vmem:[%s5794_s27 + $0x14] sm:$0xf] }
  0x12   : > { %v5025_v36 = vld [vmem:[%s7285_s1 + $0x404] ss:$8 sps:$4 sm:$0xff]   ;;  %v5813_v37 = vcombine.low %v173_v34, %v5807_v35  ;;  %v5023_v38 = vld [vmem:[%s7285_s1 + $0x400] ss:$8 sps:$4 sm:$0xff]   ;;  %v5027_v40 = vld [vmem:[%s7285_s1 + $0x214] ss:$8 sps:$4 sm:$0xff]  }
  0x13   : > { %583 = vmatpush1.bf16.msra.mxu1 %v4992_v15  ;;  %v5026_v39 = vld [vmem:[%s7285_s1 + $0x200] ss:$8 sps:$4 sm:$0xff]   ;;  %v5031_v41 = vld [vmem:[%s7285_s1 + $0x414] ss:$8 sps:$4 sm:$0xff]   ;;  %v5029_v42 = vld [vmem:[%s7285_s1 + $0x410] ss:$8 sps:$4 sm:$0xff]  }
  0x14   : > { %955 = vmatpush1.bf16.msra.mxu0 %v4993_v16  ;;  %584 = vmatprep.subr.bf16.mxu1 %v4994_v17  ;;  %v5032_v43 = vld [vmem:[%s7285_s1 + $0x210] ss:$8 sps:$4 sm:$0xff]   ;;  %v5033_v44 = vld [vmem:[%s7285_s1 + $0x224] ss:$8 sps:$4 sm:$0xff]   ;;  %v5035_v46 = vld [vmem:[%s7285_s1 + $0x420] ss:$8 sps:$4 sm:$0xff]  }
  0x15   : > { %956 = vmatprep.subr.bf16.mxu0 %v4996_v18  ;;  %v5037_v45 = vld [vmem:[%s7285_s1 + $0x424] ss:$8 sps:$4 sm:$0xff]   ;;  %v5038_v47 = vld [vmem:[%s7285_s1 + $0x220] ss:$8 sps:$4 sm:$0xff]   ;;  %v5039_v48 = vld [vmem:[%s7285_s1 + $0x234] ss:$8 sps:$4 sm:$0xff]  }
  0x16   : > { %v5043_v49 = vld [vmem:[%s7285_s1 + $0x434] ss:$8 sps:$4 sm:$0xff]   ;;  %v5041_v50 = vld [vmem:[%s7285_s1 + $0x430] ss:$8 sps:$4 sm:$0xff]   ;;  %v5045_v52 = vld [vmem:[%s7285_s1 + $0x244] ss:$8 sps:$4 sm:$0xff]  }
  0x17   : > { %585 = vmatpush1.bf16.msra.mxu1 %v4998_v19  ;;  %v5044_v51 = vld [vmem:[%s7285_s1 + $0x230] ss:$8 sps:$4 sm:$0xff]   ;;  %v172_v53 = vld [vmem:[%s5794_s27] sm:$0xff]  ;;  %v5051_v1 = vld [vmem:[%s7285_s1 + $0x254] ss:$8 sps:$4 sm:$0xff]   ;;  %s4891_s16 = sshll.u32 %s7289_s13, 5 }
  0x18   : > { %957 = vmatpush1.bf16.msra.mxu0 %v4999_v20  ;;  %586 = vmatprep.subr.bf16.mxu1 %v5000_v21  ;;  %v5864_v54 = vld [vmem:[%s5794_s27 + $0xc] sm:$0xff]  ;;  %v224_v55 = vld [vmem:[%s5794_s27 + $0x18] sm:$0x11]  ;;  %v5047_v59 = vld [vmem:[%s7285_s1 + $0x440] ss:$8 sps:$4 sm:$0xff]   ;;  %s170_s19 = scalar_lea.vmem %s7287_s3, %s4891_s16 }
  0x19   : > { %958 = vmatprep.subr.bf16.mxu0 %v5002_v22  ;;  %v5049_v56 = vld [vmem:[%s7285_s1 + $0x444] ss:$8 sps:$4 sm:$0xff]   ;;  %v5871_v57 = vcombine.high %v172_v53, %v5864_v54  ;;  %v5873_v58 = vcombine.high %v224_v55, %v224_v55  ;;  %v5050_v63 = vld [vmem:[%s7285_s1 + $0x240] ss:$8 sps:$4 sm:$0xff]   ;;  %v5885_v0 = vcombine.low %v172_v53, %v5864_v54  ;;  %v5055_v3 = vld [vmem:[%s7285_s1 + $0x454] ss:$8 sps:$4 sm:$0xff]   ;;  %v5902_v10 = vcombine.low %v224_v55, %v224_v55 }
  0x1a   : > { %vm296_vm0 = vsmask.f32 7424  ;;  %v5053_v6 = vld [vmem:[%s7285_s1 + $0x450] ss:$8 sps:$4 sm:$0xff]   ;;  %v5057_v9 = vld [vmem:[%s7285_s1 + $0x264] ss:$8 sps:$4 sm:$0xff]  }
  0x1b   : > { %587 = vmatpush1.bf16.msra.mxu1 %v5004_v23  ;;  %v310_v60 = vshrl.u32 %v5871_v57, 16  ;;  %v312_v61 = vshll.u32 %v5871_v57, 16  ;;  %v317_v62 = vshll.u32 %v5873_v58, 16  ;;  %v5056_v8 = vld [vmem:[%s7285_s1 + $0x250] ss:$8 sps:$4 sm:$0xff]   ;;  %v300_v11 = vshll.u32 %v5885_v0, 16 }
  0x1c   : > { %959 = vmatpush1.bf16.msra.mxu0 %v5005_v24  ;;  %588 = vmatprep.subr.bf16.mxu1 %v5006_v25  ;;  %v5061_v12 = vld [vmem:[%s7285_s1 + $0x464] ss:$8 sps:$4 sm:$0xff]   ;;  %v992_v14 = vld [vmem:[%s5794_s27 + $0x8] sm:$0xe]  ;;  %v298_v19 = vshrl.u32 %v5885_v0, 16  ;;  %v305_v21 = vshll.u32 %v5902_v10, 16 }
  0x1d   : > { %960 = vmatprep.subr.bf16.mxu0 %v5008_v26  ;;  %v314_v4 = vrot.slane %v312_v61, 1  ;;  %v319_v5 = vrot.slane %v317_v62, 1  ;;  %v5059_v15 = vld [vmem:[%s7285_s1 + $0x460] ss:$8 sps:$4 sm:$0xff]   ;;  %v4240_v18 = vcombine.low %v992_v14, %v5807_v35  ;;  %v302_v20 = vrot.slane %v300_v11, 1 }
  0x1e   : > { %v5914_v16 = vld [vmem:[%s5794_s27 + $0x20] ss:$0 sps:$4 sm:$0x11]   ;;  %v5063_v22 = vld [vmem:[%s7285_s1 + $0x274] ss:$8 sps:$4 sm:$0xff]   ;;  %v324_v62 = vshll.u32 %v5813_v37, 16 }
  0x1f   : > { %589 = vmatpush1.bf16.msra.mxu1 %v5010_v27  ;;  %v315_v7 = vor.u32 %v314_v4, %v310_v60  ;;  %v5062_v17 = vld [vmem:[%s7285_s1 + $0x260] ss:$8 sps:$4 sm:$0xff]   ;;  %v5067_v23 = vld [vmem:[%s7285_s1 + $0x474] ss:$8 sps:$4 sm:$0xff]   ;;  %v5065_v24 = vld [vmem:[%s7285_s1 + $0x470] ss:$8 sps:$4 sm:$0xff]  }
  0x20   : > { %961 = vmatpush1.bf16.msra.mxu0 %v5011_v28  ;;  %590 = vmatprep.subr.bf16.mxu1 %v5012_v29  ;;  %v5068_v25 = vld [vmem:[%s7285_s1 + $0x270] ss:$8 sps:$4 sm:$0xff]   ;;  %v1057_v26 = vrot.slane %v4240_v18, 1  ;;  %v1058_v27 = vrot.slane %v5914_v16, 1  ;;  %v303_v28 = vor.u32 %v302_v20, %v298_v19  ;;  %v307_v29 = vrot.slane %v305_v21, 1 }
  0x21   : > { %962 = vmatprep.subr.bf16.mxu0 %v5014_v30  ;;  %v320_v13 = vsel %vm296_vm0, %v315_v7, %v319_v5  ;;  %v5073_v30 = vld [vmem:[%s7285_s1 + $0x284] ss:$8 sps:$4 sm:$0xff]   ;;  %v5076_v34 = vld [vmem:[%s7285_s1 + $0x580] ss:$8 sps:$4 sm:$0xff]   ;;  %v5107_v60 = vld [vmem:[%s7285_s1 + $0x2d4] ss:$8 sps:$4 sm:$0xff]  }
  0x22   : > { %608 = vmatprep.mubr.bf16.mxu1 %v320_v13  ;;  %v5099_v55 = vld [vmem:[%s7285_s1 + $0x2c0] ss:$8 sps:$4 sm:$0xff]   ;;  %v5110_v61 = vld [vmem:[%s7285_s1 + $0x5d4] ss:$8 sps:$4 sm:$0xff]   ;;  %v5108_v4 = vld [vmem:[%s7285_s1 + $0x5d0] ss:$8 sps:$4 sm:$0xff]  }
  0x23   : > { %591 = vmatpush1.bf16.msra.mxu1 %v5016_v31  ;;  %v5078_v31 = vld [vmem:[%s7285_s1 + $0x584] ss:$8 sps:$4 sm:$0xff]   ;;  %v326_v11 = vrot.slane %v324_v62, 1  ;;  %v5111_v13 = vld [vmem:[%s7285_s1 + $0x2e0] ss:$8 sps:$4 sm:$0xff]  }
  0x24   : > { %963 = vmatpush1.bf16.msra.mxu0 %v5017_v32  ;;  %592 = vmatprep.subr.bf16.mxu1 %v5018_v33  ;;  %v5071_v32 = vld [vmem:[%s7285_s1 + $0x280] ss:$8 sps:$4 sm:$0xff]   ;;  %v1059_v33 = vsel %vm1050_vm1, %v1057_v26, %v1058_v27  ;;  %v5113_v7 = vld [vmem:[%s7285_s1 + $0x2e4] ss:$8 sps:$4 sm:$0xff]   ;;  %v5122_v20 = vld [vmem:[%s7285_s1 + $0x5f4] ss:$8 sps:$4 sm:$0xff]  }
  0x25   : > { %1346 = vmatprep.subr.bf16.mxu0 %v5025_v36  ;;  %v308_v36 = vsel %vm296_vm0, %v303_v28, %v307_v29  ;;  %vm1462_vm2 = vsmask.f32 5376  ;;  %v5120_v21 = vld [vmem:[%s7285_s1 + $0x5f0] ss:$8 sps:$4 sm:$0xff]   ;;  %v5125_v26 = vld [vmem:[%s7285_s1 + $0x4] ss:$8 sps:$4 sm:$0xff]  }
  0x26   : > { %v5129_v27 = vld [vmem:[%s7285_s1 + $0x704] ss:$8 sps:$4 sm:$0xff]   ;;  %v5123_v28 = vld [vmem:[%s7285_s1] ss:$8 sps:$4 sm:$0xff]   ;;  %vm2308_vm4 = vsmask.f32 4352 }
  0x27   : > { %981 = vmatmul.mubr.bf16.vlgmr.msra.gmra.mrb[0].mxu0 %v5813_v37  ;;  %593 = vmatpush1.bf16.msra.mxu1 %v5026_v39  ;;  %v5086_v39 = vld [vmem:[%s7285_s1 + $0x594] ss:$8 sps:$4 sm:$0xff]   ;;  %vm3170_vm5 = vsmask.f32 6400 }
  0x28   : > { %1347 = vmatpush1.bf16.msra.mxu0 %v5023_v38  ;;  %594 = vmatprep.subr.bf16.mxu1 %v5027_v40  ;;  %v5083_v38 = vld [vmem:[%s7285_s1 + $0x294] ss:$8 sps:$4 sm:$0xff]   ;;  %v5081_v40 = vld [vmem:[%s7285_s1 + $0x290] ss:$8 sps:$4 sm:$0xff]  }
  0x29   : > { %1348 = vmatprep.subr.bf16.mxu0 %v5031_v41  ;;  %1378 = vmatprep.mubr.bf16.mxu0 %v5664_v2  ;;  %v5084_v41 = vld [vmem:[%s7285_s1 + $0x590] ss:$8 sps:$4 sm:$0xff]  }
  0x2b   : > { %595 = vmatpush1.bf16.msra.mxu1 %v5032_v43  ;;  %v5092_v43 = vld [vmem:[%s7285_s1 + $0x5a4] ss:$8 sps:$4 sm:$0xff]  }
  0x2c   : > { %1349 = vmatpush1.bf16.msra.mxu0 %v5029_v42  ;;  %596 = vmatprep.subr.bf16.mxu1 %v5033_v44  ;;  %v5089_v42 = vld [vmem:[%s7285_s1 + $0x2a4] ss:$8 sps:$4 sm:$0xff]   ;;  %v5087_v44 = vld [vmem:[%s7285_s1 + $0x2a0] ss:$8 sps:$4 sm:$0xff]  }
  0x2d   : > { %1350 = vmatprep.subr.bf16.mxu0 %v5037_v45  ;;  %v5090_v45 = vld [vmem:[%s7285_s1 + $0x5a0] ss:$8 sps:$4 sm:$0xff]  }
  0x2f   : > { %597 = vmatpush1.bf16.msra.mxu1 %v5038_v47  ;;  %v5098_v47 = vld [vmem:[%s7285_s1 + $0x5b4] ss:$8 sps:$4 sm:$0xff]  }
  0x30   : > { %1351 = vmatpush1.bf16.msra.mxu0 %v5035_v46  ;;  %598 = vmatprep.subr.bf16.mxu1 %v5039_v48  ;;  %v5095_v46 = vld [vmem:[%s7285_s1 + $0x2b4] ss:$8 sps:$4 sm:$0xff]   ;;  %v1394_v48 = vld [vmem:[%s5794_s27 + $0x8] sm:$0xc] }
  0x31   : > { %1352 = vmatprep.subr.bf16.mxu0 %v5043_v49  ;;  %v5093_v49 = vld [vmem:[%s7285_s1 + $0x2b0] ss:$8 sps:$4 sm:$0xff]   ;;  %v4339_v53 = vcombine.low %v1394_v48, %v5807_v35  ;;  %v5151_v48 = vld [vmem:[%s7285_s1 + $0x740] ss:$8 sps:$4 sm:$0xff]  }
  0x33   : > { %599 = vmatpush1.bf16.msra.mxu1 %v5044_v51  ;;  %v5101_v51 = vld [vmem:[%s7285_s1 + $0x2c4] ss:$8 sps:$4 sm:$0xff]  }
  0x34   : > { %1353 = vmatpush1.bf16.msra.mxu0 %v5041_v50  ;;  %600 = vmatprep.subr.bf16.mxu1 %v5045_v52  ;;  %v5096_v50 = vld [vmem:[%s7285_s1 + $0x5b0] ss:$8 sps:$4 sm:$0xff]   ;;  %v5104_v52 = vld [vmem:[%s7285_s1 + $0x5c4] ss:$8 sps:$4 sm:$0xff]  }
  0x35   : > { %1354 = vmatprep.subr.bf16.mxu0 %v5049_v56  ;;  %v5102_v56 = vld [vmem:[%s7285_s1 + $0x5c0] ss:$8 sps:$4 sm:$0xff]  }
  0x37   : > { %601 = vmatpush1.bf16.msra.mxu1 %v5050_v63  ;;  %v1498_v63 = vshrl.u32 %v4339_v53, 16 }
  0x38   : > { %1355 = vmatpush1.bf16.msra.mxu0 %v5047_v59  ;;  %602 = vmatprep.subr.bf16.mxu1 %v5051_v1  ;;  %v6002_v59 = vld [vmem:[%s5794_s27 + $0x20] ss:$0 sps:$4 sm:$0x77]   ;;  %v5105_v1 = vld [vmem:[%s7285_s1 + $0x2d0] ss:$8 sps:$4 sm:$0xff]  }
  0x39   : > { %1356 = vmatprep.subr.bf16.mxu0 %v5055_v3  ;;  %v1501_v3 = vshll.u32 %v4339_v53, 16  ;;  %v1506_v5 = vshrl.u32 %v6002_v59, 16  ;;  %v5157_v53 = vld [vmem:[%s7285_s1 + $0x750] ss:$8 sps:$4 sm:$0xff]  }
  0x3b   : > { %603 = vmatpush1.bf16.msra.mxu1 %v5056_v8  ;;  %v5116_v8 = vld [vmem:[%s7285_s1 + $0x5e4] ss:$8 sps:$4 sm:$0xff]   ;;  %v1503_v14 = vrot.slane %v1501_v3, 3  ;;  %v1508_v18 = vrot.slane %v1506_v5, 2  ;;  %v5166_v3 = vld [vmem:[%s7285_s1 + $0x70] ss:$8 sps:$4 sm:$0xff]  }
  0x3c   : > { %1357 = vmatpush1.bf16.msra.mxu0 %v5053_v6  ;;  %604 = vmatprep.subr.bf16.mxu1 %v5057_v9  ;;  %v1509_v6 = vshll.u32 %v6002_v59, 16  ;;  %v322_v9 = vshrl.u32 %v5813_v37, 16  ;;  %v5119_v37 = vld [vmem:[%s7285_s1 + $0x2f4] ss:$8 sps:$4 sm:$0xff]  }
  0x3d   : > { %1358 = vmatprep.subr.bf16.mxu0 %v5061_v12  ;;  %v1500_v12 = vrot.slane %v1498_v63, 2  ;;  %v5168_v63 = vld [vmem:[%s7285_s1 + $0x74] ss:$8 sps:$4 sm:$0xff]  }
  0x3e   : > { %v1511_v19 = vrot.slane %v1509_v6, 3  ;;  %v1914_v6 = vrot.slane %v6002_v59, 3  ;;  %v5180_v59 = vld [vmem:[%s7285_s1 + $0x94] ss:$8 sps:$4 sm:$0xff]  }
  0x3f   : > { %605 = vmatpush1.bf16.msra.mxu1 %v5062_v17  ;;  %v5114_v17 = vld [vmem:[%s7285_s1 + $0x5e0] ss:$8 sps:$4 sm:$0xff]  }
  0x40   : > { %1359 = vmatpush1.bf16.msra.mxu0 %v5059_v15  ;;  %606 = vmatprep.subr.bf16.mxu1 %v5063_v22  ;;  %v329_v15 = vshll.u32 %v5914_v16, 16  ;;  %v5117_v16 = vld [vmem:[%s7285_s1 + $0x2f0] ss:$8 sps:$4 sm:$0xff]   ;;  %v1504_v22 = vor.u32 %v1503_v14, %v1500_v12  ;;  %v5183_v12 = vld [vmem:[%s7285_s1 + $0x894] ss:$8 sps:$4 sm:$0xff]  }
  0x41   : > { %1360 = vmatprep.subr.bf16.mxu0 %v5067_v23  ;;  %v1512_v23 = vor.u32 %v1511_v19, %v1508_v18  ;;  %v5181_v14 = vld [vmem:[%s7285_s1 + $0x890] ss:$8 sps:$4 sm:$0xff]   ;;  %v5184_v18 = vld [vmem:[%s7285_s1 + $0xa0] ss:$8 sps:$4 sm:$0xff]  }
  0x42   : > { %v5187_v19 = vld [vmem:[%s7285_s1 + $0x8a0] ss:$8 sps:$4 sm:$0xff]  }
  0x43   : > { %607 = vmatpush1.bf16.msra.mxu1 %v5068_v25  ;;  %v331_v25 = vrot.slane %v329_v15, 1  ;;  %v1513_v29 = vsel %vm1462_vm2, %v1504_v22, %v1512_v23  ;;  %v5186_v15 = vld [vmem:[%s7285_s1 + $0xa4] ss:$8 sps:$4 sm:$0xff]  }
  0x44   : > { %1361 = vmatpush1.bf16.msra.mxu0 %v5065_v24  ;;  %619 = vmatprep.subr.bf16.mxu1 %v5073_v30  ;;  %v327_v24 = vor.u32 %v326_v11, %v322_v9  ;;  %v5127_v30 = vld [vmem:[%s7285_s1 + $0x700] ss:$8 sps:$4 sm:$0xff]   ;;  %v5198_v22 = vld [vmem:[%s7285_s1 + $0xc4] ss:$8 sps:$4 sm:$0xff]  }
  0x45   : > { %1800 = vmatprep.subr.bf16.mxu0 %v5078_v31  ;;  %v5175_v9 = vld [vmem:[%s7285_s1 + $0x880] ss:$8 sps:$4 sm:$0xff]   ;;  %v5201_v23 = vld [vmem:[%s7285_s1 + $0x8c4] ss:$8 sps:$4 sm:$0xff]  }
  0x46   : > { %609 = vmatmul.mubr.bf16.vlgmr.msra.gmra.mrb[0].mxu1 %v308_v36  ;;  %v332_v31 = vsel %vm296_vm0, %v327_v24, %v331_v25  ;;  %v5133_v36 = vld [vmem:[%s7285_s1 + $0x710] ss:$8 sps:$4 sm:$0xff]   ;;  %v5196_v24 = vld [vmem:[%s7285_s1 + $0xc0] ss:$8 sps:$4 sm:$0xff]  }
  0x47   : > { %1379 = vmatmul.mubr.bf16.vlgmr.msra.gmra.mrb[4].mxu0 %v1059_v33  ;;  %620 = vmatpush1.bf16.msra.mxu1 %v5071_v32  ;;  %v5132_v32 = vld [vmem:[%s7285_s1 + $0x14] ss:$8 sps:$4 sm:$0xff]   ;;  %v5199_v25 = vld [vmem:[%s7285_s1 + $0x8c0] ss:$8 sps:$4 sm:$0xff]  }
  0x48   : > { %1801 = vmatpush1.bf16.msra.mxu0 %v5076_v34  ;;  %621 = vmatprep.subr.bf16.mxu1 %v5083_v38  ;;  %v5135_v33 = vld [vmem:[%s7285_s1 + $0x714] ss:$8 sps:$4 sm:$0xff]   ;;  %v5130_v34 = vld [vmem:[%s7285_s1 + $0x10] ss:$8 sps:$4 sm:$0xff]   ;;  %v5138_v38 = vld [vmem:[%s7285_s1 + $0x24] ss:$8 sps:$4 sm:$0xff]  }
  0x49   : > { %1802 = vmatprep.subr.bf16.mxu0 %v5086_v39  ;;  %1832 = vmatprep.mubr.bf16.mxu0 %v5664_v2  ;;  %v5141_v39 = vld [vmem:[%s7285_s1 + $0x724] ss:$8 sps:$4 sm:$0xff]  }
  0x4a   : > { %651 = vmatprep.mubr.bf16.mxu1 %v5664_v2 }
  0x4b   : > { %622 = vmatpush1.bf16.msra.mxu1 %v5081_v40  ;;  %v5136_v40 = vld [vmem:[%s7285_s1 + $0x20] ss:$8 sps:$4 sm:$0xff]  }
  0x4c   : > { %1803 = vmatpush1.bf16.msra.mxu0 %v5084_v41  ;;  %623 = vmatprep.subr.bf16.mxu1 %v5089_v42  ;;  %v5139_v41 = vld [vmem:[%s7285_s1 + $0x720] ss:$8 sps:$4 sm:$0xff]   ;;  %v5144_v42 = vld [vmem:[%s7285_s1 + $0x34] ss:$8 sps:$4 sm:$0xff]  }
  0x4d   : > { %1804 = vmatprep.subr.bf16.mxu0 %v5092_v43  ;;  %v5142_v43 = vld [vmem:[%s7285_s1 + $0x30] ss:$8 sps:$4 sm:$0xff]  }
  0x4f   : > { %624 = vmatpush1.bf16.msra.mxu1 %v5087_v44  ;;  %v5145_v44 = vld [vmem:[%s7285_s1 + $0x730] ss:$8 sps:$4 sm:$0xff]  }
  0x50   : > { %1805 = vmatpush1.bf16.msra.mxu0 %v5090_v45  ;;  %625 = vmatprep.subr.bf16.mxu1 %v5095_v46  ;;  %v5150_v45 = vld [vmem:[%s7285_s1 + $0x44] ss:$8 sps:$4 sm:$0xff]  }
  0x51   : > { %1806 = vmatprep.subr.bf16.mxu0 %v5098_v47  ;;  %v5153_v46 = vld [vmem:[%s7285_s1 + $0x744] ss:$8 sps:$4 sm:$0xff]   ;;  %v5148_v47 = vld [vmem:[%s7285_s1 + $0x40] ss:$8 sps:$4 sm:$0xff]  }
  0x53   : > { %626 = vmatpush1.bf16.msra.mxu1 %v5093_v49  ;;  %v5156_v49 = vld [vmem:[%s7285_s1 + $0x54] ss:$8 sps:$4 sm:$0xff]  }
  0x54   : > { %1807 = vmatpush1.bf16.msra.mxu0 %v5096_v50  ;;  %627 = vmatprep.subr.bf16.mxu1 %v5101_v51  ;;  %v5159_v50 = vld [vmem:[%s7285_s1 + $0x754] ss:$8 sps:$4 sm:$0xff]   ;;  %v1848_v51 = vld [vmem:[%s5794_s27 + $0x8] sm:$0x8] }
  0x55   : > { %1808 = vmatprep.subr.bf16.mxu0 %v5104_v52  ;;  %v5154_v52 = vld [vmem:[%s7285_s1 + $0x50] ss:$8 sps:$4 sm:$0xff]   ;;  %v6135_v62 = vcombine.low %v1848_v51, %v5807_v35  ;;  %v5222_v51 = vld [vmem:[%s7285_s1 + $0x304] ss:$8 sps:$4 sm:$0xff]  }
  0x56   : > { %v5169_v35 = vld [vmem:[%s7285_s1 + $0x770] ss:$8 sps:$4 sm:$0xff]  }
  0x57   : > { %628 = vmatpush1.bf16.msra.mxu1 %v5099_v55  ;;  %v5162_v55 = vld [vmem:[%s7285_s1 + $0x64] ss:$8 sps:$4 sm:$0xff]   ;;  %v1913_v5 = vrot.slane %v6135_v62, 3 }
  0x58   : > { %1809 = vmatpush1.bf16.msra.mxu0 %v5102_v56  ;;  %629 = vmatprep.subr.bf16.mxu1 %v5107_v60  ;;  %v5165_v56 = vld [vmem:[%s7285_s1 + $0x764] ss:$8 sps:$4 sm:$0xff]   ;;  %v5160_v60 = vld [vmem:[%s7285_s1 + $0x60] ss:$8 sps:$4 sm:$0xff]  }
  0x59   : > { %1810 = vmatprep.subr.bf16.mxu0 %v5110_v61  ;;  %v5163_v61 = vld [vmem:[%s7285_s1 + $0x760] ss:$8 sps:$4 sm:$0xff]   ;;  %v1915_v11 = vsel %vm1906_vm3, %v1913_v5, %v1914_v6 }
  0x5b   : > { %630 = vmatpush1.bf16.msra.mxu1 %v5105_v1  ;;  %v5171_v1 = vld [vmem:[%s7285_s1 + $0x774] ss:$8 sps:$4 sm:$0xff]  }
  0x5c   : > { %1811 = vmatpush1.bf16.msra.mxu0 %v5108_v4  ;;  %631 = vmatprep.subr.bf16.mxu1 %v5113_v7  ;;  %v5174_v4 = vld [vmem:[%s7285_s1 + $0x84] ss:$8 sps:$4 sm:$0xff]  }
  0x5d   : > { %1812 = vmatprep.subr.bf16.mxu0 %v5116_v8  ;;  %v5177_v7 = vld [vmem:[%s7285_s1 + $0x884] ss:$8 sps:$4 sm:$0xff]   ;;  %v5172_v8 = vld [vmem:[%s7285_s1 + $0x80] ss:$8 sps:$4 sm:$0xff]  }
  0x5f   : > { %632 = vmatpush1.bf16.msra.mxu1 %v5111_v13  ;;  %v5178_v13 = vld [vmem:[%s7285_s1 + $0x90] ss:$8 sps:$4 sm:$0xff]  }
  0x60   : > { %1813 = vmatpush1.bf16.msra.mxu0 %v5114_v17  ;;  %633 = vmatprep.subr.bf16.mxu1 %v5119_v37  ;;  %v5189_v17 = vld [vmem:[%s7285_s1 + $0x8a4] ss:$8 sps:$4 sm:$0xff]   ;;  %v5192_v37 = vld [vmem:[%s7285_s1 + $0xb4] ss:$8 sps:$4 sm:$0xff]  }
  0x61   : > { %1814 = vmatprep.subr.bf16.mxu0 %v5122_v20  ;;  %v5195_v20 = vld [vmem:[%s7285_s1 + $0x8b4] ss:$8 sps:$4 sm:$0xff]  }
  0x63   : > { %634 = vmatpush1.bf16.msra.mxu1 %v5117_v16  ;;  %v5190_v16 = vld [vmem:[%s7285_s1 + $0xb0] ss:$8 sps:$4 sm:$0xff]  }
  0x64   : > { %1815 = vmatpush1.bf16.msra.mxu0 %v5120_v21  ;;  %905 = vmatprep.subr.bf16.mxu1 %v5125_v26  ;;  %v5193_v21 = vld [vmem:[%s7285_s1 + $0x8b0] ss:$8 sps:$4 sm:$0xff]   ;;  %v5204_v26 = vld [vmem:[%s7285_s1 + $0xd4] ss:$8 sps:$4 sm:$0xff]  }
  0x65   : > { %2202 = vmatprep.subr.bf16.mxu0 %v5129_v27  ;;  %v5226_v27 = vld [vmem:[%s5794_s27 + $0x20] ss:$0 sps:$4 sm:$0xff]  }
  0x66   : > { %652 = vmatmul.mubr.bf16.vlgmr.msra.gmra.mrb[0].mxu1 %v332_v31  ;;  %v5205_v31 = vld [vmem:[%s7285_s1 + $0x8d0] ss:$8 sps:$4 sm:$0xff]  }
  0x67   : > { %1833 = vmatmul.mubr.bf16.vlgmr.msra.gmra.mrb[8].mxu0 %v1513_v29  ;;  %906 = vmatpush1.bf16.msra.mxu1 %v5123_v28  ;;  %v5207_v28 = vld [vmem:[%s7285_s1 + $0x8d4] ss:$8 sps:$4 sm:$0xff]   ;;  %v2344_v29 = vshrl.u32 %v6135_v62, 16 }
  0x68   : > { %2203 = vmatpush1.bf16.msra.mxu0 %v5127_v30  ;;  %907 = vmatprep.subr.bf16.mxu1 %v5132_v32  ;;  %v5202_v30 = vld [vmem:[%s7285_s1 + $0xd0] ss:$8 sps:$4 sm:$0xff]   ;;  %v2347_v32 = vshll.u32 %v6135_v62, 16 }
  0x69   : > { %2204 = vmatprep.subr.bf16.mxu0 %v5135_v33  ;;  %2234 = vmatprep.mubr.bf16.mxu0 %v5664_v2  ;;  %v5210_v33 = vld [vmem:[%s7285_s1 + $0xe4] ss:$8 sps:$4 sm:$0xff]  }
  0x6a   : > { %937 = vmatprep.mubr.bf16.mxu1 %v5871_v57  ;;  %v5147_v57 = vld [vmem:[%s7285_s1 + $0x734] ss:$8 sps:$4 sm:$0xff]  }
  0x6b   : > { %908 = vmatpush1.bf16.msra.mxu1 %v5130_v34  ;;  %v2352_v34 = vshrl.u32 %v5226_v27, 16 }
  0x6c   : > { %2205 = vmatpush1.bf16.msra.mxu0 %v5133_v36  ;;  %909 = vmatprep.subr.bf16.mxu1 %v5138_v38  ;;  %v2355_v36 = vshll.u32 %v5226_v27, 16  ;;  %v5213_v38 = vld [vmem:[%s7285_s1 + $0x8e4] ss:$8 sps:$4 sm:$0xff]   ;;  %v5257_v27 = vld [vmem:[%s7285_s1 + $0x360] ss:$8 sps:$4 sm:$0xff]  }
  0x6d   : > { %2206 = vmatprep.subr.bf16.mxu0 %v5141_v39  ;;  %v2346_v39 = vrot.slane %v2344_v29, 3  ;;  %v5265_v29 = vld [vmem:[%s7285_s1 + $0x374] ss:$8 sps:$4 sm:$0xff]  }
  0x6f   : > { %910 = vmatpush1.bf16.msra.mxu1 %v5136_v40  ;;  %v5208_v40 = vld [vmem:[%s7285_s1 + $0xe0] ss:$8 sps:$4 sm:$0xff]  }
  0x70   : > { %2207 = vmatpush1.bf16.msra.mxu0 %v5139_v41  ;;  %911 = vmatprep.subr.bf16.mxu1 %v5144_v42  ;;  %v5211_v41 = vld [vmem:[%s7285_s1 + $0x8e0] ss:$8 sps:$4 sm:$0xff]   ;;  %v2349_v42 = vrot.slane %v2347_v32, 4  ;;  %v5266_v32 = vld [vmem:[%s7285_s1 + $0x970] ss:$8 sps:$4 sm:$0xff]  }
  0x71   : > { %2208 = vmatprep.subr.bf16.mxu0 %v5147_v57  ;;  %v5216_v57 = vld [vmem:[%s7285_s1 + $0xf4] ss:$8 sps:$4 sm:$0xff]  }
  0x73   : > { %912 = vmatpush1.bf16.msra.mxu1 %v5142_v43  ;;  %v2354_v43 = vrot.slane %v2352_v34, 3  ;;  %v5274_v34 = vld [vmem:[%s7285_s1 + $0x984] ss:$8 sps:$4 sm:$0xff]  }
  0x74   : > { %2209 = vmatpush1.bf16.msra.mxu0 %v5145_v44  ;;  %913 = vmatprep.subr.bf16.mxu1 %v5150_v45  ;;  %v2357_v44 = vrot.slane %v2355_v36, 4  ;;  %v5219_v45 = vld [vmem:[%s7285_s1 + $0x8f4] ss:$8 sps:$4 sm:$0xff]   ;;  %v5269_v36 = vld [vmem:[%s7285_s1 + $0x380] ss:$8 sps:$4 sm:$0xff]  }
  0x75   : > { %2210 = vmatprep.subr.bf16.mxu0 %v5153_v46  ;;  %v5214_v46 = vld [vmem:[%s7285_s1 + $0xf0] ss:$8 sps:$4 sm:$0xff]  }
  0x77   : > { %914 = vmatpush1.bf16.msra.mxu1 %v5148_v47  ;;  %v5217_v47 = vld [vmem:[%s7285_s1 + $0x8f0] ss:$8 sps:$4 sm:$0xff]  }
  0x78   : > { %2211 = vmatpush1.bf16.msra.mxu0 %v5151_v48  ;;  %915 = vmatprep.subr.bf16.mxu1 %v5156_v49  ;;  %v2350_v48 = vor.u32 %v2349_v42, %v2346_v39  ;;  %v2358_v49 = vor.u32 %v2357_v44, %v2354_v43  ;;  %v5277_v39 = vld [vmem:[%s7285_s1 + $0x394] ss:$8 sps:$4 sm:$0xff]   ;;  %v5278_v42 = vld [vmem:[%s7285_s1 + $0x990] ss:$8 sps:$4 sm:$0xff]   ;;  %v5286_v43 = vld [vmem:[%s7285_s1 + $0x9a4] ss:$8 sps:$4 sm:$0xff]  }
  0x79   : > { %2212 = vmatprep.subr.bf16.mxu0 %v5159_v50  ;;  %v6253_v50 = vld [vmem:[%s5794_s27] sm:$0xee] }
  0x7a   : > { %v5281_v44 = vld [vmem:[%s7285_s1 + $0x3a0] ss:$8 sps:$4 sm:$0xff]  }
  0x7b   : > { %916 = vmatpush1.bf16.msra.mxu1 %v5154_v52  ;;  %v5225_v52 = vld [vmem:[%s7285_s1 + $0x904] ss:$8 sps:$4 sm:$0xff]  }
  0x7c   : > { %2213 = vmatpush1.bf16.msra.mxu0 %v5157_v53  ;;  %917 = vmatprep.subr.bf16.mxu1 %v5162_v55  ;;  %v4239_v53 = vcombine.high %v6253_v50, %v5864_v54  ;;  %v6264_v55 = vld [vmem:[%s5794_s27 + $0xc] sm:$0xee] }
  0x7d   : > { %2214 = vmatprep.subr.bf16.mxu0 %v5165_v56  ;;  %v6267_v56 = vld [vmem:[%s5794_s27 + $0x18] sm:$0xff] }
  0x7e   : > { %v1054_v62 = vrot.slane %v4239_v53, 1  ;;  %v5293_v53 = vld [vmem:[%s7285_s1 + $0x3c0] ss:$8 sps:$4 sm:$0xff]  }
  0x7f   : > { %918 = vmatpush1.bf16.msra.mxu1 %v5160_v60  ;;  %v6270_v60 = vld [vmem:[%s5794_s27 + $0x24] sm:$0x11] }
  0x80   : > { %2215 = vmatpush1.bf16.msra.mxu0 %v5163_v61  ;;  %919 = vmatprep.subr.bf16.mxu1 %v5168_v63  ;;  %v5220_v61 = vld [vmem:[%s7285_s1 + $0x300] ss:$8 sps:$4 sm:$0xff]   ;;  %v1055_v63 = vrot.slane %v5873_v58, 1  ;;  %v4641_v54 = vcombine.high %v6270_v60, %v6270_v60  ;;  %v5232_v58 = vld [vmem:[%s7285_s1 + $0x914] ss:$8 sps:$4 sm:$0xff]  }
  0x81   : > { %2216 = vmatprep.subr.bf16.mxu0 %v5171_v1  ;;  %v6278_v1 = vcombine.high %v6264_v55, %v6267_v56 }
  0x82   : > { %v2773_v6 = vrot.slane %v4641_v54, 1  ;;  %v6441_v54 = vld [vmem:[%s5794_s27 + $0x18] sm:$0x77] }
  0x83   : > { %920 = vmatpush1.bf16.msra.mxu1 %v5166_v3  ;;  %v5223_v3 = vld [vmem:[%s7285_s1 + $0x900] ss:$8 sps:$4 sm:$0xff]   ;;  %v2772_v5 = vrot.slane %v6278_v1, 1 }
  0x84   : > { %2217 = vmatpush1.bf16.msra.mxu0 %v5169_v35  ;;  %921 = vmatprep.subr.bf16.mxu1 %v5174_v4  ;;  %v2359_v35 = vsel %vm2308_vm4, %v2350_v48, %v2358_v49  ;;  %v5229_v4 = vld [vmem:[%s7285_s1 + $0x314] ss:$8 sps:$4 sm:$0xff]   ;;  %v5287_v48 = vld [vmem:[%s7285_s1 + $0x3b0] ss:$8 sps:$4 sm:$0xff]  }
  0x85   : > { %2646 = vmatprep.subr.bf16.mxu0 %v5177_v7  ;;  %v5227_v7 = vld [vmem:[%s7285_s1 + $0x310] ss:$8 sps:$4 sm:$0xff]  }
  0x86   : > { %v5290_v49 = vld [vmem:[%s7285_s1 + $0x9b0] ss:$8 sps:$4 sm:$0xff]  }
  0x87   : > { %2235 = vmatmul.mubr.bf16.vlgmr.msra.gmra.mrb[12].mxu0 %v1915_v11  ;;  %922 = vmatpush1.bf16.msra.mxu1 %v5172_v8  ;;  %v1056_v8 = vsel %vm1050_vm1, %v1054_v62, %v1055_v63  ;;  %v5230_v11 = vld [vmem:[%s7285_s1 + $0x910] ss:$8 sps:$4 sm:$0xff]   ;;  %v5301_v62 = vld [vmem:[%s7285_s1 + $0x3d4] ss:$8 sps:$4 sm:$0xff]   ;;  %v6438_v63 = vld [vmem:[%s5794_s27] sm:$0xcc] }
  0x88   : > { %2647 = vmatpush1.bf16.msra.mxu0 %v5175_v9  ;;  %923 = vmatprep.subr.bf16.mxu1 %v5180_v59  ;;  %v2774_v9 = vsel %vm1050_vm1, %v2772_v5, %v2773_v6  ;;  %v5238_v59 = vld [vmem:[%s7285_s1 + $0x924] ss:$8 sps:$4 sm:$0xff]   ;;  %v6456_v5 = vcombine.high %v6441_v54, %v6441_v54  ;;  %v5302_v6 = vld [vmem:[%s7285_s1 + $0x9d0] ss:$8 sps:$4 sm:$0xff]  }
  0x89   : > { %2648 = vmatprep.subr.bf16.mxu0 %v5183_v12  ;;  %2678 = vmatprep.mubr.bf16.mxu0 %v5664_v2  ;;  %v5233_v12 = vld [vmem:[%s7285_s1 + $0x320] ss:$8 sps:$4 sm:$0xff]  }
  0x8b   : > { %924 = vmatpush1.bf16.msra.mxu1 %v5178_v13  ;;  %v5236_v13 = vld [vmem:[%s7285_s1 + $0x920] ss:$8 sps:$4 sm:$0xff]  }
  0x8c   : > { %2649 = vmatpush1.bf16.msra.mxu0 %v5181_v14  ;;  %925 = vmatprep.subr.bf16.mxu1 %v5186_v15  ;;  %v5241_v14 = vld [vmem:[%s7285_s1 + $0x334] ss:$8 sps:$4 sm:$0xff]  }
  0x8d   : > { %2650 = vmatprep.subr.bf16.mxu0 %v5189_v17  ;;  %v5244_v15 = vld [vmem:[%s7285_s1 + $0x934] ss:$8 sps:$4 sm:$0xff]   ;;  %v5239_v17 = vld [vmem:[%s7285_s1 + $0x330] ss:$8 sps:$4 sm:$0xff]  }
  0x8f   : > { %926 = vmatpush1.bf16.msra.mxu1 %v5184_v18  ;;  %v5242_v18 = vld [vmem:[%s7285_s1 + $0x930] ss:$8 sps:$4 sm:$0xff]  }
  0x90   : > { %2651 = vmatpush1.bf16.msra.mxu0 %v5187_v19  ;;  %927 = vmatprep.subr.bf16.mxu1 %v5192_v37  ;;  %v5247_v19 = vld [vmem:[%s7285_s1 + $0x344] ss:$8 sps:$4 sm:$0xff]  }
  0x91   : > { %2652 = vmatprep.subr.bf16.mxu0 %v5195_v20  ;;  %v5250_v37 = vld [vmem:[%s7285_s1 + $0x944] ss:$8 sps:$4 sm:$0xff]   ;;  %v5245_v20 = vld [vmem:[%s7285_s1 + $0x340] ss:$8 sps:$4 sm:$0xff]  }
  0x93   : > { %928 = vmatpush1.bf16.msra.mxu1 %v5190_v16  ;;  %v5248_v16 = vld [vmem:[%s7285_s1 + $0x940] ss:$8 sps:$4 sm:$0xff]  }
  0x94   : > { %2653 = vmatpush1.bf16.msra.mxu0 %v5193_v21  ;;  %929 = vmatprep.subr.bf16.mxu1 %v5198_v22  ;;  %v5253_v21 = vld [vmem:[%s7285_s1 + $0x354] ss:$8 sps:$4 sm:$0xff]  }
  0x95   : > { %2654 = vmatprep.subr.bf16.mxu0 %v5201_v23  ;;  %v5256_v22 = vld [vmem:[%s7285_s1 + $0x954] ss:$8 sps:$4 sm:$0xff]   ;;  %v5251_v23 = vld [vmem:[%s7285_s1 + $0x350] ss:$8 sps:$4 sm:$0xff]  }
  0x97   : > { %930 = vmatpush1.bf16.msra.mxu1 %v5196_v24  ;;  %v5254_v24 = vld [vmem:[%s7285_s1 + $0x950] ss:$8 sps:$4 sm:$0xff]  }
  0x98   : > { %2655 = vmatpush1.bf16.msra.mxu0 %v5199_v25  ;;  %931 = vmatprep.subr.bf16.mxu1 %v5204_v26  ;;  %v5259_v25 = vld [vmem:[%s7285_s1 + $0x364] ss:$8 sps:$4 sm:$0xff]  }
  0x99   : > { %2656 = vmatprep.subr.bf16.mxu0 %v5207_v28  ;;  %v5262_v26 = vld [vmem:[%s7285_s1 + $0x964] ss:$8 sps:$4 sm:$0xff]   ;;  %v5260_v28 = vld [vmem:[%s7285_s1 + $0x960] ss:$8 sps:$4 sm:$0xff]  }
  0x9b   : > { %932 = vmatpush1.bf16.msra.mxu1 %v5202_v30  ;;  %v5268_v30 = vld [vmem:[%s7285_s1 + $0x974] ss:$8 sps:$4 sm:$0xff]  }
  0x9c   : > { %2657 = vmatpush1.bf16.msra.mxu0 %v5205_v31  ;;  %933 = vmatprep.subr.bf16.mxu1 %v5210_v33  ;;  %v5263_v31 = vld [vmem:[%s7285_s1 + $0x370] ss:$8 sps:$4 sm:$0xff]   ;;  %v5271_v33 = vld [vmem:[%s7285_s1 + $0x384] ss:$8 sps:$4 sm:$0xff]  }
  0x9d   : > { %2658 = vmatprep.subr.bf16.mxu0 %v5213_v38  ;;  %v5272_v38 = vld [vmem:[%s7285_s1 + $0x980] ss:$8 sps:$4 sm:$0xff]  }
  0x9f   : > { %934 = vmatpush1.bf16.msra.mxu1 %v5208_v40  ;;  %v5280_v40 = vld [vmem:[%s7285_s1 + $0x994] ss:$8 sps:$4 sm:$0xff]  }
  0xa0   : > { %2659 = vmatpush1.bf16.msra.mxu0 %v5211_v41  ;;  %935 = vmatprep.subr.bf16.mxu1 %v5216_v57  ;;  %v5275_v41 = vld [vmem:[%s7285_s1 + $0x390] ss:$8 sps:$4 sm:$0xff]   ;;  %v5283_v57 = vld [vmem:[%s7285_s1 + $0x3a4] ss:$8 sps:$4 sm:$0xff]  }
  0xa1   : > { %2660 = vmatprep.subr.bf16.mxu0 %v5219_v45  ;;  %v5284_v45 = vld [vmem:[%s7285_s1 + $0x9a0] ss:$8 sps:$4 sm:$0xff]  }
  0xa3   : > { %936 = vmatpush1.bf16.msra.mxu1 %v5214_v46  ;;  %v5289_v46 = vld [vmem:[%s7285_s1 + $0x3b4] ss:$8 sps:$4 sm:$0xff]  }
  0xa4   : > { %2661 = vmatpush1.bf16.msra.mxu0 %v5217_v47  ;;  %1303 = vmatprep.subr.bf16.mxu1 %v5222_v51  ;;  %v5292_v47 = vld [vmem:[%s7285_s1 + $0x9b4] ss:$8 sps:$4 sm:$0xff]   ;;  %v5295_v51 = vld [vmem:[%s7285_s1 + $0x3c4] ss:$8 sps:$4 sm:$0xff]  }
  0xa5   : > { %3021 = vmatprep.subr.bf16.mxu0 %v5225_v52  ;;  %v5298_v52 = vld [vmem:[%s7285_s1 + $0x9c4] ss:$8 sps:$4 sm:$0xff]  }
  0xa6   : > { %938 = vmatmul.mubr.bf16.vlgmr.msra.gmra.mrb[0].mxu1 %v5885_v0  ;;  %v5235_v0 = vld [vmem:[%s7285_s1 + $0x324] ss:$8 sps:$4 sm:$0xff]  }
  0xa7   : > { %2679 = vmatmul.mubr.bf16.vlgmr.msra.gmra.mrb[16].mxu0 %v2359_v35  ;;  %1304 = vmatpush1.bf16.msra.mxu1 %v5220_v61  ;;  %v5296_v61 = vld [vmem:[%s7285_s1 + $0x9c0] ss:$8 sps:$4 sm:$0xff]   ;;  %v5299_v35 = vld [vmem:[%s7285_s1 + $0x3d0] ss:$8 sps:$4 sm:$0xff]  }
  0xa8   : > { %3022 = vmatpush1.bf16.msra.mxu0 %v5223_v3  ;;  %1305 = vmatprep.subr.bf16.mxu1 %v5229_v4  ;;  %v5304_v3 = vld [vmem:[%s7285_s1 + $0x9d4] ss:$8 sps:$4 sm:$0xff]   ;;  %v6450_v4 = vld [vmem:[%s5794_s27 + $0xc] sm:$0xff] }
  0xa9   : > { %3023 = vmatprep.subr.bf16.mxu0 %v5232_v58  ;;  %1335 = vmatprep.mubr.bf16.mxu1 %v1056_v8  ;;  %v4338_v58 = vcombine.high %v6438_v63, %v6450_v4  ;;  %v5310_v8 = vld [vmem:[%s7285_s1 + $0x9e4] ss:$8 sps:$4 sm:$0xff]  }
  0xaa   : > { %3053 = vmatprep.mubr.bf16.mxu0 %v2774_v9  ;;  %v5305_v9 = vld [vmem:[%s7285_s1 + $0x3e0] ss:$8 sps:$4 sm:$0xff]  }
  0xab   : > { %1306 = vmatpush1.bf16.msra.mxu1 %v5227_v7  ;;  %v5307_v7 = vld [vmem:[%s7285_s1 + $0x3e4] ss:$8 sps:$4 sm:$0xff]  }
  0xac   : > { %3024 = vmatpush1.bf16.msra.mxu0 %v5230_v11  ;;  %1307 = vmatprep.subr.bf16.mxu1 %v5235_v0  ;;  %v1481_v11 = vshrl.u32 %v4338_v58, 16  ;;  %v1484_v0 = vshll.u32 %v4338_v58, 16  ;;  %v5361_v58 = vld [vmem:[%s7285_s1 + $0x4e4] ss:$8 sps:$4 sm:$0xff]  }
  0xad   : > { %3025 = vmatprep.subr.bf16.mxu0 %v5238_v59  ;;  %v1489_v59 = vshrl.u32 %v6456_v5, 16 }
  0xaf   : > { %1308 = vmatpush1.bf16.msra.mxu1 %v5233_v12  ;;  %v1492_v12 = vshll.u32 %v6456_v5, 16 }
  0xb0   : > { %3026 = vmatpush1.bf16.msra.mxu0 %v5236_v13  ;;  %1309 = vmatprep.subr.bf16.mxu1 %v5241_v14  ;;  %v5308_v13 = vld [vmem:[%s7285_s1 + $0x9e0] ss:$8 sps:$4 sm:$0xff]   ;;  %v5313_v14 = vld [vmem:[%s7285_s1 + $0x3f4] ss:$8 sps:$4 sm:$0xff]  }
  0xb1   : > { %3027 = vmatprep.subr.bf16.mxu0 %v5244_v15  ;;  %v4238_v15 = vcombine.low %v6253_v50, %v6450_v4  ;;  %v5314_v50 = vld [vmem:[%s7285_s1 + $0x9f0] ss:$8 sps:$4 sm:$0xff]  }
  0xb3   : > { %1310 = vmatpush1.bf16.msra.mxu1 %v5239_v17  ;;  %v6482_v17 = vcombine.low %v6264_v55, %v6267_v56  ;;  %v1052_v55 = vrot.slane %v5902_v10, 1  ;;  %v1483_v56 = vrot.slane %v1481_v11, 2  ;;  %v5326_v10 = vld [vmem:[%s7285_s1 + $0xa04] ss:$8 sps:$4 sm:$0xff]  }
  0xb4   : > { %3028 = vmatpush1.bf16.msra.mxu0 %v5242_v18  ;;  %1311 = vmatprep.subr.bf16.mxu1 %v5247_v19  ;;  %v4640_v18 = vcombine.low %v6270_v60, %v6270_v60  ;;  %v5316_v19 = vld [vmem:[%s7285_s1 + $0x9f4] ss:$8 sps:$4 sm:$0xff]   ;;  %v1494_v60 = vrot.slane %v1492_v12, 3  ;;  %v3189_v12 = vshrl.u32 %v6278_v1, 16 }
  0xb5   : > { %3029 = vmatprep.subr.bf16.mxu0 %v5250_v37  ;;  %v5311_v37 = vld [vmem:[%s7285_s1 + $0x3f0] ss:$8 sps:$4 sm:$0xff]  }
  0xb7   : > { %1312 = vmatpush1.bf16.msra.mxu1 %v5245_v20  ;;  %v1486_v20 = vrot.slane %v1484_v0, 3  ;;  %v5378_v0 = vld [vmem:[%s5794_s27 + $0x2c] ss:$0 sps:$4 sm:$0x11]  }
  0xb8   : > { %3030 = vmatpush1.bf16.msra.mxu0 %v5248_v16  ;;  %1313 = vmatprep.subr.bf16.mxu1 %v5253_v21  ;;  %v1491_v16 = vrot.slane %v1489_v59, 2  ;;  %v1051_v21 = vrot.slane %v4238_v15, 1 }
  0xb9   : > { %3031 = vmatprep.subr.bf16.mxu0 %v5256_v22  ;;  %v5321_v22 = vld [vmem:[%s7285_s1 + $0x484] ss:$8 sps:$4 sm:$0xff]  }
  0xbb   : > { %1314 = vmatpush1.bf16.msra.mxu1 %v5251_v23  ;;  %v2769_v23 = vrot.slane %v6482_v17, 1 }
  0xbc   : > { %3032 = vmatpush1.bf16.msra.mxu0 %v5254_v24  ;;  %1315 = vmatprep.subr.bf16.mxu1 %v5259_v25  ;;  %v2770_v24 = vrot.slane %v4640_v18, 1  ;;  %v5319_v25 = vld [vmem:[%s7285_s1 + $0x480] ss:$8 sps:$4 sm:$0xff]  }
  0xbd   : > { %3033 = vmatprep.subr.bf16.mxu0 %v5262_v26  ;;  %v1487_v26 = vor.u32 %v1486_v20, %v1483_v56  ;;  %v5365_v56 = vld [vmem:[%s7285_s1 + $0x4f0] ss:$8 sps:$4 sm:$0xff]  }
  0xbe   : > { %v5368_v20 = vld [vmem:[%s7285_s1 + $0xa70] ss:$8 sps:$4 sm:$0xff]  }
  0xbf   : > { %1316 = vmatpush1.bf16.msra.mxu1 %v5257_v27  ;;  %v1495_v27 = vor.u32 %v1494_v60, %v1491_v16  ;;  %v5373_v16 = vld [vmem:[%s7285_s1 + $0x504] ss:$8 sps:$4 sm:$0xff]  }
  0xc0   : > { %3034 = vmatpush1.bf16.msra.mxu0 %v5260_v28  ;;  %1317 = vmatprep.subr.bf16.mxu1 %v5265_v29  ;;  %v1053_v28 = vsel %vm1050_vm1, %v1051_v21, %v1052_v55  ;;  %v5324_v29 = vld [vmem:[%s7285_s1 + $0xa00] ss:$8 sps:$4 sm:$0xff]   ;;  %v5376_v60 = vld [vmem:[%s7285_s1 + $0xa84] ss:$8 sps:$4 sm:$0xff]   ;;  %v3191_v21 = vrot.slane %v3189_v12, 1 }
  0xc1   : > { %3035 = vmatprep.subr.bf16.mxu0 %v5268_v30  ;;  %v2771_v30 = vsel %vm1050_vm1, %v2769_v23, %v2770_v24  ;;  %v5405_v12 = vld [vmem:[%s7285_s1 + $0x554] ss:$8 sps:$4 sm:$0xff]  }
  0xc3   : > { %1318 = vmatpush1.bf16.msra.mxu1 %v5263_v31  ;;  %v5331_v31 = vld [vmem:[%s7285_s1 + $0x494] ss:$8 sps:$4 sm:$0xff]  }
  0xc4   : > { %3036 = vmatpush1.bf16.msra.mxu0 %v5266_v32  ;;  %1319 = vmatprep.subr.bf16.mxu1 %v5271_v33  ;;  %v5334_v32 = vld [vmem:[%s7285_s1 + $0xa14] ss:$8 sps:$4 sm:$0xff]   ;;  %v5329_v33 = vld [vmem:[%s7285_s1 + $0x490] ss:$8 sps:$4 sm:$0xff]  }
  0xc5   : > { %3037 = vmatprep.subr.bf16.mxu0 %v5274_v34  ;;  %v5332_v34 = vld [vmem:[%s7285_s1 + $0xa10] ss:$8 sps:$4 sm:$0xff]  }
  0xc7   : > { %1320 = vmatpush1.bf16.msra.mxu1 %v5269_v36  ;;  %v1496_v36 = vsel %vm1462_vm2, %v1487_v26, %v1495_v27  ;;  %v5531_v27 = vld [vmem:[%s5794_s27 + $0x2c] ss:$0 sps:$4 sm:$0x33]  }
  0xc8   : > { %3038 = vmatpush1.bf16.msra.mxu0 %v5272_v38  ;;  %1321 = vmatprep.subr.bf16.mxu1 %v5277_v39  ;;  %v5337_v38 = vld [vmem:[%s7285_s1 + $0x4a4] ss:$8 sps:$4 sm:$0xff]  }
  0xc9   : > { %3039 = vmatprep.subr.bf16.mxu0 %v5280_v40  ;;  %v5340_v39 = vld [vmem:[%s7285_s1 + $0xa24] ss:$8 sps:$4 sm:$0xff]   ;;  %v5335_v40 = vld [vmem:[%s7285_s1 + $0x4a0] ss:$8 sps:$4 sm:$0xff]  }
  0xcb   : > { %1322 = vmatpush1.bf16.msra.mxu1 %v5275_v41  ;;  %v5338_v41 = vld [vmem:[%s7285_s1 + $0xa20] ss:$8 sps:$4 sm:$0xff]  }
  0xcc   : > { %3040 = vmatpush1.bf16.msra.mxu0 %v5278_v42  ;;  %1323 = vmatprep.subr.bf16.mxu1 %v5283_v57  ;;  %v5343_v42 = vld [vmem:[%s7285_s1 + $0x4b4] ss:$8 sps:$4 sm:$0xff]  }
  0xcd   : > { %3041 = vmatprep.subr.bf16.mxu0 %v5286_v43  ;;  %v5346_v57 = vld [vmem:[%s7285_s1 + $0xa34] ss:$8 sps:$4 sm:$0xff]   ;;  %v5341_v43 = vld [vmem:[%s7285_s1 + $0x4b0] ss:$8 sps:$4 sm:$0xff]  }
  0xcf   : > { %1324 = vmatpush1.bf16.msra.mxu1 %v5281_v44  ;;  %v5344_v44 = vld [vmem:[%s7285_s1 + $0xa30] ss:$8 sps:$4 sm:$0xff]  }
  0xd0   : > { %3042 = vmatpush1.bf16.msra.mxu0 %v5284_v45  ;;  %1325 = vmatprep.subr.bf16.mxu1 %v5289_v46  ;;  %v5349_v45 = vld [vmem:[%s7285_s1 + $0x4c4] ss:$8 sps:$4 sm:$0xff]  }
  0xd1   : > { %3043 = vmatprep.subr.bf16.mxu0 %v5292_v47  ;;  %v5352_v46 = vld [vmem:[%s7285_s1 + $0xa44] ss:$8 sps:$4 sm:$0xff]   ;;  %v5347_v47 = vld [vmem:[%s7285_s1 + $0x4c0] ss:$8 sps:$4 sm:$0xff]  }
  0xd3   : > { %1326 = vmatpush1.bf16.msra.mxu1 %v5287_v48  ;;  %v5350_v48 = vld [vmem:[%s7285_s1 + $0xa40] ss:$8 sps:$4 sm:$0xff]  }
  0xd4   : > { %3044 = vmatpush1.bf16.msra.mxu0 %v5290_v49  ;;  %1327 = vmatprep.subr.bf16.mxu1 %v5295_v51  ;;  %v5355_v49 = vld [vmem:[%s7285_s1 + $0x4d4] ss:$8 sps:$4 sm:$0xff]   ;;  %v6565_v51 = vld [vmem:[%s5794_s27 + $0x24] sm:$0x33] }
  0xd5   : > { %3045 = vmatprep.subr.bf16.mxu0 %v5298_v52  ;;  %v5358_v52 = vld [vmem:[%s7285_s1 + $0xa54] ss:$8 sps:$4 sm:$0xff]  }
  0xd7   : > { %1328 = vmatpush1.bf16.msra.mxu1 %v5293_v53  ;;  %v5353_v53 = vld [vmem:[%s7285_s1 + $0x4d0] ss:$8 sps:$4 sm:$0xff]  }
  0xd8   : > { %3046 = vmatpush1.bf16.msra.mxu0 %v5296_v61  ;;  %1329 = vmatprep.subr.bf16.mxu1 %v5301_v62  ;;  %v5356_v61 = vld [vmem:[%s7285_s1 + $0xa50] ss:$8 sps:$4 sm:$0xff]   ;;  %v2694_v62 = vld [vmem:[%s5794_s27 + $0x14] sm:$0xe] }
  0xd9   : > { %3047 = vmatprep.subr.bf16.mxu0 %v5304_v3  ;;  %v2696_v3 = vld [vmem:[%s5794_s27 + $0x20] sm:$0xf] }
  0xda   : > { %v4639_v11 = vcombine.low %v2694_v62, %v2696_v3  ;;  %v5391_v62 = vld [vmem:[%s7285_s1 + $0x530] ss:$8 sps:$4 sm:$0xff]  }
  0xdb   : > { %1330 = vmatpush1.bf16.msra.mxu1 %v5299_v35  ;;  %v6580_v35 = vcombine.high %v6565_v51, %v6565_v51  ;;  %v5394_v3 = vld [vmem:[%s7285_s1 + $0xab0] ss:$8 sps:$4 sm:$0xff]  }
  0xdc   : > { %3048 = vmatpush1.bf16.msra.mxu0 %v5302_v6  ;;  %1331 = vmatprep.subr.bf16.mxu1 %v5307_v7  ;;  %v5364_v6 = vld [vmem:[%s7285_s1 + $0xa64] ss:$8 sps:$4 sm:$0xff]   ;;  %v3209_v55 = vshll.u32 %v4639_v11, 16 }
  0xdd   : > { %3049 = vmatprep.subr.bf16.mxu0 %v5310_v8  ;;  %v5359_v8 = vld [vmem:[%s7285_s1 + $0x4e0] ss:$8 sps:$4 sm:$0xff]   ;;  %v3200_v15 = vshll.u32 %v6580_v35, 16 }
  0xdf   : > { %1332 = vmatpush1.bf16.msra.mxu1 %v5305_v9  ;;  %v5362_v9 = vld [vmem:[%s7285_s1 + $0xa60] ss:$8 sps:$4 sm:$0xff]   ;;  %v3202_v24 = vrot.slane %v3200_v15, 2 }
  0xe0   : > { %3050 = vmatpush1.bf16.msra.mxu0 %v5308_v13  ;;  %1333 = vmatprep.subr.bf16.mxu1 %v5313_v14  ;;  %v3192_v13 = vshll.u32 %v6278_v1, 16  ;;  %v3197_v14 = vshrl.u32 %v6580_v35, 16  ;;  %v5370_v1 = vld [vmem:[%s7285_s1 + $0xa74] ss:$8 sps:$4 sm:$0xff]  }
  0xe1   : > { %3051 = vmatprep.subr.bf16.mxu0 %v5316_v19  ;;  %v5367_v19 = vld [vmem:[%s7285_s1 + $0x4f4] ss:$8 sps:$4 sm:$0xff]  }
  0xe2   : > { %v3199_v23 = vrot.slane %v3197_v14, 1 }
  0xe3   : > { %1334 = vmatpush1.bf16.msra.mxu1 %v5311_v37  ;;  %v3206_v37 = vshrl.u32 %v4639_v11, 16 }
  0xe4   : > { %3052 = vmatpush1.bf16.msra.mxu0 %v5314_v50  ;;  %1757 = vmatprep.subr.bf16.mxu1 %v5321_v22  ;;  %v3194_v22 = vrot.slane %v3192_v13, 2  ;;  %v5408_v13 = vld [vmem:[%s7285_s1 + $0xad4] ss:$8 sps:$4 sm:$0xff]  }
  0xe5   : > { %3064 = vmatprep.subr.bf16.mxu0 %v5326_v10  ;;  %v2775_v10 = vrot.slane %v4639_v11, 1  ;;  %v3208_v26 = vrot.slane %v3206_v37, 1  ;;  %v4337_v11 = vcombine.low %v6438_v63, %v6450_v4  ;;  %v5403_v63 = vld [vmem:[%s7285_s1 + $0x550] ss:$8 sps:$4 sm:$0xff]   ;;  %v5411_v37 = vld [vmem:[%s7285_s1 + $0x564] ss:$8 sps:$4 sm:$0xff]  }
  0xe6   : > { %1336 = vmatmul.mubr.bf16.vlgmr.msra.gmra.mrb[4].mxu1 %v1053_v28  ;;  %v3211_v28 = vrot.slane %v3209_v55, 2  ;;  %v5414_v55 = vld [vmem:[%s7285_s1 + $0xae4] ss:$8 sps:$4 sm:$0xff]  }
  0xe7   : > { %3054 = vmatmul.mubr.bf16.vlgmr.msra.gmra.mrb[16].mxu0 %v2771_v30  ;;  %1758 = vmatpush1.bf16.msra.mxu1 %v5319_v25  ;;  %v2776_v25 = vrot.slane %v5378_v0, 1  ;;  %v5374_v30 = vld [vmem:[%s7285_s1 + $0xa80] ss:$8 sps:$4 sm:$0xff]   ;;  %v6689_v0 = vcombine.low %v6441_v54, %v6441_v54  ;;  %v5406_v54 = vld [vmem:[%s7285_s1 + $0xad0] ss:$8 sps:$4 sm:$0xff]   ;;  %v1464_v14 = vshrl.u32 %v4337_v11, 16 }
  0xe8   : > { %3065 = vmatpush1.bf16.msra.mxu0 %v5324_v29  ;;  %1759 = vmatprep.subr.bf16.mxu1 %v5331_v31  ;;  %v5371_v29 = vld [vmem:[%s7285_s1 + $0x500] ss:$8 sps:$4 sm:$0xff]   ;;  %v3195_v31 = vor.u32 %v3194_v22, %v3191_v21  ;;  %v1467_v15 = vshll.u32 %v4337_v11, 16  ;;  %v5417_v21 = vld [vmem:[%s7285_s1 + $0x574] ss:$8 sps:$4 sm:$0xff]  }
  0xe9   : > { %3066 = vmatprep.subr.bf16.mxu0 %v5334_v32  ;;  %3096 = vmatprep.mubr.bf16.mxu0 %v5664_v2  ;;  %v3203_v32 = vor.u32 %v3202_v24, %v3199_v23  ;;  %v1466_v22 = vrot.slane %v1464_v14, 2  ;;  %v5457_v11 = vld [vmem:[%s7285_s1 + $0x654] ss:$8 sps:$4 sm:$0xff]  }
  0xea   : > { %1789 = vmatprep.mubr.bf16.mxu1 %v1496_v36  ;;  %v2777_v36 = vsel %vm1050_vm1, %v2775_v10, %v2776_v25  ;;  %v1469_v23 = vrot.slane %v1467_v15, 3 }
  0xeb   : > { %1760 = vmatpush1.bf16.msra.mxu1 %v5329_v33  ;;  %v3214_v33 = vshrl.u32 %v5531_v27, 16 }
  0xec   : > { %3067 = vmatpush1.bf16.msra.mxu0 %v5332_v34  ;;  %1761 = vmatprep.subr.bf16.mxu1 %v5337_v38  ;;  %v3217_v34 = vshll.u32 %v5531_v27, 16  ;;  %v5381_v38 = vld [vmem:[%s7285_s1 + $0x514] ss:$8 sps:$4 sm:$0xff]  }
  0xed   : > { %3068 = vmatprep.subr.bf16.mxu0 %v5340_v39  ;;  %v5384_v39 = vld [vmem:[%s7285_s1 + $0xa94] ss:$8 sps:$4 sm:$0xff]  }
  0xef   : > { %1762 = vmatpush1.bf16.msra.mxu1 %v5335_v40  ;;  %v3212_v40 = vor.u32 %v3211_v28, %v3208_v26  ;;  %v6727_v26 = vld [vmem:[%s5794_s27] sm:$0x88]  ;;  %v5420_v28 = vld [vmem:[%s7285_s1 + $0xaf4] ss:$8 sps:$4 sm:$0xff]  }
  0xf0   : > { %3069 = vmatpush1.bf16.msra.mxu0 %v5338_v41  ;;  %1763 = vmatprep.subr.bf16.mxu1 %v5343_v42  ;;  %v3216_v41 = vrot.slane %v3214_v33, 1  ;;  %v3219_v42 = vrot.slane %v3217_v34, 2  ;;  %v5427_v34 = vld [vmem:[%s7285_s1 + $0x604] ss:$8 sps:$4 sm:$0xff]  }
  0xf1   : > { %3070 = vmatprep.subr.bf16.mxu0 %v5346_v57  ;;  %v5379_v57 = vld [vmem:[%s7285_s1 + $0x510] ss:$8 sps:$4 sm:$0xff]  }
  0xf3   : > { %1764 = vmatpush1.bf16.msra.mxu1 %v5341_v43  ;;  %v5382_v43 = vld [vmem:[%s7285_s1 + $0xa90] ss:$8 sps:$4 sm:$0xff]  }
  0xf4   : > { %3071 = vmatpush1.bf16.msra.mxu0 %v5344_v44  ;;  %1765 = vmatprep.subr.bf16.mxu1 %v5349_v45  ;;  %v3204_v44 = vsel %vm3170_vm5, %v3195_v31, %v3203_v32  ;;  %v3220_v45 = vor.u32 %v3219_v42, %v3216_v41  ;;  %v6742_v31 = vcombine.high %v6727_v26, %v6450_v4  ;;  %v5428_v4 = vld [vmem:[%s7285_s1 + $0xb00] ss:$8 sps:$4 sm:$0xff]   ;;  %v5433_v42 = vld [vmem:[%s7285_s1 + $0x614] ss:$8 sps:$4 sm:$0xff]  }
  0xf5   : > { %3072 = vmatprep.subr.bf16.mxu0 %v5352_v46  ;;  %v5387_v46 = vld [vmem:[%s7285_s1 + $0x524] ss:$8 sps:$4 sm:$0xff]   ;;  %v1470_v32 = vor.u32 %v1469_v23, %v1466_v22 }
  0xf7   : > { %1766 = vmatpush1.bf16.msra.mxu1 %v5347_v47  ;;  %v5390_v47 = vld [vmem:[%s7285_s1 + $0xaa4] ss:$8 sps:$4 sm:$0xff]  }
  0xf8   : > { %3073 = vmatpush1.bf16.msra.mxu0 %v5350_v48  ;;  %1767 = vmatprep.subr.bf16.mxu1 %v5355_v49  ;;  %v6653_v48 = vsel %vm3170_vm5, %v3212_v40, %v3220_v45  ;;  %v5385_v49 = vld [vmem:[%s7285_s1 + $0x520] ss:$8 sps:$4 sm:$0xff]   ;;  %v1911_v40 = vrot.slane %v6456_v5, 3  ;;  %v5439_v45 = vld [vmem:[%s7285_s1 + $0x624] ss:$8 sps:$4 sm:$0xff]  }
  0xf9   : > { %3074 = vmatprep.subr.bf16.mxu0 %v5358_v52  ;;  %v5388_v52 = vld [vmem:[%s7285_s1 + $0xaa0] ss:$8 sps:$4 sm:$0xff]  }
  0xfa   : > { %v6588_v7 = vpop.f32.mrb[0].mxu0 }
  0xfb   : > { %v6597_v59 = vpop.f32.mrb[1].mxu0  ;;  %1768 = vmatpush1.bf16.msra.mxu1 %v5353_v53  ;;  %v5393_v53 = vld [vmem:[%s7285_s1 + $0x534] ss:$8 sps:$4 sm:$0xff]  }
  0xfc   : > { %v6603_v18 = vpop.f32.mrb[2].mxu0  ;;  %3075 = vmatpush1.bf16.msra.mxu0 %v5356_v61  ;;  %1769 = vmatprep.subr.bf16.mxu1 %v5361_v58  ;;  %v5396_v61 = vld [vmem:[%s7285_s1 + $0xab4] ss:$8 sps:$4 sm:$0xff]   ;;  %v5399_v58 = vld [vmem:[%s7285_s1 + $0x544] ss:$8 sps:$4 sm:$0xff]  }
  0xfd   : > { %v6608_v50 = vpop.f32.mrb[3].mxu0  ;;  %3076 = vmatprep.subr.bf16.mxu0 %v5364_v6  ;;  %v5402_v6 = vld [vmem:[%s7285_s1 + $0xac4] ss:$8 sps:$4 sm:$0xff]  }
  0xff   : > { %1770 = vmatpush1.bf16.msra.mxu1 %v5359_v8  ;;  %v5397_v8 = vld [vmem:[%s7285_s1 + $0x540] ss:$8 sps:$4 sm:$0xff]  }
 0x100   : > { %3077 = vmatpush1.bf16.msra.mxu0 %v5362_v9  ;;  %1771 = vmatprep.subr.bf16.mxu1 %v5367_v19  ;;  %v5400_v9 = vld [vmem:[%s7285_s1 + $0xac0] ss:$8 sps:$4 sm:$0xff]   ;;  %v1472_v19 = vshrl.u32 %v6689_v0, 16 }
 0x101   : > { %3078 = vmatprep.subr.bf16.mxu0 %v5370_v1  ;;  %v1475_v1 = vshll.u32 %v6689_v0, 16 }
 0x102   : > { %v1474_v24 = vrot.slane %v1472_v19, 2  ;;  %v5466_v19 = vld [vmem:[%s7285_s1 + $0xb64] ss:$8 sps:$4 sm:$0xff]  }
 0x103   : > { %1772 = vmatpush1.bf16.msra.mxu1 %v5365_v56  ;;  %v1477_v25 = vrot.slane %v1475_v1, 3 }
 0x104   : > { %3079 = vmatpush1.bf16.msra.mxu0 %v5368_v20  ;;  %1773 = vmatprep.subr.bf16.mxu1 %v5373_v16  ;;  %v5409_v20 = vld [vmem:[%s7285_s1 + $0x560] ss:$8 sps:$4 sm:$0xff]  }
 0x105   : > { %3465 = vmatprep.subr.bf16.mxu0 %v5376_v60  ;;  %v5412_v16 = vld [vmem:[%s7285_s1 + $0xae0] ss:$8 sps:$4 sm:$0xff]   ;;  %v1478_v33 = vor.u32 %v1477_v25, %v1474_v24 }
 0x107   : > { %3097 = vmatmul.mubr.bf16.vlgmr.msra.gmra.mrb[16].mxu0 %v2777_v36  ;;  %1774 = vmatpush1.bf16.msra.mxu1 %v5371_v29  ;;  %v5415_v29 = vld [vmem:[%s7285_s1 + $0x570] ss:$8 sps:$4 sm:$0xff]   ;;  %v5430_v36 = vld [vmem:[%s7285_s1 + $0xb04] ss:$8 sps:$4 sm:$0xff]   ;;  %v1479_v41 = vsel %vm1462_vm2, %v1470_v32, %v1478_v33 }
 0x108   : > { %3466 = vmatpush1.bf16.msra.mxu0 %v5374_v30  ;;  %1775 = vmatprep.subr.bf16.mxu1 %v5381_v38  ;;  %v5418_v30 = vld [vmem:[%s7285_s1 + $0xaf0] ss:$8 sps:$4 sm:$0xff]   ;;  %v5425_v38 = vld [vmem:[%s7285_s1 + $0x600] ss:$8 sps:$4 sm:$0xff]  }
 0x109   : > { %3467 = vmatprep.subr.bf16.mxu0 %v5384_v39  ;;  %3497 = vmatprep.mubr.bf16.mxu0 %v3204_v44  ;;  %v1910_v39 = vrot.slane %v6742_v31, 3  ;;  %v5434_v44 = vld [vmem:[%s7285_s1 + $0xb10] ss:$8 sps:$4 sm:$0xff]  }
 0x10a   : > { %v5470_v32 = vld [vmem:[%s7285_s1 + $0xb70] ss:$8 sps:$4 sm:$0xff]  }
 0x10b   : > { %1776 = vmatpush1.bf16.msra.mxu1 %v5379_v57  ;;  %v5436_v57 = vld [vmem:[%s7285_s1 + $0xb14] ss:$8 sps:$4 sm:$0xff]   ;;  %v1912_v5 = vsel %vm1906_vm3, %v1910_v39, %v1911_v40  ;;  %v5477_v39 = vld [vmem:[%s7285_s1 + $0xb80] ss:$8 sps:$4 sm:$0xff]  }
 0x10c   : > { %3468 = vmatpush1.bf16.msra.mxu0 %v5382_v43  ;;  %1777 = vmatprep.subr.bf16.mxu1 %v5387_v46  ;;  %v5431_v43 = vld [vmem:[%s7285_s1 + $0x610] ss:$8 sps:$4 sm:$0xff]   ;;  %v5442_v46 = vld [vmem:[%s7285_s1 + $0xb24] ss:$8 sps:$4 sm:$0xff]  }
 0x10d   : > { %3469 = vmatprep.subr.bf16.mxu0 %v5390_v47  ;;  %v5437_v47 = vld [vmem:[%s7285_s1 + $0x620] ss:$8 sps:$4 sm:$0xff]  }
 0x10f   : > { %1778 = vmatpush1.bf16.msra.mxu1 %v5385_v49  ;;  %v5440_v49 = vld [vmem:[%s7285_s1 + $0xb20] ss:$8 sps:$4 sm:$0xff]  }
 0x110   : > { %3470 = vmatpush1.bf16.msra.mxu0 %v5388_v52  ;;  %1779 = vmatprep.subr.bf16.mxu1 %v5393_v53  ;;  %v5445_v52 = vld [vmem:[%s7285_s1 + $0x634] ss:$8 sps:$4 sm:$0xff]  }
 0x111   : > { %3471 = vmatprep.subr.bf16.mxu0 %v5396_v61  ;;  %v5448_v53 = vld [vmem:[%s7285_s1 + $0xb34] ss:$8 sps:$4 sm:$0xff]   ;;  %v5443_v61 = vld [vmem:[%s7285_s1 + $0x630] ss:$8 sps:$4 sm:$0xff]  }
 0x113   : > { %1780 = vmatpush1.bf16.msra.mxu1 %v5391_v62  ;;  %v5446_v62 = vld [vmem:[%s7285_s1 + $0xb30] ss:$8 sps:$4 sm:$0xff]  }
 0x114   : > { %3472 = vmatpush1.bf16.msra.mxu0 %v5394_v3  ;;  %1781 = vmatprep.subr.bf16.mxu1 %v5399_v58  ;;  %v5451_v3 = vld [vmem:[%s7285_s1 + $0x644] ss:$8 sps:$4 sm:$0xff]  }
 0x115   : > { %3473 = vmatprep.subr.bf16.mxu0 %v5402_v6  ;;  %v5454_v58 = vld [vmem:[%s7285_s1 + $0xb44] ss:$8 sps:$4 sm:$0xff]   ;;  %v5449_v6 = vld [vmem:[%s7285_s1 + $0x640] ss:$8 sps:$4 sm:$0xff]  }
 0x117   : > { %1782 = vmatpush1.bf16.msra.mxu1 %v5397_v8  ;;  %v5452_v8 = vld [vmem:[%s7285_s1 + $0xb40] ss:$8 sps:$4 sm:$0xff]  }
 0x118   : > { %3474 = vmatpush1.bf16.msra.mxu0 %v5400_v9  ;;  %1783 = vmatprep.subr.bf16.mxu1 %v5405_v12  ;;  %v6810_v9 = vcombine.low %v6565_v51, %v6565_v51  ;;  %v5460_v12 = vld [vmem:[%s7285_s1 + $0xb54] ss:$8 sps:$4 sm:$0xff]   ;;  %v5455_v51 = vld [vmem:[%s7285_s1 + $0x650] ss:$8 sps:$4 sm:$0xff]  }
 0x119   : > { %3475 = vmatprep.subr.bf16.mxu0 %v5408_v13  ;;  %v3172_v13 = vshrl.u32 %v6482_v17, 16 }
 0x11a   : > { %v6711_v56 = vpop.f32.mrb[4].mxu0  ;;  %v3180_v14 = vshrl.u32 %v6810_v9, 16  ;;  %v3183_v15 = vshll.u32 %v6810_v9, 16 }
 0x11b   : > { %v6719_v60 = vpop.f32.mrb[5].mxu0  ;;  %1784 = vmatpush1.bf16.msra.mxu1 %v5403_v63  ;;  %v3175_v63 = vshll.u32 %v6482_v17, 16  ;;  %v5463_v17 = vld [vmem:[%s7285_s1 + $0x664] ss:$8 sps:$4 sm:$0xff]  }
 0x11c   : > { %v6724_v10 = vpop.f32.mrb[6].mxu0  ;;  %3476 = vmatpush1.bf16.msra.mxu0 %v5406_v54  ;;  %1785 = vmatprep.subr.bf16.mxu1 %v5411_v37  ;;  %v5458_v54 = vld [vmem:[%s7285_s1 + $0xb50] ss:$8 sps:$4 sm:$0xff]   ;;  %v3182_v23 = vrot.slane %v3180_v14, 1  ;;  %v3185_v24 = vrot.slane %v3183_v15, 2  ;;  %v2327_v15 = vshrl.u32 %v6742_v31, 16 }
 0x11d   : > { %v6729_v27 = vpop.f32.mrb[7].mxu0  ;;  %3477 = vmatprep.subr.bf16.mxu0 %v5414_v55  ;;  %v5461_v55 = vld [vmem:[%s7285_s1 + $0x660] ss:$8 sps:$4 sm:$0xff]   ;;  %v3177_v22 = vrot.slane %v3175_v63, 2  ;;  %v5508_v63 = vld [vmem:[%s7285_s1 + $0xbd0] ss:$8 sps:$4 sm:$0xff]  }
 0x11f   : > { %1786 = vmatpush1.bf16.msra.mxu1 %v5409_v20  ;;  %v3174_v20 = vrot.slane %v3172_v13, 1  ;;  %v5505_v13 = vld [vmem:[%s7285_s1 + $0x6d0] ss:$8 sps:$4 sm:$0xff]  }
 0x120   : > { %3478 = vmatpush1.bf16.msra.mxu0 %v5412_v16  ;;  %1787 = vmatprep.subr.bf16.mxu1 %v5417_v21  ;;  %v5464_v21 = vld [vmem:[%s7285_s1 + $0xb60] ss:$8 sps:$4 sm:$0xff]  }
 0x121   : > { %3479 = vmatprep.subr.bf16.mxu0 %v5420_v28  ;;  %v5469_v28 = vld [vmem:[%s7285_s1 + $0x674] ss:$8 sps:$4 sm:$0xff]   ;;  %v3178_v33 = vor.u32 %v3177_v22, %v3174_v20 }
 0x123   : > { %1788 = vmatpush1.bf16.msra.mxu1 %v5415_v29  ;;  %v5472_v29 = vld [vmem:[%s7285_s1 + $0xb74] ss:$8 sps:$4 sm:$0xff]  }
 0x124   : > { %3480 = vmatpush1.bf16.msra.mxu0 %v5418_v30  ;;  %2159 = vmatprep.subr.bf16.mxu1 %v5427_v34  ;;  %v5467_v30 = vld [vmem:[%s7285_s1 + $0x670] ss:$8 sps:$4 sm:$0xff]   ;;  %v3186_v34 = vor.u32 %v3185_v24, %v3182_v23  ;;  %v5514_v23 = vld [vmem:[%s7285_s1 + $0xbe0] ss:$8 sps:$4 sm:$0xff]  }
 0x125   : > { %3481 = vmatprep.subr.bf16.mxu0 %v5430_v36  ;;  %v5475_v36 = vld [vmem:[%s7285_s1 + $0x684] ss:$8 sps:$4 sm:$0xff]  }
 0x126   : > { %1790 = vmatmul.mubr.bf16.vlgmr.msra.gmra.mrb[8].mxu1 %v1479_v41  ;;  %v3187_v40 = vsel %vm3170_vm5, %v3178_v33, %v3186_v34  ;;  %v5483_v41 = vld [vmem:[%s7285_s1 + $0x694] ss:$8 sps:$4 sm:$0xff]   ;;  %v5652_v24 = vld [vmem:[%s5794_s27 + $0xc] sm:$0xff]  ;;  %v2329_v33 = vrot.slane %v2327_v15, 3 }
 0x127   : > { %2160 = vmatpush1.bf16.msra.mxu1 %v5425_v38  ;;  %2191 = vmatprep.mubr.bf16.mxu1 %v1912_v5  ;;  %v5479_v38 = vld [vmem:[%s7285_s1 + $0xb84] ss:$8 sps:$4 sm:$0xff]  }
 0x128   : > { %3482 = vmatpush1.bf16.msra.mxu0 %v5428_v4  ;;  %2161 = vmatprep.subr.bf16.mxu1 %v5433_v42  ;;  %v5473_v4 = vld [vmem:[%s7285_s1 + $0x680] ss:$8 sps:$4 sm:$0xff]   ;;  %v5486_v42 = vld [vmem:[%s7285_s1 + $0xb94] ss:$8 sps:$4 sm:$0xff]   ;;  %v5489_v5 = vld [vmem:[%s7285_s1 + $0x6a4] ss:$8 sps:$4 sm:$0xff]  }
 0x129   : > { %3483 = vmatprep.subr.bf16.mxu0 %v5436_v57  ;;  %v5481_v57 = vld [vmem:[%s7285_s1 + $0x690] ss:$8 sps:$4 sm:$0xff]   ;;  %v5555_v15 = vld [vmem:[%s7285_s1 + $0xc44] ss:$8 sps:$4 sm:$0xff]  }
 0x12b   : > { %2162 = vmatpush1.bf16.msra.mxu1 %v5431_v43  ;;  %v5484_v43 = vld [vmem:[%s7285_s1 + $0xb90] ss:$8 sps:$4 sm:$0xff]  }
 0x12c   : > { %3484 = vmatpush1.bf16.msra.mxu0 %v5434_v44  ;;  %2163 = vmatprep.subr.bf16.mxu1 %v5439_v45  ;;  %v5492_v44 = vld [vmem:[%s7285_s1 + $0xba4] ss:$8 sps:$4 sm:$0xff]   ;;  %v5487_v45 = vld [vmem:[%s7285_s1 + $0x6a0] ss:$8 sps:$4 sm:$0xff]  }
 0x12d   : > { %3485 = vmatprep.subr.bf16.mxu0 %v5442_v46  ;;  %v5490_v46 = vld [vmem:[%s7285_s1 + $0xba0] ss:$8 sps:$4 sm:$0xff]  }
 0x12f   : > { %2164 = vmatpush1.bf16.msra.mxu1 %v5437_v47  ;;  %v5495_v47 = vld [vmem:[%s7285_s1 + $0x6b4] ss:$8 sps:$4 sm:$0xff]  }
 0x130   : > { %3486 = vmatpush1.bf16.msra.mxu0 %v5440_v49  ;;  %2165 = vmatprep.subr.bf16.mxu1 %v5445_v52  ;;  %v5498_v49 = vld [vmem:[%s7285_s1 + $0xbb4] ss:$8 sps:$4 sm:$0xff]   ;;  %v5493_v52 = vld [vmem:[%s7285_s1 + $0x6b0] ss:$8 sps:$4 sm:$0xff]  }
 0x131   : > { %3487 = vmatprep.subr.bf16.mxu0 %v5448_v53  ;;  %v5496_v53 = vld [vmem:[%s7285_s1 + $0xbb0] ss:$8 sps:$4 sm:$0xff]  }
 0x133   : > { %2166 = vmatpush1.bf16.msra.mxu1 %v5443_v61  ;;  %v5501_v61 = vld [vmem:[%s7285_s1 + $0x6c4] ss:$8 sps:$4 sm:$0xff]  }
 0x134   : > { %3488 = vmatpush1.bf16.msra.mxu0 %v5446_v62  ;;  %2167 = vmatprep.subr.bf16.mxu1 %v5451_v3  ;;  %v5504_v62 = vld [vmem:[%s7285_s1 + $0xbc4] ss:$8 sps:$4 sm:$0xff]   ;;  %v5499_v3 = vld [vmem:[%s7285_s1 + $0x6c0] ss:$8 sps:$4 sm:$0xff]  }
 0x135   : > { %3489 = vmatprep.subr.bf16.mxu0 %v5454_v58  ;;  %v5502_v58 = vld [vmem:[%s7285_s1 + $0xbc0] ss:$8 sps:$4 sm:$0xff]  }
 0x137   : > { %2168 = vmatpush1.bf16.msra.mxu1 %v5449_v6  ;;  %v6923_v6 = vld [vmem:[%s5794_s27 + $0x18] sm:$0xff] }
 0x138   : > { %3490 = vmatpush1.bf16.msra.mxu0 %v5452_v8  ;;  %2169 = vmatprep.subr.bf16.mxu1 %v5457_v11  ;;  %v5507_v8 = vld [vmem:[%s7285_s1 + $0x6d4] ss:$8 sps:$4 sm:$0xff]  }
 0x139   : > { %3491 = vmatprep.subr.bf16.mxu0 %v5460_v12  ;;  %v5510_v11 = vld [vmem:[%s7285_s1 + $0xbd4] ss:$8 sps:$4 sm:$0xff]   ;;  %v4539_v12 = vcombine.high %v6923_v6, %v6923_v6 }
 0x13a   : > { %v6834_v37 = vpop.f32.mrb[8].mxu0 }
 0x13b   : > { %v6836_v1 = vpop.f32.mrb[9].mxu0  ;;  %2170 = vmatpush1.bf16.msra.mxu1 %v5455_v51  ;;  %v5513_v51 = vld [vmem:[%s7285_s1 + $0x6e4] ss:$8 sps:$4 sm:$0xff]   ;;  %v2335_v20 = vshrl.u32 %v4539_v12, 16 }
 0x13c   : > { %v6841_v16 = vpop.f32.mrb[10].mxu0  ;;  %3492 = vmatpush1.bf16.msra.mxu0 %v5458_v54  ;;  %2171 = vmatprep.subr.bf16.mxu1 %v5463_v17  ;;  %v5516_v54 = vld [vmem:[%s7285_s1 + $0xbe4] ss:$8 sps:$4 sm:$0xff]  }
 0x13d   : > { %v6846_v25 = vpop.f32.mrb[11].mxu0  ;;  %3493 = vmatprep.subr.bf16.mxu0 %v5466_v19  ;;  %v5511_v19 = vld [vmem:[%s7285_s1 + $0x6e0] ss:$8 sps:$4 sm:$0xff]  }
 0x13f   : > { %2172 = vmatpush1.bf16.msra.mxu1 %v5461_v55  ;;  %v2330_v55 = vshll.u32 %v6742_v31, 16  ;;  %v5519_v31 = vld [vmem:[%s7285_s1 + $0x6f4] ss:$8 sps:$4 sm:$0xff]  }
 0x140   : > { %3494 = vmatpush1.bf16.msra.mxu0 %v5464_v21  ;;  %2173 = vmatprep.subr.bf16.mxu1 %v5469_v28  ;;  %v2338_v21 = vshll.u32 %v4539_v12, 16  ;;  %v6961_v28 = vcombine.low %v6727_v26, %v5652_v24  ;;  %v6975_v26 = vld [vmem:[%s5794_s27 + $0x18] sm:$0xff] }
 0x141   : > { %3495 = vmatprep.subr.bf16.mxu0 %v5472_v29  ;;  %v6964_v29 = vld [vmem:[%s5794_s27 + $0xc] sm:$0xcc]  ;;  %v2332_v34 = vrot.slane %v2330_v55, 4  ;;  %v5546_v12 = vld [vmem:[%s7285_s1 + $0x7b4] ss:$8 sps:$4 sm:$0xff]  }
 0x142   : > { %v5553_v55 = vld [vmem:[%s7285_s1 + $0xc40] ss:$8 sps:$4 sm:$0xff]   ;;  %v5559_v24 = vld [vmem:[%s7285_s1 + $0xc50] ss:$8 sps:$4 sm:$0xff]  }
 0x143   : > { %2174 = vmatpush1.bf16.msra.mxu1 %v5467_v30 }
 0x144   : > { %3496 = vmatpush1.bf16.msra.mxu0 %v5470_v32  ;;  %2175 = vmatprep.subr.bf16.mxu1 %v5475_v36  ;;  %v5522_v32 = vld [vmem:[%s7285_s1 + $0xbf4] ss:$8 sps:$4 sm:$0xff]   ;;  %v2337_v36 = vrot.slane %v2335_v20, 3 }
 0x145   : > { %3508 = vmatprep.subr.bf16.mxu0 %v5479_v38  ;;  %v2340_v38 = vrot.slane %v2338_v21, 4  ;;  %v5558_v20 = vld [vmem:[%s7285_s1 + $0x7d4] ss:$8 sps:$4 sm:$0xff]  }
 0x146   : > { %v5561_v21 = vld [vmem:[%s7285_s1 + $0xc54] ss:$8 sps:$4 sm:$0xff]  }
 0x147   : > { %3498 = vmatmul.mubr.bf16.vlgmr.msra.gmra.mrb[16].mxu0 %v3187_v40  ;;  %2176 = vmatpush1.bf16.msra.mxu1 %v5473_v4  ;;  %v4839_v4 = vcombine.high %v6964_v29, %v6975_v26  ;;  %v5520_v40 = vld [vmem:[%s7285_s1 + $0xbf0] ss:$8 sps:$4 sm:$0xff]  }
 0x148   : > { %3509 = vmatpush1.bf16.msra.mxu0 %v5477_v39  ;;  %2177 = vmatprep.subr.bf16.mxu1 %v5483_v41  ;;  %v5517_v39 = vld [vmem:[%s7285_s1 + $0x6f0] ss:$8 sps:$4 sm:$0xff]   ;;  %v1907_v41 = vrot.slane %v6961_v28, 3 }
 0x149   : > { %3510 = vmatprep.subr.bf16.mxu0 %v5486_v42  ;;  %3540 = vmatprep.mubr.bf16.mxu0 %v5664_v2  ;;  %v1908_v42 = vrot.slane %v6689_v0, 3  ;;  %v5525_v0 = vld [vmem:[%s7285_s1 + $0x780] ss:$8 sps:$4 sm:$0xff]  }
 0x14b   : > { %2178 = vmatpush1.bf16.msra.mxu1 %v5481_v57  ;;  %v5527_v57 = vld [vmem:[%s7285_s1 + $0x784] ss:$8 sps:$4 sm:$0xff]  }
 0x14c   : > { %3511 = vmatpush1.bf16.msra.mxu0 %v5484_v43  ;;  %2179 = vmatprep.subr.bf16.mxu1 %v5489_v5  ;;  %v5530_v43 = vld [vmem:[%s7285_s1 + $0xc04] ss:$8 sps:$4 sm:$0xff]   ;;  %v2333_v5 = vor.u32 %v2332_v34, %v2329_v33 }
 0x14d   : > { %3512 = vmatprep.subr.bf16.mxu0 %v5492_v44  ;;  %v2341_v44 = vor.u32 %v2340_v38, %v2337_v36 }
 0x14f   : > { %2180 = vmatpush1.bf16.msra.mxu1 %v5487_v45  ;;  %v3618_v45 = vrot.slane %v4839_v4, 2 }
 0x150   : > { %3513 = vmatpush1.bf16.msra.mxu0 %v5490_v46  ;;  %2181 = vmatprep.subr.bf16.mxu1 %v5495_v47  ;;  %v3619_v46 = vrot.slane %v6580_v35, 2  ;;  %v1909_v47 = vsel %vm1906_vm3, %v1907_v41, %v1908_v42  ;;  %v5537_v35 = vld [vmem:[%s7285_s1 + $0xc14] ss:$8 sps:$4 sm:$0xff]  }
 0x151   : > { %3514 = vmatprep.subr.bf16.mxu0 %v5498_v49  ;;  %v5528_v49 = vld [vmem:[%s7285_s1 + $0xc00] ss:$8 sps:$4 sm:$0xff]   ;;  %v5573_v42 = vld [vmem:[%s7285_s1 + $0xc74] ss:$8 sps:$4 sm:$0xff]  }
 0x153   : > { %2182 = vmatpush1.bf16.msra.mxu1 %v5493_v52  ;;  %v5534_v52 = vld [vmem:[%s7285_s1 + $0x794] ss:$8 sps:$4 sm:$0xff]  }
 0x154   : > { %3515 = vmatpush1.bf16.msra.mxu0 %v5496_v53  ;;  %2183 = vmatprep.subr.bf16.mxu1 %v5501_v61  ;;  %v2342_v53 = vsel %vm2308_vm4, %v2333_v5, %v2341_v44  ;;  %v3620_v61 = vsel %vm3614_vm6, %v3618_v45, %v3619_v46  ;;  %v5576_v5 = vld [vmem:[%s7285_s1 + $0x804] ss:$8 sps:$4 sm:$0xff]   ;;  %v5574_v44 = vld [vmem:[%s7285_s1 + $0x800] ss:$8 sps:$4 sm:$0xff]   ;;  %v5582_v46 = vld [vmem:[%s7285_s1 + $0x814] ss:$8 sps:$4 sm:$0xff]  }
 0x155   : > { %3516 = vmatprep.subr.bf16.mxu0 %v5504_v62  ;;  %v5532_v62 = vld [vmem:[%s7285_s1 + $0x790] ss:$8 sps:$4 sm:$0xff]   ;;  %v5577_v45 = vld [vmem:[%s7285_s1 + $0xc80] ss:$8 sps:$4 sm:$0xff]  }
 0x157   : > { %2184 = vmatpush1.bf16.msra.mxu1 %v5499_v3  ;;  %v5535_v3 = vld [vmem:[%s7285_s1 + $0xc10] ss:$8 sps:$4 sm:$0xff]  }
 0x158   : > { %3517 = vmatpush1.bf16.msra.mxu0 %v5502_v58  ;;  %2185 = vmatprep.subr.bf16.mxu1 %v5507_v8  ;;  %v5543_v58 = vld [vmem:[%s7285_s1 + $0xc24] ss:$8 sps:$4 sm:$0xff]   ;;  %v5538_v8 = vld [vmem:[%s7285_s1 + $0x7a0] ss:$8 sps:$4 sm:$0xff]  }
 0x159   : > { %3518 = vmatprep.subr.bf16.mxu0 %v5510_v11  ;;  %v5541_v11 = vld [vmem:[%s7285_s1 + $0xc20] ss:$8 sps:$4 sm:$0xff]  }
 0x15a   : > { %v6945_v14 = vpop.f32.mrb[12].mxu0 }
 0x15b   : > { %v6948_v17 = vpop.f32.mrb[13].mxu0  ;;  %2186 = vmatpush1.bf16.msra.mxu1 %v5505_v13  ;;  %v5549_v13 = vld [vmem:[%s7285_s1 + $0xc34] ss:$8 sps:$4 sm:$0xff]  }
 0x15c   : > { %v6954_v22 = vpop.f32.mrb[14].mxu0  ;;  %3519 = vmatpush1.bf16.msra.mxu0 %v5508_v63  ;;  %2187 = vmatprep.subr.bf16.mxu1 %v5513_v51  ;;  %v5544_v63 = vld [vmem:[%s7285_s1 + $0x7b0] ss:$8 sps:$4 sm:$0xff]  }
 0x15d   : > { %v6966_v30 = vpop.f32.mrb[15].mxu0  ;;  %3520 = vmatprep.subr.bf16.mxu0 %v5516_v54  ;;  %v5547_v51 = vld [vmem:[%s7285_s1 + $0xc30] ss:$8 sps:$4 sm:$0xff]   ;;  %v5552_v54 = vld [vmem:[%s7285_s1 + $0x7c4] ss:$8 sps:$4 sm:$0xff]  }
 0x15f   : > { %2188 = vmatpush1.bf16.msra.mxu1 %v5511_v19  ;;  %v5550_v19 = vld [vmem:[%s7285_s1 + $0x7c0] ss:$8 sps:$4 sm:$0xff]  }
 0x160   : > { %3521 = vmatpush1.bf16.msra.mxu0 %v5514_v23  ;;  %2189 = vmatprep.subr.bf16.mxu1 %v5519_v31  ;;  %v5556_v23 = vld [vmem:[%s7285_s1 + $0x7d0] ss:$8 sps:$4 sm:$0xff]   ;;  %v5564_v31 = vld [vmem:[%s7285_s1 + $0x7e4] ss:$8 sps:$4 sm:$0xff]  }
 0x161   : > { %3522 = vmatprep.subr.bf16.mxu0 %v5522_v32  ;;  %v5567_v32 = vld [vmem:[%s7285_s1 + $0xc64] ss:$8 sps:$4 sm:$0xff]  }
 0x163   : > { %2190 = vmatpush1.bf16.msra.mxu1 %v5517_v39  ;;  %v5562_v39 = vld [vmem:[%s7285_s1 + $0x7e0] ss:$8 sps:$4 sm:$0xff]  }
 0x164   : > { %3523 = vmatpush1.bf16.msra.mxu0 %v5520_v40  ;;  %2603 = vmatprep.subr.bf16.mxu1 %v5527_v57  ;;  %v5565_v40 = vld [vmem:[%s7285_s1 + $0xc60] ss:$8 sps:$4 sm:$0xff]  }
 0x165   : > { %3867 = vmatprep.subr.bf16.mxu0 %v5530_v43  ;;  %v5571_v43 = vld [vmem:[%s7285_s1 + $0xc70] ss:$8 sps:$4 sm:$0xff]  }
 0x166   : > { %2192 = vmatmul.mubr.bf16.vlgmr.msra.gmra.mrb[12].mxu1 %v1909_v47  ;;  %v5585_v47 = vld [vmem:[%s7285_s1 + $0xc94] ss:$8 sps:$4 sm:$0xff]  }
 0x167   : > { %3541 = vmatmul.mubr.bf16.vlgmr.msra.gmra.mrb[16].mxu0 %v6653_v48  ;;  %2604 = vmatpush1.bf16.msra.mxu1 %v5525_v0  ;;  %v5540_v48 = vld [vmem:[%s7285_s1 + $0x7a4] ss:$8 sps:$4 sm:$0xff]   ;;  %v5580_v0 = vld [vmem:[%s7285_s1 + $0x810] ss:$8 sps:$4 sm:$0xff]  }
 0x168   : > { %3868 = vmatpush1.bf16.msra.mxu0 %v5528_v49  ;;  %2605 = vmatprep.subr.bf16.mxu1 %v5534_v52  ;;  %v5583_v49 = vld [vmem:[%s7285_s1 + $0xc90] ss:$8 sps:$4 sm:$0xff]   ;;  %v5588_v52 = vld [vmem:[%s7285_s1 + $0x824] ss:$8 sps:$4 sm:$0xff]  }
 0x169   : > { %3869 = vmatprep.subr.bf16.mxu0 %v5537_v35  ;;  %2635 = vmatprep.mubr.bf16.mxu1 %v2342_v53  ;;  %v5591_v35 = vld [vmem:[%s7285_s1 + $0xca4] ss:$8 sps:$4 sm:$0xff]   ;;  %v5586_v53 = vld [vmem:[%s7285_s1 + $0x820] ss:$8 sps:$4 sm:$0xff]  }
 0x16a   : > { %3899 = vmatprep.mubr.bf16.mxu0 %v3620_v61  ;;  %v5589_v61 = vld [vmem:[%s7285_s1 + $0xca0] ss:$8 sps:$4 sm:$0xff]  }
 0x16b   : > { %2606 = vmatpush1.bf16.msra.mxu1 %v5532_v62  ;;  %v5594_v62 = vld [vmem:[%s7285_s1 + $0x834] ss:$8 sps:$4 sm:$0xff]  }
 0x16c   : > { %3870 = vmatpush1.bf16.msra.mxu0 %v5535_v3  ;;  %2607 = vmatprep.subr.bf16.mxu1 %v5540_v48  ;;  %v5597_v3 = vld [vmem:[%s7285_s1 + $0xcb4] ss:$8 sps:$4 sm:$0xff]   ;;  %v5592_v48 = vld [vmem:[%s7285_s1 + $0x830] ss:$8 sps:$4 sm:$0xff]  }
 0x16d   : > { %3871 = vmatprep.subr.bf16.mxu0 %v5543_v58  ;;  %v5595_v58 = vld [vmem:[%s7285_s1 + $0xcb0] ss:$8 sps:$4 sm:$0xff]  }
 0x16f   : > { %2608 = vmatpush1.bf16.msra.mxu1 %v5538_v8  ;;  %v5600_v8 = vld [vmem:[%s7285_s1 + $0x844] ss:$8 sps:$4 sm:$0xff]  }
 0x170   : > { %3872 = vmatpush1.bf16.msra.mxu0 %v5541_v11  ;;  %2609 = vmatprep.subr.bf16.mxu1 %v5546_v12  ;;  %v5603_v11 = vld [vmem:[%s7285_s1 + $0xcc4] ss:$8 sps:$4 sm:$0xff]   ;;  %v5598_v12 = vld [vmem:[%s7285_s1 + $0x840] ss:$8 sps:$4 sm:$0xff]  }
 0x171   : > { %3873 = vmatprep.subr.bf16.mxu0 %v5549_v13  ;;  %v5601_v13 = vld [vmem:[%s7285_s1 + $0xcc0] ss:$8 sps:$4 sm:$0xff]  }
 0x173   : > { %2610 = vmatpush1.bf16.msra.mxu1 %v5544_v63  ;;  %v4538_v63 = vcombine.low %v6923_v6, %v6923_v6  ;;  %v5604_v6 = vld [vmem:[%s7285_s1 + $0x850] ss:$8 sps:$4 sm:$0xff]  }
 0x174   : > { %3874 = vmatpush1.bf16.msra.mxu0 %v5547_v51  ;;  %2611 = vmatprep.subr.bf16.mxu1 %v5552_v54  ;;  %v5606_v51 = vld [vmem:[%s7285_s1 + $0x854] ss:$8 sps:$4 sm:$0xff]  }
 0x175   : > { %3875 = vmatprep.subr.bf16.mxu0 %v5555_v15  ;;  %v5609_v54 = vld [vmem:[%s7285_s1 + $0xcd4] ss:$8 sps:$4 sm:$0xff]   ;;  %v2310_v15 = vshrl.u32 %v6961_v28, 16 }
 0x177   : > { %2612 = vmatpush1.bf16.msra.mxu1 %v5550_v19  ;;  %v2313_v19 = vshll.u32 %v6961_v28, 16  ;;  %v5615_v28 = vld [vmem:[%s7285_s1 + $0xce4] ss:$8 sps:$4 sm:$0xff]  }
 0x178   : > { %3876 = vmatpush1.bf16.msra.mxu0 %v5553_v55  ;;  %2613 = vmatprep.subr.bf16.mxu1 %v5558_v20  ;;  %v5607_v55 = vld [vmem:[%s7285_s1 + $0xcd0] ss:$8 sps:$4 sm:$0xff]   ;;  %v2318_v20 = vshrl.u32 %v4538_v63, 16 }
 0x179   : > { %3877 = vmatprep.subr.bf16.mxu0 %v5561_v21  ;;  %v939_v33 = vpop.f32.mrb[0].mxu1  ;;  %v2321_v21 = vshll.u32 %v4538_v63, 16  ;;  %v5654_v63 = vld [vmem:[%s5794_s27 + $0x20] sm:$0xf] }
 0x17a   : > { %v7071_v34 = vadd.f32 %v6588_v7, %v939_v33  ;;  %v941_v36 = vpop.f32.mrb[1].mxu1  ;;  %v2315_v33 = vrot.slane %v2313_v19, 4 }
 0x17b   : > { %v7074_v38 = vadd.f32 %v6597_v59, %v941_v36  ;;  %v943_v4 = vpop.f32.mrb[2].mxu1  ;;  %2614 = vmatpush1.bf16.msra.mxu1 %v5556_v23  ;;  %v5570_v59 = vld [vmem:[%s7285_s1 + $0x7f4] ss:$8 sps:$4 sm:$0xff]   ;;  %v5612_v23 = vld [vmem:[%s7285_s1 + $0x864] ss:$8 sps:$4 sm:$0xff]   ;;  %v2320_v36 = vrot.slane %v2318_v20, 3 }
 0x17c   : > { %3878 = vmatpush1.bf16.msra.mxu0 %v5559_v24  ;;  %v7083_v41 = vadd.f32 %v6603_v18, %v943_v4  ;;  %v945_v7 = vpop.f32.mrb[3].mxu1  ;;  %2615 = vmatprep.subr.bf16.mxu1 %v5564_v31  ;;  %v5568_v18 = vld [vmem:[%s7285_s1 + $0x7f0] ss:$8 sps:$4 sm:$0xff]   ;;  %v5610_v24 = vld [vmem:[%s7285_s1 + $0x860] ss:$8 sps:$4 sm:$0xff]   ;;  %v2312_v31 = vrot.slane %v2310_v15, 3 }
 0x17d   : > { %3879 = vmatprep.subr.bf16.mxu0 %v5567_v32  ;;  %v7092_v57 = vadd.f32 %v6608_v50, %v945_v7  ;;  %v5579_v50 = vld [vmem:[%s7285_s1 + $0xc84] ss:$8 sps:$4 sm:$0xff]   ;;  %v5613_v32 = vld [vmem:[%s7285_s1 + $0xce0] ss:$8 sps:$4 sm:$0xff]   ;;  %v2323_v4 = vrot.slane %v2321_v21, 4 }
 0x17e   : > { %v5621_v7 = vld [vmem:[%s7285_s1 + $0xcf4] ss:$8 sps:$4 sm:$0xff]   ;;  %v5647_v20 = vld [vmem:[%s7285_s1 + $0xd70] ss:$8 sps:$4 sm:$0xff]  }
 0x17f   : > { %2616 = vmatpush1.bf16.msra.mxu1 %v5562_v39  ;;  %v4838_v39 = vcombine.low %v6964_v29, %v6975_v26  ;;  %v5619_v29 = vld [vmem:[%s7285_s1 + $0xcf0] ss:$8 sps:$4 sm:$0xff]   ;;  %v2316_v26 = vor.u32 %v2315_v33, %v2312_v31  ;;  %v5655_v21 = vld [vmem:[%s5794_s27 + $0x2c] ss:$0 sps:$4 sm:$0x33]  }
 0x180   : > { %3880 = vmatpush1.bf16.msra.mxu0 %v5565_v40  ;;  %2617 = vmatprep.subr.bf16.mxu1 %v5570_v59  ;;  %v5618_v40 = vld [vmem:[%s7285_s1 + $0x874] ss:$8 sps:$4 sm:$0xff]   ;;  %v5616_v59 = vld [vmem:[%s7285_s1 + $0x870] ss:$8 sps:$4 sm:$0xff]  }
 0x181   : > { %3881 = vmatprep.subr.bf16.mxu0 %v5573_v42  ;;  %v2324_v42 = vor.u32 %v2323_v4, %v2320_v36 }
 0x183   : > { %2618 = vmatpush1.bf16.msra.mxu1 %v5568_v18  ;;  %v3615_v18 = vrot.slane %v4838_v39, 2 }
 0x184   : > { %3882 = vmatpush1.bf16.msra.mxu0 %v5571_v43  ;;  %2619 = vmatprep.subr.bf16.mxu1 %v5576_v5  ;;  %v3616_v43 = vrot.slane %v6810_v9, 2  ;;  %v5627_v5 = vld [vmem:[%s7285_s1 + $0xd04] ss:$8 sps:$4 sm:$0xff]   ;;  %v5631_v9 = vld [vmem:[%s7285_s1 + $0xd14] ss:$8 sps:$4 sm:$0xff]  }
 0x185   : > { %3883 = vmatprep.subr.bf16.mxu0 %v5579_v50  ;;  %v2325_v50 = vsel %vm2308_vm4, %v2316_v26, %v2324_v42 }
 0x187   : > { %2620 = vmatpush1.bf16.msra.mxu1 %v5574_v44  ;;  %v5625_v44 = vld [vmem:[%s7285_s1 + $0xd00] ss:$8 sps:$4 sm:$0xff]  }
 0x188   : > { %3884 = vmatpush1.bf16.msra.mxu0 %v5577_v45  ;;  %2621 = vmatprep.subr.bf16.mxu1 %v5582_v46  ;;  %v3617_v45 = vsel %vm3614_vm6, %v3615_v18, %v3616_v43  ;;  %v5629_v46 = vld [vmem:[%s7285_s1 + $0xd10] ss:$8 sps:$4 sm:$0xff]  }
 0x189   : > { %3885 = vmatprep.subr.bf16.mxu0 %v5585_v47  ;;  %v5634_v47 = vld [vmem:[%s7285_s1 + $0xd24] ss:$8 sps:$4 sm:$0xff]  }
 0x18b   : > { %2622 = vmatpush1.bf16.msra.mxu1 %v5580_v0  ;;  %v5632_v0 = vld [vmem:[%s7285_s1 + $0xd20] ss:$8 sps:$4 sm:$0xff]  }
 0x18c   : > { %3886 = vmatpush1.bf16.msra.mxu0 %v5583_v49  ;;  %2623 = vmatprep.subr.bf16.mxu1 %v5588_v52  ;;  %v5637_v49 = vld [vmem:[%s7285_s1 + $0xd34] ss:$8 sps:$4 sm:$0xff]   ;;  %v5640_v52 = vld [vmem:[%s7285_s1 + $0xd44] ss:$8 sps:$4 sm:$0xff]  }
 0x18d   : > { %3887 = vmatprep.subr.bf16.mxu0 %v5591_v35  ;;  %v5638_v35 = vld [vmem:[%s7285_s1 + $0xd40] ss:$8 sps:$4 sm:$0xff]  }
 0x18f   : > { %2624 = vmatpush1.bf16.msra.mxu1 %v5586_v53  ;;  %v5643_v53 = vld [vmem:[%s7285_s1 + $0xd54] ss:$8 sps:$4 sm:$0xff]  }
 0x190   : > { %3888 = vmatpush1.bf16.msra.mxu0 %v5589_v61  ;;  %2625 = vmatprep.subr.bf16.mxu1 %v5594_v62  ;;  %v5641_v61 = vld [vmem:[%s7285_s1 + $0xd50] ss:$8 sps:$4 sm:$0xff]   ;;  %v5646_v62 = vld [vmem:[%s7285_s1 + $0xd64] ss:$8 sps:$4 sm:$0xff]  }
 0x191   : > { %3889 = vmatprep.subr.bf16.mxu0 %v5597_v3  ;;  %v3556_v3 = vld [vmem:[%s5794_s27 + $0x14] sm:$0xc] }
 0x193   : > { %2626 = vmatpush1.bf16.msra.mxu1 %v5592_v48 }
 0x194   : > { %3890 = vmatpush1.bf16.msra.mxu0 %v5595_v58  ;;  %2627 = vmatprep.subr.bf16.mxu1 %v5600_v8 }
 0x195   : > { %3891 = vmatprep.subr.bf16.mxu0 %v5603_v11 }
 0x197   : > { %2628 = vmatpush1.bf16.msra.mxu1 %v5598_v12 }
 0x198   : > { %3892 = vmatpush1.bf16.msra.mxu0 %v5601_v13  ;;  %2629 = vmatprep.subr.bf16.mxu1 %v5606_v51  ;;  %v5644_v13 = vld [vmem:[%s7285_s1 + $0xd60] ss:$8 sps:$4 sm:$0xff]   ;;  %v4840_v51 = vcombine.low %v3556_v3, %v5654_v63 }
 0x199   : > { %3893 = vmatprep.subr.bf16.mxu0 %v5609_v54 }
 0x19b   : > { %2630 = vmatpush1.bf16.msra.mxu1 %v5604_v6 }
 0x19c   : > { %3894 = vmatpush1.bf16.msra.mxu0 %v5607_v55  ;;  %2631 = vmatprep.subr.bf16.mxu1 %v5612_v23  ;;  %v3622_v23 = vrot.slane %v5655_v21, 2 }
 0x19d   : > { %3895 = vmatprep.subr.bf16.mxu0 %v5615_v28 }
 0x19f   : > { %2632 = vmatpush1.bf16.msra.mxu1 %v5610_v24 }
 0x1a0   : > { %3896 = vmatpush1.bf16.msra.mxu0 %v5613_v32  ;;  %2633 = vmatprep.subr.bf16.mxu1 %v5618_v40 }
 0x1a1   : > { %3897 = vmatprep.subr.bf16.mxu0 %v5621_v7 }
 0x1a3   : > { %2634 = vmatpush1.bf16.msra.mxu1 %v5616_v59 }
 0x1a4   : > { %3898 = vmatpush1.bf16.msra.mxu0 %v5619_v29 }
 0x1a5   : > { %3910 = vmatprep.subr.bf16.mxu0 %v5627_v5 }
 0x1a6   : > { %2636 = vmatmul.mubr.bf16.vlgmr.msra.gmra.mrb[16].mxu1 %v2325_v50 }
 0x1a7   : > { %3900 = vmatmul.mubr.bf16.vlgmr.msra.gmra.mrb[16].mxu0 %v3617_v45 }
 0x1a8   : > { %3911 = vmatpush1.bf16.msra.mxu0 %v5625_v44  ;;  %3942 = vmatprep.mubr.bf16.mxu0 %v5664_v2  ;;  %v5635_v2 = vld [vmem:[%s7285_s1 + $0xd30] ss:$8 sps:$4 sm:$0xff]  }
 0x1a9   : > { %3912 = vmatprep.subr.bf16.mxu0 %v5631_v9 }
 0x1ac   : > { %3913 = vmatpush1.bf16.msra.mxu0 %v5629_v46 }
 0x1ad   : > { %3914 = vmatprep.subr.bf16.mxu0 %v5634_v47 }
 0x1b0   : > { %3915 = vmatpush1.bf16.msra.mxu0 %v5632_v0 }
 0x1b1   : > { %3916 = vmatprep.subr.bf16.mxu0 %v5637_v49 }
 0x1b4   : > { %3917 = vmatpush1.bf16.msra.mxu0 %v5635_v2  ;;  %v3959_v2 = vlaneseq }
 0x1b5   : > { %3918 = vmatprep.subr.bf16.mxu0 %v5640_v52 }
 0x1b6   : > { %v3960_v52 = vshrl.u32 %v3959_v2, 7 }
 0x1b8   : > { %3919 = vmatpush1.bf16.msra.mxu0 %v5638_v35  ;;  %v3961_v35 = vsub.s32 0, %v3960_v52 }
 0x1b9   : > { %3920 = vmatprep.subr.bf16.mxu0 %v5643_v53  ;;  %v1337_v48 = vpop.f32.mrb[4].mxu1 }
 0x1ba   : > { %v4893_v58 = vadd.f32 %v7071_v34, %v1337_v48  ;;  %v1339_v8 = vpop.f32.mrb[5].mxu1  ;;  %v5649_v34 = vld [vmem:[%s7285_s1 + $0xd74] ss:$8 sps:$4 sm:$0xff]  }
 0x1bb   : > { %v4902_v11 = vadd.f32 %v7074_v38, %v1339_v8  ;;  %v1341_v12 = vpop.f32.mrb[6].mxu1 }
 0x1bc   : > { %3921 = vmatpush1.bf16.msra.mxu0 %v5641_v61  ;;  %v4911_v54 = vadd.f32 %v7083_v41, %v1341_v12  ;;  %v1343_v15 = vpop.f32.mrb[7].mxu1  ;;  %v4894_v19 = vadd.f32 %v4893_v58, %v6711_v56  ;;  %v3621_v41 = vrot.slane %v4840_v51, 2 }
 0x1bd   : > { %3922 = vmatprep.subr.bf16.mxu0 %v5646_v62  ;;  %v4920_v38 = vadd.f32 %v7092_v57, %v1343_v15  ;;  %v4903_v6 = vadd.f32 %v4902_v11, %v6719_v60 }
 0x1be   : > { %v4912_v55 = vadd.f32 %v4911_v54, %v6724_v10  ;;  %v3623_v56 = vsel %vm3614_vm6, %v3621_v41, %v3622_v23 }
 0x1bf   : > { %v4921_v28 = vadd.f32 %v4920_v38, %v6729_v27 }
 0x1c0   : > { %3923 = vmatpush1.bf16.msra.mxu0 %v5644_v13 }
 0x1c1   : > { %3924 = vmatprep.subr.bf16.mxu0 %v5649_v34 }
 0x1c4   : > { %3925 = vmatpush1.bf16.msra.mxu0 %v5647_v20 }
 0x1c7   : > { %3943 = vmatmul.mubr.bf16.vlgmr.msra.gmra.mrb[16].mxu0 %v3623_v56 }
 0x1f9   : > { %v1791_v57 = vpop.f32.mrb[8].mxu1 }
 0x1fa   : > { %v4895_v24 = vadd.f32 %v4894_v19, %v1791_v57  ;;  %v1793_v60 = vpop.f32.mrb[9].mxu1 }
 0x1fb   : > { %v4904_v31 = vadd.f32 %v4903_v6, %v1793_v60  ;;  %v1795_v10 = vpop.f32.mrb[10].mxu1 }
 0x1fc   : > { %v4913_v32 = vadd.f32 %v4912_v55, %v1795_v10  ;;  %v1797_v33 = vpop.f32.mrb[11].mxu1  ;;  %v4896_v36 = vadd.f32 %v4895_v24, %v6834_v37 }
 0x1fd   : > { %v4922_v4 = vadd.f32 %v4921_v28, %v1797_v33  ;;  %v4905_v39 = vadd.f32 %v4904_v31, %v6836_v1 }
 0x1fe   : > { %v4914_v40 = vadd.f32 %v4913_v32, %v6841_v16 }
 0x1ff   : > { %v4923_v27 = vadd.f32 %v4922_v4, %v6846_v25 }
 0x239   : > { %v2193_v7 = vpop.f32.mrb[12].mxu1 }
 0x23a   : > { %v4897_v59 = vadd.f32 %v4896_v36, %v2193_v7  ;;  %v2195_v29 = vpop.f32.mrb[13].mxu1 }
 0x23b   : > { %v4906_v26 = vadd.f32 %v4905_v39, %v2195_v29  ;;  %v2197_v42 = vpop.f32.mrb[14].mxu1 }
 0x23c   : > { %v4915_v18 = vadd.f32 %v4914_v40, %v2197_v42  ;;  %v2199_v43 = vpop.f32.mrb[15].mxu1  ;;  %v4898_v5 = vadd.f32 %v4897_v59, %v6945_v14  ;;  %v3957_v14 = vld [vmem:[%s7286_s2] sm:$0x3] }
 0x23d   : > { %v4924_v50 = vadd.f32 %v4923_v27, %v2199_v43  ;;  %v4907_v44 = vadd.f32 %v4906_v26, %v6948_v17  ;;  %v3965_v17 = vsub.s32 1, %v3960_v52 }
 0x23e   : > { %v4916_v37 = vadd.f32 %v4915_v18, %v6954_v22  ;;  %v3962_v22 = vrot.slane %v3957_v14, %v3961_v35 }
 0x23f   : > { %v4925_v1 = vadd.f32 %v4924_v50, %v6966_v30  ;;  %v3966_v30 = vrot.slane %v3957_v14, %v3965_v17 }
 0x279   : > { %v2637_v16 = vpop.f32.mrb[16].mxu1 }
 0x27a   : > { %v4899_v45 = vadd.f32 %v4898_v5, %v2637_v16  ;;  %v2639_v25 = vpop.f32.mrb[17].mxu1 }
 0x27b   : > { %v4908_v9 = vadd.f32 %v4907_v44, %v2639_v25  ;;  %v2641_v46 = vpop.f32.mrb[18].mxu1 }
 0x27c   : > { %v4917_v47 = vadd.f32 %v4916_v37, %v2641_v46  ;;  %v2643_v0 = vpop.f32.mrb[19].mxu1 }
 0x27d   : > { %v4926_v49 = vadd.f32 %v4925_v1, %v2643_v0 }
 0x29a   : > { %v3944_v53 = vpop.f32.mrb[16].mxu0 }
 0x29b   : > { %v4900_v61 = vadd.f32 %v4899_v45, %v3944_v53  ;;  %v3946_v62 = vpop.f32.mrb[17].mxu0 }
 0x29c   : > { %v4909_v3 = vadd.f32 %v4908_v9, %v3946_v62  ;;  %v3948_v48 = vpop.f32.mrb[18].mxu0 }
 0x29d   : > { %v3969_v58 = vadd.f32 %v4900_v61, %v3962_v22  ;;  %v4918_v8 = vadd.f32 %v4917_v47, %v3948_v48  ;;  %v3950_v11 = vpop.f32.mrb[19].mxu0 }
 0x29e   : > { %v3970_v12 = vadd.f32 %v4909_v3, %v3966_v30  ;;  %v4927_v13 = vadd.f32 %v4926_v49, %v3950_v11 }
 0x29f   : > { %3973 = vst [vmem:[%s170_s19] sm:$0xff] %v3969_v58  ;;  %v3971_v63 = vadd.f32 %v4918_v8, %v3962_v22 }
 0x2a0   : > { %3974 = vst [vmem:[%s170_s19 + $0x8] sm:$0xff] %v3970_v12  ;;  %v3972_v51 = vadd.f32 %v4927_v13, %v3966_v30 }
 0x2a1   : > { %3975 = vst [vmem:[%s170_s19 + $0x10] sm:$0xff] %v3971_v63 }
 0x2a2   : > { %3976 = vst [vmem:[%s170_s19 + $0x18] sm:$0xff] %v3972_v51 }
 0x2a3 PF: > { %s13_s12 = sadd.s32 1, %s5662_s12  }
 0x2a4   : > { %p10_p4 = scmp.ge.s32.totalorder %s13_s12, 4  }
 0x2a6   :  { %12 = sbr.rel (!%p10_p4) target bundleno = 1 (0x1), region = 70 }

</bundles_post_ra>
